<compile_context>
chip_gen: v6e
topology: v6e:2x2x1
jax: 0.10.0
libtpu: 0.0.40
codegen_flags: <defaults>
</compile_context>

<pallas_src>
import functools

import numpy as np
import jax
import jax.numpy as jnp
from jax.experimental import pallas as pl
from jax.experimental.pallas import tpu as pltpu

_C = 128          # lane-dense channel width (conv1's 64 out-channels zero-padded)
_GROUPS = 8       # GroupNorm groups used throughout MNIST_CNN
_CIN_MIN = 8      # conv1 input channels padded up to a multiple of this (not 128)
_B_TILE = 8       # images processed per grid step
_EPS = 1e-5


def _ceil_to(x, m):
    return ((x + m - 1) // m) * m


# ---------------------------------------------------------------------------
# In-kernel helpers
# ---------------------------------------------------------------------------
def _conv3x3(src, w_ref, m_rows, wpad):
    """3x3 conv as 9 shifted MXU dots over a flat padded-image layout.

    `src` is a Ref or value laid out as (rows, Cin) with row = r*wpad + c over
    the zero-padded image.  Extended-output row m = i*wpad + j; columns
    j >= wpad-2 are garbage and are masked out later.
    """
    acc = None
    for kh in range(3):
        for kw in range(3):
            off = kh * wpad + kw
            lhs = src[off:off + m_rows, :].astype(jnp.bfloat16)
            part = jnp.dot(lhs, w_ref[kh, kw], preferred_element_type=jnp.float32)
            acc = part if acc is None else acc + part
    return acc


def _bias_relu_groupnorm(z, b_row, g_row, be_row, avg, maskf, count, eps=_EPS):
    """bias + ReLU + GroupNorm (PyTorch semantics) on a masked flat activation."""
    h = jnp.maximum(z + b_row, 0.0)
    hm = h * maskf                                            # zero garbage rows
    inv = 1.0 / float(count)
    s1 = jnp.sum(hm, axis=0, keepdims=True) * inv             # E[x]   per channel
    s2 = jnp.sum(hm * hm, axis=0, keepdims=True) * inv        # E[x^2] per channel
    gmean = jnp.dot(s1, avg, preferred_element_type=jnp.float32)
    gmsq = jnp.dot(s2, avg, preferred_element_type=jnp.float32)
    var = jnp.maximum(gmsq - gmean * gmean, 0.0)
    scale = jax.lax.rsqrt(var + eps) * g_row
    return ((h - gmean) * scale + be_row) * maskf


# ---------------------------------------------------------------------------
# Fused kernel: conv1..conv4 + GroupNorms + adaptive avg-pool for one batch tile
# ---------------------------------------------------------------------------
def _mnist_fused_kernel(x_ref, w1_ref, w2_ref, w3_ref, w4_ref,
                        b_ref, g_ref, be_ref, avg1_ref, avgc_ref,
                        s_ref, m1_ref, m2_ref,
                        o_ref, a1_ref, a2_ref, a3_ref,
                        *, img_h, img_w, out_h, out_w, b_tile):
    wp1, wp2 = img_w + 2, out_w + 2
    m1e, m2e = img_h * wp1, out_h * wp2            # extended-grid rows per image
    rows1, rows2 = a1_ref.shape[0], a2_ref.shape[0]
    cnt1, cnt2 = img_h * img_w, out_h * out_w

    # Zero the padding head/tail of the activation scratches once per tile; the
    # [wp+1, wp+1+m_e) interior is fully rewritten for every image.
    a1_ref[0:wp1 + 1, :] = jnp.zeros((wp1 + 1, _C), jnp.float32)
    a1_ref[wp1 + 1 + m1e:rows1, :] = jnp.zeros((rows1 - wp1 - 1 - m1e, _C),
                                               jnp.float32)
    for ref in (a2_ref, a3_ref):
        ref[0:wp2 + 1, :] = jnp.zeros((wp2 + 1, _C), jnp.float32)
        ref[wp2 + 1 + m2e:rows2, :] = jnp.zeros((rows2 - wp2 - 1 - m2e, _C),
                                                jnp.float32)

    # Small VMEM-resident per-call constants.
    mask1 = m1_ref[...]            # (m1e, 1) f32 {0,1}: valid columns, grid 1
    mask2 = m2_ref[...]            # (m2e, 1) f32 {0,1}: valid columns, grid 2
    s_mat = s_ref[...]             # (m2e, m1e) bf16: stride-2 subsample selection
    avg1 = avg1_ref[...]
    avgc = avgc_ref[...]
    b_all, g_all, be_all = b_ref[...], g_ref[...], be_ref[...]

    def one_image(n, carry):
        # ---- conv1 (3x3, stride 1) + ReLU + GroupNorm(8, 64) ----
        x_img = x_ref[n]                                     # (p1in, cin_pad) bf16
        acc = _conv3x3(x_img, w1_ref, m1e, wp1)
        y = _bias_relu_groupnorm(acc, b_all[0:1], g_all[0:1], be_all[0:1],
                                 avg1, mask1, cnt1)
        a1_ref[wp1 + 1:wp1 + 1 + m1e, :] = y

        # ---- conv2 (3x3, stride 2) + ReLU + GroupNorm(8, 128) ----
        # Evaluate on the stride-1 grid, then one selection-matrix matmul picks
        # the stride-2 phase and lands it directly in conv3's padded layout
        # (garbage columns correspond to all-zero rows of s_mat).
        acc = _conv3x3(a1_ref, w2_ref, m1e, wp1)
        z = jnp.dot(s_mat, acc.astype(jnp.bfloat16),
                    preferred_element_type=jnp.float32)       # (m2e, C)
        y = _bias_relu_groupnorm(z, b_all[1:2], g_all[1:2], be_all[1:2],
                                 avgc, mask2, cnt2)
        a2_ref[wp2 + 1:wp2 + 1 + m2e, :] = y

        # ---- conv3 (3x3, stride 1) + ReLU + GroupNorm(8, 128) ----
        acc = _conv3x3(a2_ref, w3_ref, m2e, wp2)
        y = _bias_relu_groupnorm(acc, b_all[2:3], g_all[2:3], be_all[2:3],
                                 avgc, mask2, cnt2)
        a3_ref[wp2 + 1:wp2 + 1 + m2e, :] = y

        # ---- conv4 (3x3, stride 1) + ReLU + GroupNorm(8, 128) + avg-pool ----
        acc = _conv3x3(a3_ref, w4_ref, m2e, wp2)
        y = _bias_relu_groupnorm(acc, b_all[3:4], g_all[3:4], be_all[3:4],
                                 avgc, mask2, cnt2)
        pooled = jnp.sum(y, axis=0, keepdims=True) * (1.0 / float(cnt2))
        o_ref[pl.ds(n, 1), :] = pooled
        return carry

    jax.lax.fori_loop(0, b_tile, one_image, 0)


# ---------------------------------------------------------------------------
# Parameter preparation (run once, outside the jitted forward)
# ---------------------------------------------------------------------------
def _group_matrix(c_real, groups, c_pad=_C):
    """(C_pad, C_pad) matrix mapping per-channel means to group means."""
    cg = c_real // groups
    gid = np.arange(c_real) // cg
    mat = (gid[:, None] == gid[None, :]).astype(np.float32) / float(cg)
    mat = np.pad(mat, ((0, c_pad - c_real), (0, c_pad - c_real)))
    return jnp.asarray(mat)


def prepare_params(p):
    cin = p["w1"].shape[2]
    cin_pad = max(_CIN_MIN, _ceil_to(cin, _CIN_MIN))

    def pad_w(w, kpad):
        _, _, ci, co = w.shape
        return jnp.pad(w, ((0, 0), (0, 0), (0, kpad - ci),
                           (0, _C - co))).astype(jnp.bfloat16)

    def pad_v(v):
        return jnp.pad(v, (0, _C - v.shape[0])).astype(jnp.float32)

    return {
        "w1": pad_w(p["w1"], cin_pad),
        "w2": pad_w(p["w2"], _C),
        "w3": pad_w(p["w3"], _C),
        "w4": pad_w(p["w4"], _C),
        "b_all": jnp.stack([pad_v(p["b1"]), pad_v(p["b2"]),
                            pad_v(p["b3"]), pad_v(p["b4"])]),
        "g_all": jnp.stack([pad_v(p["g0"]), pad_v(p["g1"]),
                            pad_v(p["g2"]), pad_v(p["g3"])]),
        "be_all": jnp.stack([pad_v(p["be0"]), pad_v(p["be1"]),
                             pad_v(p["be2"]), pad_v(p["be3"])]),
        "avg1": _group_matrix(64, _GROUPS),
        "avgc": _group_matrix(_C, _GROUPS),
    }


# ---------------------------------------------------------------------------
# Forward pass
# ---------------------------------------------------------------------------
def mnist_cnn_forward(x_nchw, prepared):
    """Fused Pallas forward pass.  Input NCHW float32, output (N, 128) float32."""
    n, cin, img_h, img_w = x_nchw.shape
    cin_pad = prepared["w1"].shape[2]
    assert cin <= cin_pad

    out_h = (img_h - 1) // 2 + 1
    out_w = (img_w - 1) // 2 + 1
    wp1, wp2 = img_w + 2, out_w + 2
    hp1 = img_h + 2
    m1e, m2e = img_h * wp1, out_h * wp2
    p1in = _ceil_to(hp1 * wp1 + 2, 8)           # padded-input rows/image (+tap slack)
    rows1 = _ceil_to(hp1 * wp1 + 2, 8)
    rows2 = _ceil_to((out_h + 2) * wp2 + 2, 8)
    n_pad = _ceil_to(max(n, 1), _B_TILE)

    # Input: NCHW -> zero-padded flat NHWC rows, real channel count, bf16.
    x = jnp.transpose(x_nchw, (0, 2, 3, 1)).astype(jnp.float32)
    x = jnp.pad(x, ((0, n_pad - n), (1, 1), (1, 1), (0, cin_pad - cin)))
    x = x.reshape(n_pad, hp1 * wp1, cin_pad)
    x = jnp.pad(x, ((0, 0), (0, p1in - hp1 * wp1), (0, 0))).astype(jnp.bfloat16)

    # Trace-time constants: stride-2 selection matrix and validity masks.
    s_np = np.zeros((m2e, m1e), np.float32)
    for i in range(out_h):
        for j in range(out_w):
            s_np[i * wp2 + j, (2 * i) * wp1 + (2 * j)] = 1.0
    s_mat = jnp.asarray(s_np, jnp.bfloat16)
    mask1 = jnp.asarray((np.arange(m1e) % wp1 < img_w).astype(np.float32)[:, None])
    mask2 = jnp.asarray((np.arange(m2e) % wp2 < out_w).astype(np.float32)[:, None])

    kernel = functools.partial(_mnist_fused_kernel, img_h=img_h, img_w=img_w,
                               out_h=out_h, out_w=out_w, b_tile=_B_TILE)

    out = pl.pallas_call(
        kernel,
        out_shape=jax.ShapeDtypeStruct((n_pad, _C), jnp.float32),
        grid=(n_pad // _B_TILE,),
        in_specs=[
            pl.BlockSpec((_B_TILE, p1in, cin_pad), lambda i: (i, 0, 0)),
            pl.BlockSpec((3, 3, cin_pad, _C), lambda i: (0, 0, 0, 0)),
            pl.BlockSpec((3, 3, _C, _C), lambda i: (0, 0, 0, 0)),
            pl.BlockSpec((3, 3, _C, _C), lambda i: (0, 0, 0, 0)),
            pl.BlockSpec((3, 3, _C, _C), lambda i: (0, 0, 0, 0)),
            pl.BlockSpec((4, _C), lambda i: (0, 0)),
            pl.BlockSpec((4, _C), lambda i: (0, 0)),
            pl.BlockSpec((4, _C), lambda i: (0, 0)),
            pl.BlockSpec((_C, _C), lambda i: (0, 0)),
            pl.BlockSpec((_C, _C), lambda i: (0, 0)),
            pl.BlockSpec((m2e, m1e), lambda i: (0, 0)),
            pl.BlockSpec((m1e, 1), lambda i: (0, 0)),
            pl.BlockSpec((m2e, 1), lambda i: (0, 0)),
        ],
        out_specs=pl.BlockSpec((_B_TILE, _C), lambda i: (i, 0)),
        scratch_shapes=[
            pltpu.VMEM((rows1, _C), jnp.float32),   # padded conv2 input (layer-1 out)
            pltpu.VMEM((rows2, _C), jnp.float32),   # padded conv3 input
            pltpu.VMEM((rows2, _C), jnp.float32),   # padded conv4 input
        ],
        compiler_params=pltpu.CompilerParams(
            dimension_semantics=("parallel",)),
    )(x, prepared["w1"], prepared["w2"], prepared["w3"], prepared["w4"],
      prepared["b_all"], prepared["g_all"], prepared["be_all"],
      prepared["avg1"], prepared["avgc"], s_mat, mask1, mask2)
    return out[:n]


# ---------------------------------------------------------------------------
# Deterministic synthetic parameters (shapes from MNIST_CNN.__init__)
# ---------------------------------------------------------------------------
def init_params(key, in_channels):
    ks = jax.random.split(key, 16)

    def cw(k, cin, cout):      # HWIO conv weight
        return (0.05 * jax.random.normal(k, (3, 3, cin, cout))).astype(jnp.float32)

    def vec(k, c, base):
        return (base + 0.1 * jax.random.normal(k, (c,))).astype(jnp.float32)

    return {
        "w1": cw(ks[0], in_channels, 64), "b1": vec(ks[1], 64, 0.0),
        "w2": cw(ks[2], 64, 128),         "b2": vec(ks[3], 128, 0.0),
        "w3": cw(ks[4], 128, 128),        "b3": vec(ks[5], 128, 0.0),
        "w4": cw(ks[6], 128, 128),        "b4": vec(ks[7], 128, 0.0),
        "g0": vec(ks[8], 64, 1.0),  "be0": vec(ks[9], 64, 0.0),
        "g1": vec(ks[10], 128, 1.0), "be1": vec(ks[11], 128, 0.0),
        "g2": vec(ks[12], 128, 1.0), "be2": vec(ks[13], 128, 0.0),
        "g3": vec(ks[14], 128, 1.0), "be3": vec(ks[15], 128, 0.0),
    }


# ---------------------------------------------------------------------------
# Pure-JAX reference (PyTorch semantics) used only for a correctness check
# ---------------------------------------------------------------------------
def reference_forward(x_nchw, p):
    def conv(x, w_hwio, b, stride):
        y = jax.lax.conv_general_dilated(
            x, w_hwio, (stride, stride), [(1, 1), (1, 1)],
            dimension_numbers=("NCHW", "HWIO", "NCHW"))
        return jax.nn.relu(y + b.reshape(1, -1, 1, 1))

    def gn(x, gamma, beta, G=8, eps=1e-5):
        N, C, H, W = x.shape
        xg = x.reshape(N, G, -1)
        mean = xg.mean(-1, keepdims=True)
        var = ((xg - mean) ** 2).mean(-1, keepdims=True)
        xn = ((xg - mean) / jnp.sqrt(var + eps)).reshape(N, C, H, W)
        return xn * gamma.reshape(1, -1, 1, 1) + beta.reshape(1, -1, 1, 1)

    x = gn(conv(x_nchw, p["w1"], p["b1"], 1), p["g0"], p["be0"])
    x = gn(conv(x, p["w2"], p["b2"], 2), p["g1"], p["be1"])
    x = gn(conv(x, p["w3"], p["b3"], 1), p["g2"], p["be2"])
    x = gn(conv(x, p["w4"], p["b4"], 1), p["g3"], p["be3"])
    return x.mean(axis=(2, 3))


if __name__ == "__main__":
    key = jax.random.PRNGKey(0)
    kx, kp, kx2, kp2 = jax.random.split(key, 4)
    fwd = jax.jit(mnist_cnn_forward)

    # Case 1: small 16x16 input, 4 channels (batch=2).
    x = jax.random.normal(kx, (2, 4, 16, 16), dtype=jnp.float32)
    params = init_params(kp, in_channels=4)
    prepared = prepare_params(params)           # once, outside the jitted forward
    out = jax.block_until_ready(fwd(x, prepared))
    assert out.shape == (2, 128) and out.dtype == jnp.float32
    ref = reference_forward(x, params)
    err = float(jnp.max(jnp.abs(out - ref)))
    assert err < 5e-2, f"16x16 mismatch vs reference: {err}"

    # Case 2: real MNIST shape (1x28x28) to exercise the stride-2 geometry.
    x2 = jax.random.normal(kx2, (2, 1, 28, 28), dtype=jnp.float32)
    params2 = init_params(kp2, in_channels=1)
    prepared2 = prepare_params(params2)
    out2 = jax.block_until_ready(fwd(x2, prepared2))
    ref2 = reference_forward(x2, params2)
    err2 = float(jnp.max(jnp.abs(out2 - ref2)))
    assert err2 < 5e-2, f"28x28 mismatch vs reference: {err2}"

    print("KERNEL_OK")
</pallas_src>

<mosaic_0001>
module attributes {stable_mosaic.version = 11 : i64} {
  func.func @_mnist_fused_kernel(%arg0: i32, %arg1: memref<8x328x8xbf16, #tpu.memory_space<vmem>>, %arg2: memref<3x3x8x128xbf16, #tpu.memory_space<vmem>>, %arg3: memref<3x3x128x128xbf16, #tpu.memory_space<vmem>>, %arg4: memref<3x3x128x128xbf16, #tpu.memory_space<vmem>>, %arg5: memref<3x3x128x128xbf16, #tpu.memory_space<vmem>>, %arg6: memref<4x128xf32, #tpu.memory_space<vmem>>, %arg7: memref<4x128xf32, #tpu.memory_space<vmem>>, %arg8: memref<4x128xf32, #tpu.memory_space<vmem>>, %arg9: memref<128x128xf32, #tpu.memory_space<vmem>>, %arg10: memref<128x128xf32, #tpu.memory_space<vmem>>, %arg11: memref<80x288xbf16, #tpu.memory_space<vmem>>, %arg12: memref<288x1xf32, #tpu.memory_space<vmem>>, %arg13: memref<80x1xf32, #tpu.memory_space<vmem>>, %arg14: memref<8x128xf32, #tpu.memory_space<vmem>>, %arg15: memref<328x128xf32, #tpu.memory_space<vmem>>, %arg16: memref<104x128xf32, #tpu.memory_space<vmem>>, %arg17: memref<104x128xf32, #tpu.memory_space<vmem>>) attributes {dimension_semantics = [#tpu.dimension_semantics<parallel>], iteration_bounds = array<i64: 1>, scalar_prefetch = 0 : i64, scratch_operands = 3 : i64, tpu.core_type = #tpu.core_type<tc>, window_params = [{transform_indices = @transform_0, window_bounds = array<i64: 8, 328, 8>}, {pipeline_mode = #tpu.pipeline_mode<synchronous>, transform_indices = @transform_1, window_bounds = array<i64: 3, 3, 8, 128>}, {pipeline_mode = #tpu.pipeline_mode<synchronous>, transform_indices = @transform_2, window_bounds = array<i64: 3, 3, 128, 128>}, {pipeline_mode = #tpu.pipeline_mode<synchronous>, transform_indices = @transform_3, window_bounds = array<i64: 3, 3, 128, 128>}, {pipeline_mode = #tpu.pipeline_mode<synchronous>, transform_indices = @transform_4, window_bounds = array<i64: 3, 3, 128, 128>}, {pipeline_mode = #tpu.pipeline_mode<synchronous>, transform_indices = @transform_5, window_bounds = array<i64: 4, 128>}, {pipeline_mode = #tpu.pipeline_mode<synchronous>, transform_indices = @transform_6, window_bounds = array<i64: 4, 128>}, {pipeline_mode = #tpu.pipeline_mode<synchronous>, transform_indices = @transform_7, window_bounds = array<i64: 4, 128>}, {pipeline_mode = #tpu.pipeline_mode<synchronous>, transform_indices = @transform_8, window_bounds = array<i64: 128, 128>}, {pipeline_mode = #tpu.pipeline_mode<synchronous>, transform_indices = @transform_9, window_bounds = array<i64: 128, 128>}, {pipeline_mode = #tpu.pipeline_mode<synchronous>, transform_indices = @transform_10, window_bounds = array<i64: 80, 288>}, {pipeline_mode = #tpu.pipeline_mode<synchronous>, transform_indices = @transform_11, window_bounds = array<i64: 288, 1>}, {pipeline_mode = #tpu.pipeline_mode<synchronous>, transform_indices = @transform_12, window_bounds = array<i64: 80, 1>}, {transform_indices = @transform_13, window_bounds = array<i64: 8, 128>}]} {
    %cst = arith.constant 0.000000e+00 : f32
    %0 = vector.broadcast %cst : f32 to vector<19x128xf32>
    %c0 = arith.constant 0 : index
    %c0_0 = arith.constant 0 : index
    %1 = vector.load %arg15[%c0, %c0_0] : memref<328x128xf32, #tpu.memory_space<vmem>>, vector<19x128xf32>
    tpu.vector_store %arg15[%c0, %c0_0], %0 {strides = array<i32>} : memref<328x128xf32, #tpu.memory_space<vmem>>, vector<19x128xf32>,
    %cst_1 = arith.constant 0.000000e+00 : f32
    %2 = vector.broadcast %cst_1 : f32 to vector<21x128xf32>
    %c307 = arith.constant 307 : index
    %c0_2 = arith.constant 0 : index
    %3 = vector.load %arg15[%c307, %c0_2] : memref<328x128xf32, #tpu.memory_space<vmem>>, vector<21x128xf32>
    tpu.vector_store %arg15[%c307, %c0_2], %2 {strides = array<i32>} : memref<328x128xf32, #tpu.memory_space<vmem>>, vector<21x128xf32>,
    %cst_3 = arith.constant 0.000000e+00 : f32
    %4 = vector.broadcast %cst_3 : f32 to vector<11x128xf32>
    %c0_4 = arith.constant 0 : index
    %c0_5 = arith.constant 0 : index
    %5 = vector.load %arg16[%c0_4, %c0_5] : memref<104x128xf32, #tpu.memory_space<vmem>>, vector<11x128xf32>
    tpu.vector_store %arg16[%c0_4, %c0_5], %4 {strides = array<i32>} : memref<104x128xf32, #tpu.memory_space<vmem>>, vector<11x128xf32>,
    %cst_6 = arith.constant 0.000000e+00 : f32
    %6 = vector.broadcast %cst_6 : f32 to vector<13x128xf32>
    %c91 = arith.constant 91 : index
    %c0_7 = arith.constant 0 : index
    %7 = vector.load %arg16[%c91, %c0_7] : memref<104x128xf32, #tpu.memory_space<vmem>>, vector<13x128xf32>
    tpu.vector_store %arg16[%c91, %c0_7], %6 {strides = array<i32>} : memref<104x128xf32, #tpu.memory_space<vmem>>, vector<13x128xf32>,
    %cst_8 = arith.constant 0.000000e+00 : f32
    %8 = vector.broadcast %cst_8 : f32 to vector<11x128xf32>
    %c0_9 = arith.constant 0 : index
    %c0_10 = arith.constant 0 : index
    %9 = vector.load %arg17[%c0_9, %c0_10] : memref<104x128xf32, #tpu.memory_space<vmem>>, vector<11x128xf32>
    tpu.vector_store %arg17[%c0_9, %c0_10], %8 {strides = array<i32>} : memref<104x128xf32, #tpu.memory_space<vmem>>, vector<11x128xf32>,
    %cst_11 = arith.constant 0.000000e+00 : f32
    %10 = vector.broadcast %cst_11 : f32 to vector<13x128xf32>
    %c91_12 = arith.constant 91 : index
    %c0_13 = arith.constant 0 : index
    %11 = vector.load %arg17[%c91_12, %c0_13] : memref<104x128xf32, #tpu.memory_space<vmem>>, vector<13x128xf32>
    tpu.vector_store %arg17[%c91_12, %c0_13], %10 {strides = array<i32>} : memref<104x128xf32, #tpu.memory_space<vmem>>, vector<13x128xf32>,
    %c0_14 = arith.constant 0 : index
    %c0_15 = arith.constant 0 : index
    %12 = vector.load %arg12[%c0_14, %c0_15] : memref<288x1xf32, #tpu.memory_space<vmem>>, vector<288x1xf32>
    %c0_16 = arith.constant 0 : index
    %c0_17 = arith.constant 0 : index
    %13 = vector.load %arg13[%c0_16, %c0_17] : memref<80x1xf32, #tpu.memory_space<vmem>>, vector<80x1xf32>
    %c0_18 = arith.constant 0 : index
    %c0_19 = arith.constant 0 : index
    %14 = vector.load %arg11[%c0_18, %c0_19] : memref<80x288xbf16, #tpu.memory_space<vmem>>, vector<80x288xbf16>
    %c0_20 = arith.constant 0 : index
    %c0_21 = arith.constant 0 : index
    %15 = vector.load %arg9[%c0_20, %c0_21] : memref<128x128xf32, #tpu.memory_space<vmem>>, vector<128x128xf32>
    %c0_22 = arith.constant 0 : index
    %c0_23 = arith.constant 0 : index
    %16 = vector.load %arg10[%c0_22, %c0_23] : memref<128x128xf32, #tpu.memory_space<vmem>>, vector<128x128xf32>
    %c0_24 = arith.constant 0 : index
    %c0_25 = arith.constant 0 : index
    %17 = vector.load %arg6[%c0_24, %c0_25] : memref<4x128xf32, #tpu.memory_space<vmem>>, vector<4x128xf32>
    %c0_26 = arith.constant 0 : index
    %c0_27 = arith.constant 0 : index
    %18 = vector.load %arg7[%c0_26, %c0_27] : memref<4x128xf32, #tpu.memory_space<vmem>>, vector<4x128xf32>
    %c0_28 = arith.constant 0 : index
    %c0_29 = arith.constant 0 : index
    %19 = vector.load %arg8[%c0_28, %c0_29] : memref<4x128xf32, #tpu.memory_space<vmem>>, vector<4x128xf32>
    %c0_i32 = arith.constant 0 : i32
    %c8_i32 = arith.constant 8 : i32
    %20 = arith.addi %c0_i32, %c8_i32 : i32
    %c1_i32 = arith.constant 1 : i32
    scf.for %arg18 = %c0_i32 to %20 step %c1_i32  : i32 {
      %21 = arith.index_cast %arg18 : i32 to index
      %c0_31 = arith.constant 0 : index
      %c0_32 = arith.constant 0 : index
      %22 = vector.load %arg1[%21, %c0_31, %c0_32] : memref<8x328x8xbf16, #tpu.memory_space<vmem>>, vector<1x328x8xbf16>
      %23 = vector.shape_cast %22 : vector<1x328x8xbf16> to vector<328x8xbf16>
      %24 = vector.extract_strided_slice %23 {offsets = [0, 0], sizes = [288, 8], strides = [1, 1]} : vector<328x8xbf16> to vector<288x8xbf16>
      %c0_33 = arith.constant 0 : index
      %c0_34 = arith.constant 0 : index
      %c0_35 = arith.constant 0 : index
      %c0_36 = arith.constant 0 : index
      %25 = vector.load %arg2[%c0_33, %c0_34, %c0_35, %c0_36] : memref<3x3x8x128xbf16, #tpu.memory_space<vmem>>, vector<1x1x8x128xbf16>
      %26 = vector.shape_cast %25 : vector<1x1x8x128xbf16> to vector<8x128xbf16>
      %cst_37 = arith.constant dense<0.000000e+00> : vector<288x128xf32>
      %27 = tpu.matmul %24, %26, %cst_37 {dimension_numbers = #tpu.dot_dimension_numbers<[1], [0], [0], [1], [0, 0, 1, 1], [], []>} : vector<288x8xbf16>, vector<8x128xbf16>, vector<288x128xf32> -> vector<288x128xf32>
      %28 = vector.extract_strided_slice %23 {offsets = [1, 0], sizes = [288, 8], strides = [1, 1]} : vector<328x8xbf16> to vector<288x8xbf16>
      %c0_38 = arith.constant 0 : index
      %c1 = arith.constant 1 : index
      %c0_39 = arith.constant 0 : index
      %c0_40 = arith.constant 0 : index
      %29 = vector.load %arg2[%c0_38, %c1, %c0_39, %c0_40] : memref<3x3x8x128xbf16, #tpu.memory_space<vmem>>, vector<1x1x8x128xbf16>
      %30 = vector.shape_cast %29 : vector<1x1x8x128xbf16> to vector<8x128xbf16>
      %cst_41 = arith.constant dense<0.000000e+00> : vector<288x128xf32>
      %31 = tpu.matmul %28, %30, %cst_41 {dimension_numbers = #tpu.dot_dimension_numbers<[1], [0], [0], [1], [0, 0, 1, 1], [], []>} : vector<288x8xbf16>, vector<8x128xbf16>, vector<288x128xf32> -> vector<288x128xf32>
      %32 = arith.addf %27, %31 : vector<288x128xf32>
      %33 = vector.extract_strided_slice %23 {offsets = [2, 0], sizes = [288, 8], strides = [1, 1]} : vector<328x8xbf16> to vector<288x8xbf16>
      %c0_42 = arith.constant 0 : index
      %c2 = arith.constant 2 : index
      %c0_43 = arith.constant 0 : index
      %c0_44 = arith.constant 0 : index
      %34 = vector.load %arg2[%c0_42, %c2, %c0_43, %c0_44] : memref<3x3x8x128xbf16, #tpu.memory_space<vmem>>, vector<1x1x8x128xbf16>
      %35 = vector.shape_cast %34 : vector<1x1x8x128xbf16> to vector<8x128xbf16>
      %cst_45 = arith.constant dense<0.000000e+00> : vector<288x128xf32>
      %36 = tpu.matmul %33, %35, %cst_45 {dimension_numbers = #tpu.dot_dimension_numbers<[1], [0], [0], [1], [0, 0, 1, 1], [], []>} : vector<288x8xbf16>, vector<8x128xbf16>, vector<288x128xf32> -> vector<288x128xf32>
      %37 = arith.addf %32, %36 : vector<288x128xf32>
      %38 = vector.extract_strided_slice %23 {offsets = [18, 0], sizes = [288, 8], strides = [1, 1]} : vector<328x8xbf16> to vector<288x8xbf16>
      %c1_46 = arith.constant 1 : index
      %c0_47 = arith.constant 0 : index
      %c0_48 = arith.constant 0 : index
      %c0_49 = arith.constant 0 : index
      %39 = vector.load %arg2[%c1_46, %c0_47, %c0_48, %c0_49] : memref<3x3x8x128xbf16, #tpu.memory_space<vmem>>, vector<1x1x8x128xbf16>
      %40 = vector.shape_cast %39 : vector<1x1x8x128xbf16> to vector<8x128xbf16>
      %cst_50 = arith.constant dense<0.000000e+00> : vector<288x128xf32>
      %41 = tpu.matmul %38, %40, %cst_50 {dimension_numbers = #tpu.dot_dimension_numbers<[1], [0], [0], [1], [0, 0, 1, 1], [], []>} : vector<288x8xbf16>, vector<8x128xbf16>, vector<288x128xf32> -> vector<288x128xf32>
      %42 = arith.addf %37, %41 : vector<288x128xf32>
      %43 = vector.extract_strided_slice %23 {offsets = [19, 0], sizes = [288, 8], strides = [1, 1]} : vector<328x8xbf16> to vector<288x8xbf16>
      %c1_51 = arith.constant 1 : index
      %c1_52 = arith.constant 1 : index
      %c0_53 = arith.constant 0 : index
      %c0_54 = arith.constant 0 : index
      %44 = vector.load %arg2[%c1_51, %c1_52, %c0_53, %c0_54] : memref<3x3x8x128xbf16, #tpu.memory_space<vmem>>, vector<1x1x8x128xbf16>
      %45 = vector.shape_cast %44 : vector<1x1x8x128xbf16> to vector<8x128xbf16>
      %cst_55 = arith.constant dense<0.000000e+00> : vector<288x128xf32>
      %46 = tpu.matmul %43, %45, %cst_55 {dimension_numbers = #tpu.dot_dimension_numbers<[1], [0], [0], [1], [0, 0, 1, 1], [], []>} : vector<288x8xbf16>, vector<8x128xbf16>, vector<288x128xf32> -> vector<288x128xf32>
      %47 = arith.addf %42, %46 : vector<288x128xf32>
      %48 = vector.extract_strided_slice %23 {offsets = [20, 0], sizes = [288, 8], strides = [1, 1]} : vector<328x8xbf16> to vector<288x8xbf16>
      %c1_56 = arith.constant 1 : index
      %c2_57 = arith.constant 2 : index
      %c0_58 = arith.constant 0 : index
      %c0_59 = arith.constant 0 : index
      %49 = vector.load %arg2[%c1_56, %c2_57, %c0_58, %c0_59] : memref<3x3x8x128xbf16, #tpu.memory_space<vmem>>, vector<1x1x8x128xbf16>
      %50 = vector.shape_cast %49 : vector<1x1x8x128xbf16> to vector<8x128xbf16>
      %cst_60 = arith.constant dense<0.000000e+00> : vector<288x128xf32>
      %51 = tpu.matmul %48, %50, %cst_60 {dimension_numbers = #tpu.dot_dimension_numbers<[1], [0], [0], [1], [0, 0, 1, 1], [], []>} : vector<288x8xbf16>, vector<8x128xbf16>, vector<288x128xf32> -> vector<288x128xf32>
      %52 = arith.addf %47, %51 : vector<288x128xf32>
      %53 = vector.extract_strided_slice %23 {offsets = [36, 0], sizes = [288, 8], strides = [1, 1]} : vector<328x8xbf16> to vector<288x8xbf16>
      %c2_61 = arith.constant 2 : index
      %c0_62 = arith.constant 0 : index
      %c0_63 = arith.constant 0 : index
      %c0_64 = arith.constant 0 : index
      %54 = vector.load %arg2[%c2_61, %c0_62, %c0_63, %c0_64] : memref<3x3x8x128xbf16, #tpu.memory_space<vmem>>, vector<1x1x8x128xbf16>
      %55 = vector.shape_cast %54 : vector<1x1x8x128xbf16> to vector<8x128xbf16>
      %cst_65 = arith.constant dense<0.000000e+00> : vector<288x128xf32>
      %56 = tpu.matmul %53, %55, %cst_65 {dimension_numbers = #tpu.dot_dimension_numbers<[1], [0], [0], [1], [0, 0, 1, 1], [], []>} : vector<288x8xbf16>, vector<8x128xbf16>, vector<288x128xf32> -> vector<288x128xf32>
      %57 = arith.addf %52, %56 : vector<288x128xf32>
      %58 = vector.extract_strided_slice %23 {offsets = [37, 0], sizes = [288, 8], strides = [1, 1]} : vector<328x8xbf16> to vector<288x8xbf16>
      %c2_66 = arith.constant 2 : index
      %c1_67 = arith.constant 1 : index
      %c0_68 = arith.constant 0 : index
      %c0_69 = arith.constant 0 : index
      %59 = vector.load %arg2[%c2_66, %c1_67, %c0_68, %c0_69] : memref<3x3x8x128xbf16, #tpu.memory_space<vmem>>, vector<1x1x8x128xbf16>
      %60 = vector.shape_cast %59 : vector<1x1x8x128xbf16> to vector<8x128xbf16>
      %cst_70 = arith.constant dense<0.000000e+00> : vector<288x128xf32>
      %61 = tpu.matmul %58, %60, %cst_70 {dimension_numbers = #tpu.dot_dimension_numbers<[1], [0], [0], [1], [0, 0, 1, 1], [], []>} : vector<288x8xbf16>, vector<8x128xbf16>, vector<288x128xf32> -> vector<288x128xf32>
      %62 = arith.addf %57, %61 : vector<288x128xf32>
      %63 = vector.extract_strided_slice %23 {offsets = [38, 0], sizes = [288, 8], strides = [1, 1]} : vector<328x8xbf16> to vector<288x8xbf16>
      %c2_71 = arith.constant 2 : index
      %c2_72 = arith.constant 2 : index
      %c0_73 = arith.constant 0 : index
      %c0_74 = arith.constant 0 : index
      %64 = vector.load %arg2[%c2_71, %c2_72, %c0_73, %c0_74] : memref<3x3x8x128xbf16, #tpu.memory_space<vmem>>, vector<1x1x8x128xbf16>
      %65 = vector.shape_cast %64 : vector<1x1x8x128xbf16> to vector<8x128xbf16>
      %cst_75 = arith.constant dense<0.000000e+00> : vector<288x128xf32>
      %66 = tpu.matmul %63, %65, %cst_75 {dimension_numbers = #tpu.dot_dimension_numbers<[1], [0], [0], [1], [0, 0, 1, 1], [], []>} : vector<288x8xbf16>, vector<8x128xbf16>, vector<288x128xf32> -> vector<288x128xf32>
      %67 = arith.addf %62, %66 : vector<288x128xf32>
      %68 = vector.extract_strided_slice %17 {offsets = [0, 0], sizes = [1, 128], strides = [1, 1]} : vector<4x128xf32> to vector<1x128xf32>
      %69 = vector.extract_strided_slice %18 {offsets = [0, 0], sizes = [1, 128], strides = [1, 1]} : vector<4x128xf32> to vector<1x128xf32>
      %70 = vector.extract_strided_slice %19 {offsets = [0, 0], sizes = [1, 128], strides = [1, 1]} : vector<4x128xf32> to vector<1x128xf32>
      %71 = vector.broadcast %68 : vector<1x128xf32> to vector<288x128xf32>
      %72 = arith.addf %67, %71 : vector<288x128xf32>
      %cst_76 = arith.constant 0.000000e+00 : f32
      %73 = vector.broadcast %cst_76 : f32 to vector<288x128xf32>
      %74 = arith.maximumf %72, %73 : vector<288x128xf32>
      %75 = vector.broadcast %12 : vector<288x1xf32> to vector<288x128xf32>
      %76 = arith.mulf %74, %75 : vector<288x128xf32>
      %cst_77 = arith.constant dense<0.000000e+00> : vector<128xf32>
      %77 = vector.multi_reduction <add>, %76, %cst_77 [0] : vector<288x128xf32> to vector<128xf32>
      %78 = vector.shape_cast %77 : vector<128xf32> to vector<1x128xf32>
      %cst_78 = arith.constant 3.906250e-03 : f32
      %79 = vector.broadcast %cst_78 : f32 to vector<1x128xf32>
      %80 = arith.mulf %78, %79 : vector<1x128xf32>
      %81 = arith.mulf %76, %76 : vector<288x128xf32>
      %cst_79 = arith.constant dense<0.000000e+00> : vector<128xf32>
      %82 = vector.multi_reduction <add>, %81, %cst_79 [0] : vector<288x128xf32> to vector<128xf32>
      %83 = vector.shape_cast %82 : vector<128xf32> to vector<1x128xf32>
      %cst_80 = arith.constant 3.906250e-03 : f32
      %84 = vector.broadcast %cst_80 : f32 to vector<1x128xf32>
      %85 = arith.mulf %83, %84 : vector<1x128xf32>
      %cst_81 = arith.constant dense<0.000000e+00> : vector<1x128xf32>
      %86 = tpu.matmul %80, %15, %cst_81 {dimension_numbers = #tpu.dot_dimension_numbers<[1], [0], [0], [1], [0, 0, 1, 1], [], []>} : vector<1x128xf32>, vector<128x128xf32>, vector<1x128xf32> -> vector<1x128xf32>
      %cst_82 = arith.constant dense<0.000000e+00> : vector<1x128xf32>
      %87 = tpu.matmul %85, %15, %cst_82 {dimension_numbers = #tpu.dot_dimension_numbers<[1], [0], [0], [1], [0, 0, 1, 1], [], []>} : vector<1x128xf32>, vector<128x128xf32>, vector<1x128xf32> -> vector<1x128xf32>
      %88 = arith.mulf %86, %86 : vector<1x128xf32>
      %89 = arith.subf %87, %88 : vector<1x128xf32>
      %cst_83 = arith.constant 0.000000e+00 : f32
      %90 = vector.broadcast %cst_83 : f32 to vector<1x128xf32>
      %91 = arith.maximumf %89, %90 : vector<1x128xf32>
      %cst_84 = arith.constant 9.99999974E-6 : f32
      %92 = vector.broadcast %cst_84 : f32 to vector<1x128xf32>
      %93 = arith.addf %91, %92 : vector<1x128xf32>
      %94 = math.rsqrt %93 : vector<1x128xf32>
      %95 = arith.mulf %94, %69 : vector<1x128xf32>
      %96 = vector.broadcast %86 : vector<1x128xf32> to vector<288x128xf32>
      %97 = arith.subf %74, %96 : vector<288x128xf32>
      %98 = vector.broadcast %95 : vector<1x128xf32> to vector<288x128xf32>
      %99 = arith.mulf %97, %98 : vector<288x128xf32>
      %100 = vector.broadcast %70 : vector<1x128xf32> to vector<288x128xf32>
      %101 = arith.addf %99, %100 : vector<288x128xf32>
      %102 = vector.broadcast %12 : vector<288x1xf32> to vector<288x128xf32>
      %103 = arith.mulf %101, %102 : vector<288x128xf32>
      %c19 = arith.constant 19 : index
      %c0_85 = arith.constant 0 : index
      %104 = vector.load %arg15[%c19, %c0_85] : memref<328x128xf32, #tpu.memory_space<vmem>>, vector<288x128xf32>
      tpu.vector_store %arg15[%c19, %c0_85], %103 {strides = array<i32>} : memref<328x128xf32, #tpu.memory_space<vmem>>, vector<288x128xf32>,
      %c0_86 = arith.constant 0 : index
      %c0_87 = arith.constant 0 : index
      %105 = vector.load %arg15[%c0_86, %c0_87] : memref<328x128xf32, #tpu.memory_space<vmem>>, vector<288x128xf32>
      %106 = arith.truncf %105 : vector<288x128xf32> to vector<288x128xbf16>
      %c0_88 = arith.constant 0 : index
      %c0_89 = arith.constant 0 : index
      %c0_90 = arith.constant 0 : index
      %c0_91 = arith.constant 0 : index
      %107 = vector.load %arg3[%c0_88, %c0_89, %c0_90, %c0_91] : memref<3x3x128x128xbf16, #tpu.memory_space<vmem>>, vector<1x1x128x128xbf16>
      %108 = vector.shape_cast %107 : vector<1x1x128x128xbf16> to vector<128x128xbf16>
      %cst_92 = arith.constant dense<0.000000e+00> : vector<288x128xf32>
      %109 = tpu.matmul %106, %108, %cst_92 {dimension_numbers = #tpu.dot_dimension_numbers<[1], [0], [0], [1], [0, 0, 1, 1], [], []>} : vector<288x128xbf16>, vector<128x128xbf16>, vector<288x128xf32> -> vector<288x128xf32>
      %c1_93 = arith.constant 1 : index
      %c0_94 = arith.constant 0 : index
      %110 = vector.load %arg15[%c1_93, %c0_94] : memref<328x128xf32, #tpu.memory_space<vmem>>, vector<288x128xf32>
      %111 = arith.truncf %110 : vector<288x128xf32> to vector<288x128xbf16>
      %c0_95 = arith.constant 0 : index
      %c1_96 = arith.constant 1 : index
      %c0_97 = arith.constant 0 : index
      %c0_98 = arith.constant 0 : index
      %112 = vector.load %arg3[%c0_95, %c1_96, %c0_97, %c0_98] : memref<3x3x128x128xbf16, #tpu.memory_space<vmem>>, vector<1x1x128x128xbf16>
      %113 = vector.shape_cast %112 : vector<1x1x128x128xbf16> to vector<128x128xbf16>
      %cst_99 = arith.constant dense<0.000000e+00> : vector<288x128xf32>
      %114 = tpu.matmul %111, %113, %cst_99 {dimension_numbers = #tpu.dot_dimension_numbers<[1], [0], [0], [1], [0, 0, 1, 1], [], []>} : vector<288x128xbf16>, vector<128x128xbf16>, vector<288x128xf32> -> vector<288x128xf32>
      %115 = arith.addf %109, %114 : vector<288x128xf32>
      %c2_100 = arith.constant 2 : index
      %c0_101 = arith.constant 0 : index
      %116 = vector.load %arg15[%c2_100, %c0_101] : memref<328x128xf32, #tpu.memory_space<vmem>>, vector<288x128xf32>
      %117 = arith.truncf %116 : vector<288x128xf32> to vector<288x128xbf16>
      %c0_102 = arith.constant 0 : index
      %c2_103 = arith.constant 2 : index
      %c0_104 = arith.constant 0 : index
      %c0_105 = arith.constant 0 : index
      %118 = vector.load %arg3[%c0_102, %c2_103, %c0_104, %c0_105] : memref<3x3x128x128xbf16, #tpu.memory_space<vmem>>, vector<1x1x128x128xbf16>
      %119 = vector.shape_cast %118 : vector<1x1x128x128xbf16> to vector<128x128xbf16>
      %cst_106 = arith.constant dense<0.000000e+00> : vector<288x128xf32>
      %120 = tpu.matmul %117, %119, %cst_106 {dimension_numbers = #tpu.dot_dimension_numbers<[1], [0], [0], [1], [0, 0, 1, 1], [], []>} : vector<288x128xbf16>, vector<128x128xbf16>, vector<288x128xf32> -> vector<288x128xf32>
      %121 = arith.addf %115, %120 : vector<288x128xf32>
      %c18 = arith.constant 18 : index
      %c0_107 = arith.constant 0 : index
      %122 = vector.load %arg15[%c18, %c0_107] : memref<328x128xf32, #tpu.memory_space<vmem>>, vector<288x128xf32>
      %123 = arith.truncf %122 : vector<288x128xf32> to vector<288x128xbf16>
      %c1_108 = arith.constant 1 : index
      %c0_109 = arith.constant 0 : index
      %c0_110 = arith.constant 0 : index
      %c0_111 = arith.constant 0 : index
      %124 = vector.load %arg3[%c1_108, %c0_109, %c0_110, %c0_111] : memref<3x3x128x128xbf16, #tpu.memory_space<vmem>>, vector<1x1x128x128xbf16>
      %125 = vector.shape_cast %124 : vector<1x1x128x128xbf16> to vector<128x128xbf16>
      %cst_112 = arith.constant dense<0.000000e+00> : vector<288x128xf32>
      %126 = tpu.matmul %123, %125, %cst_112 {dimension_numbers = #tpu.dot_dimension_numbers<[1], [0], [0], [1], [0, 0, 1, 1], [], []>} : vector<288x128xbf16>, vector<128x128xbf16>, vector<288x128xf32> -> vector<288x128xf32>
      %127 = arith.addf %121, %126 : vector<288x128xf32>
      %c19_113 = arith.constant 19 : index
      %c0_114 = arith.constant 0 : index
      %128 = vector.load %arg15[%c19_113, %c0_114] : memref<328x128xf32, #tpu.memory_space<vmem>>, vector<288x128xf32>
      %129 = arith.truncf %128 : vector<288x128xf32> to vector<288x128xbf16>
      %c1_115 = arith.constant 1 : index
      %c1_116 = arith.constant 1 : index
      %c0_117 = arith.constant 0 : index
      %c0_118 = arith.constant 0 : index
      %130 = vector.load %arg3[%c1_115, %c1_116, %c0_117, %c0_118] : memref<3x3x128x128xbf16, #tpu.memory_space<vmem>>, vector<1x1x128x128xbf16>
      %131 = vector.shape_cast %130 : vector<1x1x128x128xbf16> to vector<128x128xbf16>
      %cst_119 = arith.constant dense<0.000000e+00> : vector<288x128xf32>
      %132 = tpu.matmul %129, %131, %cst_119 {dimension_numbers = #tpu.dot_dimension_numbers<[1], [0], [0], [1], [0, 0, 1, 1], [], []>} : vector<288x128xbf16>, vector<128x128xbf16>, vector<288x128xf32> -> vector<288x128xf32>
      %133 = arith.addf %127, %132 : vector<288x128xf32>
      %c20 = arith.constant 20 : index
      %c0_120 = arith.constant 0 : index
      %134 = vector.load %arg15[%c20, %c0_120] : memref<328x128xf32, #tpu.memory_space<vmem>>, vector<288x128xf32>
      %135 = arith.truncf %134 : vector<288x128xf32> to vector<288x128xbf16>
      %c1_121 = arith.constant 1 : index
      %c2_122 = arith.constant 2 : index
      %c0_123 = arith.constant 0 : index
      %c0_124 = arith.constant 0 : index
      %136 = vector.load %arg3[%c1_121, %c2_122, %c0_123, %c0_124] : memref<3x3x128x128xbf16, #tpu.memory_space<vmem>>, vector<1x1x128x128xbf16>
      %137 = vector.shape_cast %136 : vector<1x1x128x128xbf16> to vector<128x128xbf16>
      %cst_125 = arith.constant dense<0.000000e+00> : vector<288x128xf32>
      %138 = tpu.matmul %135, %137, %cst_125 {dimension_numbers = #tpu.dot_dimension_numbers<[1], [0], [0], [1], [0, 0, 1, 1], [], []>} : vector<288x128xbf16>, vector<128x128xbf16>, vector<288x128xf32> -> vector<288x128xf32>
      %139 = arith.addf %133, %138 : vector<288x128xf32>
      %c36 = arith.constant 36 : index
      %c0_126 = arith.constant 0 : index
      %140 = vector.load %arg15[%c36, %c0_126] : memref<328x128xf32, #tpu.memory_space<vmem>>, vector<288x128xf32>
      %141 = arith.truncf %140 : vector<288x128xf32> to vector<288x128xbf16>
      %c2_127 = arith.constant 2 : index
      %c0_128 = arith.constant 0 : index
      %c0_129 = arith.constant 0 : index
      %c0_130 = arith.constant 0 : index
      %142 = vector.load %arg3[%c2_127, %c0_128, %c0_129, %c0_130] : memref<3x3x128x128xbf16, #tpu.memory_space<vmem>>, vector<1x1x128x128xbf16>
      %143 = vector.shape_cast %142 : vector<1x1x128x128xbf16> to vector<128x128xbf16>
      %cst_131 = arith.constant dense<0.000000e+00> : vector<288x128xf32>
      %144 = tpu.matmul %141, %143, %cst_131 {dimension_numbers = #tpu.dot_dimension_numbers<[1], [0], [0], [1], [0, 0, 1, 1], [], []>} : vector<288x128xbf16>, vector<128x128xbf16>, vector<288x128xf32> -> vector<288x128xf32>
      %145 = arith.addf %139, %144 : vector<288x128xf32>
      %c37 = arith.constant 37 : index
      %c0_132 = arith.constant 0 : index
      %146 = vector.load %arg15[%c37, %c0_132] : memref<328x128xf32, #tpu.memory_space<vmem>>, vector<288x128xf32>
      %147 = arith.truncf %146 : vector<288x128xf32> to vector<288x128xbf16>
      %c2_133 = arith.constant 2 : index
      %c1_134 = arith.constant 1 : index
      %c0_135 = arith.constant 0 : index
      %c0_136 = arith.constant 0 : index
      %148 = vector.load %arg3[%c2_133, %c1_134, %c0_135, %c0_136] : memref<3x3x128x128xbf16, #tpu.memory_space<vmem>>, vector<1x1x128x128xbf16>
      %149 = vector.shape_cast %148 : vector<1x1x128x128xbf16> to vector<128x128xbf16>
      %cst_137 = arith.constant dense<0.000000e+00> : vector<288x128xf32>
      %150 = tpu.matmul %147, %149, %cst_137 {dimension_numbers = #tpu.dot_dimension_numbers<[1], [0], [0], [1], [0, 0, 1, 1], [], []>} : vector<288x128xbf16>, vector<128x128xbf16>, vector<288x128xf32> -> vector<288x128xf32>
      %151 = arith.addf %145, %150 : vector<288x128xf32>
      %c38 = arith.constant 38 : index
      %c0_138 = arith.constant 0 : index
      %152 = vector.load %arg15[%c38, %c0_138] : memref<328x128xf32, #tpu.memory_space<vmem>>, vector<288x128xf32>
      %153 = arith.truncf %152 : vector<288x128xf32> to vector<288x128xbf16>
      %c2_139 = arith.constant 2 : index
      %c2_140 = arith.constant 2 : index
      %c0_141 = arith.constant 0 : index
      %c0_142 = arith.constant 0 : index
      %154 = vector.load %arg3[%c2_139, %c2_140, %c0_141, %c0_142] : memref<3x3x128x128xbf16, #tpu.memory_space<vmem>>, vector<1x1x128x128xbf16>
      %155 = vector.shape_cast %154 : vector<1x1x128x128xbf16> to vector<128x128xbf16>
      %cst_143 = arith.constant dense<0.000000e+00> : vector<288x128xf32>
      %156 = tpu.matmul %153, %155, %cst_143 {dimension_numbers = #tpu.dot_dimension_numbers<[1], [0], [0], [1], [0, 0, 1, 1], [], []>} : vector<288x128xbf16>, vector<128x128xbf16>, vector<288x128xf32> -> vector<288x128xf32>
      %157 = arith.addf %151, %156 : vector<288x128xf32>
      %158 = arith.truncf %157 : vector<288x128xf32> to vector<288x128xbf16>
      %cst_144 = arith.constant dense<0.000000e+00> : vector<80x128xf32>
      %159 = tpu.matmul %14, %158, %cst_144 {dimension_numbers = #tpu.dot_dimension_numbers<[1], [0], [0], [1], [0, 0, 1, 1], [], []>} : vector<80x288xbf16>, vector<288x128xbf16>, vector<80x128xf32> -> vector<80x128xf32>
      %160 = vector.extract_strided_slice %17 {offsets = [1, 0], sizes = [1, 128], strides = [1, 1]} : vector<4x128xf32> to vector<1x128xf32>
      %161 = vector.extract_strided_slice %18 {offsets = [1, 0], sizes = [1, 128], strides = [1, 1]} : vector<4x128xf32> to vector<1x128xf32>
      %162 = vector.extract_strided_slice %19 {offsets = [1, 0], sizes = [1, 128], strides = [1, 1]} : vector<4x128xf32> to vector<1x128xf32>
      %163 = vector.broadcast %160 : vector<1x128xf32> to vector<80x128xf32>
      %164 = arith.addf %159, %163 : vector<80x128xf32>
      %cst_145 = arith.constant 0.000000e+00 : f32
      %165 = vector.broadcast %cst_145 : f32 to vector<80x128xf32>
      %166 = arith.maximumf %164, %165 : vector<80x128xf32>
      %167 = vector.broadcast %13 : vector<80x1xf32> to vector<80x128xf32>
      %168 = arith.mulf %166, %167 : vector<80x128xf32>
      %cst_146 = arith.constant dense<0.000000e+00> : vector<128xf32>
      %169 = vector.multi_reduction <add>, %168, %cst_146 [0] : vector<80x128xf32> to vector<128xf32>
      %170 = vector.shape_cast %169 : vector<128xf32> to vector<1x128xf32>
      %cst_147 = arith.constant 1.562500e-02 : f32
      %171 = vector.broadcast %cst_147 : f32 to vector<1x128xf32>
      %172 = arith.mulf %170, %171 : vector<1x128xf32>
      %173 = arith.mulf %168, %168 : vector<80x128xf32>
      %cst_148 = arith.constant dense<0.000000e+00> : vector<128xf32>
      %174 = vector.multi_reduction <add>, %173, %cst_148 [0] : vector<80x128xf32> to vector<128xf32>
      %175 = vector.shape_cast %174 : vector<128xf32> to vector<1x128xf32>
      %cst_149 = arith.constant 1.562500e-02 : f32
      %176 = vector.broadcast %cst_149 : f32 to vector<1x128xf32>
      %177 = arith.mulf %175, %176 : vector<1x128xf32>
      %cst_150 = arith.constant dense<0.000000e+00> : vector<1x128xf32>
      %178 = tpu.matmul %172, %16, %cst_150 {dimension_numbers = #tpu.dot_dimension_numbers<[1], [0], [0], [1], [0, 0, 1, 1], [], []>} : vector<1x128xf32>, vector<128x128xf32>, vector<1x128xf32> -> vector<1x128xf32>
      %cst_151 = arith.constant dense<0.000000e+00> : vector<1x128xf32>
      %179 = tpu.matmul %177, %16, %cst_151 {dimension_numbers = #tpu.dot_dimension_numbers<[1], [0], [0], [1], [0, 0, 1, 1], [], []>} : vector<1x128xf32>, vector<128x128xf32>, vector<1x128xf32> -> vector<1x128xf32>
      %180 = arith.mulf %178, %178 : vector<1x128xf32>
      %181 = arith.subf %179, %180 : vector<1x128xf32>
      %cst_152 = arith.constant 0.000000e+00 : f32
      %182 = vector.broadcast %cst_152 : f32 to vector<1x128xf32>
      %183 = arith.maximumf %181, %182 : vector<1x128xf32>
      %cst_153 = arith.constant 9.99999974E-6 : f32
      %184 = vector.broadcast %cst_153 : f32 to vector<1x128xf32>
      %185 = arith.addf %183, %184 : vector<1x128xf32>
      %186 = math.rsqrt %185 : vector<1x128xf32>
      %187 = arith.mulf %186, %161 : vector<1x128xf32>
      %188 = vector.broadcast %178 : vector<1x128xf32> to vector<80x128xf32>
      %189 = arith.subf %166, %188 : vector<80x128xf32>
      %190 = vector.broadcast %187 : vector<1x128xf32> to vector<80x128xf32>
      %191 = arith.mulf %189, %190 : vector<80x128xf32>
      %192 = vector.broadcast %162 : vector<1x128xf32> to vector<80x128xf32>
      %193 = arith.addf %191, %192 : vector<80x128xf32>
      %194 = vector.broadcast %13 : vector<80x1xf32> to vector<80x128xf32>
      %195 = arith.mulf %193, %194 : vector<80x128xf32>
      %c11 = arith.constant 11 : index
      %c0_154 = arith.constant 0 : index
      %196 = vector.load %arg16[%c11, %c0_154] : memref<104x128xf32, #tpu.memory_space<vmem>>, vector<80x128xf32>
      tpu.vector_store %arg16[%c11, %c0_154], %195 {strides = array<i32>} : memref<104x128xf32, #tpu.memory_space<vmem>>, vector<80x128xf32>,
      %c0_155 = arith.constant 0 : index
      %c0_156 = arith.constant 0 : index
      %197 = vector.load %arg16[%c0_155, %c0_156] : memref<104x128xf32, #tpu.memory_space<vmem>>, vector<80x128xf32>
      %198 = arith.truncf %197 : vector<80x128xf32> to vector<80x128xbf16>
      %c0_157 = arith.constant 0 : index
      %c0_158 = arith.constant 0 : index
      %c0_159 = arith.constant 0 : index
      %c0_160 = arith.constant 0 : index
      %199 = vector.load %arg4[%c0_157, %c0_158, %c0_159, %c0_160] : memref<3x3x128x128xbf16, #tpu.memory_space<vmem>>, vector<1x1x128x128xbf16>
      %200 = vector.shape_cast %199 : vector<1x1x128x128xbf16> to vector<128x128xbf16>
      %cst_161 = arith.constant dense<0.000000e+00> : vector<80x128xf32>
      %201 = tpu.matmul %198, %200, %cst_161 {dimension_numbers = #tpu.dot_dimension_numbers<[1], [0], [0], [1], [0, 0, 1, 1], [], []>} : vector<80x128xbf16>, vector<128x128xbf16>, vector<80x128xf32> -> vector<80x128xf32>
      %c1_162 = arith.constant 1 : index
      %c0_163 = arith.constant 0 : index
      %202 = vector.load %arg16[%c1_162, %c0_163] : memref<104x128xf32, #tpu.memory_space<vmem>>, vector<80x128xf32>
      %203 = arith.truncf %202 : vector<80x128xf32> to vector<80x128xbf16>
      %c0_164 = arith.constant 0 : index
      %c1_165 = arith.constant 1 : index
      %c0_166 = arith.constant 0 : index
      %c0_167 = arith.constant 0 : index
      %204 = vector.load %arg4[%c0_164, %c1_165, %c0_166, %c0_167] : memref<3x3x128x128xbf16, #tpu.memory_space<vmem>>, vector<1x1x128x128xbf16>
      %205 = vector.shape_cast %204 : vector<1x1x128x128xbf16> to vector<128x128xbf16>
      %cst_168 = arith.constant dense<0.000000e+00> : vector<80x128xf32>
      %206 = tpu.matmul %203, %205, %cst_168 {dimension_numbers = #tpu.dot_dimension_numbers<[1], [0], [0], [1], [0, 0, 1, 1], [], []>} : vector<80x128xbf16>, vector<128x128xbf16>, vector<80x128xf32> -> vector<80x128xf32>
      %207 = arith.addf %201, %206 : vector<80x128xf32>
      %c2_169 = arith.constant 2 : index
      %c0_170 = arith.constant 0 : index
      %208 = vector.load %arg16[%c2_169, %c0_170] : memref<104x128xf32, #tpu.memory_space<vmem>>, vector<80x128xf32>
      %209 = arith.truncf %208 : vector<80x128xf32> to vector<80x128xbf16>
      %c0_171 = arith.constant 0 : index
      %c2_172 = arith.constant 2 : index
      %c0_173 = arith.constant 0 : index
      %c0_174 = arith.constant 0 : index
      %210 = vector.load %arg4[%c0_171, %c2_172, %c0_173, %c0_174] : memref<3x3x128x128xbf16, #tpu.memory_space<vmem>>, vector<1x1x128x128xbf16>
      %211 = vector.shape_cast %210 : vector<1x1x128x128xbf16> to vector<128x128xbf16>
      %cst_175 = arith.constant dense<0.000000e+00> : vector<80x128xf32>
      %212 = tpu.matmul %209, %211, %cst_175 {dimension_numbers = #tpu.dot_dimension_numbers<[1], [0], [0], [1], [0, 0, 1, 1], [], []>} : vector<80x128xbf16>, vector<128x128xbf16>, vector<80x128xf32> -> vector<80x128xf32>
      %213 = arith.addf %207, %212 : vector<80x128xf32>
      %c10 = arith.constant 10 : index
      %c0_176 = arith.constant 0 : index
      %214 = vector.load %arg16[%c10, %c0_176] : memref<104x128xf32, #tpu.memory_space<vmem>>, vector<80x128xf32>
      %215 = arith.truncf %214 : vector<80x128xf32> to vector<80x128xbf16>
      %c1_177 = arith.constant 1 : index
      %c0_178 = arith.constant 0 : index
      %c0_179 = arith.constant 0 : index
      %c0_180 = arith.constant 0 : index
      %216 = vector.load %arg4[%c1_177, %c0_178, %c0_179, %c0_180] : memref<3x3x128x128xbf16, #tpu.memory_space<vmem>>, vector<1x1x128x128xbf16>
      %217 = vector.shape_cast %216 : vector<1x1x128x128xbf16> to vector<128x128xbf16>
      %cst_181 = arith.constant dense<0.000000e+00> : vector<80x128xf32>
      %218 = tpu.matmul %215, %217, %cst_181 {dimension_numbers = #tpu.dot_dimension_numbers<[1], [0], [0], [1], [0, 0, 1, 1], [], []>} : vector<80x128xbf16>, vector<128x128xbf16>, vector<80x128xf32> -> vector<80x128xf32>
      %219 = arith.addf %213, %218 : vector<80x128xf32>
      %c11_182 = arith.constant 11 : index
      %c0_183 = arith.constant 0 : index
      %220 = vector.load %arg16[%c11_182, %c0_183] : memref<104x128xf32, #tpu.memory_space<vmem>>, vector<80x128xf32>
      %221 = arith.truncf %220 : vector<80x128xf32> to vector<80x128xbf16>
      %c1_184 = arith.constant 1 : index
      %c1_185 = arith.constant 1 : index
      %c0_186 = arith.constant 0 : index
      %c0_187 = arith.constant 0 : index
      %222 = vector.load %arg4[%c1_184, %c1_185, %c0_186, %c0_187] : memref<3x3x128x128xbf16, #tpu.memory_space<vmem>>, vector<1x1x128x128xbf16>
      %223 = vector.shape_cast %222 : vector<1x1x128x128xbf16> to vector<128x128xbf16>
      %cst_188 = arith.constant dense<0.000000e+00> : vector<80x128xf32>
      %224 = tpu.matmul %221, %223, %cst_188 {dimension_numbers = #tpu.dot_dimension_numbers<[1], [0], [0], [1], [0, 0, 1, 1], [], []>} : vector<80x128xbf16>, vector<128x128xbf16>, vector<80x128xf32> -> vector<80x128xf32>
      %225 = arith.addf %219, %224 : vector<80x128xf32>
      %c12 = arith.constant 12 : index
      %c0_189 = arith.constant 0 : index
      %226 = vector.load %arg16[%c12, %c0_189] : memref<104x128xf32, #tpu.memory_space<vmem>>, vector<80x128xf32>
      %227 = arith.truncf %226 : vector<80x128xf32> to vector<80x128xbf16>
      %c1_190 = arith.constant 1 : index
      %c2_191 = arith.constant 2 : index
      %c0_192 = arith.constant 0 : index
      %c0_193 = arith.constant 0 : index
      %228 = vector.load %arg4[%c1_190, %c2_191, %c0_192, %c0_193] : memref<3x3x128x128xbf16, #tpu.memory_space<vmem>>, vector<1x1x128x128xbf16>
      %229 = vector.shape_cast %228 : vector<1x1x128x128xbf16> to vector<128x128xbf16>
      %cst_194 = arith.constant dense<0.000000e+00> : vector<80x128xf32>
      %230 = tpu.matmul %227, %229, %cst_194 {dimension_numbers = #tpu.dot_dimension_numbers<[1], [0], [0], [1], [0, 0, 1, 1], [], []>} : vector<80x128xbf16>, vector<128x128xbf16>, vector<80x128xf32> -> vector<80x128xf32>
      %231 = arith.addf %225, %230 : vector<80x128xf32>
      %c20_195 = arith.constant 20 : index
      %c0_196 = arith.constant 0 : index
      %232 = vector.load %arg16[%c20_195, %c0_196] : memref<104x128xf32, #tpu.memory_space<vmem>>, vector<80x128xf32>
      %233 = arith.truncf %232 : vector<80x128xf32> to vector<80x128xbf16>
      %c2_197 = arith.constant 2 : index
      %c0_198 = arith.constant 0 : index
      %c0_199 = arith.constant 0 : index
      %c0_200 = arith.constant 0 : index
      %234 = vector.load %arg4[%c2_197, %c0_198, %c0_199, %c0_200] : memref<3x3x128x128xbf16, #tpu.memory_space<vmem>>, vector<1x1x128x128xbf16>
      %235 = vector.shape_cast %234 : vector<1x1x128x128xbf16> to vector<128x128xbf16>
      %cst_201 = arith.constant dense<0.000000e+00> : vector<80x128xf32>
      %236 = tpu.matmul %233, %235, %cst_201 {dimension_numbers = #tpu.dot_dimension_numbers<[1], [0], [0], [1], [0, 0, 1, 1], [], []>} : vector<80x128xbf16>, vector<128x128xbf16>, vector<80x128xf32> -> vector<80x128xf32>
      %237 = arith.addf %231, %236 : vector<80x128xf32>
      %c21 = arith.constant 21 : index
      %c0_202 = arith.constant 0 : index
      %238 = vector.load %arg16[%c21, %c0_202] : memref<104x128xf32, #tpu.memory_space<vmem>>, vector<80x128xf32>
      %239 = arith.truncf %238 : vector<80x128xf32> to vector<80x128xbf16>
      %c2_203 = arith.constant 2 : index
      %c1_204 = arith.constant 1 : index
      %c0_205 = arith.constant 0 : index
      %c0_206 = arith.constant 0 : index
      %240 = vector.load %arg4[%c2_203, %c1_204, %c0_205, %c0_206] : memref<3x3x128x128xbf16, #tpu.memory_space<vmem>>, vector<1x1x128x128xbf16>
      %241 = vector.shape_cast %240 : vector<1x1x128x128xbf16> to vector<128x128xbf16>
      %cst_207 = arith.constant dense<0.000000e+00> : vector<80x128xf32>
      %242 = tpu.matmul %239, %241, %cst_207 {dimension_numbers = #tpu.dot_dimension_numbers<[1], [0], [0], [1], [0, 0, 1, 1], [], []>} : vector<80x128xbf16>, vector<128x128xbf16>, vector<80x128xf32> -> vector<80x128xf32>
      %243 = arith.addf %237, %242 : vector<80x128xf32>
      %c22 = arith.constant 22 : index
      %c0_208 = arith.constant 0 : index
      %244 = vector.load %arg16[%c22, %c0_208] : memref<104x128xf32, #tpu.memory_space<vmem>>, vector<80x128xf32>
      %245 = arith.truncf %244 : vector<80x128xf32> to vector<80x128xbf16>
      %c2_209 = arith.constant 2 : index
      %c2_210 = arith.constant 2 : index
      %c0_211 = arith.constant 0 : index
      %c0_212 = arith.constant 0 : index
      %246 = vector.load %arg4[%c2_209, %c2_210, %c0_211, %c0_212] : memref<3x3x128x128xbf16, #tpu.memory_space<vmem>>, vector<1x1x128x128xbf16>
      %247 = vector.shape_cast %246 : vector<1x1x128x128xbf16> to vector<128x128xbf16>
      %cst_213 = arith.constant dense<0.000000e+00> : vector<80x128xf32>
      %248 = tpu.matmul %245, %247, %cst_213 {dimension_numbers = #tpu.dot_dimension_numbers<[1], [0], [0], [1], [0, 0, 1, 1], [], []>} : vector<80x128xbf16>, vector<128x128xbf16>, vector<80x128xf32> -> vector<80x128xf32>
      %249 = arith.addf %243, %248 : vector<80x128xf32>
      %250 = vector.extract_strided_slice %17 {offsets = [2, 0], sizes = [1, 128], strides = [1, 1]} : vector<4x128xf32> to vector<1x128xf32>
      %251 = vector.extract_strided_slice %18 {offsets = [2, 0], sizes = [1, 128], strides = [1, 1]} : vector<4x128xf32> to vector<1x128xf32>
      %252 = vector.extract_strided_slice %19 {offsets = [2, 0], sizes = [1, 128], strides = [1, 1]} : vector<4x128xf32> to vector<1x128xf32>
      %253 = vector.broadcast %250 : vector<1x128xf32> to vector<80x128xf32>
      %254 = arith.addf %249, %253 : vector<80x128xf32>
      %cst_214 = arith.constant 0.000000e+00 : f32
      %255 = vector.broadcast %cst_214 : f32 to vector<80x128xf32>
      %256 = arith.maximumf %254, %255 : vector<80x128xf32>
      %257 = vector.broadcast %13 : vector<80x1xf32> to vector<80x128xf32>
      %258 = arith.mulf %256, %257 : vector<80x128xf32>
      %cst_215 = arith.constant dense<0.000000e+00> : vector<128xf32>
      %259 = vector.multi_reduction <add>, %258, %cst_215 [0] : vector<80x128xf32> to vector<128xf32>
      %260 = vector.shape_cast %259 : vector<128xf32> to vector<1x128xf32>
      %cst_216 = arith.constant 1.562500e-02 : f32
      %261 = vector.broadcast %cst_216 : f32 to vector<1x128xf32>
      %262 = arith.mulf %260, %261 : vector<1x128xf32>
      %263 = arith.mulf %258, %258 : vector<80x128xf32>
      %cst_217 = arith.constant dense<0.000000e+00> : vector<128xf32>
      %264 = vector.multi_reduction <add>, %263, %cst_217 [0] : vector<80x128xf32> to vector<128xf32>
      %265 = vector.shape_cast %264 : vector<128xf32> to vector<1x128xf32>
      %cst_218 = arith.constant 1.562500e-02 : f32
      %266 = vector.broadcast %cst_218 : f32 to vector<1x128xf32>
      %267 = arith.mulf %265, %266 : vector<1x128xf32>
      %cst_219 = arith.constant dense<0.000000e+00> : vector<1x128xf32>
      %268 = tpu.matmul %262, %16, %cst_219 {dimension_numbers = #tpu.dot_dimension_numbers<[1], [0], [0], [1], [0, 0, 1, 1], [], []>} : vector<1x128xf32>, vector<128x128xf32>, vector<1x128xf32> -> vector<1x128xf32>
      %cst_220 = arith.constant dense<0.000000e+00> : vector<1x128xf32>
      %269 = tpu.matmul %267, %16, %cst_220 {dimension_numbers = #tpu.dot_dimension_numbers<[1], [0], [0], [1], [0, 0, 1, 1], [], []>} : vector<1x128xf32>, vector<128x128xf32>, vector<1x128xf32> -> vector<1x128xf32>
      %270 = arith.mulf %268, %268 : vector<1x128xf32>
      %271 = arith.subf %269, %270 : vector<1x128xf32>
      %cst_221 = arith.constant 0.000000e+00 : f32
      %272 = vector.broadcast %cst_221 : f32 to vector<1x128xf32>
      %273 = arith.maximumf %271, %272 : vector<1x128xf32>
      %cst_222 = arith.constant 9.99999974E-6 : f32
      %274 = vector.broadcast %cst_222 : f32 to vector<1x128xf32>
      %275 = arith.addf %273, %274 : vector<1x128xf32>
      %276 = math.rsqrt %275 : vector<1x128xf32>
      %277 = arith.mulf %276, %251 : vector<1x128xf32>
      %278 = vector.broadcast %268 : vector<1x128xf32> to vector<80x128xf32>
      %279 = arith.subf %256, %278 : vector<80x128xf32>
      %280 = vector.broadcast %277 : vector<1x128xf32> to vector<80x128xf32>
      %281 = arith.mulf %279, %280 : vector<80x128xf32>
      %282 = vector.broadcast %252 : vector<1x128xf32> to vector<80x128xf32>
      %283 = arith.addf %281, %282 : vector<80x128xf32>
      %284 = vector.broadcast %13 : vector<80x1xf32> to vector<80x128xf32>
      %285 = arith.mulf %283, %284 : vector<80x128xf32>
      %c11_223 = arith.constant 11 : index
      %c0_224 = arith.constant 0 : index
      %286 = vector.load %arg17[%c11_223, %c0_224] : memref<104x128xf32, #tpu.memory_space<vmem>>, vector<80x128xf32>
      tpu.vector_store %arg17[%c11_223, %c0_224], %285 {strides = array<i32>} : memref<104x128xf32, #tpu.memory_space<vmem>>, vector<80x128xf32>,
      %c0_225 = arith.constant 0 : index
      %c0_226 = arith.constant 0 : index
      %287 = vector.load %arg17[%c0_225, %c0_226] : memref<104x128xf32, #tpu.memory_space<vmem>>, vector<80x128xf32>
      %288 = arith.truncf %287 : vector<80x128xf32> to vector<80x128xbf16>
      %c0_227 = arith.constant 0 : index
      %c0_228 = arith.constant 0 : index
      %c0_229 = arith.constant 0 : index
      %c0_230 = arith.constant 0 : index
      %289 = vector.load %arg5[%c0_227, %c0_228, %c0_229, %c0_230] : memref<3x3x128x128xbf16, #tpu.memory_space<vmem>>, vector<1x1x128x128xbf16>
      %290 = vector.shape_cast %289 : vector<1x1x128x128xbf16> to vector<128x128xbf16>
      %cst_231 = arith.constant dense<0.000000e+00> : vector<80x128xf32>
      %291 = tpu.matmul %288, %290, %cst_231 {dimension_numbers = #tpu.dot_dimension_numbers<[1], [0], [0], [1], [0, 0, 1, 1], [], []>} : vector<80x128xbf16>, vector<128x128xbf16>, vector<80x128xf32> -> vector<80x128xf32>
      %c1_232 = arith.constant 1 : index
      %c0_233 = arith.constant 0 : index
      %292 = vector.load %arg17[%c1_232, %c0_233] : memref<104x128xf32, #tpu.memory_space<vmem>>, vector<80x128xf32>
      %293 = arith.truncf %292 : vector<80x128xf32> to vector<80x128xbf16>
      %c0_234 = arith.constant 0 : index
      %c1_235 = arith.constant 1 : index
      %c0_236 = arith.constant 0 : index
      %c0_237 = arith.constant 0 : index
      %294 = vector.load %arg5[%c0_234, %c1_235, %c0_236, %c0_237] : memref<3x3x128x128xbf16, #tpu.memory_space<vmem>>, vector<1x1x128x128xbf16>
      %295 = vector.shape_cast %294 : vector<1x1x128x128xbf16> to vector<128x128xbf16>
      %cst_238 = arith.constant dense<0.000000e+00> : vector<80x128xf32>
      %296 = tpu.matmul %293, %295, %cst_238 {dimension_numbers = #tpu.dot_dimension_numbers<[1], [0], [0], [1], [0, 0, 1, 1], [], []>} : vector<80x128xbf16>, vector<128x128xbf16>, vector<80x128xf32> -> vector<80x128xf32>
      %297 = arith.addf %291, %296 : vector<80x128xf32>
      %c2_239 = arith.constant 2 : index
      %c0_240 = arith.constant 0 : index
      %298 = vector.load %arg17[%c2_239, %c0_240] : memref<104x128xf32, #tpu.memory_space<vmem>>, vector<80x128xf32>
      %299 = arith.truncf %298 : vector<80x128xf32> to vector<80x128xbf16>
      %c0_241 = arith.constant 0 : index
      %c2_242 = arith.constant 2 : index
      %c0_243 = arith.constant 0 : index
      %c0_244 = arith.constant 0 : index
      %300 = vector.load %arg5[%c0_241, %c2_242, %c0_243, %c0_244] : memref<3x3x128x128xbf16, #tpu.memory_space<vmem>>, vector<1x1x128x128xbf16>
      %301 = vector.shape_cast %300 : vector<1x1x128x128xbf16> to vector<128x128xbf16>
      %cst_245 = arith.constant dense<0.000000e+00> : vector<80x128xf32>
      %302 = tpu.matmul %299, %301, %cst_245 {dimension_numbers = #tpu.dot_dimension_numbers<[1], [0], [0], [1], [0, 0, 1, 1], [], []>} : vector<80x128xbf16>, vector<128x128xbf16>, vector<80x128xf32> -> vector<80x128xf32>
      %303 = arith.addf %297, %302 : vector<80x128xf32>
      %c10_246 = arith.constant 10 : index
      %c0_247 = arith.constant 0 : index
      %304 = vector.load %arg17[%c10_246, %c0_247] : memref<104x128xf32, #tpu.memory_space<vmem>>, vector<80x128xf32>
      %305 = arith.truncf %304 : vector<80x128xf32> to vector<80x128xbf16>
      %c1_248 = arith.constant 1 : index
      %c0_249 = arith.constant 0 : index
      %c0_250 = arith.constant 0 : index
      %c0_251 = arith.constant 0 : index
      %306 = vector.load %arg5[%c1_248, %c0_249, %c0_250, %c0_251] : memref<3x3x128x128xbf16, #tpu.memory_space<vmem>>, vector<1x1x128x128xbf16>
      %307 = vector.shape_cast %306 : vector<1x1x128x128xbf16> to vector<128x128xbf16>
      %cst_252 = arith.constant dense<0.000000e+00> : vector<80x128xf32>
      %308 = tpu.matmul %305, %307, %cst_252 {dimension_numbers = #tpu.dot_dimension_numbers<[1], [0], [0], [1], [0, 0, 1, 1], [], []>} : vector<80x128xbf16>, vector<128x128xbf16>, vector<80x128xf32> -> vector<80x128xf32>
      %309 = arith.addf %303, %308 : vector<80x128xf32>
      %c11_253 = arith.constant 11 : index
      %c0_254 = arith.constant 0 : index
      %310 = vector.load %arg17[%c11_253, %c0_254] : memref<104x128xf32, #tpu.memory_space<vmem>>, vector<80x128xf32>
      %311 = arith.truncf %310 : vector<80x128xf32> to vector<80x128xbf16>
      %c1_255 = arith.constant 1 : index
      %c1_256 = arith.constant 1 : index
      %c0_257 = arith.constant 0 : index
      %c0_258 = arith.constant 0 : index
      %312 = vector.load %arg5[%c1_255, %c1_256, %c0_257, %c0_258] : memref<3x3x128x128xbf16, #tpu.memory_space<vmem>>, vector<1x1x128x128xbf16>
      %313 = vector.shape_cast %312 : vector<1x1x128x128xbf16> to vector<128x128xbf16>
      %cst_259 = arith.constant dense<0.000000e+00> : vector<80x128xf32>
      %314 = tpu.matmul %311, %313, %cst_259 {dimension_numbers = #tpu.dot_dimension_numbers<[1], [0], [0], [1], [0, 0, 1, 1], [], []>} : vector<80x128xbf16>, vector<128x128xbf16>, vector<80x128xf32> -> vector<80x128xf32>
      %315 = arith.addf %309, %314 : vector<80x128xf32>
      %c12_260 = arith.constant 12 : index
      %c0_261 = arith.constant 0 : index
      %316 = vector.load %arg17[%c12_260, %c0_261] : memref<104x128xf32, #tpu.memory_space<vmem>>, vector<80x128xf32>
      %317 = arith.truncf %316 : vector<80x128xf32> to vector<80x128xbf16>
      %c1_262 = arith.constant 1 : index
      %c2_263 = arith.constant 2 : index
      %c0_264 = arith.constant 0 : index
      %c0_265 = arith.constant 0 : index
      %318 = vector.load %arg5[%c1_262, %c2_263, %c0_264, %c0_265] : memref<3x3x128x128xbf16, #tpu.memory_space<vmem>>, vector<1x1x128x128xbf16>
      %319 = vector.shape_cast %318 : vector<1x1x128x128xbf16> to vector<128x128xbf16>
      %cst_266 = arith.constant dense<0.000000e+00> : vector<80x128xf32>
      %320 = tpu.matmul %317, %319, %cst_266 {dimension_numbers = #tpu.dot_dimension_numbers<[1], [0], [0], [1], [0, 0, 1, 1], [], []>} : vector<80x128xbf16>, vector<128x128xbf16>, vector<80x128xf32> -> vector<80x128xf32>
      %321 = arith.addf %315, %320 : vector<80x128xf32>
      %c20_267 = arith.constant 20 : index
      %c0_268 = arith.constant 0 : index
      %322 = vector.load %arg17[%c20_267, %c0_268] : memref<104x128xf32, #tpu.memory_space<vmem>>, vector<80x128xf32>
      %323 = arith.truncf %322 : vector<80x128xf32> to vector<80x128xbf16>
      %c2_269 = arith.constant 2 : index
      %c0_270 = arith.constant 0 : index
      %c0_271 = arith.constant 0 : index
      %c0_272 = arith.constant 0 : index
      %324 = vector.load %arg5[%c2_269, %c0_270, %c0_271, %c0_272] : memref<3x3x128x128xbf16, #tpu.memory_space<vmem>>, vector<1x1x128x128xbf16>
      %325 = vector.shape_cast %324 : vector<1x1x128x128xbf16> to vector<128x128xbf16>
      %cst_273 = arith.constant dense<0.000000e+00> : vector<80x128xf32>
      %326 = tpu.matmul %323, %325, %cst_273 {dimension_numbers = #tpu.dot_dimension_numbers<[1], [0], [0], [1], [0, 0, 1, 1], [], []>} : vector<80x128xbf16>, vector<128x128xbf16>, vector<80x128xf32> -> vector<80x128xf32>
      %327 = arith.addf %321, %326 : vector<80x128xf32>
      %c21_274 = arith.constant 21 : index
      %c0_275 = arith.constant 0 : index
      %328 = vector.load %arg17[%c21_274, %c0_275] : memref<104x128xf32, #tpu.memory_space<vmem>>, vector<80x128xf32>
      %329 = arith.truncf %328 : vector<80x128xf32> to vector<80x128xbf16>
      %c2_276 = arith.constant 2 : index
      %c1_277 = arith.constant 1 : index
      %c0_278 = arith.constant 0 : index
      %c0_279 = arith.constant 0 : index
      %330 = vector.load %arg5[%c2_276, %c1_277, %c0_278, %c0_279] : memref<3x3x128x128xbf16, #tpu.memory_space<vmem>>, vector<1x1x128x128xbf16>
      %331 = vector.shape_cast %330 : vector<1x1x128x128xbf16> to vector<128x128xbf16>
      %cst_280 = arith.constant dense<0.000000e+00> : vector<80x128xf32>
      %332 = tpu.matmul %329, %331, %cst_280 {dimension_numbers = #tpu.dot_dimension_numbers<[1], [0], [0], [1], [0, 0, 1, 1], [], []>} : vector<80x128xbf16>, vector<128x128xbf16>, vector<80x128xf32> -> vector<80x128xf32>
      %333 = arith.addf %327, %332 : vector<80x128xf32>
      %c22_281 = arith.constant 22 : index
      %c0_282 = arith.constant 0 : index
      %334 = vector.load %arg17[%c22_281, %c0_282] : memref<104x128xf32, #tpu.memory_space<vmem>>, vector<80x128xf32>
      %335 = arith.truncf %334 : vector<80x128xf32> to vector<80x128xbf16>
      %c2_283 = arith.constant 2 : index
      %c2_284 = arith.constant 2 : index
      %c0_285 = arith.constant 0 : index
      %c0_286 = arith.constant 0 : index
      %336 = vector.load %arg5[%c2_283, %c2_284, %c0_285, %c0_286] : memref<3x3x128x128xbf16, #tpu.memory_space<vmem>>, vector<1x1x128x128xbf16>
      %337 = vector.shape_cast %336 : vector<1x1x128x128xbf16> to vector<128x128xbf16>
      %cst_287 = arith.constant dense<0.000000e+00> : vector<80x128xf32>
      %338 = tpu.matmul %335, %337, %cst_287 {dimension_numbers = #tpu.dot_dimension_numbers<[1], [0], [0], [1], [0, 0, 1, 1], [], []>} : vector<80x128xbf16>, vector<128x128xbf16>, vector<80x128xf32> -> vector<80x128xf32>
      %339 = arith.addf %333, %338 : vector<80x128xf32>
      %340 = vector.extract_strided_slice %17 {offsets = [3, 0], sizes = [1, 128], strides = [1, 1]} : vector<4x128xf32> to vector<1x128xf32>
      %341 = vector.extract_strided_slice %18 {offsets = [3, 0], sizes = [1, 128], strides = [1, 1]} : vector<4x128xf32> to vector<1x128xf32>
      %342 = vector.extract_strided_slice %19 {offsets = [3, 0], sizes = [1, 128], strides = [1, 1]} : vector<4x128xf32> to vector<1x128xf32>
      %343 = vector.broadcast %340 : vector<1x128xf32> to vector<80x128xf32>
      %344 = arith.addf %339, %343 : vector<80x128xf32>
      %cst_288 = arith.constant 0.000000e+00 : f32
      %345 = vector.broadcast %cst_288 : f32 to vector<80x128xf32>
      %346 = arith.maximumf %344, %345 : vector<80x128xf32>
      %347 = vector.broadcast %13 : vector<80x1xf32> to vector<80x128xf32>
      %348 = arith.mulf %346, %347 : vector<80x128xf32>
      %cst_289 = arith.constant dense<0.000000e+00> : vector<128xf32>
      %349 = vector.multi_reduction <add>, %348, %cst_289 [0] : vector<80x128xf32> to vector<128xf32>
      %350 = vector.shape_cast %349 : vector<128xf32> to vector<1x128xf32>
      %cst_290 = arith.constant 1.562500e-02 : f32
      %351 = vector.broadcast %cst_290 : f32 to vector<1x128xf32>
      %352 = arith.mulf %350, %351 : vector<1x128xf32>
      %353 = arith.mulf %348, %348 : vector<80x128xf32>
      %cst_291 = arith.constant dense<0.000000e+00> : vector<128xf32>
      %354 = vector.multi_reduction <add>, %353, %cst_291 [0] : vector<80x128xf32> to vector<128xf32>
      %355 = vector.shape_cast %354 : vector<128xf32> to vector<1x128xf32>
      %cst_292 = arith.constant 1.562500e-02 : f32
      %356 = vector.broadcast %cst_292 : f32 to vector<1x128xf32>
      %357 = arith.mulf %355, %356 : vector<1x128xf32>
      %cst_293 = arith.constant dense<0.000000e+00> : vector<1x128xf32>
      %358 = tpu.matmul %352, %16, %cst_293 {dimension_numbers = #tpu.dot_dimension_numbers<[1], [0], [0], [1], [0, 0, 1, 1], [], []>} : vector<1x128xf32>, vector<128x128xf32>, vector<1x128xf32> -> vector<1x128xf32>
      %cst_294 = arith.constant dense<0.000000e+00> : vector<1x128xf32>
      %359 = tpu.matmul %357, %16, %cst_294 {dimension_numbers = #tpu.dot_dimension_numbers<[1], [0], [0], [1], [0, 0, 1, 1], [], []>} : vector<1x128xf32>, vector<128x128xf32>, vector<1x128xf32> -> vector<1x128xf32>
      %360 = arith.mulf %358, %358 : vector<1x128xf32>
      %361 = arith.subf %359, %360 : vector<1x128xf32>
      %cst_295 = arith.constant 0.000000e+00 : f32
      %362 = vector.broadcast %cst_295 : f32 to vector<1x128xf32>
      %363 = arith.maximumf %361, %362 : vector<1x128xf32>
      %cst_296 = arith.constant 9.99999974E-6 : f32
      %364 = vector.broadcast %cst_296 : f32 to vector<1x128xf32>
      %365 = arith.addf %363, %364 : vector<1x128xf32>
      %366 = math.rsqrt %365 : vector<1x128xf32>
      %367 = arith.mulf %366, %341 : vector<1x128xf32>
      %368 = vector.broadcast %358 : vector<1x128xf32> to vector<80x128xf32>
      %369 = arith.subf %346, %368 : vector<80x128xf32>
      %370 = vector.broadcast %367 : vector<1x128xf32> to vector<80x128xf32>
      %371 = arith.mulf %369, %370 : vector<80x128xf32>
      %372 = vector.broadcast %342 : vector<1x128xf32> to vector<80x128xf32>
      %373 = arith.addf %371, %372 : vector<80x128xf32>
      %374 = vector.broadcast %13 : vector<80x1xf32> to vector<80x128xf32>
      %375 = arith.mulf %373, %374 : vector<80x128xf32>
      %cst_297 = arith.constant dense<0.000000e+00> : vector<128xf32>
      %376 = vector.multi_reduction <add>, %375, %cst_297 [0] : vector<80x128xf32> to vector<128xf32>
      %377 = vector.shape_cast %376 : vector<128xf32> to vector<1x128xf32>
      %cst_298 = arith.constant 1.562500e-02 : f32
      %378 = vector.broadcast %cst_298 : f32 to vector<1x128xf32>
      %379 = arith.mulf %377, %378 : vector<1x128xf32>
      %380 = arith.index_cast %arg18 : i32 to index
      %c0_299 = arith.constant 0 : index
      %381 = vector.load %arg14[%380, %c0_299] : memref<8x128xf32, #tpu.memory_space<vmem>>, vector<1x128xf32>
      tpu.vector_store %arg14[%380, %c0_299], %379 {strides = array<i32>} : memref<8x128xf32, #tpu.memory_space<vmem>>, vector<1x128xf32>,
    }
    %c8_i32_30 = arith.constant 8 : i32
    return
  }
  func.func @transform_0(%arg0: i32) -> (i32, i32, i32) {
    %c0_i32 = arith.constant 0 : i32
    %c0_i32_0 = arith.constant 0 : i32
    %c0_i32_1 = arith.constant 0 : i32
    return %arg0, %c0_i32, %c0_i32_0 : i32, i32, i32
  }
  func.func @transform_1(%arg0: i32) -> (i32, i32, i32, i32) {
    %c0_i32 = arith.constant 0 : i32
    %c0_i32_0 = arith.constant 0 : i32
    %c0_i32_1 = arith.constant 0 : i32
    %c0_i32_2 = arith.constant 0 : i32
    %c0_i32_3 = arith.constant 0 : i32
    return %c0_i32, %c0_i32_0, %c0_i32_1, %c0_i32_2 : i32, i32, i32, i32
  }
  func.func @transform_2(%arg0: i32) -> (i32, i32, i32, i32) {
    %c0_i32 = arith.constant 0 : i32
    %c0_i32_0 = arith.constant 0 : i32
    %c0_i32_1 = arith.constant 0 : i32
    %c0_i32_2 = arith.constant 0 : i32
    %c0_i32_3 = arith.constant 0 : i32
    return %c0_i32, %c0_i32_0, %c0_i32_1, %c0_i32_2 : i32, i32, i32, i32
  }
  func.func @transform_3(%arg0: i32) -> (i32, i32, i32, i32) {
    %c0_i32 = arith.constant 0 : i32
    %c0_i32_0 = arith.constant 0 : i32
    %c0_i32_1 = arith.constant 0 : i32
    %c0_i32_2 = arith.constant 0 : i32
    %c0_i32_3 = arith.constant 0 : i32
    return %c0_i32, %c0_i32_0, %c0_i32_1, %c0_i32_2 : i32, i32, i32, i32
  }
  func.func @transform_4(%arg0: i32) -> (i32, i32, i32, i32) {
    %c0_i32 = arith.constant 0 : i32
    %c0_i32_0 = arith.constant 0 : i32
    %c0_i32_1 = arith.constant 0 : i32
    %c0_i32_2 = arith.constant 0 : i32
    %c0_i32_3 = arith.constant 0 : i32
    return %c0_i32, %c0_i32_0, %c0_i32_1, %c0_i32_2 : i32, i32, i32, i32
  }
  func.func @transform_5(%arg0: i32) -> (i32, i32) {
    %c0_i32 = arith.constant 0 : i32
    %c0_i32_0 = arith.constant 0 : i32
    %c0_i32_1 = arith.constant 0 : i32
    return %c0_i32, %c0_i32_0 : i32, i32
  }
  func.func @transform_6(%arg0: i32) -> (i32, i32) {
    %c0_i32 = arith.constant 0 : i32
    %c0_i32_0 = arith.constant 0 : i32
    %c0_i32_1 = arith.constant 0 : i32
    return %c0_i32, %c0_i32_0 : i32, i32
  }
  func.func @transform_7(%arg0: i32) -> (i32, i32) {
    %c0_i32 = arith.constant 0 : i32
    %c0_i32_0 = arith.constant 0 : i32
    %c0_i32_1 = arith.constant 0 : i32
    return %c0_i32, %c0_i32_0 : i32, i32
  }
  func.func @transform_8(%arg0: i32) -> (i32, i32) {
    %c0_i32 = arith.constant 0 : i32
    %c0_i32_0 = arith.constant 0 : i32
    %c0_i32_1 = arith.constant 0 : i32
    return %c0_i32, %c0_i32_0 : i32, i32
  }
  func.func @transform_9(%arg0: i32) -> (i32, i32) {
    %c0_i32 = arith.constant 0 : i32
    %c0_i32_0 = arith.constant 0 : i32
    %c0_i32_1 = arith.constant 0 : i32
    return %c0_i32, %c0_i32_0 : i32, i32
  }
  func.func @transform_10(%arg0: i32) -> (i32, i32) {
    %c0_i32 = arith.constant 0 : i32
    %c0_i32_0 = arith.constant 0 : i32
    %c0_i32_1 = arith.constant 0 : i32
    return %c0_i32, %c0_i32_0 : i32, i32
  }
  func.func @transform_11(%arg0: i32) -> (i32, i32) {
    %c0_i32 = arith.constant 0 : i32
    %c0_i32_0 = arith.constant 0 : i32
    %c0_i32_1 = arith.constant 0 : i32
    return %c0_i32, %c0_i32_0 : i32, i32
  }
  func.func @transform_12(%arg0: i32) -> (i32, i32) {
    %c0_i32 = arith.constant 0 : i32
    %c0_i32_0 = arith.constant 0 : i32
    %c0_i32_1 = arith.constant 0 : i32
    return %c0_i32, %c0_i32_0 : i32, i32
  }
  func.func @transform_13(%arg0: i32) -> (i32, i32) {
    %c0_i32 = arith.constant 0 : i32
    %c0_i32_0 = arith.constant 0 : i32
    return %arg0, %c0_i32 : i32, i32
  }
}

</mosaic_0001>

<bundles_post_ra>
// kernel: mnist_cnn_forward.1
= control target key start
LH: loop header
LB: loop body
LE: loop exit
PB: predicated region body
PF: predicated region fallthrough
CT: control target
= control target key end

     0   :  { %v14467_v0 = vmov 0.0   ;;  %s19775_s0 = inlined_call_operand.vmem [shape: bf16[8,328,8], index: 0, kind: input, shape index: {}]   ;;  %s19776_s1 = inlined_call_operand.vmem [shape: bf16[3,3,8,128], index: 1, kind: input, shape index: {}]   ;;  %s19777_s2 = inlined_call_operand.vmem [shape: bf16[3,3,128,128], index: 2, kind: input, shape index: {}]   ;;  %s19778_s3 = inlined_call_operand.vmem [shape: bf16[3,3,128,128], index: 3, kind: input, shape index: {}]   ;;  %s19779_s4 = inlined_call_operand.vmem [shape: bf16[3,3,128,128], index: 4, kind: input, shape index: {}]   ;;  %s19780_s11 = inlined_call_operand.vmem [shape: f32[288,1], index: 11, kind: input, shape index: {}]   ;;  %s19781_s13 = inlined_call_operand.vmem [shape: f32[8,128], index: 13, kind: output, shape index: {}]   ;;  %s19782_s12 = inlined_call_operand.vmem [shape: f32[80,1], index: 12, kind: input, shape index: {}]   ;;  %s19783_s10 = inlined_call_operand.vmem [shape: bf16[80,288], index: 10, kind: input, shape index: {}]   ;;  %s19784_s8 = inlined_call_operand.vmem [shape: f32[128,128], index: 8, kind: input, shape index: {}]   ;;  %s19785_s9 = inlined_call_operand.vmem [shape: f32[128,128], index: 9, kind: input, shape index: {}]   ;;  %s19786_s5 = inlined_call_operand.vmem [shape: f32[4,128], index: 5, kind: input, shape index: {}]   ;;  %s19787_s6 = inlined_call_operand.vmem [shape: f32[4,128], index: 6, kind: input, shape index: {}]   ;;  %s19788_s7 = inlined_call_operand.vmem [shape: f32[4,128], index: 7, kind: input, shape index: {}]  }
   0x1   :  { %45 = vst [vmem:[#allocation2] sm:$0xff] %v14467_v0  ;;  %46 = vst [vmem:[#allocation2 + $0x8] sm:$0xff] %v14467_v0  ;;  %v14544_v1 = vld [vmem:[%s19780_s11] sm:$0xff]  ;;  %v14549_v2 = vld [vmem:[%s19780_s11 + $0x8] sm:$0xff] }
   0x2   :  { %47 = vst [vmem:[#allocation2 + $0x10] sm:$0x7] %v14467_v0  ;;  %48 = vst [vmem:[#allocation2 + $0x133] sm:$0xff] %v14467_v0  ;;  %v14554_v3 = vld [vmem:[%s19780_s11 + $0x10] sm:$0xff]  ;;  %v14559_v4 = vld [vmem:[%s19780_s11 + $0x18] sm:$0xff] }
   0x3   :  { %49 = vst [vmem:[#allocation2 + $0x13b] sm:$0xff] %v14467_v0  ;;  %50 = vst [vmem:[#allocation2 + $0x143] sm:$0x1f] %v14467_v0  ;;  %v14564_v5 = vld [vmem:[%s19780_s11 + $0x20] sm:$0xff]  ;;  %v14569_v6 = vld [vmem:[%s19780_s11 + $0x28] sm:$0xff] }
   0x4   :  { %51 = vst [vmem:[#allocation3] sm:$0xff] %v14467_v0  ;;  %52 = vst [vmem:[#allocation3 + $0x8] sm:$0x7] %v14467_v0  ;;  %v14574_v7 = vld [vmem:[%s19780_s11 + $0x30] sm:$0xff]  ;;  %v14579_v8 = vld [vmem:[%s19780_s11 + $0x38] sm:$0xff] }
   0x5   :  { %53 = vst [vmem:[#allocation3 + $0x5b] sm:$0xff] %v14467_v0  ;;  %54 = vst [vmem:[#allocation3 + $0x63] sm:$0x1f] %v14467_v0  ;;  %v14584_v9 = vld [vmem:[%s19780_s11 + $0x40] sm:$0xff]  ;;  %v14589_v10 = vld [vmem:[%s19780_s11 + $0x48] sm:$0xff] }
   0x6   :  { %55 = vst [vmem:[#allocation4] sm:$0xff] %v14467_v0  ;;  %56 = vst [vmem:[#allocation4 + $0x8] sm:$0x7] %v14467_v0  ;;  %v14594_v11 = vld [vmem:[%s19780_s11 + $0x50] sm:$0xff]  ;;  %v14599_v12 = vld [vmem:[%s19780_s11 + $0x58] sm:$0xff] }
   0x7   :  { %57 = vst [vmem:[#allocation4 + $0x5b] sm:$0xff] %v14467_v0  ;;  %58 = vst [vmem:[#allocation4 + $0x63] sm:$0x1f] %v14467_v0  ;;  %v14604_v13 = vld [vmem:[%s19780_s11 + $0x60] sm:$0xff]  ;;  %v14609_v14 = vld [vmem:[%s19780_s11 + $0x68] sm:$0xff] }
   0x8   :  { %19973 = vst [vmem:[#allocation5_spill] sm:$0xff] %v14544_v1  ;;  %19974 = vst [vmem:[#allocation6_spill] sm:$0xff] %v14549_v2  ;;  %v14614_v15 = vld [vmem:[%s19780_s11 + $0x70] sm:$0xff]  ;;  %v14619_v16 = vld [vmem:[%s19780_s11 + $0x78] sm:$0xff] }
   0x9   :  { %19975 = vst [vmem:[#allocation7_spill] sm:$0xff] %v14554_v3  ;;  %19976 = vst [vmem:[#allocation8_spill] sm:$0xff] %v14559_v4  ;;  %v14624_v17 = vld [vmem:[%s19780_s11 + $0x80] sm:$0xff]  ;;  %v14629_v18 = vld [vmem:[%s19780_s11 + $0x88] sm:$0xff] }
   0xa   :  { %19977 = vst [vmem:[#allocation9_spill] sm:$0xff] %v14564_v5  ;;  %19978 = vst [vmem:[#allocation10_spill] sm:$0xff] %v14569_v6  ;;  %v14634_v19 = vld [vmem:[%s19780_s11 + $0x90] sm:$0xff]  ;;  %v14639_v20 = vld [vmem:[%s19780_s11 + $0x98] sm:$0xff] }
   0xb   :  { %19979 = vst [vmem:[#allocation11_spill] sm:$0xff] %v14574_v7  ;;  %19980 = vst [vmem:[#allocation12_spill] sm:$0xff] %v14579_v8  ;;  %v14644_v21 = vld [vmem:[%s19780_s11 + $0xa0] sm:$0xff]  ;;  %v14649_v22 = vld [vmem:[%s19780_s11 + $0xa8] sm:$0xff] }
   0xc   :  { %19981 = vst [vmem:[#allocation13_spill] sm:$0xff] %v14584_v9  ;;  %19982 = vst [vmem:[#allocation14_spill] sm:$0xff] %v14589_v10  ;;  %v14654_v23 = vld [vmem:[%s19780_s11 + $0xb0] sm:$0xff]  ;;  %v14659_v24 = vld [vmem:[%s19780_s11 + $0xb8] sm:$0xff] }
   0xd   :  { %19983 = vst [vmem:[#allocation15_spill] sm:$0xff] %v14594_v11  ;;  %19984 = vst [vmem:[#allocation16_spill] sm:$0xff] %v14599_v12  ;;  %v14664_v25 = vld [vmem:[%s19780_s11 + $0xc0] sm:$0xff]  ;;  %v14669_v26 = vld [vmem:[%s19780_s11 + $0xc8] sm:$0xff] }
   0xe   :  { %19985 = vst [vmem:[#allocation17_spill] sm:$0xff] %v14604_v13  ;;  %19986 = vst [vmem:[#allocation18_spill] sm:$0xff] %v14609_v14  ;;  %v14674_v27 = vld [vmem:[%s19780_s11 + $0xd0] sm:$0xff]  ;;  %v14679_v28 = vld [vmem:[%s19780_s11 + $0xd8] sm:$0xff] }
   0xf   :  { %19987 = vst [vmem:[#allocation19_spill] sm:$0xff] %v14614_v15  ;;  %19988 = vst [vmem:[#allocation20_spill] sm:$0xff] %v14619_v16  ;;  %v14684_v29 = vld [vmem:[%s19780_s11 + $0xe0] sm:$0xff]  ;;  %v14689_v30 = vld [vmem:[%s19780_s11 + $0xe8] sm:$0xff] }
  0x10   :  { %19989 = vst [vmem:[#allocation21_spill] sm:$0xff] %v14624_v17  ;;  %19990 = vst [vmem:[#allocation22_spill] sm:$0xff] %v14629_v18  ;;  %v14694_v31 = vld [vmem:[%s19780_s11 + $0xf0] sm:$0xff]  ;;  %v14699_v32 = vld [vmem:[%s19780_s11 + $0xf8] sm:$0xff] }
  0x11   :  { %19991 = vst [vmem:[#allocation23_spill] sm:$0xff] %v14634_v19  ;;  %19992 = vst [vmem:[#allocation24_spill] sm:$0xff] %v14639_v20  ;;  %v14704_v33 = vld [vmem:[%s19780_s11 + $0x100] sm:$0xff]  ;;  %v14709_v34 = vld [vmem:[%s19780_s11 + $0x108] sm:$0xff] }
  0x12   :  { %19993 = vst [vmem:[#allocation25_spill] sm:$0xff] %v14644_v21  ;;  %19994 = vst [vmem:[#allocation26_spill] sm:$0xff] %v14649_v22  ;;  %v14714_v35 = vld [vmem:[%s19780_s11 + $0x110] sm:$0xff]  ;;  %v14719_v36 = vld [vmem:[%s19780_s11 + $0x118] sm:$0xff] }
  0x13   :  { %19995 = vst [vmem:[#allocation27_spill] sm:$0xff] %v14654_v23  ;;  %19996 = vst [vmem:[#allocation28_spill] sm:$0xff] %v14659_v24  ;;  %v14724_v37 = vld [vmem:[%s19782_s12] sm:$0xff]  ;;  %v14729_v38 = vld [vmem:[%s19782_s12 + $0x8] sm:$0xff] }
  0x14   :  { %19997 = vst [vmem:[#allocation29_spill] sm:$0xff] %v14664_v25  ;;  %19998 = vst [vmem:[#allocation30_spill] sm:$0xff] %v14669_v26  ;;  %v14734_v39 = vld [vmem:[%s19782_s12 + $0x10] sm:$0xff]  ;;  %v14739_v40 = vld [vmem:[%s19782_s12 + $0x18] sm:$0xff] }
  0x15   :  { %19999 = vst [vmem:[#allocation31_spill] sm:$0xff] %v14674_v27  ;;  %20000 = vst [vmem:[#allocation32_spill] sm:$0xff] %v14679_v28  ;;  %v14744_v41 = vld [vmem:[%s19782_s12 + $0x20] sm:$0xff]  ;;  %v14749_v42 = vld [vmem:[%s19782_s12 + $0x28] sm:$0xff] }
  0x16   :  { %20001 = vst [vmem:[#allocation33_spill] sm:$0xff] %v14684_v29  ;;  %20002 = vst [vmem:[#allocation34_spill] sm:$0xff] %v14689_v30  ;;  %v14754_v43 = vld [vmem:[%s19782_s12 + $0x30] sm:$0xff]  ;;  %v14759_v44 = vld [vmem:[%s19782_s12 + $0x38] sm:$0xff] }
  0x17   :  { %20003 = vst [vmem:[#allocation35_spill] sm:$0xff] %v14694_v31  ;;  %20004 = vst [vmem:[#allocation36_spill] sm:$0xff] %v14699_v32  ;;  %v14764_v45 = vld [vmem:[%s19782_s12 + $0x40] sm:$0xff]  ;;  %v14769_v46 = vld [vmem:[%s19782_s12 + $0x48] sm:$0xff] }
  0x18   :  { %20005 = vst [vmem:[#allocation37_spill] sm:$0xff] %v14704_v33  ;;  %20006 = vst [vmem:[#allocation38_spill] sm:$0xff] %v14709_v34  ;;  %v14774_v47 = vld [vmem:[%s19783_s10] sm:$0xff]  ;;  %v14779_v48 = vld [vmem:[%s19783_s10 + $0x8] sm:$0xf] }
  0x19   :  { %20007 = vst [vmem:[#allocation39_spill] sm:$0xff] %v14714_v35  ;;  %20008 = vst [vmem:[#allocation40_spill] sm:$0xff] %v14719_v36  ;;  %v14784_v49 = vld [vmem:[%s19783_s10 + $0xc] sm:$0xff]  ;;  %v14789_v50 = vld [vmem:[%s19783_s10 + $0x14] sm:$0xf] }
  0x1a   :  { %20009 = vst [vmem:[#allocation41_spill] sm:$0xff] %v14724_v37  ;;  %20010 = vst [vmem:[#allocation42_spill] sm:$0xff] %v14729_v38  ;;  %v14794_v51 = vld [vmem:[%s19783_s10 + $0x18] sm:$0xff]  ;;  %v14799_v52 = vld [vmem:[%s19783_s10 + $0x20] sm:$0xf] }
  0x1b   :  { %20011 = vst [vmem:[#allocation43_spill] sm:$0xff] %v14734_v39  ;;  %20012 = vst [vmem:[#allocation44_spill] sm:$0xff] %v14739_v40  ;;  %v14804_v53 = vld [vmem:[%s19783_s10 + $0x24] sm:$0xff]  ;;  %v14809_v54 = vld [vmem:[%s19783_s10 + $0x2c] sm:$0xf] }
  0x1c   :  { %20013 = vst [vmem:[#allocation45_spill] sm:$0xff] %v14744_v41  ;;  %20014 = vst [vmem:[#allocation46_spill] sm:$0xff] %v14749_v42  ;;  %v14814_v55 = vld [vmem:[%s19783_s10 + $0x30] sm:$0xff]  ;;  %v14819_v56 = vld [vmem:[%s19783_s10 + $0x38] sm:$0xf] }
  0x1d   :  { %20015 = vst [vmem:[#allocation47_spill] sm:$0xff] %v14754_v43  ;;  %20016 = vst [vmem:[#allocation48_spill] sm:$0xff] %v14759_v44  ;;  %v14824_v57 = vld [vmem:[%s19783_s10 + $0x3c] sm:$0xff]  ;;  %v14829_v58 = vld [vmem:[%s19783_s10 + $0x44] sm:$0xf] }
  0x1e   :  { %20017 = vst [vmem:[#allocation49_spill] sm:$0xff] %v14764_v45  ;;  %20018 = vst [vmem:[#allocation50_spill] sm:$0xff] %v14769_v46  ;;  %v14834_v59 = vld [vmem:[%s19783_s10 + $0x48] sm:$0xff]  ;;  %v14839_v60 = vld [vmem:[%s19783_s10 + $0x50] sm:$0xf] }
  0x1f   :  { %20019 = vst [vmem:[#allocation51_spill] sm:$0xff] %v14774_v47  ;;  %20020 = vst [vmem:[#allocation52_spill] sm:$0xff] %v14779_v48  ;;  %v14844_v61 = vld [vmem:[%s19783_s10 + $0x54] sm:$0xff]  ;;  %v14849_v62 = vld [vmem:[%s19783_s10 + $0x5c] sm:$0xf] }
  0x20   :  { %20021 = vst [vmem:[#allocation53_spill] sm:$0xff] %v14784_v49  ;;  %20022 = vst [vmem:[#allocation54_spill] sm:$0xff] %v14789_v50  ;;  %v14854_v63 = vld [vmem:[%s19783_s10 + $0x60] sm:$0xff]  ;;  %v14859_v0 = vld [vmem:[%s19783_s10 + $0x68] sm:$0xf] }
  0x21   :  { %20023 = vst [vmem:[#allocation55_spill] sm:$0xff] %v14794_v51  ;;  %20024 = vst [vmem:[#allocation56_spill] sm:$0xff] %v14799_v52  ;;  %v14889_v52 = vld [vmem:[%s19784_s8 + $0x18] sm:$0xff]  ;;  %v14904_v48 = vld [vmem:[%s19784_s8 + $0x30] sm:$0xff] }
  0x22   :  { %20025 = vst [vmem:[#allocation57_spill] sm:$0xff] %v14804_v53  ;;  %20026 = vst [vmem:[#allocation58_spill] sm:$0xff] %v14809_v54  ;;  %v14899_v54 = vld [vmem:[%s19784_s8 + $0x28] sm:$0xff]  ;;  %v14909_v50 = vld [vmem:[%s19784_s8 + $0x38] sm:$0xff] }
  0x23   :  { %20027 = vst [vmem:[#allocation59_spill] sm:$0xff] %v14814_v55  ;;  %20028 = vst [vmem:[#allocation60_spill] sm:$0xff] %v14819_v56  ;;  %v14869_v56 = vld [vmem:[%s19783_s10 + $0x74] sm:$0xf]  ;;  %v14934_v55 = vld [vmem:[%s19784_s8 + $0x60] sm:$0xff] }
  0x24   :  { %20029 = vst [vmem:[#allocation61_spill] sm:$0xff] %v14824_v57  ;;  %20030 = vst [vmem:[#allocation62_spill] sm:$0xff] %v14829_v58  ;;  %v14879_v58 = vld [vmem:[%s19784_s8 + $0x8] sm:$0xff]  ;;  %v14944_v51 = vld [vmem:[%s19784_s8 + $0x70] sm:$0xff] }
  0x25   :  { %20031 = vst [vmem:[#allocation63_spill] sm:$0xff] %v14834_v59  ;;  %20032 = vst [vmem:[#allocation64_spill] sm:$0xff] %v14839_v60  ;;  %v14864_v60 = vld [vmem:[%s19783_s10 + $0x6c] sm:$0xff]  ;;  %v14949_v53 = vld [vmem:[%s19784_s8 + $0x78] sm:$0xff]  ;;  %s15046_s10 = smov 0  }
  0x26   :  { %20033 = vst [vmem:[#allocation65_spill] sm:$0xff] %v14844_v61  ;;  %20034 = vst [vmem:[#allocation66_spill] sm:$0xff] %v14849_v62  ;;  %v14874_v62 = vld [vmem:[%s19784_s8] sm:$0xff]  ;;  %v14924_v59 = vld [vmem:[%s19784_s8 + $0x50] sm:$0xff] }
  0x27   :  { %20035 = vst [vmem:[#allocation67_spill] sm:$0xff] %v14854_v63  ;;  %20036 = vst [vmem:[#allocation68_spill] sm:$0xff] %v14859_v0  ;;  %v14884_v0 = vld [vmem:[%s19784_s8 + $0x10] sm:$0xff]  ;;  %v14914_v63 = vld [vmem:[%s19784_s8 + $0x40] sm:$0xff] }
  0x28   :  { %20037 = vst [vmem:[#allocation69_spill] sm:$0xff] %v14864_v60  ;;  %20038 = vst [vmem:[#allocation70_spill] sm:$0xff] %v14869_v56  ;;  %v14894_v56 = vld [vmem:[%s19784_s8 + $0x20] sm:$0xff]  ;;  %v14919_v60 = vld [vmem:[%s19784_s8 + $0x48] sm:$0xff] }
  0x29   :  { %20039 = vst [vmem:[#allocation71_spill] sm:$0xff] %v14874_v62  ;;  %20040 = vst [vmem:[#allocation72_spill] sm:$0xff] %v14879_v58  ;;  %v14929_v61 = vld [vmem:[%s19784_s8 + $0x58] sm:$0xff]  ;;  %v14939_v57 = vld [vmem:[%s19784_s8 + $0x68] sm:$0xff] }
  0x2a   :  { %20041 = vst [vmem:[#allocation73_spill] sm:$0xff] %v14884_v0  ;;  %20042 = vst [vmem:[#allocation74_spill] sm:$0xff] %v14889_v52  ;;  %v14954_v47 = vld [vmem:[%s19785_s9] sm:$0xff]  ;;  %v14959_v49 = vld [vmem:[%s19785_s9 + $0x8] sm:$0xff] }
  0x2b   :  { %20043 = vst [vmem:[#allocation75_spill] sm:$0xff] %v14894_v56  ;;  %20044 = vst [vmem:[#allocation76_spill] sm:$0xff] %v14899_v54  ;;  %v14964_v62 = vld [vmem:[%s19785_s9 + $0x10] sm:$0xff]  ;;  %v14969_v58 = vld [vmem:[%s19785_s9 + $0x18] sm:$0xff] }
  0x2c   :  { %20045 = vst [vmem:[#allocation77_spill] sm:$0xff] %v14904_v48  ;;  %20046 = vst [vmem:[#allocation78_spill] sm:$0xff] %v14909_v50  ;;  %v14974_v0 = vld [vmem:[%s19785_s9 + $0x20] sm:$0xff] }
  0x2d   :  { %20047 = vst [vmem:[#allocation79_spill] sm:$0xff] %v14914_v63  ;;  %20048 = vst [vmem:[#allocation80_spill] sm:$0xff] %v14919_v60 }
  0x2e   :  { %20049 = vst [vmem:[#allocation81_spill] sm:$0xff] %v14924_v59  ;;  %20050 = vst [vmem:[#allocation82_spill] sm:$0xff] %v14929_v61 }
  0x2f   :  { %20051 = vst [vmem:[#allocation83_spill] sm:$0xff] %v14934_v55  ;;  %20052 = vst [vmem:[#allocation84_spill] sm:$0xff] %v14939_v57 }
  0x30   :  { %20053 = vst [vmem:[#allocation85_spill] sm:$0xff] %v14944_v51  ;;  %20054 = vst [vmem:[#allocation86_spill] sm:$0xff] %v14949_v53 }
  0x31   :  { %20055 = vst [vmem:[#allocation87_spill] sm:$0xff] %v14954_v47  ;;  %20056 = vst [vmem:[#allocation88_spill] sm:$0xff] %v14959_v49  ;;  %v14979_v47 = vld [vmem:[%s19785_s9 + $0x28] sm:$0xff]  ;;  %v14984_v49 = vld [vmem:[%s19785_s9 + $0x30] sm:$0xff] }
  0x32   :  { %20057 = vst [vmem:[#allocation89_spill] sm:$0xff] %v14964_v62  ;;  %20058 = vst [vmem:[#allocation90_spill] sm:$0xff] %v14969_v58  ;;  %v14989_v62 = vld [vmem:[%s19785_s9 + $0x38] sm:$0xff]  ;;  %v14994_v58 = vld [vmem:[%s19785_s9 + $0x40] sm:$0xff] }
  0x33   :  { %20059 = vst [vmem:[#allocation91_spill] sm:$0xff] %v14974_v0  ;;  %20060 = vst [vmem:[#allocation92_spill] sm:$0xff] %v14979_v47  ;;  %v14999_v0 = vld [vmem:[%s19785_s9 + $0x48] sm:$0xff]  ;;  %v15004_v47 = vld [vmem:[%s19785_s9 + $0x50] sm:$0xff] }
  0x34   :  { %20061 = vst [vmem:[#allocation93_spill] sm:$0xff] %v14984_v49  ;;  %20062 = vst [vmem:[#allocation94_spill] sm:$0xff] %v14989_v62  ;;  %v15009_v49 = vld [vmem:[%s19785_s9 + $0x58] sm:$0xff]  ;;  %v15014_v62 = vld [vmem:[%s19785_s9 + $0x60] sm:$0xff] }
  0x35   :  { %20063 = vst [vmem:[#allocation95_spill] sm:$0xff] %v14994_v58  ;;  %20064 = vst [vmem:[#allocation96_spill] sm:$0xff] %v14999_v0  ;;  %v15019_v58 = vld [vmem:[%s19785_s9 + $0x68] sm:$0xff]  ;;  %v15024_v0 = vld [vmem:[%s19785_s9 + $0x70] sm:$0xff] }
  0x36   :  { %20065 = vst [vmem:[#allocation97_spill] sm:$0xff] %v15004_v47  ;;  %20066 = vst [vmem:[#allocation98_spill] sm:$0xff] %v15009_v49  ;;  %v15029_v47 = vld [vmem:[%s19785_s9 + $0x78] sm:$0xff]  ;;  %v15034_v49 = vld [vmem:[%s19786_s5] sm:$0xf] }
  0x37   :  { %20067 = vst [vmem:[#allocation99_spill] sm:$0xff] %v15014_v62  ;;  %20068 = vst [vmem:[#allocation100_spill] sm:$0xff] %v15019_v58  ;;  %v15039_v62 = vld [vmem:[%s19787_s6] sm:$0xf] }
  0x38   :  { %20069 = vst [vmem:[#allocation101_spill] sm:$0xff] %v15024_v0  ;;  %20070 = vst [vmem:[#allocation102_spill] sm:$0xff] %v15029_v47  ;;  %v15044_v58 = vld [vmem:[%s19788_s7] sm:$0xf] }
  0x39   :  { %20071 = vst [vmem:[#allocation103_spill] sm:$0xff] %v15034_v49  ;;  %20072 = vst [vmem:[#allocation104_spill] sm:$0xff] %v15039_v62 }
  0x3a   :  { %20073 = vst [vmem:[#allocation105_spill] sm:$0xff] %v15044_v58 }
  0x3b LB: > { %v10753_v0 = vld [vmem:[%s19776_s1 + $0x4] sm:$0xf]  ;;  %vm510_vm0 = vcmask 1043456   ;;  %v210_v62 = vld [vmem:[%s19776_s1] sm:$0xf]  ;;  %s11566_s24 = smul.u32 164, %s14465_s10  ;;  %s10738_s9 = scalar_lea.vmem %s19781_s13, %s14465_s10  ;;  %s14465_s10 = sphi %s15046_s10, %s165_s10  }
  0x3c   : > { %14159 = vmatprep.subr.msk.bf16.mxu0 %vm510_vm0, %v10753_v0  ;;  %14160 = vmatprep.subr.msk.bf16.mxu1 %vm510_vm0, %v10753_v0  ;;  %v512_v47 = vsel %vm510_vm0, %v10753_v0, 0  ;;  %v10809_v58 = vld [vmem:[%s19776_s1 + $0x8] sm:$0xf]  ;;  %vm306_vm1 = vsmask.f32 7424  ;;  %vm455_vm2 = vcmask 64512  }
  0x3d   : > { %12396 = vmatpush3.bf16.msra.mxu0 %v512_v47  ;;  %14158 = vmatpush3.bf16.msra.mxu1 %v512_v47  ;;  %s15069_s27 = scalar_lea.vmem %s19775_s0, %s11566_s24  ;;  %v1002_v61 = vsel %vm510_vm0, %v10809_v58, 0  ;;  %v10828_v32 = vld [vmem:[%s19776_s1 + $0xc] sm:$0xf]  ;;  %vm909_vm3 = vcmask 1046528   ;;  %vm1453_vm4 = vsmask.f32 6400 }
  0x3e   : > { %14161 = vmatprep.subr.msk.bf16.mxu1 %vm510_vm0, %v210_v62  ;;  %14162 = vmatprep.subr.msk.bf16.mxu0 %vm510_vm0, %v10809_v58  ;;  %v15072_v0 = vld [vmem:[%s15069_s27] sm:$0xff]   ;;  %v15075_v49 = vld [vmem:[%s15069_s27 + $0x8] sm:$0xff]   ;;  %v15090_v59 = vld [vmem:[%s15069_s27 + $0x10] sm:$0xff]   ;;  %vm1811_vm5 = vcmask 1045504   ;;  %vm2355_vm6 = vsmask.f32 5376 }
  0x3f   : > { %v308_v47 = vshrl.u32 %v15072_v0, 16  ;;  %v310_v52 = vshll.u32 %v15072_v0, 16  ;;  %v19833_v56 = vshll.u32 %v15075_v49, 16  ;;  %v15082_v48 = vld [vmem:[%s15069_s27 + $0x80] sm:$0xff]   ;;  %v15085_v50 = vld [vmem:[%s15069_s27 + $0x88] sm:$0xff]   ;;  %v20078_v53 = vshrl.u32 %v15075_v49, 16 }
  0x40   : > { %v15094_v55 = vshll.u32 %v15082_v48, 16  ;;  %v15097_v54 = vshrl.u32 %v15082_v48, 16  ;;  %v15100_v57 = vshll.u32 %v15085_v50, 16  ;;  %v15106_v51 = vld [vmem:[%s15069_s27 + $0x90] sm:$0xf]  ;;  %v15111_v58 = vshll.u32 %v15090_v59, 16 }
  0x41   : > { %v312_v63 = vrot.slane %v310_v52, 1  ;;  %v317_v60 = vrot.slane %v19833_v56, 1  ;;  %v15103_v52 = vshrl.u32 %v15085_v50, 16  ;;  %v15115_v45 = vcombine.low %v15106_v51, %v15106_v51  ;;  %v15118_v44 = vld [vmem:[%s15069_s27 + $0x18] sm:$0xff]   ;;  %v15135_v38 = vld [vmem:[%s15069_s27 + $0x28] sm:$0xff]   ;;  %v15167_v30 = vld [vmem:[%s15069_s27 + $0x30] sm:$0xff]  }
  0x42   : > { %20074 = vst [vmem:[#allocation106_spill] sm:$0xff] %v15094_v55  ;;  %20075 = vst [vmem:[#allocation107_spill] sm:$0xff] %v15097_v54  ;;  %v19835_v43 = vrot.slane %v15094_v55, 1  ;;  %v445_v42 = vrot.slane %v15100_v57, 1  ;;  %v15123_v41 = vshrl.u32 %v15090_v59, 16  ;;  %v15132_v39 = vshll.u32 %v15118_v44, 16 }
  0x43   : > { %20076 = vst [vmem:[#allocation108_spill] sm:$0xff] %v15100_v57  ;;  %20077 = vst [vmem:[#allocation109_spill] sm:$0xff] %v15103_v52  ;;  %v313_v56 = vor.u32 %v312_v63, %v308_v47  ;;  %v321_v46 = vor.u32 %v20078_v53, %v317_v60  ;;  %v15126_v63 = vld [vmem:[%s15069_s27 + $0x20] sm:$0xff]   ;;  %v325_v47 = vrot.slane %v15111_v58, 1  ;;  %v451_v40 = vshll.u32 %v15115_v45, 16  ;;  %v15215_v26 = vld [vmem:[%s15069_s27 + $0x48] sm:$0xff]  }
  0x44   : > { %v441_v37 = vor.u32 %v15097_v54, %v19835_v43  ;;  %v449_v36 = vor.u32 %v15103_v52, %v445_v42  ;;  %v15157_v43 = vld [vmem:[%s19776_s1 + $0x10] sm:$0xf]  ;;  %v15231_v24 = vshll.u32 %v15215_v26, 16  ;;  %v15245_v22 = vld [vmem:[%s15069_s27 + $0x58] sm:$0xff]   ;;  %v15261_v21 = vshrl.u32 %v15215_v26, 16  ;;  %v15275_v15 = vld [vmem:[%s15069_s27 + $0x60] sm:$0xff]  }
  0x45   : > { %v318_v53 = vsel %vm306_vm1, %v313_v56, %v317_v60  ;;  %v15143_v56 = vshrl.u32 %v15118_v44, 16  ;;  %v15146_v60 = vshll.u32 %v15126_v63, 16  ;;  %v326_v35 = vsel %vm306_vm1, %v321_v46, %v325_v47  ;;  %v15236_v23 = vld [vmem:[%s15069_s27 + $0x50] sm:$0xff]   ;;  %v15294_v52 = vld [vmem:[%s15069_s27 + $0x68] sm:$0xff]   ;;  %v15334_v6 = vld [vmem:[%s15069_s27 + $0x78] sm:$0xff]   ;;  %s165_s10 = sadd.s32 1, %s14465_s10  }
  0x46   : > { %12397 = vmatprep.mubr.msk.bf16.mxu0 %vm455_vm2, %v318_v53  ;;  %v453_v34 = vrot.slane %v451_v40, 1  ;;  %v329_v33 = vor.u32 %v15123_v41, %v325_v47  ;;  %v333_v53 = vrot.slane %v15132_v39, 1  ;;  %v446_v31 = vsel %vm306_vm1, %v441_v37, %v445_v42  ;;  %v15180_v42 = vld [vmem:[%s15069_s27 + $0x38] sm:$0xff]   ;;  %v15325_v7 = vld [vmem:[%s15069_s27 + $0x70] sm:$0xff]   ;;  %v20089_v3 = vld [vmem:[#allocation7_spill] sm:$0xff]  ;;  %p162_p0 = scmp.ge.s32.totalorder %s165_s10, 8  }
  0x47   : > { %12398 = vmatmul.mubr.msk.bf16.vlgmr.msra.gmra.mxu0 %vm455_vm2, %v326_v35  ;;  %v728_v40 = vsel %vm510_vm0, %v210_v62, 0  ;;  %v341_v46 = vrot.slane %v15146_v60, 1  ;;  %v15164_v47 = vshrl.u32 %v15126_v63, 16  ;;  %12429 = vmatprep.mubr.msk.bf16.mxu1 %vm455_vm2, %v446_v31  ;;  %v15174_v37 = vshll.u32 %v15135_v38, 16  ;;  %v20088_v1 = vld [vmem:[#allocation5_spill] sm:$0xff]  ;;  %v20090_v2 = vld [vmem:[#allocation6_spill] sm:$0xff] }
  0x48   : > { %v454_v29 = vsel %vm306_vm1, %v449_v36, %v453_v34  ;;  %v334_v28 = vsel %vm306_vm1, %v329_v33, %v333_v53  ;;  %v337_v27 = vor.u32 %v15143_v56, %v333_v53  ;;  %12472 = vmatpush3.bf16.msra.mxu0 %v1002_v61  ;;  %v15186_v33 = vshll.u32 %v15167_v30, 16  ;;  %v20091_v4 = vld [vmem:[#allocation8_spill] sm:$0xff] }
  0x49   : > { %12430 = vmatmul.mubr.msk.bf16.vlgmr.msra.gmra.mxu1 %vm455_vm2, %v454_v29  ;;  %12401 = vmatprep.mubr.msk.bf16.mxu0 %vm455_vm2, %v334_v28  ;;  %v345_v35 = vor.u32 %v15164_v47, %v341_v46  ;;  %v349_v31 = vrot.slane %v15174_v37, 1  ;;  %v15193_v29 = vshrl.u32 %v15135_v38, 16  ;;  %v15197_v36 = vshrl.u32 %v15167_v30, 16 }
  0x4a   : > { %12434 = vmatpush3.bf16.msra.mxu1 %v728_v40  ;;  %12435 = vmatprep.mubr.msk.bf16.mxu1 %vm455_vm2, %v15072_v0  ;;  %v342_v28 = vsel %vm306_vm1, %v337_v27, %v341_v46  ;;  %v15200_v61 = vshll.u32 %v15180_v42, 16  ;;  %v1236_v62 = vsel %vm510_vm0, %v10828_v32, 0  ;;  %v357_v53 = vrot.slane %v15186_v33, 1  ;;  %v15206_v40 = vld [vmem:[%s15069_s27 + $0x40] sm:$0xff]  }
  0x4b   : > { %14163 = vmatprep.subr.msk.bf16.mxu1 %vm510_vm0, %v10828_v32  ;;  %14164 = vmatprep.subr.msk.bf16.mxu0 %vm510_vm0, %v15157_v43  ;;  %v350_v34 = vsel %vm306_vm1, %v345_v35, %v349_v31  ;;  %v353_v27 = vor.u32 %v15193_v29, %v349_v31  ;;  %v15220_v32 = vshll.u32 %v15206_v40, 16  ;;  %v15224_v31 = vshrl.u32 %v15180_v42, 16 }
  0x4c   : > { %v361_v46 = vor.u32 %v15197_v36, %v357_v53  ;;  %v365_v35 = vrot.slane %v15200_v61, 1  ;;  %v15228_v25 = vshrl.u32 %v15206_v40, 16  ;;  %v15265_v19 = vshrl.u32 %v15236_v23, 16 }
  0x4d   : > { %v15268_v18 = vshll.u32 %v15245_v22, 16  ;;  %v20079_v17 = vshll.u32 %v15075_v49, 16  ;;  %v945_v14 = vrot.slane %v15115_v45, 1  ;;  %v20080_v13 = vshrl.u32 %v15075_v49, 16 }
  0x4e   : > { %v15305_v45 = vshll.u32 %v15275_v15, 16  ;;  %v1466_v12 = vrot.slane %v15146_v60, 2  ;;  %v15311_v10 = vshrl.u32 %v15245_v22, 16  ;;  %vm2713_vm7 = vcmask 1044480  }
  0x4f   : > { %12402 = vmatmul.mubr.msk.bf16.gmra.mxu0 %vm455_vm2, %v342_v28  ;;  %v358_v28 = vsel %vm306_vm1, %v353_v27, %v357_v53  ;;  %v369_v53 = vor.u32 %v15224_v31, %v365_v35  ;;  %v15272_v16 = vrot.slane %v20079_v17, 2  ;;  %v15287_v17 = vrot.slane %v20080_v13, 1 }
  0x50   : > { %12405 = vmatprep.mubr.msk.bf16.mxu0 %vm455_vm2, %v350_v34  ;;  %v366_v34 = vsel %vm306_vm1, %v361_v46, %v365_v35  ;;  %v381_v46 = vrot.slane %v15231_v24, 1  ;;  %v15257_v35 = vshll.u32 %v15236_v23, 16  ;;  %v397_v57 = vrot.slane %v15268_v18, 1  ;;  %20081 = vst [vmem:[#allocation110_spill] sm:$0xff] %v15305_v45 }
  0x51   : > { %12436 = vmatmul.mubr.msk.bf16.vlgmr.msra.gmra.mxu1 %vm455_vm2, %v15075_v49  ;;  %v15318_v13 = vshll.u32 %v15294_v52, 16  ;;  %v405_v8 = vrot.slane %v15305_v45, 1  ;;  %vm14470_vm8 = vmmov 0   ;;  %vm6783_vm9 = vcmask 261120  }
  0x52   : > { %12439 = vmatprep.mubr.msk.bf16.mxu1 %vm455_vm2, %v15090_v59  ;;  %12510 = vmatpush3.bf16.msra.mxu1 %v1236_v62  ;;  %v373_v62 = vrot.slane %v15220_v32, 1 }
  0x53   : > { %20082 = vst [vmem:[#allocation111_spill] sm:$0xff] %v15318_v13 }
  0x54   : > { %v377_v27 = vor.u32 %v15228_v25, %v373_v62 }
  0x56   : > { %v382_v20 = vsel %vm306_vm1, %v377_v27, %v381_v46  ;;  %v385_v27 = vor.u32 %v15261_v21, %v381_v46  ;;  %v1465_v46 = vrot.slane %v15164_v47, 1 }
  0x57   : > { %12406 = vmatmul.mubr.msk.bf16.gmra.mxu0 %vm455_vm2, %v358_v28  ;;  %v15250_v28 = vld [vmem:[%s19776_s1 + $0x14] sm:$0xf] }
  0x58   : > { %12409 = vmatprep.mubr.msk.bf16.mxu0 %vm455_vm2, %v366_v34  ;;  %14165 = vmatprep.subr.msk.bf16.mxu1 %vm510_vm0, %v15250_v28  ;;  %v374_v34 = vsel %vm306_vm1, %v369_v53, %v373_v62  ;;  %v389_v62 = vrot.slane %v15257_v35, 1  ;;  %v15280_v53 = vrot.slane %v15085_v50, 1  ;;  %v15320_v54 = vor.u32 %v1466_v12, %v1465_v46 }
  0x59   : > { %12440 = vmatmul.mubr.msk.bf16.gmra.mxu1 %vm455_vm2, %v15118_v44  ;;  %v15347_v46 = vshrl.u32 %v15325_v7, 16 }
  0x5a   : > { %12443 = vmatprep.mubr.msk.bf16.mxu1 %vm455_vm2, %v15126_v63  ;;  %v390_v11 = vsel %vm306_vm1, %v385_v27, %v389_v62 }
  0x5f   : > { %12410 = vmatmul.mubr.msk.bf16.gmra.mxu0 %vm455_vm2, %v374_v34  ;;  %v393_v34 = vor.u32 %v15265_v19, %v389_v62  ;;  %v401_v62 = vor.u32 %v15311_v10, %v397_v57 }
  0x60   : > { %12413 = vmatprep.mubr.msk.bf16.mxu0 %vm455_vm2, %v382_v20  ;;  %v15300_v20 = vsel %vm909_vm3, %v15280_v53, %v945_v14  ;;  %v15315_v14 = vshrl.u32 %v15275_v15, 16 }
  0x61   : > { %12444 = vmatmul.mubr.msk.bf16.gmra.mxu1 %vm455_vm2, %v15135_v38  ;;  %v398_v9 = vsel %vm306_vm1, %v393_v34, %v397_v57  ;;  %v413_v34 = vrot.slane %v15318_v13, 1  ;;  %v406_v12 = vsel %vm306_vm1, %v401_v62, %v405_v8  ;;  %v15350_v13 = vshll.u32 %v15334_v6, 16 }
  0x62   : > { %12447 = vmatprep.mubr.msk.bf16.mxu1 %vm455_vm2, %v15167_v30  ;;  %v409_v27 = vor.u32 %v15315_v14, %v405_v8 }
  0x63   : > { %20084 = vst [vmem:[#allocation113_spill] sm:$0xff] %v15350_v13  ;;  %v429_v62 = vrot.slane %v15350_v13, 1  ;;  %v911_v13 = vrot.slane %v15075_v49, 1  ;;  %v915_v49 = vrot.slane %v15118_v44, 1  ;;  %v919_v44 = vrot.slane %v15135_v38, 1 }
  0x64   : > { %v414_v57 = vsel %vm306_vm1, %v409_v27, %v413_v34  ;;  %v15363_v27 = vshrl.u32 %v15334_v6, 16 }
  0x67   : > { %12414 = vmatmul.mubr.msk.bf16.gmra.mxu0 %vm455_vm2, %v390_v11  ;;  %v15339_v11 = vshll.u32 %v15325_v7, 16 }
  0x68   : > { %12417 = vmatprep.mubr.msk.bf16.mxu0 %vm455_vm2, %v398_v9  ;;  %v15343_v9 = vshrl.u32 %v15294_v52, 16 }
  0x69   : > { %12448 = vmatmul.mubr.msk.bf16.gmra.mxu1 %vm455_vm2, %v15180_v42  ;;  %20083 = vst [vmem:[#allocation112_spill] sm:$0xff] %v15339_v11  ;;  %v421_v5 = vrot.slane %v15339_v11, 1 }
  0x6a   : > { %12451 = vmatprep.mubr.msk.bf16.mxu1 %vm455_vm2, %v15206_v40  ;;  %v417_v45 = vor.u32 %v15343_v9, %v413_v34  ;;  %v433_v34 = vor.u32 %v15363_v27, %v429_v62 }
  0x6b   : > { %v425_v8 = vor.u32 %v15347_v46, %v421_v5 }
  0x6d   : > { %v430_v11 = vsel %vm306_vm1, %v425_v8, %v429_v62  ;;  %v917_v62 = vrot.slane %v15126_v63, 1 }
  0x6f   : > { %12418 = vmatmul.mubr.msk.bf16.gmra.mxu0 %vm455_vm2, %v406_v12  ;;  %v422_v12 = vsel %vm306_vm1, %v417_v45, %v421_v5  ;;  %v20085_v5 = vrot.slane %v15094_v55, 1  ;;  %v920_v63 = vsel %vm909_vm3, %v917_v62, %v919_v44 }
  0x70   : > { %12421 = vmatprep.mubr.msk.bf16.mxu0 %vm455_vm2, %v414_v57  ;;  %v910_v57 = vrot.slane %v15072_v0, 1 }
  0x71   : > { %12452 = vmatmul.mubr.msk.bf16.gmra.mxu1 %vm455_vm2, %v15215_v26  ;;  %v438_v45 = vsel %vm306_vm1, %v433_v34, %v20085_v5  ;;  %v15396_v34 = vld [vmem:[%s19776_s1 + $0x18] sm:$0xf] }
  0x72   : > { %12455 = vmatprep.mubr.msk.bf16.mxu1 %vm455_vm2, %v15236_v23  ;;  %v912_v8 = vsel %vm909_vm3, %v910_v57, %v911_v13  ;;  %v923_v57 = vrot.slane %v15180_v42, 1  ;;  %v2364_v42 = vrot.slane %v15146_v60, 3  ;;  %v15440_v60 = vld [vmem:[%s19776_s1 + $0x1c] sm:$0xf] }
  0x77   : > { %12422 = vmatmul.mubr.msk.bf16.gmra.mxu0 %vm455_vm2, %v422_v12  ;;  %v1594_v12 = vsel %vm510_vm0, %v15157_v43, 0  ;;  %v918_v43 = vsel %vm909_vm3, %v915_v49, %v917_v62 }
  0x78   : > { %12425 = vmatprep.mubr.msk.bf16.mxu0 %vm455_vm2, %v430_v11  ;;  %v913_v11 = vrot.slane %v15090_v59, 1 }
  0x79   : > { %12456 = vmatmul.mubr.msk.bf16.gmra.mxu1 %vm455_vm2, %v15245_v22 }
  0x7a   : > { %12459 = vmatprep.mubr.msk.bf16.mxu1 %vm455_vm2, %v15275_v15  ;;  %v914_v0 = vsel %vm909_vm3, %v911_v13, %v913_v11  ;;  %v916_v59 = vsel %vm909_vm3, %v913_v11, %v915_v49  ;;  %v921_v13 = vrot.slane %v15167_v30, 1  ;;  %v1904_v30 = vsel %vm510_vm0, %v15250_v28, 0 }
  0x7b   : > { %v929_v11 = vrot.slane %v15236_v23, 1  ;;  %v931_v28 = vrot.slane %v15245_v22, 1  ;;  %v933_v22 = vrot.slane %v15275_v15, 1  ;;  %v935_v23 = vrot.slane %v15294_v52, 1 }
  0x7c   : > { %v922_v38 = vsel %vm909_vm3, %v919_v44, %v921_v13  ;;  %v924_v5 = vsel %vm909_vm3, %v921_v13, %v923_v57  ;;  %v939_v15 = vrot.slane %v15334_v6, 1  ;;  %v941_v44 = vrot.slane %v15082_v48, 1 }
  0x7d   : > { %v934_v62 = vsel %vm909_vm3, %v931_v28, %v933_v22 }
  0x7e   : > { %v942_v13 = vsel %vm909_vm3, %v939_v15, %v941_v44 }
  0x7f   : > { %12426 = vmatmul.mubr.msk.bf16.gmra.mxu0 %vm455_vm2, %v438_v45  ;;  %v925_v45 = vrot.slane %v15206_v40, 1  ;;  %v2363_v40 = vrot.slane %v15164_v47, 2  ;;  %v932_v47 = vsel %vm909_vm3, %v929_v11, %v931_v28  ;;  %v14430_v28 = vld [vmem:[%s15069_s27 + $0x8] sm:$0xff]  }
  0x80   : > { %12473 = vmatprep.mubr.msk.bf16.mxu0 %vm455_vm2, %v912_v8  ;;  %v927_v8 = vrot.slane %v15215_v26, 1 }
  0x81   : > { %12460 = vmatmul.mubr.msk.bf16.gmra.mxu1 %vm455_vm2, %v15294_v52  ;;  %v936_v52 = vsel %vm909_vm3, %v933_v22, %v935_v23 }
  0x82   : > { %12463 = vmatprep.mubr.msk.bf16.mxu1 %vm455_vm2, %v15325_v7  ;;  %v928_v26 = vsel %vm909_vm3, %v925_v45, %v927_v8  ;;  %v930_v49 = vsel %vm909_vm3, %v927_v8, %v929_v11  ;;  %v1474_v11 = vrot.slane %v15186_v33, 2 }
  0x87   : > { %12474 = vmatmul.mubr.msk.bf16.vlgmr.msra.gmra.mxu0 %vm455_vm2, %v914_v0 }
  0x88   : > { %12477 = vmatprep.mubr.msk.bf16.mxu0 %vm455_vm2, %v916_v59  ;;  %12548 = vmatpush3.bf16.msra.mxu0 %v1594_v12  ;;  %v937_v12 = vrot.slane %v15325_v7, 1  ;;  %v207_v7 = vld [vmem:[%s15069_s27 + $0x98] sm:$0xf] }
  0x89   : > { %12464 = vmatmul.mubr.msk.bf16.gmra.mxu1 %vm455_vm2, %v15334_v6  ;;  %14166 = vmatprep.subr.msk.bf16.mxu0 %vm510_vm0, %v15396_v34  ;;  %v206_v6 = vld [vmem:[%s15069_s27 + $0x94] sm:$0xf] }
  0x8a   : > { %12467 = vmatprep.mubr.msk.bf16.mxu1 %vm455_vm2, %v15082_v48  ;;  %v1461_v48 = vrot.slane %v15143_v56, 1 }
  0x8f   : > { %12478 = vmatmul.mubr.msk.bf16.gmra.mxu0 %vm455_vm2, %v918_v43 }
  0x90   : > { %12481 = vmatprep.mubr.msk.bf16.mxu0 %vm455_vm2, %v920_v63 }
  0x91   : > { %12468 = vmatmul.mubr.msk.bf16.gmra.mxu1 %vm455_vm2, %v15085_v50  ;;  %v926_v50 = vsel %vm909_vm3, %v923_v57, %v925_v45  ;;  %v1458_v57 = vrot.slane %v15111_v58, 2  ;;  %v15480_v45 = vcombine.low %v207_v7, %v207_v7 }
  0x92   : > { %12511 = vmatprep.mubr.msk.bf16.mxu1 %vm455_vm2, %v914_v0  ;;  %v15447_v0 = vor.u32 %v2364_v42, %v2363_v40  ;;  %v1470_v40 = vrot.slane %v15174_v37, 2 }
  0x93   : > { %v1227_v42 = vrot.slane %v15480_v45, 1 }
  0x97   : > { %12482 = vmatmul.mubr.msk.bf16.gmra.mxu0 %vm455_vm2, %v922_v38 }
  0x98   : > { %12485 = vmatprep.mubr.msk.bf16.mxu0 %vm455_vm2, %v924_v5 }
  0x99   : > { %12512 = vmatmul.mubr.msk.bf16.vlgmr.msra.gmra.mxu1 %vm455_vm2, %v916_v59  ;;  %v938_v59 = vsel %vm909_vm3, %v935_v23, %v937_v12 }
  0x9a   : > { %12515 = vmatprep.mubr.msk.bf16.mxu1 %vm455_vm2, %v918_v43  ;;  %12586 = vmatpush3.bf16.msra.mxu1 %v1904_v30  ;;  %v940_v43 = vsel %vm909_vm3, %v937_v12, %v939_v15  ;;  %v1462_v30 = vrot.slane %v15132_v39, 2  ;;  %v2138_v15 = vsel %vm510_vm0, %v15396_v34, 0 }
  0x9b   : > { %14167 = vmatprep.subr.msk.bf16.mxu1 %vm510_vm0, %v15440_v60 }
  0x9c   : > { %v1463_v23 = vor.u32 %v1462_v30, %v1461_v48  ;;  %v1486_v30 = vrot.slane %v15231_v24, 2 }
  0x9f   : > { %12486 = vmatmul.mubr.msk.bf16.gmra.mxu0 %vm455_vm2, %v926_v50 }
  0xa0   : > { %12489 = vmatprep.mubr.msk.bf16.mxu0 %vm455_vm2, %v928_v26 }
  0xa1   : > { %12516 = vmatmul.mubr.msk.bf16.gmra.mxu1 %vm455_vm2, %v920_v63  ;;  %v1457_v63 = vrot.slane %v15123_v41, 1 }
  0xa2   : > { %12519 = vmatprep.mubr.msk.bf16.mxu1 %vm455_vm2, %v922_v38  ;;  %v944_v38 = vsel %vm909_vm3, %v941_v44, %v15280_v53  ;;  %v1477_v44 = vrot.slane %v15224_v31, 1 }
  0xa3   : > { %v1459_v8 = vor.u32 %v1458_v57, %v1457_v63  ;;  %v1481_v63 = vrot.slane %v15228_v25, 1  ;;  %v15529_v57 = vld [vmem:[%s15069_s27 + $0x20] sm:$0xff]  }
  0xa4   : > { %v19850_v48 = vrot.slane %v15529_v57, 2 }
  0xa7   : > { %12490 = vmatmul.mubr.msk.bf16.gmra.mxu0 %vm455_vm2, %v930_v49 }
  0xa8   : > { %12493 = vmatprep.mubr.msk.bf16.mxu0 %vm455_vm2, %v932_v47 }
  0xa9   : > { %12520 = vmatmul.mubr.msk.bf16.gmra.mxu1 %vm455_vm2, %v924_v5  ;;  %v15477_v5 = vcombine.low %v15106_v51, %v206_v6  ;;  %v1469_v51 = vrot.slane %v15193_v29, 1  ;;  %v14432_v6 = vld [vmem:[%s15069_s27 + $0x18] sm:$0xff]  }
  0xaa   : > { %12523 = vmatprep.mubr.msk.bf16.mxu1 %vm455_vm2, %v926_v50  ;;  %v1815_v7 = vrot.slane %v14432_v6, 2  ;;  %v15566_v6 = vld [vmem:[%s15069_s27 + $0x40] sm:$0xff]  }
  0xab   : > { %20086 = vst [vmem:[#allocation114_spill] sm:$0xff] %v15477_v5  ;;  %v1225_v50 = vrot.slane %v15477_v5, 1 }
  0xaf   : > { %12494 = vmatmul.mubr.msk.bf16.gmra.mxu0 %vm455_vm2, %v934_v62 }
  0xb0   : > { %12497 = vmatprep.mubr.msk.bf16.mxu0 %vm455_vm2, %v936_v52 }
  0xb1   : > { %12524 = vmatmul.mubr.msk.bf16.gmra.mxu1 %vm455_vm2, %v928_v26  ;;  %v1473_v26 = vrot.slane %v15197_v36, 1 }
  0xb2   : > { %12527 = vmatprep.mubr.msk.bf16.mxu1 %vm455_vm2, %v930_v49  ;;  %v1812_v49 = vrot.slane %v14430_v28, 2  ;;  %v1490_v28 = vrot.slane %v15257_v35, 2 }
  0xb3   : > { %v1475_v34 = vor.u32 %v1474_v11, %v1473_v26  ;;  %v1228_v26 = vsel %vm909_vm3, %v1225_v50, %v1227_v42  ;;  %v1489_v11 = vrot.slane %v15265_v19, 1  ;;  %v15551_v42 = vld [vmem:[%s15069_s27 + $0x30] sm:$0xff]  }
  0xb7   : > { %12498 = vmatmul.mubr.msk.bf16.gmra.mxu0 %vm455_vm2, %v938_v59 }
  0xb8   : > { %12501 = vmatprep.mubr.msk.bf16.mxu0 %vm455_vm2, %v940_v43 }
  0xb9   : > { %12528 = vmatmul.mubr.msk.bf16.gmra.mxu1 %vm455_vm2, %v932_v47  ;;  %v20087_v47 = vor.u32 %v15272_v16, %v15287_v17  ;;  %v15509_v16 = vld [vmem:[%s19776_s1 + $0x20] sm:$0xf]  ;;  %v1468_v17 = vsel %vm1453_vm4, %v1463_v23, %v15320_v54 }
  0xba   : > { %12531 = vmatprep.mubr.msk.bf16.mxu1 %vm455_vm2, %v934_v62  ;;  %v14431_v62 = vld [vmem:[%s15069_s27 + $0x10] sm:$0xff]  }
  0xbb   : > { %v1460_v22 = vsel %vm1453_vm4, %v20087_v47, %v1459_v8  ;;  %v1813_v12 = vrot.slane %v14431_v62, 2  ;;  %v1493_v62 = vrot.slane %v15311_v10, 1 }
  0xbd   : > { %v1814_v47 = vsel %vm1811_vm5, %v1812_v49, %v1813_v12 }
  0xbf   : > { %12502 = vmatmul.mubr.msk.bf16.gmra.mxu0 %vm455_vm2, %v942_v13 }
  0xc0   : > { %12505 = vmatprep.mubr.msk.bf16.mxu0 %vm455_vm2, %v944_v38 }
  0xc1   : > { %12532 = vmatmul.mubr.msk.bf16.gmra.mxu1 %vm455_vm2, %v936_v52  ;;  %v1464_v52 = vsel %vm1453_vm4, %v1459_v8, %v1463_v23  ;;  %v1821_v23 = vrot.slane %v15551_v42, 2  ;;  %v14438_v42 = vld [vmem:[%s15069_s27 + $0x48] sm:$0xff]  }
  0xc2   : > { %12535 = vmatprep.mubr.msk.bf16.mxu1 %vm455_vm2, %v938_v59  ;;  %v1471_v59 = vor.u32 %v1470_v40, %v1469_v51  ;;  %v15536_v51 = vld [vmem:[%s15069_s27 + $0x28] sm:$0xff]   ;;  %v14468_v40 = vmov 0  }
  0xc3   : > { %14181 = vset.pattern.permute.xlu0 %v14468_v40  ;;  %14182 = vset.pattern.permute.xlu1 %v14468_v40  ;;  %v20094_v40 = vld [vmem:[#allocation10_spill] sm:$0xff] }
  0xc4   : > { %v1476_v8 = vsel %vm1453_vm4, %v1471_v59, %v1475_v34  ;;  %3099 = vperm.xlu0 %14181, %v20088_v1   ;;  %3109 = vperm.xlu1 %14182, %v20089_v3   ;;  %v20100_v1 = vld [vmem:[#allocation107_spill] sm:$0xff]  ;;  %v15613_v3 = vld [vmem:[%s15069_s27 + $0x60] sm:$0xff]  }
  0xc7   : > { %12506 = vmatmul.mubr.msk.bf16.gmra.mxu0 %vm455_vm2, %v15300_v20  ;;  %v1226_v20 = vsel %vm909_vm3, %v15280_v53, %v1225_v50  ;;  %v1472_v53 = vsel %vm1453_vm4, %v15320_v54, %v1471_v59  ;;  %v1497_v59 = vrot.slane %v15315_v14, 1  ;;  %v15600_v54 = vld [vmem:[%s15069_s27 + $0x58] sm:$0xff]  }
  0xc8   : > { %12549 = vmatprep.mubr.msk.bf16.mxu0 %vm455_vm2, %v1460_v22  ;;  %3104 = vperm.xlu0 %14181, %v20090_v2   ;;  %v1513_v2 = vrot.slane %v20100_v1, 1  ;;  %v20104_v1 = vld [vmem:[#allocation13_spill] sm:$0xff] }
  0xc9   : > { %12536 = vmatmul.mubr.msk.bf16.gmra.mxu1 %vm455_vm2, %v940_v43  ;;  %v1478_v43 = vrot.slane %v15200_v61, 2  ;;  %3114 = vperm.xlu1 %14182, %v20091_v4   ;;  %v20108_v4 = vld [vmem:[#allocation109_spill] sm:$0xff] }
  0xca   : > { %12539 = vmatprep.mubr.msk.bf16.mxu1 %vm455_vm2, %v942_v13  ;;  %v1482_v13 = vrot.slane %v15220_v32, 2 }
  0xcb   : > { %v1479_v22 = vor.u32 %v1478_v43, %v1477_v44  ;;  %v20092_v44 = vld [vmem:[#allocation110_spill] sm:$0xff] }
  0xcc   : > { %v1483_v50 = vor.u32 %v1482_v13, %v1481_v63  ;;  %v1498_v43 = vrot.slane %v20092_v44, 2  ;;  %v20093_v13 = vld [vmem:[#allocation9_spill] sm:$0xff] }
  0xcd   : > { %v1480_v49 = vsel %vm1453_vm4, %v1475_v34, %v1479_v22  ;;  %v2496_v34 = vsel %vm510_vm0, %v15440_v60, 0  ;;  %3119 = vperm.xlu0 %14181, %v20093_v13   ;;  %3124 = vperm.xlu1 %14182, %v20094_v40   ;;  %v1501_v60 = vrot.slane %v15343_v9, 1  ;;  %v1509_v40 = vrot.slane %v15363_v27, 1  ;;  %v20099_v63 = vld [vmem:[#allocation113_spill] sm:$0xff] }
  0xcf   : > { %12550 = vmatmul.mubr.msk.bf16.vlgmr.msra.gmra.mxu0 %vm455_vm2, %v1464_v52  ;;  %v14436_v52 = vld [vmem:[%s15069_s27 + $0x38] sm:$0xff]  }
  0xd0   : > { %12553 = vmatprep.mubr.msk.bf16.mxu0 %vm455_vm2, %v1468_v17  ;;  %12624 = vmatpush3.bf16.msra.mxu0 %v2138_v15  ;;  %v1494_v15 = vrot.slane %v15268_v18, 2  ;;  %v1823_v17 = vrot.slane %v14436_v52, 2  ;;  %v20096_v52 = vld [vmem:[#allocation112_spill] sm:$0xff] }
  0xd1   : > { %12540 = vmatmul.mubr.msk.bf16.gmra.mxu1 %vm455_vm2, %v944_v38  ;;  %14168 = vmatprep.subr.msk.bf16.mxu0 %vm510_vm0, %v15509_v16  ;;  %v1485_v38 = vrot.slane %v15261_v21, 1 }
  0xd2   : > { %12543 = vmatprep.mubr.msk.bf16.mxu1 %vm455_vm2, %v1226_v20  ;;  %v1484_v20 = vsel %vm1453_vm4, %v1479_v22, %v1483_v50 }
  0xd7   : > { %12554 = vmatmul.mubr.msk.bf16.gmra.mxu0 %vm455_vm2, %v1472_v53  ;;  %v15563_v53 = vsel %vm1811_vm5, %v1813_v12, %v1815_v7  ;;  %v1487_v12 = vor.u32 %v1486_v30, %v1485_v38  ;;  %v1506_v38 = vrot.slane %v20096_v52, 2  ;;  %v15590_v30 = vld [vmem:[%s15069_s27 + $0x50] sm:$0xff]  }
  0xd8   : > { %12557 = vmatprep.mubr.msk.bf16.mxu0 %vm455_vm2, %v1476_v8  ;;  %v15576_v8 = vsel %vm1811_vm5, %v1815_v7, %v19850_v48  ;;  %v1827_v7 = vrot.slane %v14438_v42, 2  ;;  %v1510_v42 = vrot.slane %v20099_v63, 2 }
  0xd9   : > { %12544 = vmatmul.mubr.msk.bf16.gmra.mxu1 %vm455_vm2, %v1228_v26  ;;  %v1491_v26 = vor.u32 %v1490_v28, %v1489_v11  ;;  %v20097_v28 = vld [vmem:[#allocation11_spill] sm:$0xff]  ;;  %v1488_v13 = vsel %vm1453_vm4, %v1483_v50, %v1487_v12  ;;  %v20101_v11 = vrot.slane %v15536_v51, 2  ;;  %v1514_v50 = vrot.slane %v15094_v55, 2 }
  0xda   : > { %12587 = vmatprep.mubr.msk.bf16.mxu1 %vm455_vm2, %v1814_v47  ;;  %v20095_v47 = vld [vmem:[#allocation111_spill] sm:$0xff]  ;;  %3129 = vperm.xlu0 %14181, %v20097_v28   ;;  %v20102_v28 = vrot.slane %v15529_v57, 2  ;;  %v1495_v57 = vor.u32 %v1494_v15, %v1493_v62  ;;  %v20109_v62 = vld [vmem:[#allocation108_spill] sm:$0xff] }
  0xdb   : > { %v1502_v22 = vrot.slane %v20095_v47, 2  ;;  %v1492_v48 = vsel %vm1453_vm4, %v1487_v12, %v1491_v26  ;;  %v20103_v12 = vmov %v20101_v11  ;;  %v1518_v15 = vrot.slane %v20109_v62, 2  ;;  %v15639_v55 = vld [vmem:[%s15069_s27 + $0x68] sm:$0xff]  }
  0xdc   : > { %v1496_v51 = vsel %vm1453_vm4, %v1491_v26, %v1495_v57  ;;  %20110 = vst [vmem:[#allocation110_spill] sm:$0xff] %v15639_v55  ;;  %v20111_v26 = vrot.slane %v15566_v6, 2 }
  0xde   : > { %3139 = vperm.xlu0 %14181, %v20104_v1  }
  0xdf   : > { %12558 = vmatmul.mubr.msk.bf16.gmra.mxu0 %vm455_vm2, %v1480_v49  ;;  %v1505_v49 = vrot.slane %v15347_v46, 1 }
  0xe0   : > { %12561 = vmatprep.mubr.msk.bf16.mxu0 %vm455_vm2, %v1484_v20  ;;  %v20098_v20 = vld [vmem:[#allocation12_spill] sm:$0xff] }
  0xe1   : > { %12588 = vmatmul.mubr.msk.bf16.vlgmr.msra.gmra.mxu1 %vm455_vm2, %v15563_v53  ;;  %3134 = vperm.xlu1 %14182, %v20098_v20   ;;  %v15609_v20 = vsel %vm1811_vm5, %v20102_v28, %v20101_v11  ;;  %v20105_v11 = vld [vmem:[#allocation14_spill] sm:$0xff]  ;;  %v1499_v28 = vor.u32 %v1498_v43, %v1497_v59  ;;  %v1835_v59 = vrot.slane %v15639_v55, 2  ;;  %v1507_v55 = vor.u32 %v1506_v38, %v1505_v49 }
  0xe2   : > { %12591 = vmatprep.mubr.msk.bf16.mxu1 %vm455_vm2, %v15576_v8  ;;  %12662 = vmatpush3.bf16.msra.mxu1 %v2496_v34  ;;  %v15620_v34 = vsel %vm1811_vm5, %v20103_v12, %v1821_v23  ;;  %v20107_v12 = vld [vmem:[#allocation16_spill] sm:$0xff]  ;;  %v20117_v49 = vshrl.u32 %v15477_v5, 16 }
  0xe3   : > { %v1500_v1 = vsel %vm1453_vm4, %v1495_v57, %v1499_v28  ;;  %v20112_v57 = vld [vmem:[#allocation17_spill] sm:$0xff] }
  0xe4   : > { %v1524_v38 = vrot.slane %v20117_v49, 1 }
  0xe5   : > { %3144 = vperm.xlu1 %14182, %v20105_v11   ;;  %v15636_v11 = vsel %vm1811_vm5, %v1821_v23, %v1823_v17  ;;  %v20113_v23 = vld [vmem:[#allocation18_spill] sm:$0xff] }
  0xe7   : > { %12562 = vmatmul.mubr.msk.bf16.gmra.mxu0 %vm455_vm2, %v1488_v13  ;;  %v20106_v13 = vld [vmem:[#allocation15_spill] sm:$0xff] }
  0xe8   : > { %12565 = vmatprep.mubr.msk.bf16.mxu0 %vm455_vm2, %v1492_v48  ;;  %3149 = vperm.xlu0 %14181, %v20106_v13   ;;  %v1517_v48 = vrot.slane %v20108_v4, 1  ;;  %v15647_v13 = vsel %vm1811_vm5, %v1823_v17, %v20111_v26  ;;  %v20115_v17 = vld [vmem:[#allocation20_spill] sm:$0xff] }
  0xe9   : > { %12592 = vmatmul.mubr.msk.bf16.gmra.mxu1 %vm455_vm2, %v15609_v20  ;;  %3154 = vperm.xlu1 %14182, %v20107_v12   ;;  %v1503_v12 = vor.u32 %v1502_v22, %v1501_v60  ;;  %v1531_v60 = vshrl.u32 %v15480_v45, 16  ;;  %v20116_v22 = vrot.slane %v15566_v6, 2  ;;  %v1511_v6 = vor.u32 %v1510_v42, %v1509_v40 }
  0xea   : > { %12595 = vmatprep.mubr.msk.bf16.mxu1 %vm455_vm2, %v15620_v34 }
  0xeb   : > { %v1504_v43 = vsel %vm1453_vm4, %v1499_v28, %v1503_v12  ;;  %v1508_v26 = vsel %vm1453_vm4, %v1503_v12, %v1507_v55  ;;  %v20118_v28 = vrot.slane %v15590_v30, 2  ;;  %v1512_v49 = vsel %vm1453_vm4, %v1507_v55, %v1511_v6 }
  0xec   : > { %3159 = vperm.xlu0 %14181, %v20112_v57   ;;  %v15665_v57 = vsel %vm1811_vm5, %v20116_v22, %v1827_v7  ;;  %v1515_v22 = vor.u32 %v1514_v50, %v1513_v2  ;;  %v1533_v42 = vrot.slane %v1531_v60, 1  ;;  %v15697_v50 = vld [vmem:[%s15069_s27 + $0x70] sm:$0xff]  }
  0xed   : > { %3164 = vperm.xlu1 %14182, %v20113_v23   ;;  %v1534_v23 = vshll.u32 %v15480_v45, 16  ;;  %v15674_v12 = vsel %vm1811_vm5, %v1827_v7, %v20118_v28  ;;  %v20122_v7 = vld [vmem:[#allocation24_spill] sm:$0xff]  ;;  %20125 = vst [vmem:[#allocation111_spill] sm:$0xff] %v15697_v50 }
  0xee   : > { %v1516_v28 = vsel %vm1453_vm4, %v1511_v6, %v1515_v22  ;;  %v20126_v6 = vrot.slane %v15613_v3, 2 }
  0xef   : > { %12566 = vmatmul.mubr.msk.bf16.gmra.mxu0 %vm455_vm2, %v1496_v51  ;;  %v20114_v51 = vld [vmem:[#allocation19_spill] sm:$0xff]  ;;  %v1536_v55 = vrot.slane %v1534_v23, 2 }
  0xf0   : > { %12569 = vmatprep.mubr.msk.bf16.mxu0 %vm455_vm2, %v1500_v1  ;;  %3169 = vperm.xlu0 %14181, %v20114_v51   ;;  %v19853_v1 = vshll.u32 %v15477_v5, 16  ;;  %v20119_v51 = vld [vmem:[#allocation21_spill] sm:$0xff] }
  0xf1   : > { %12596 = vmatmul.mubr.msk.bf16.gmra.mxu1 %vm455_vm2, %v15636_v11  ;;  %3174 = vperm.xlu1 %14182, %v20115_v17   ;;  %v20120_v17 = vld [vmem:[#allocation22_spill] sm:$0xff] }
  0xf2   : > { %12599 = vmatprep.mubr.msk.bf16.mxu1 %vm455_vm2, %v15647_v13  ;;  %v1527_v40 = vrot.slane %v19853_v1, 2 }
  0xf4   : > { %3179 = vperm.xlu0 %14181, %v20119_v51   ;;  %v20124_v51 = vrot.slane %v15590_v30, 2  ;;  %v1519_v30 = vor.u32 %v1518_v15, %v1517_v48  ;;  %v1528_v23 = vor.u32 %v1527_v40, %v1524_v38  ;;  %v20132_v48 = vrot.slane %v15613_v3, 2  ;;  %v20133_v40 = vld [vmem:[#allocation29_spill] sm:$0xff] }
  0xf5   : > { %3184 = vperm.xlu1 %14182, %v20120_v17   ;;  %v1837_v17 = vrot.slane %v15697_v50, 2 }
  0xf6   : > { %v15722_v15 = vsel %vm1811_vm5, %v20132_v48, %v1835_v59 }
  0xf7   : > { %12570 = vmatmul.mubr.msk.bf16.gmra.mxu0 %vm455_vm2, %v1504_v43  ;;  %v20121_v43 = vld [vmem:[#allocation23_spill] sm:$0xff]  ;;  %v15726_v38 = vsel %vm1811_vm5, %v1835_v59, %v1837_v17 }
  0xf8   : > { %12573 = vmatprep.mubr.msk.bf16.mxu0 %vm455_vm2, %v1508_v26  ;;  %3189 = vperm.xlu0 %14181, %v20121_v43   ;;  %v20123_v26 = vrot.slane %v15600_v54, 2  ;;  %v1520_v54 = vsel %vm1453_vm4, %v1515_v22, %v1519_v30  ;;  %v1537_v22 = vor.u32 %v1536_v55, %v1533_v42  ;;  %v20139_v55 = vld [vmem:[#allocation31_spill] sm:$0xff] }
  0xf9   : > { %12600 = vmatmul.mubr.msk.bf16.gmra.mxu1 %vm455_vm2, %v15665_v57  ;;  %3194 = vperm.xlu1 %14182, %v20122_v7   ;;  %v20128_v7 = vld [vmem:[#allocation25_spill] sm:$0xff] }
  0xfa   : > { %12603 = vmatprep.mubr.msk.bf16.mxu1 %vm455_vm2, %v15674_v12  ;;  %v15694_v2 = vsel %vm1811_vm5, %v20124_v51, %v20123_v26  ;;  %v20127_v43 = vmov %v20123_v26  ;;  %v20129_v26 = vld [vmem:[#allocation26_spill] sm:$0xff]  ;;  %v20131_v51 = vld [vmem:[#allocation28_spill] sm:$0xff] }
  0xfb   : > { %v15706_v60 = vsel %vm1811_vm5, %v20127_v43, %v20126_v6  ;;  %v1529_v6 = vsel %vm1453_vm4, %v1519_v30, %v1528_v23  ;;  %v20134_v43 = vld [vmem:[#allocation30_spill] sm:$0xff]  ;;  %v15738_v30 = vld [vmem:[%s15069_s27 + $0x78] sm:$0xff]  }
  0xfc   : > { %3199 = vperm.xlu0 %14181, %v20128_v7   ;;  %20136 = vst [vmem:[#allocation113_spill] sm:$0xff] %v15738_v30  ;;  %v1839_v59 = vrot.slane %v15738_v30, 2  ;;  %v2806_v30 = vsel %vm510_vm0, %v15509_v16, 0  ;;  %v2359_v16 = vrot.slane %v15143_v56, 2 }
  0xfd   : > { %3204 = vperm.xlu1 %14182, %v20129_v26  }
  0xff   : > { %12574 = vmatmul.mubr.msk.bf16.gmra.mxu0 %vm455_vm2, %v1512_v49  ;;  %v20130_v49 = vld [vmem:[#allocation27_spill] sm:$0xff] }
 0x100   : > { %12577 = vmatprep.mubr.msk.bf16.mxu0 %vm455_vm2, %v1516_v28  ;;  %3209 = vperm.xlu0 %14181, %v20130_v49  }
 0x101   : > { %12604 = vmatmul.mubr.msk.bf16.gmra.mxu1 %vm455_vm2, %v15694_v2  ;;  %3214 = vperm.xlu1 %14182, %v20131_v51   ;;  %v1538_v51 = vsel %vm1453_vm4, %v1528_v23, %v1537_v22  ;;  %v20144_v23 = vld [vmem:[#allocation34_spill] sm:$0xff] }
 0x102   : > { %12607 = vmatprep.mubr.msk.bf16.mxu1 %vm455_vm2, %v15706_v60 }
 0x104   : > { %3219 = vperm.xlu0 %14181, %v20133_v40  }
 0x105   : > { %3224 = vperm.xlu1 %14182, %v20134_v43   ;;  %v15753_v43 = vsel %vm1811_vm5, %v1837_v17, %v1839_v59 }
 0x107   : > { %v12399_v28 = vpop.f32.mrf.mxu0  ;;  %12578 = vmatmul.mubr.msk.bf16.gmra.mxu0 %vm455_vm2, %v1520_v54  ;;  %v15744_v54 = vld [vmem:[%s15069_s27 + $0x80] sm:$0xff]  }
 0x108   : > { %12581 = vmatprep.mubr.msk.bf16.mxu0 %vm455_vm2, %v1529_v6  ;;  %20138 = vst [vmem:[#allocation116_spill] sm:$0xff] %v15744_v54  ;;  %v1841_v42 = vrot.slane %v15744_v54, 2  ;;  %3229 = vperm.xlu0 %14181, %v20139_v55   ;;  %v20140_v6 = vld [vmem:[#allocation32_spill] sm:$0xff]  ;;  %v20143_v55 = vld [vmem:[#allocation33_spill] sm:$0xff] }
 0x109   : > { %v15731_v7 = vpop.f32.mrf.mxu1  ;;  %12608 = vmatmul.mubr.msk.bf16.gmra.mxu1 %vm455_vm2, %v15722_v15  ;;  %v548_v3 = vpop.f32.mrf.mxu0  ;;  %3234 = vperm.xlu1 %14182, %v20140_v6  }
 0x10a   : > { %20135 = vst [vmem:[#allocation112_spill] sm:$0xff] %v15731_v7  ;;  %12611 = vmatprep.mubr.msk.bf16.mxu1 %vm455_vm2, %v15726_v38  ;;  %v15759_v54 = vsel %vm1811_vm5, %v1839_v59, %v1841_v42  ;;  %v20147_v7 = vld [vmem:[#allocation36_spill] sm:$0xff] }
 0x10b   : > { %v15741_v26 = vpop.f32.mrf.mxu1  ;;  %v12400_v49 = vpop.f32.mrf.mxu0 }
 0x10c   : > { %20137 = vst [vmem:[#allocation115_spill] sm:$0xff] %v15741_v26  ;;  %3239 = vperm.xlu0 %14181, %v20143_v55   ;;  %v15776_v55 = vrot.slane %v15477_v5, 2 }
 0x10d   : > { %v15750_v48 = vpop.f32.mrf.mxu1  ;;  %v551_v40 = vpop.f32.mrf.mxu0  ;;  %3244 = vperm.xlu1 %14182, %v20144_v23   ;;  %v20146_v23 = vld [vmem:[#allocation35_spill] sm:$0xff] }
 0x10e   : > { %20141 = vst [vmem:[#allocation117_spill] sm:$0xff] %v15750_v48 }
 0x10f   : > { %v15755_v1 = vpop.f32.mrf.mxu1  ;;  %v12403_v26 = vpop.f32.mrf.mxu0  ;;  %12582 = vmatmul.mubr.msk.bf16.gmra.mxu0 %vm455_vm2, %v1538_v51  ;;  %v15772_v51 = vld [vmem:[%s15069_s27 + $0x88] sm:$0xff]  }
 0x110   : > { %20142 = vst [vmem:[#allocation118_spill] sm:$0xff] %v15755_v1  ;;  %12625 = vmatprep.mubr.msk.bf16.mxu0 %vm455_vm2, %v15563_v53  ;;  %20145 = vst [vmem:[#allocation119_spill] sm:$0xff] %v15772_v51  ;;  %v1843_v59 = vrot.slane %v15772_v51, 2  ;;  %3249 = vperm.xlu0 %14181, %v20146_v23  }
 0x111   : > { %v12437_v22 = vpop.f32.mrf.mxu1  ;;  %12612 = vmatmul.mubr.msk.bf16.gmra.mxu1 %vm455_vm2, %v15753_v43  ;;  %v564_v17 = vpop.f32.mrf.mxu0  ;;  %3254 = vperm.xlu1 %14182, %v20147_v7   ;;  %v2356_v7 = vrot.slane %v15123_v41, 2  ;;  %v20150_v41 = vld [vmem:[#allocation38_spill] sm:$0xff] }
 0x112   : > { %v15767_v6 = vadd.f32 %v12437_v22, %v12399_v28  ;;  %12615 = vmatprep.mubr.msk.bf16.mxu1 %vm455_vm2, %v15759_v54  ;;  %v15787_v51 = vsel %vm1811_vm5, %v1841_v42, %v1843_v59  ;;  %v15791_v5 = vsel %vm1811_vm5, %v1843_v59, %v15776_v55 }
 0x113   : > { %v764_v53 = vpop.f32.mrf.mxu1  ;;  %v12404_v1 = vpop.f32.mrf.mxu0 }
 0x114   : > { %v15779_v48 = vadd.f32 %v764_v53, %v548_v3  ;;  %v2357_v3 = vrot.slane %v15111_v58, 3  ;;  %v20148_v53 = vld [vmem:[#allocation37_spill] sm:$0xff] }
 0x115   : > { %v12438_v28 = vpop.f32.mrf.mxu1  ;;  %v567_v22 = vpop.f32.mrf.mxu0  ;;  %3259 = vperm.xlu0 %14181, %v20148_v53   ;;  %3264 = vperm.xlu1 %14182, %v20150_v41  }
 0x116   : > { %v15784_v50 = vadd.f32 %v12438_v28, %v12400_v49  ;;  %v2360_v49 = vrot.slane %v15132_v39, 3  ;;  %v1847_v39 = vrot.slane %v15480_v45, 2 }
 0x117   : > { %v767_v62 = vpop.f32.mrf.mxu1  ;;  %v12407_v23 = vpop.f32.mrf.mxu0  ;;  %12626 = vmatmul.mubr.msk.bf16.vlgmr.msra.gmra.mxu0 %vm455_vm2, %v15576_v8 }
 0x118   : > { %v15800_v42 = vadd.f32 %v767_v62, %v551_v40  ;;  %12629 = vmatprep.mubr.msk.bf16.mxu0 %vm455_vm2, %v15609_v20  ;;  %12700 = vmatpush3.bf16.msra.mxu0 %v2806_v30  ;;  %v2358_v40 = vor.u32 %v2357_v3, %v2356_v7  ;;  %v2361_v28 = vor.u32 %v2360_v49, %v2359_v16  ;;  %v20151_v20 = vld [vmem:[#allocation39_spill] sm:$0xff]  ;;  %v2368_v3 = vrot.slane %v15174_v37, 3  ;;  %v20153_v16 = vld [vmem:[#allocation41_spill] sm:$0xff] }
 0x119   : > { %v12441_v59 = vpop.f32.mrf.mxu1  ;;  %12616 = vmatmul.mubr.msk.bf16.gmra.mxu1 %vm455_vm2, %v15787_v51  ;;  %v580_v8 = vpop.f32.mrf.mxu0  ;;  %3269 = vperm.xlu0 %14181, %v20151_v20  }
 0x11a   : > { %20149 = vst [vmem:[#allocation120_spill] sm:$0xff] %v15800_v42  ;;  %v15807_v58 = vadd.f32 %v12441_v59, %v12403_v26  ;;  %12619 = vmatprep.mubr.msk.bf16.mxu1 %vm455_vm2, %v15791_v5  ;;  %v20152_v42 = vld [vmem:[#allocation40_spill] sm:$0xff]  ;;  %v1848_v59 = vsel %vm1811_vm5, %v15776_v55, %v1847_v39  ;;  %v2362_v7 = vsel %vm2355_vm6, %v2358_v40, %v2361_v28  ;;  %v20154_v39 = vld [vmem:[#allocation42_spill] sm:$0xff]  ;;  %v20155_v40 = vld [vmem:[#allocation43_spill] sm:$0xff] }
 0x11b   : > { %v780_v56 = vpop.f32.mrf.mxu1  ;;  %v12408_v62 = vpop.f32.mrf.mxu0  ;;  %3274 = vperm.xlu1 %14182, %v20152_v42  }
 0x11c   : > { %v15813_v30 = vadd.f32 %v780_v56, %v564_v17  ;;  %v2367_v17 = vrot.slane %v15193_v29, 2 }
 0x11d   : > { %v12442_v53 = vpop.f32.mrf.mxu1  ;;  %v583_v4 = vpop.f32.mrf.mxu0  ;;  %6957 = vperm.xlu0 %14181, %v20153_v16  }
 0x11e   : > { %v15816_v26 = vadd.f32 %v12442_v53, %v12404_v1  ;;  %v2369_v37 = vor.u32 %v2368_v3, %v2367_v17  ;;  %v2375_v17 = vrot.slane %v15224_v31, 2  ;;  %v20157_v3 = vld [vmem:[#allocation45_spill] sm:$0xff] }
 0x11f   : > { %v783_v41 = vpop.f32.mrf.mxu1  ;;  %v12411_v45 = vpop.f32.mrf.mxu0  ;;  %12630 = vmatmul.mubr.msk.bf16.gmra.mxu0 %vm455_vm2, %v15620_v34  ;;  %6962 = vperm.xlu1 %14182, %v20154_v39  }
 0x120   : > { %v15826_v49 = vadd.f32 %v783_v41, %v567_v22  ;;  %12633 = vmatprep.mubr.msk.bf16.mxu0 %vm455_vm2, %v15636_v11  ;;  %v20156_v11 = vld [vmem:[#allocation44_spill] sm:$0xff] }
 0x121   : > { %v12445_v1 = vpop.f32.mrf.mxu1  ;;  %12620 = vmatmul.mubr.msk.bf16.gmra.mxu1 %vm455_vm2, %v1848_v59  ;;  %v596_v42 = vpop.f32.mrf.mxu0  ;;  %6967 = vperm.xlu0 %14181, %v20155_v40   ;;  %v2366_v59 = vsel %vm2355_vm6, %v2361_v28, %v15447_v0  ;;  %v20158_v28 = vld [vmem:[#allocation46_spill] sm:$0xff]  ;;  %v20159_v40 = vld [vmem:[#allocation47_spill] sm:$0xff] }
 0x122   : > { %v15832_v34 = vadd.f32 %v12445_v1, %v12407_v23  ;;  %12663 = vmatprep.mubr.msk.bf16.mxu1 %vm455_vm2, %v2362_v7  ;;  %v2371_v23 = vrot.slane %v15197_v36, 2  ;;  %v2372_v7 = vrot.slane %v15186_v33, 3 }
 0x123   : > { %v796_v29 = vpop.f32.mrf.mxu1  ;;  %v12412_v56 = vpop.f32.mrf.mxu0  ;;  %6972 = vperm.xlu1 %14182, %v20156_v11   ;;  %v20160_v11 = vld [vmem:[#allocation48_spill] sm:$0xff] }
 0x124   : > { %v15836_v22 = vadd.f32 %v796_v29, %v580_v8  ;;  %v2370_v8 = vsel %vm2355_vm6, %v15447_v0, %v2369_v37  ;;  %v2373_v31 = vor.u32 %v2372_v7, %v2371_v23 }
 0x125   : > { %v12446_v20 = vpop.f32.mrf.mxu1  ;;  %v599_v53 = vpop.f32.mrf.mxu0  ;;  %6977 = vperm.xlu0 %14181, %v20157_v3   ;;  %v20161_v3 = vld [vmem:[#allocation49_spill] sm:$0xff] }
 0x126   : > { %v15839_v41 = vadd.f32 %v12446_v20, %v12408_v62  ;;  %v2376_v62 = vrot.slane %v15200_v61, 3 }
 0x127   : > { %v799_v16 = vpop.f32.mrf.mxu1  ;;  %v12415_v1 = vpop.f32.mrf.mxu0  ;;  %12634 = vmatmul.mubr.msk.bf16.gmra.mxu0 %vm455_vm2, %v15647_v13  ;;  %6982 = vperm.xlu1 %14182, %v20158_v28  }
 0x128   : > { %v15852_v39 = vadd.f32 %v799_v16, %v583_v4  ;;  %12637 = vmatprep.mubr.msk.bf16.mxu0 %vm455_vm2, %v15665_v57  ;;  %v2377_v29 = vor.u32 %v2376_v62, %v2375_v17  ;;  %v2374_v16 = vsel %vm2355_vm6, %v2369_v37, %v2373_v31  ;;  %v2383_v17 = vrot.slane %v15261_v21, 2  ;;  %v20162_v37 = vld [vmem:[#allocation50_spill] sm:$0xff] }
 0x129   : > { %v12449_v33 = vpop.f32.mrf.mxu1  ;;  %12664 = vmatmul.mubr.msk.bf16.vlgmr.msra.gmra.mxu1 %vm455_vm2, %v2366_v59  ;;  %v612_v36 = vpop.f32.mrf.mxu0  ;;  %6987 = vperm.xlu0 %14181, %v20159_v40   ;;  %v2384_v62 = vrot.slane %v15231_v24, 3 }
 0x12a   : > { %v15858_v13 = vadd.f32 %v12449_v33, %v12411_v45  ;;  %12667 = vmatprep.mubr.msk.bf16.mxu1 %vm455_vm2, %v2370_v8  ;;  %v2379_v45 = vrot.slane %v15228_v25, 2  ;;  %v2380_v8 = vrot.slane %v15220_v32, 3 }
 0x12b   : > { %v812_v0 = vpop.f32.mrf.mxu1  ;;  %v12416_v61 = vpop.f32.mrf.mxu0  ;;  %6992 = vperm.xlu1 %14182, %v20160_v11   ;;  %v2385_v28 = vor.u32 %v2384_v62, %v2383_v17  ;;  %v2388_v11 = vrot.slane %v15257_v35, 3 }
 0x12c   : > { %v15862_v4 = vadd.f32 %v812_v0, %v596_v42  ;;  %v2378_v42 = vsel %vm2355_vm6, %v2373_v31, %v2377_v29  ;;  %v2381_v21 = vor.u32 %v2380_v8, %v2379_v45  ;;  %v2392_v8 = vrot.slane %v15268_v18, 3 }
 0x12d   : > { %v12450_v20 = vpop.f32.mrf.mxu1  ;;  %v615_v57 = vpop.f32.mrf.mxu0  ;;  %6997 = vperm.xlu0 %14181, %v20161_v3   ;;  %v2395_v3 = vrot.slane %v15315_v14, 2 }
 0x12e   : > { %v15865_v59 = vadd.f32 %v12450_v20, %v12412_v56  ;;  %v2387_v20 = vrot.slane %v15265_v19, 2  ;;  %v2386_v45 = vsel %vm2355_vm6, %v2381_v21, %v2385_v28 }
 0x12f   : > { %v815_v23 = vpop.f32.mrf.mxu1  ;;  %v12419_v7 = vpop.f32.mrf.mxu0  ;;  %12638 = vmatmul.mubr.msk.bf16.gmra.mxu0 %vm455_vm2, %v15674_v12  ;;  %7002 = vperm.xlu1 %14182, %v20162_v37  }
 0x130   : > { %v15876_v56 = vadd.f32 %v815_v23, %v599_v53  ;;  %12641 = vmatprep.mubr.msk.bf16.mxu0 %vm455_vm2, %v15694_v2  ;;  %v2382_v2 = vsel %vm2355_vm6, %v2377_v29, %v2381_v21 }
 0x131   : > { %v12453_v25 = vpop.f32.mrf.mxu1  ;;  %12668 = vmatmul.mubr.msk.bf16.gmra.mxu1 %vm455_vm2, %v2374_v16  ;;  %v628_v32 = vpop.f32.mrf.mxu0 }
 0x132   : > { %v15882_v12 = vadd.f32 %v12453_v25, %v12415_v1  ;;  %12671 = vmatprep.mubr.msk.bf16.mxu1 %vm455_vm2, %v2378_v42 }
 0x133   : > { %v828_v33 = vpop.f32.mrf.mxu1  ;;  %v12420_v24 = vpop.f32.mrf.mxu0 }
 0x134   : > { %v15885_v31 = vadd.f32 %v828_v33, %v612_v36  ;;  %v2391_v36 = vrot.slane %v15311_v10, 2  ;;  %v2400_v33 = vrot.slane %v20095_v47, 3 }
 0x135   : > { %v12454_v53 = vpop.f32.mrf.mxu1  ;;  %v631_v0 = vpop.f32.mrf.mxu0 }
 0x136   : > { %v15887_v40 = vadd.f32 %v12454_v53, %v12416_v61  ;;  %v2393_v17 = vor.u32 %v2392_v8, %v2391_v36  ;;  %v208_v53 = vld [vmem:[%s15069_s27 + $0x9c] sm:$0xf] }
 0x137   : > { %v831_v1 = vpop.f32.mrf.mxu1  ;;  %v12423_v16 = vpop.f32.mrf.mxu0  ;;  %12642 = vmatmul.mubr.msk.bf16.gmra.mxu0 %vm455_vm2, %v15706_v60  ;;  %v2389_v60 = vor.u32 %v2388_v11, %v2387_v20 }
 0x138   : > { %v15897_v23 = vadd.f32 %v831_v1, %v615_v57  ;;  %12645 = vmatprep.mubr.msk.bf16.mxu0 %vm455_vm2, %v15722_v15  ;;  %v2404_v1 = vrot.slane %v20096_v52, 3 }
 0x139   : > { %v12457_v61 = vpop.f32.mrf.mxu1  ;;  %12672 = vmatmul.mubr.msk.bf16.gmra.mxu1 %vm455_vm2, %v2382_v2  ;;  %v644_v19 = vpop.f32.mrf.mxu0  ;;  %v2390_v15 = vsel %vm2355_vm6, %v2385_v28, %v2389_v60  ;;  %v2394_v21 = vsel %vm2355_vm6, %v2389_v60, %v2393_v17 }
 0x13a   : > { %v15902_v35 = vadd.f32 %v12457_v61, %v12419_v7  ;;  %12675 = vmatprep.mubr.msk.bf16.mxu1 %vm455_vm2, %v2386_v45  ;;  %v2396_v7 = vrot.slane %v20092_v44, 3  ;;  %v14447_v45 = vld [vmem:[%s15069_s27 + $0x98] sm:$0xf] }
 0x13b   : > { %v844_v29 = vpop.f32.mrf.mxu1  ;;  %v12424_v42 = vpop.f32.mrf.mxu0  ;;  %v15931_v36 = vcombine.low %v14447_v45, %v208_v53  ;;  %v20164_v53 = vld [vmem:[#allocation107_spill] sm:$0xff] }
 0x13c   : > { %v15905_v10 = vadd.f32 %v844_v29, %v628_v32  ;;  %v2399_v32 = vrot.slane %v15343_v9, 2  ;;  %v2407_v29 = vrot.slane %v15363_v27, 2 }
 0x13d   : > { %v12458_v18 = vpop.f32.mrf.mxu1  ;;  %v647_v57 = vpop.f32.mrf.mxu0 }
 0x13e   : > { %v15907_v62 = vadd.f32 %v12458_v18, %v12420_v24  ;;  %v2401_v20 = vor.u32 %v2400_v33, %v2399_v32 }
 0x13f   : > { %v847_v25 = vpop.f32.mrf.mxu1  ;;  %v12427_v37 = vpop.f32.mrf.mxu0  ;;  %12646 = vmatmul.mubr.msk.bf16.gmra.mxu0 %vm455_vm2, %v15726_v38  ;;  %v2397_v38 = vor.u32 %v2396_v7, %v2395_v3 }
 0x140   : > { %v15917_v24 = vadd.f32 %v847_v25, %v631_v0  ;;  %12649 = vmatprep.mubr.msk.bf16.mxu0 %vm455_vm2, %v15753_v43  ;;  %v2403_v43 = vrot.slane %v15347_v46, 2  ;;  %v2408_v46 = vrot.slane %v20099_v63, 3  ;;  %v15962_v25 = vld [vmem:[%s15069_s27 + $0xa0] ss:$0 sps:$4 sm:$0xff]  }
 0x141   : > { %v12461_v14 = vpop.f32.mrf.mxu1  ;;  %12676 = vmatmul.mubr.msk.bf16.gmra.mxu1 %vm455_vm2, %v2390_v15  ;;  %v660_v44 = vpop.f32.mrf.mxu0  ;;  %v2398_v8 = vsel %vm2355_vm6, %v2393_v17, %v2397_v38  ;;  %v2127_v15 = vrot.slane %v15931_v36, 2 }
 0x142   : > { %v15922_v28 = vadd.f32 %v12461_v14, %v12423_v16  ;;  %12679 = vmatprep.mubr.msk.bf16.mxu1 %vm455_vm2, %v2394_v21  ;;  %v20163_v14 = vld [vmem:[#allocation120_spill] sm:$0xff] }
 0x143   : > { %v860_v2 = vpop.f32.mrf.mxu1  ;;  %v12428_v9 = vpop.f32.mrf.mxu0 }
 0x144   : > { %v15926_v47 = vadd.f32 %v860_v2, %v644_v19  ;;  %v2402_v19 = vsel %vm2355_vm6, %v2397_v38, %v2401_v20  ;;  %v20165_v2 = vld [vmem:[#allocation106_spill] sm:$0xff] }
 0x145   : > { %v12462_v0 = vpop.f32.mrf.mxu1  ;;  %v663_v11 = vpop.f32.mrf.mxu0 }
 0x146   : > { %v15933_v16 = vadd.f32 %v12462_v0, %v12424_v42 }
 0x147   : > { %v863_v61 = vpop.f32.mrf.mxu1  ;;  %v12475_v60 = vpop.f32.mrf.mxu0  ;;  %12650 = vmatmul.mubr.msk.bf16.gmra.mxu0 %vm455_vm2, %v15759_v54  ;;  %v2405_v54 = vor.u32 %v2404_v1, %v2403_v43  ;;  %v20166_v1 = vld [vmem:[#allocation109_spill] sm:$0xff] }
 0x148   : > { %v15941_v18 = vadd.f32 %v863_v61, %v647_v57  ;;  %v15944_v52 = vadd.f32 %v12475_v60, %v15767_v6  ;;  %12653 = vmatprep.mubr.msk.bf16.mxu0 %vm455_vm2, %v15787_v51  ;;  %v2409_v57 = vor.u32 %v2408_v46, %v2407_v29  ;;  %v2129_v60 = vrot.slane %v15962_v25, 2  ;;  %v14448_v29 = vld [vmem:[%s15069_s27 + $0x10] sm:$0xff]  }
 0x149   : > { %v12465_v42 = vpop.f32.mrf.mxu1  ;;  %12680 = vmatmul.mubr.msk.bf16.gmra.mxu1 %vm455_vm2, %v2398_v8  ;;  %v1038_v17 = vpop.f32.mrf.mxu0  ;;  %v2714_v46 = vrot.slane %v14448_v29, 3 }
 0x14a   : > { %v15950_v3 = vadd.f32 %v12465_v42, %v12427_v37  ;;  %v15953_v27 = vadd.f32 %v1038_v17, %v15779_v48  ;;  %12683 = vmatprep.mubr.msk.bf16.mxu1 %vm455_vm2, %v2402_v19  ;;  %v2406_v37 = vsel %vm2355_vm6, %v2401_v20, %v2405_v54  ;;  %v2128_v48 = vsel %vm1811_vm5, %v15776_v55, %v2127_v15  ;;  %v14449_v42 = vld [vmem:[%s15069_s27 + $0x18] sm:$0xff]  }
 0x14b   : > { %v876_v63 = vpop.f32.mrf.mxu1  ;;  %v12476_v6 = vpop.f32.mrf.mxu0  ;;  %v2410_v20 = vsel %vm2355_vm6, %v2405_v54, %v2409_v57  ;;  %v2415_v55 = vrot.slane %v20166_v1, 2  ;;  %v2715_v17 = vrot.slane %v14449_v42, 3  ;;  %v14451_v42 = vld [vmem:[%s15069_s27 + $0x28] sm:$0xff]  }
 0x14c   : > { %v15956_v7 = vadd.f32 %v876_v63, %v660_v44  ;;  %v15959_v51 = vadd.f32 %v12476_v6, %v15784_v50  ;;  %v2411_v44 = vrot.slane %v20164_v53, 2  ;;  %v2412_v50 = vrot.slane %v20165_v2, 3 }
 0x14d   : > { %v12466_v21 = vpop.f32.mrf.mxu1  ;;  %v1041_v32 = vpop.f32.mrf.mxu0  ;;  %v2716_v53 = vsel %vm2713_vm7, %v2714_v46, %v2715_v17 }
 0x14e   : > { %v15967_v33 = vadd.f32 %v12466_v21, %v12428_v9  ;;  %v15970_v38 = vadd.f32 %v1041_v32, %v20163_v14  ;;  %v20167_v9 = vld [vmem:[#allocation108_spill] sm:$0xff]  ;;  %v2424_v21 = vshrl.u32 %v15931_v36, 16  ;;  %v2427_v32 = vshll.u32 %v15931_v36, 16 }
 0x14f   : > { %v879_v0 = vpop.f32.mrf.mxu1  ;;  %v12479_v43 = vpop.f32.mrf.mxu0  ;;  %12654 = vmatmul.mubr.msk.bf16.gmra.mxu0 %vm455_vm2, %v15791_v5  ;;  %v2416_v45 = vrot.slane %v20167_v9, 3 }
 0x150   : > { %v15979_v8 = vadd.f32 %v879_v0, %v663_v11  ;;  %v15982_v61 = vadd.f32 %v12479_v43, %v15807_v58  ;;  %12657 = vmatprep.mubr.msk.bf16.mxu0 %vm455_vm2, %v2128_v48  ;;  %v2413_v58 = vor.u32 %v2412_v50, %v2411_v44  ;;  %v2130_v48 = vsel %vm1811_vm5, %v2127_v15, %v2129_v60  ;;  %v20168_v44 = vld [vmem:[#allocation114_spill] sm:$0xff] }
 0x151   : > { %v15986_v19 = vpop.f32.mrf.mxu1  ;;  %12684 = vmatmul.mubr.msk.bf16.gmra.mxu1 %vm455_vm2, %v2406_v37  ;;  %v1054_v5 = vpop.f32.mrf.mxu0  ;;  %v2417_v6 = vor.u32 %v2416_v45, %v2415_v55  ;;  %v20169_v2 = vshrl.u32 %v20168_v44, 16  ;;  %v20170_v0 = vshll.u32 %v20168_v44, 16  ;;  %v2426_v9 = vrot.slane %v2424_v21, 2 }
 0x152   : > { %v15992_v54 = vadd.f32 %v1054_v5, %v15813_v30  ;;  %12687 = vmatprep.mubr.msk.bf16.mxu1 %vm455_vm2, %v2410_v20  ;;  %v2429_v45 = vrot.slane %v2427_v32, 3  ;;  %v14450_v5 = vld [vmem:[%s15069_s27 + $0x20] sm:$0xff]   ;;  %v2436_v21 = vshll.u32 %v15962_v25, 16 }
 0x153   : > { %v15995_v11 = vpop.f32.mrf.mxu1  ;;  %v12480_v63 = vpop.f32.mrf.mxu0  ;;  %v2419_v50 = vrot.slane %v20169_v2, 2  ;;  %v2420_v43 = vrot.slane %v20170_v0, 3  ;;  %v2418_v55 = vsel %vm2355_vm6, %v2413_v58, %v2417_v6 }
 0x154   : > { %v16000_v37 = vadd.f32 %v12480_v63, %v15816_v26  ;;  %v2414_v26 = vsel %vm2355_vm6, %v2409_v57, %v2413_v58  ;;  %v2719_v63 = vrot.slane %v14451_v42, 3 }
 0x155   : > { %v16003_v30 = vpop.f32.mrf.mxu1  ;;  %v1057_v14 = vpop.f32.mrf.mxu0  ;;  %v2421_v46 = vor.u32 %v2420_v43, %v2419_v50 }
 0x156   : > { %v16011_v20 = vadd.f32 %v1057_v14, %v15826_v49  ;;  %v2717_v49 = vrot.slane %v14450_v5, 3  ;;  %v14452_v5 = vld [vmem:[%s15069_s27 + $0x30] sm:$0xff]  }
 0x157   : > { %v16014_v1 = vpop.f32.mrf.mxu1  ;;  %v12483_v15 = vpop.f32.mrf.mxu0  ;;  %12658 = vmatmul.mubr.msk.bf16.gmra.mxu0 %vm455_vm2, %v2130_v48 }
 0x158   : > { %v16019_v60 = vadd.f32 %v12483_v15, %v15832_v34  ;;  %12701 = vmatprep.mubr.msk.bf16.mxu0 %vm455_vm2, %v2716_v53  ;;  %v2433_v34 = vshrl.u32 %v15962_v25, 16  ;;  %v2430_v53 = vor.u32 %v2429_v45, %v2426_v9  ;;  %v2438_v9 = vrot.slane %v2436_v21, 3 }
 0x159   : > { %v12513_v29 = vpop.f32.mrf.mxu1  ;;  %12688 = vmatmul.mubr.msk.bf16.gmra.mxu1 %vm455_vm2, %v2414_v26  ;;  %v1070_v57 = vpop.f32.mrf.mxu0  ;;  %v2720_v26 = vsel %vm2713_vm7, %v2717_v49, %v2719_v63 }
 0x15a   : > { %v16026_v48 = vadd.f32 %v12513_v29, %v15944_v52  ;;  %v1189_v58 = vadd.f32 %v1070_v57, %v15836_v22  ;;  %12691 = vmatprep.mubr.msk.bf16.mxu1 %vm455_vm2, %v2418_v55  ;;  %v2718_v52 = vsel %vm2713_vm7, %v2715_v17, %v2717_v49  ;;  %v2422_v22 = vsel %vm2355_vm6, %v2417_v6, %v2421_v46  ;;  %v14453_v29 = vld [vmem:[%s15069_s27 + $0x38] sm:$0xff]  }
 0x15b   : > { %v1272_v32 = vpop.f32.mrf.mxu1  ;;  %v12484_v14 = vpop.f32.mrf.mxu0  ;;  %v2431_v17 = vsel %vm2355_vm6, %v2421_v46, %v2430_v53  ;;  %v2721_v49 = vrot.slane %v14452_v5, 3  ;;  %v2723_v57 = vrot.slane %v14453_v29, 3 }
 0x15c   : > { %v16033_v2 = vadd.f32 %v1272_v32, %v15953_v27  ;;  %v1192_v50 = vadd.f32 %v12484_v14, %v15839_v41  ;;  %v2435_v27 = vrot.slane %v2433_v34, 2 }
 0x15d   : > { %v12514_v0 = vpop.f32.mrf.mxu1  ;;  %v1073_v43 = vpop.f32.mrf.mxu0 }
 0x15e   : > { %v16040_v15 = vadd.f32 %v12514_v0, %v15959_v51  ;;  %v16043_v55 = vadd.f32 %v1073_v43, %v15852_v39  ;;  %v2439_v46 = vor.u32 %v2438_v9, %v2435_v27 }
 0x15f   : > { %v16045_v45 = vpop.f32.mrf.mxu1  ;;  %v12487_v41 = vpop.f32.mrf.mxu0  ;;  %12702 = vmatmul.mubr.msk.bf16.vlgmr.msra.gmra.mxu0 %vm455_vm2, %v2718_v52  ;;  %v2722_v52 = vsel %vm2713_vm7, %v2719_v63, %v2721_v49  ;;  %v14454_v63 = vld [vmem:[%s15069_s27 + $0x40] sm:$0xff]  }
 0x160   : > { %v1195_v6 = vadd.f32 %v12487_v41, %v15858_v13  ;;  %12705 = vmatprep.mubr.msk.bf16.mxu0 %vm455_vm2, %v2720_v26  ;;  %v2440_v26 = vsel %vm2355_vm6, %v2430_v53, %v2439_v46  ;;  %v2725_v9 = vrot.slane %v14454_v63, 3 }
 0x161   : > { %v12517_v51 = vpop.f32.mrf.mxu1  ;;  %12692 = vmatmul.mubr.msk.bf16.gmra.mxu1 %vm455_vm2, %v2422_v22  ;;  %v1086_v39 = vpop.f32.mrf.mxu0 }
 0x162   : > { %v16055_v42 = vadd.f32 %v12517_v51, %v15982_v61  ;;  %v1193_v34 = vadd.f32 %v1086_v39, %v15862_v4  ;;  %12695 = vmatprep.mubr.msk.bf16.mxu1 %vm455_vm2, %v2431_v17  ;;  %v2724_v61 = vsel %vm2713_vm7, %v2721_v49, %v2723_v57  ;;  %v14455_v17 = vld [vmem:[%s15069_s27 + $0x48] sm:$0xff]   ;;  %v2726_v29 = vsel %vm2713_vm7, %v2723_v57, %v2725_v9 }
 0x163   : > { %v1288_v21 = vpop.f32.mrf.mxu1  ;;  %v12488_v13 = vpop.f32.mrf.mxu0 }
 0x164   : > { %v16060_v32 = vadd.f32 %v1288_v21, %v15992_v54  ;;  %v1196_v14 = vadd.f32 %v12488_v13, %v15865_v59 }
 0x165   : > { %v12518_v0 = vpop.f32.mrf.mxu1  ;;  %v1089_v43 = vpop.f32.mrf.mxu0 }
 0x166   : > { %v16066_v4 = vadd.f32 %v12518_v0, %v16000_v37  ;;  %v16069_v22 = vadd.f32 %v1089_v43, %v15876_v56  ;;  %v2727_v56 = vrot.slane %v14455_v17, 3 }
 0x167   : > { %v16072_v27 = vpop.f32.mrf.mxu1  ;;  %v12491_v54 = vpop.f32.mrf.mxu0  ;;  %12706 = vmatmul.mubr.msk.bf16.gmra.mxu0 %vm455_vm2, %v2722_v52 }
 0x168   : > { %v1199_v59 = vadd.f32 %v12491_v54, %v15882_v12  ;;  %12709 = vmatprep.mubr.msk.bf16.mxu0 %vm455_vm2, %v2724_v61  ;;  %v2728_v13 = vsel %vm2713_vm7, %v2725_v9, %v2727_v56 }
 0x169   : > { %v12521_v41 = vpop.f32.mrf.mxu1  ;;  %12696 = vmatmul.mubr.msk.bf16.gmra.mxu1 %vm455_vm2, %v2440_v26  ;;  %v1102_v37 = vpop.f32.mrf.mxu0  ;;  %v14457_v26 = vld [vmem:[%s15069_s27 + $0x58] sm:$0xff]  }
 0x16a   : > { %v16081_v5 = vadd.f32 %v12521_v41, %v16019_v60  ;;  %v1197_v53 = vadd.f32 %v1102_v37, %v15885_v31  ;;  %v2731_v54 = vrot.slane %v14457_v26, 3 }
 0x16b   : > { %v1304_v49 = vpop.f32.mrf.mxu1  ;;  %v12492_v51 = vpop.f32.mrf.mxu0 }
 0x16c   : > { %v16084_v39 = vadd.f32 %v1304_v49, %v1189_v58  ;;  %v1200_v12 = vadd.f32 %v12492_v51, %v15887_v40  ;;  %v14456_v40 = vld [vmem:[%s15069_s27 + $0x50] sm:$0xff]  }
 0x16d   : > { %v12522_v46 = vpop.f32.mrf.mxu1  ;;  %v1105_v21 = vpop.f32.mrf.mxu0  ;;  %v2729_v57 = vrot.slane %v14456_v40, 3 }
 0x16e   : > { %v16089_v52 = vadd.f32 %v12522_v46, %v1192_v50  ;;  %v16092_v60 = vadd.f32 %v1105_v21, %v15897_v23 }
 0x16f   : > { %v16094_v31 = vpop.f32.mrf.mxu1  ;;  %v12495_v0 = vpop.f32.mrf.mxu0  ;;  %12710 = vmatmul.mubr.msk.bf16.gmra.mxu0 %vm455_vm2, %v2726_v29  ;;  %v2732_v51 = vsel %vm2713_vm7, %v2729_v57, %v2731_v54 }
 0x170   : > { %v1203_v58 = vadd.f32 %v12495_v0, %v15902_v35  ;;  %12713 = vmatprep.mubr.msk.bf16.mxu0 %vm455_vm2, %v2728_v13  ;;  %v2730_v35 = vsel %vm2713_vm7, %v2727_v56, %v2729_v57  ;;  %v20171_v0 = vld [vmem:[#allocation110_spill] sm:$0xff] }
 0x171   : > { %v12525_v43 = vpop.f32.mrf.mxu1  ;;  %v1118_v61 = vpop.f32.mrf.mxu0  ;;  %v2735_v40 = vrot.slane %v20171_v0, 3 }
 0x172   : > { %v16101_v50 = vadd.f32 %v12525_v43, %v1195_v6  ;;  %v1201_v23 = vadd.f32 %v1118_v61, %v15905_v10 }
 0x173   : > { %v1320_v63 = vpop.f32.mrf.mxu1  ;;  %v12496_v9 = vpop.f32.mrf.mxu0 }
 0x174   : > { %v16104_v41 = vadd.f32 %v1320_v63, %v1193_v34  ;;  %v1204_v37 = vadd.f32 %v12496_v9, %v15907_v62  ;;  %v14458_v62 = vld [vmem:[%s15069_s27 + $0x60] sm:$0xff]  }
 0x175   : > { %v12526_v17 = vpop.f32.mrf.mxu1  ;;  %v1121_v49 = vpop.f32.mrf.mxu0  ;;  %v2733_v56 = vrot.slane %v14458_v62, 3  ;;  %v20173_v62 = vld [vmem:[#allocation113_spill] sm:$0xff] }
 0x176   : > { %v16109_v29 = vadd.f32 %v12526_v17, %v1196_v14  ;;  %v16112_v6 = vadd.f32 %v1121_v49, %v15917_v24 }
 0x177   : > { %v16114_v46 = vpop.f32.mrf.mxu1  ;;  %v12499_v10 = vpop.f32.mrf.mxu0  ;;  %12714 = vmatmul.mubr.msk.bf16.gmra.mxu0 %vm455_vm2, %v2730_v35  ;;  %v2736_v35 = vsel %vm2713_vm7, %v2733_v56, %v2735_v40 }
 0x178   : > { %v1207_v34 = vadd.f32 %v12499_v10, %v15922_v28  ;;  %12717 = vmatprep.mubr.msk.bf16.mxu0 %vm455_vm2, %v2732_v51  ;;  %v2734_v28 = vsel %vm2713_vm7, %v2731_v54, %v2733_v56  ;;  %v2739_v56 = vrot.slane %v20173_v62, 3 }
 0x179   : > { %v12529_v21 = vpop.f32.mrf.mxu1  ;;  %v1134_v13 = vpop.f32.mrf.mxu0 }
 0x17a   : > { %v16121_v14 = vadd.f32 %v12529_v21, %v1199_v59  ;;  %v1205_v24 = vadd.f32 %v1134_v13, %v15926_v47 }
 0x17b   : > { %v1336_v57 = vpop.f32.mrf.mxu1  ;;  %v12500_v43 = vpop.f32.mrf.mxu0 }
 0x17c   : > { %v16124_v61 = vadd.f32 %v1336_v57, %v1197_v53  ;;  %v1208_v26 = vadd.f32 %v12500_v43, %v15933_v16  ;;  %v20172_v16 = vld [vmem:[#allocation111_spill] sm:$0xff] }
 0x17d   : > { %v12530_v63 = vpop.f32.mrf.mxu1  ;;  %v1137_v9 = vpop.f32.mrf.mxu0  ;;  %v2737_v54 = vrot.slane %v20172_v16, 3 }
 0x17e   : > { %v16129_v17 = vadd.f32 %v12530_v63, %v1200_v12  ;;  %v16132_v49 = vadd.f32 %v1137_v9, %v15941_v18  ;;  %v20174_v9 = vld [vmem:[#allocation112_spill] sm:$0xff] }
 0x17f   : > { %v16134_v59 = vpop.f32.mrf.mxu1  ;;  %v12503_v47 = vpop.f32.mrf.mxu0  ;;  %12718 = vmatmul.mubr.msk.bf16.gmra.mxu0 %vm455_vm2, %v2734_v28  ;;  %v2740_v63 = vsel %vm2713_vm7, %v2737_v54, %v2739_v56 }
 0x180   : > { %v1211_v53 = vadd.f32 %v12503_v47, %v15950_v3  ;;  %12721 = vmatprep.mubr.msk.bf16.mxu0 %vm455_vm2, %v2736_v35  ;;  %v2738_v3 = vsel %vm2713_vm7, %v2735_v40, %v2737_v54  ;;  %v901_v35 = vadd.f32 %v15986_v19, %v20174_v9  ;;  %v20175_v40 = vld [vmem:[#allocation116_spill] sm:$0xff]  ;;  %v20177_v19 = vld [vmem:[#allocation117_spill] sm:$0xff] }
 0x181   : > { %v12533_v51 = vpop.f32.mrf.mxu1  ;;  %v1150_v10 = vpop.f32.mrf.mxu0  ;;  %v2741_v16 = vrot.slane %v20175_v40, 3 }
 0x182   : > { %v16141_v12 = vadd.f32 %v12533_v51, %v1203_v58  ;;  %v1209_v18 = vadd.f32 %v1150_v10, %v15956_v7  ;;  %v20176_v10 = vld [vmem:[#allocation119_spill] sm:$0xff] }
 0x183   : > { %v1352_v21 = vpop.f32.mrf.mxu1  ;;  %v12504_v13 = vpop.f32.mrf.mxu0  ;;  %v2743_v62 = vrot.slane %v20176_v10, 3 }
 0x184   : > { %v16144_v0 = vadd.f32 %v1352_v21, %v1201_v23  ;;  %v1212_v57 = vadd.f32 %v12504_v13, %v15967_v33 }
 0x185   : > { %v12534_v43 = vpop.f32.mrf.mxu1  ;;  %v1153_v28 = vpop.f32.mrf.mxu0 }
 0x186   : > { %v16151_v47 = vadd.f32 %v12534_v43, %v1204_v37  ;;  %v16154_v58 = vadd.f32 %v1153_v28, %v15979_v8  ;;  %v904_v37 = vadd.f32 %v16003_v30, %v20177_v19 }
 0x187   : > { %v16156_v7 = vpop.f32.mrf.mxu1  ;;  %v12507_v23 = vpop.f32.mrf.mxu0  ;;  %12722 = vmatmul.mubr.msk.bf16.gmra.mxu0 %vm455_vm2, %v2738_v3  ;;  %v2742_v3 = vsel %vm2713_vm7, %v2739_v56, %v2741_v16 }
 0x188   : > { %v1215_v33 = vadd.f32 %v12507_v23, %v901_v35  ;;  %12725 = vmatprep.mubr.msk.bf16.mxu0 %vm455_vm2, %v2740_v63  ;;  %v2744_v35 = vsel %vm2713_vm7, %v2741_v16, %v2743_v62 }
 0x189   : > { %v12537_v51 = vpop.f32.mrf.mxu1  ;;  %v1166_v54 = vpop.f32.mrf.mxu0 }
 0x18a   : > { %v16164_v21 = vadd.f32 %v12537_v51, %v1207_v34  ;;  %v2745_v34 = vrot.slane %v20168_v44, 3  ;;  %v2747_v51 = vrot.slane %v15931_v36, 3 }
 0x18b   : > { %v1368_v8 = vpop.f32.mrf.mxu1  ;;  %v12508_v13 = vpop.f32.mrf.mxu0 }
 0x18c   : > { %v16166_v43 = vadd.f32 %v1368_v8, %v1205_v24  ;;  %v1216_v28 = vadd.f32 %v12508_v13, %v904_v37  ;;  %v2748_v44 = vsel %vm2713_vm7, %v2745_v34, %v2747_v51 }
 0x18d   : > { %v12538_v9 = vpop.f32.mrf.mxu1  ;;  %v16169_v63 = vpop.f32.mrf.mxu0 }
 0x18e   : > { %v16172_v23 = vadd.f32 %v12538_v9, %v1208_v26 }
 0x18f   : > { %v16174_v40 = vpop.f32.mrf.mxu1  ;;  %v12551_v10 = vpop.f32.mrf.mxu0  ;;  %12726 = vmatmul.mubr.msk.bf16.gmra.mxu0 %vm455_vm2, %v2742_v3 }
 0x190   : > { %v1775_v30 = vadd.f32 %v12551_v10, %v16026_v48  ;;  %12729 = vmatprep.mubr.msk.bf16.mxu0 %vm455_vm2, %v2744_v35  ;;  %v2746_v48 = vsel %vm2713_vm7, %v2743_v62, %v2745_v34 }
 0x191   : > { %v12541_v24 = vpop.f32.mrf.mxu1  ;;  %v1630_v56 = vpop.f32.mrf.mxu0 }
 0x192   : > { %v16181_v19 = vadd.f32 %v12541_v24, %v1211_v53  ;;  %v1773_v26 = vadd.f32 %v1630_v56, %v16033_v2  ;;  %v20178_v2 = vld [vmem:[#allocation115_spill] sm:$0xff] }
 0x193   : > { %v1384_v16 = vpop.f32.mrf.mxu1  ;;  %v12552_v37 = vpop.f32.mrf.mxu0 }
 0x194   : > { %v16184_v8 = vadd.f32 %v1384_v16, %v1209_v18  ;;  %v1776_v13 = vadd.f32 %v12552_v37, %v16040_v15  ;;  %v893_v18 = vadd.f32 %v15995_v11, %v20178_v2  ;;  %v2749_v15 = vrot.slane %v15962_v25, 3 }
 0x195   : > { %v12542_v3 = vpop.f32.mrf.mxu1  ;;  %v16188_v9 = vpop.f32.mrf.mxu0 }
 0x196   : > { %v16191_v35 = vadd.f32 %v12542_v3, %v1212_v57  ;;  %v1213_v56 = vadd.f32 %v1166_v54, %v893_v18  ;;  %v2750_v11 = vsel %vm2713_vm7, %v2747_v51, %v2749_v15 }
 0x197   : > { %v16193_v36 = vpop.f32.mrf.mxu1  ;;  %v12555_v53 = vpop.f32.mrf.mxu0  ;;  %12730 = vmatmul.mubr.msk.bf16.gmra.mxu0 %vm455_vm2, %v2746_v48 }
 0x198   : > { %v1779_v10 = vadd.f32 %v12555_v53, %v16055_v42  ;;  %12733 = vmatprep.mubr.msk.bf16.mxu0 %vm455_vm2, %v2748_v44 }
 0x199   : > { %v12545_v62 = vpop.f32.mrf.mxu1  ;;  %v1646_v24 = vpop.f32.mrf.mxu0 }
 0x19a   : > { %v16201_v34 = vadd.f32 %v12545_v62, %v1215_v33  ;;  %v1777_v57 = vadd.f32 %v1646_v24, %v16060_v32 }
 0x19b   : > { %v1400_v16 = vpop.f32.mrf.mxu1  ;;  %v12556_v37 = vpop.f32.mrf.mxu0 }
 0x19c   : > { %v16204_v3 = vadd.f32 %v1400_v16, %v1213_v56  ;;  %v1780_v48 = vadd.f32 %v12556_v37, %v16066_v4 }
 0x19d   : > { %v12546_v42 = vpop.f32.mrf.mxu1  ;;  %v16208_v53 = vpop.f32.mrf.mxu0 }
 0x19e   : > { %v16210_v44 = vadd.f32 %v12546_v42, %v1216_v28 }
 0x19f   : > { %v16212_v25 = vpop.f32.mrf.mxu1  ;;  %v12559_v54 = vpop.f32.mrf.mxu0  ;;  %12734 = vmatmul.mubr.msk.bf16.gmra.mxu0 %vm455_vm2, %v2750_v11 }
 0x1a0   : > { %v1783_v32 = vadd.f32 %v12559_v54, %v16081_v5 }
 0x1a1   : > { %v12589_v33 = vpop.f32.mrf.mxu1  ;;  %v1662_v2 = vpop.f32.mrf.mxu0 }
 0x1a2   : > { %v16216_v18 = vadd.f32 %v12589_v33, %v1775_v30  ;;  %v1781_v4 = vadd.f32 %v1662_v2, %v16084_v39 }
 0x1a3   : > { %v1940_v62 = vpop.f32.mrf.mxu1  ;;  %v12560_v51 = vpop.f32.mrf.mxu0 }
 0x1a4   : > { %v16219_v15 = vadd.f32 %v1940_v62, %v1773_v26  ;;  %v1784_v28 = vadd.f32 %v12560_v51, %v16089_v52 }
 0x1a5   : > { %v12590_v24 = vpop.f32.mrf.mxu1  ;;  %v16222_v56 = vpop.f32.mrf.mxu0 }
 0x1a6   : > { %20179 = vst [vmem:[#allocation120_spill] sm:$0xff] %v16222_v56  ;;  %v16224_v16 = vadd.f32 %v12590_v24, %v1776_v13 }
 0x1a7   : > { %v16226_v37 = vpop.f32.mrf.mxu1  ;;  %v12563_v5 = vpop.f32.mrf.mxu0 }
 0x1a8   : > { %v1787_v11 = vadd.f32 %v12563_v5, %v16101_v50 }
 0x1a9   : > { %v12593_v30 = vpop.f32.mrf.mxu1  ;;  %v1678_v42 = vpop.f32.mrf.mxu0 }
 0x1aa   : > { %v16229_v54 = vadd.f32 %v12593_v30, %v1779_v10  ;;  %v1785_v39 = vadd.f32 %v1678_v42, %v16104_v41 }
 0x1ab   : > { %v1956_v26 = vpop.f32.mrf.mxu1  ;;  %v12564_v33 = vpop.f32.mrf.mxu0 }
 0x1ac   : > { %v16232_v2 = vadd.f32 %v1956_v26, %v1777_v57  ;;  %v1788_v52 = vadd.f32 %v12564_v33, %v16109_v29 }
 0x1ad   : > { %v12594_v62 = vpop.f32.mrf.mxu1  ;;  %v16235_v13 = vpop.f32.mrf.mxu0 }
 0x1ae   : > { %20180 = vst [vmem:[#allocation107_spill] sm:$0xff] %v16235_v13  ;;  %v16237_v51 = vadd.f32 %v12594_v62, %v1780_v48 }
 0x1af   : > { %v16239_v24 = vpop.f32.mrf.mxu1  ;;  %v12567_v50 = vpop.f32.mrf.mxu0 }
 0x1b0   : > { %20181 = vst [vmem:[#allocation106_spill] sm:$0xff] %v16239_v24  ;;  %v1791_v5 = vadd.f32 %v12567_v50, %v16121_v14 }
 0x1b1   : > { %v12597_v10 = vpop.f32.mrf.mxu1  ;;  %v1694_v30 = vpop.f32.mrf.mxu0 }
 0x1b2   : > { %v16242_v56 = vadd.f32 %v12597_v10, %v1783_v32  ;;  %v1789_v41 = vadd.f32 %v1694_v30, %v16124_v61 }
 0x1b3   : > { %v1972_v57 = vpop.f32.mrf.mxu1  ;;  %v12568_v42 = vpop.f32.mrf.mxu0 }
 0x1b4   : > { %v16245_v26 = vadd.f32 %v1972_v57, %v1781_v4  ;;  %v1792_v29 = vadd.f32 %v12568_v42, %v16129_v17 }
 0x1b5   : > { %v12598_v33 = vpop.f32.mrf.mxu1  ;;  %v16248_v48 = vpop.f32.mrf.mxu0 }
 0x1b6   : > { %20182 = vst [vmem:[#allocation109_spill] sm:$0xff] %v16248_v48  ;;  %v16250_v62 = vadd.f32 %v12598_v33, %v1784_v28 }
 0x1b7   : > { %v16252_v24 = vpop.f32.mrf.mxu1  ;;  %v12571_v14 = vpop.f32.mrf.mxu0 }
 0x1b8   : > { %20183 = vst [vmem:[#allocation108_spill] sm:$0xff] %v16252_v24  ;;  %v1795_v50 = vadd.f32 %v12571_v14, %v16141_v12 }
 0x1b9   : > { %v12601_v32 = vpop.f32.mrf.mxu1  ;;  %v1710_v10 = vpop.f32.mrf.mxu0 }
 0x1ba   : > { %v16255_v13 = vadd.f32 %v12601_v32, %v1787_v11  ;;  %v1793_v61 = vadd.f32 %v1710_v10, %v16144_v0 }
 0x1bb   : > { %v1988_v4 = vpop.f32.mrf.mxu1  ;;  %v12572_v30 = vpop.f32.mrf.mxu0 }
 0x1bc   : > { %v16258_v57 = vadd.f32 %v1988_v4, %v1785_v39  ;;  %v1796_v17 = vadd.f32 %v12572_v30, %v16151_v47 }
 0x1bd   : > { %v12602_v42 = vpop.f32.mrf.mxu1  ;;  %v16261_v28 = vpop.f32.mrf.mxu0 }
 0x1be   : > { %20184 = vst [vmem:[#allocation114_spill] sm:$0xff] %v16261_v28  ;;  %v16263_v33 = vadd.f32 %v12602_v42, %v1788_v52 }
 0x1bf   : > { %v16265_v24 = vpop.f32.mrf.mxu1  ;;  %v12575_v12 = vpop.f32.mrf.mxu0 }
 0x1c0   : > { %20185 = vst [vmem:[#allocation110_spill] sm:$0xff] %v16265_v24  ;;  %v1799_v14 = vadd.f32 %v12575_v12, %v16164_v21 }
 0x1c1   : > { %v12605_v11 = vpop.f32.mrf.mxu1  ;;  %v1726_v32 = vpop.f32.mrf.mxu0 }
 0x1c2   : > { %v16268_v48 = vadd.f32 %v12605_v11, %v1791_v5  ;;  %v1797_v0 = vadd.f32 %v1726_v32, %v16166_v43 }
 0x1c3   : > { %v2004_v39 = vpop.f32.mrf.mxu1  ;;  %v12576_v10 = vpop.f32.mrf.mxu0 }
 0x1c4   : > { %v16271_v4 = vadd.f32 %v2004_v39, %v1789_v41  ;;  %v1800_v47 = vadd.f32 %v12576_v10, %v16172_v23 }
 0x1c5   : > { %v12606_v30 = vpop.f32.mrf.mxu1  ;;  %v16274_v52 = vpop.f32.mrf.mxu0 }
 0x1c6   : > { %20186 = vst [vmem:[#allocation111_spill] sm:$0xff] %v16274_v52  ;;  %v16276_v42 = vadd.f32 %v12606_v30, %v1792_v29 }
 0x1c7   : > { %v16278_v24 = vpop.f32.mrf.mxu1  ;;  %v12579_v21 = vpop.f32.mrf.mxu0 }
 0x1c8   : > { %20187 = vst [vmem:[#allocation113_spill] sm:$0xff] %v16278_v24  ;;  %v1803_v12 = vadd.f32 %v12579_v21, %v16181_v19 }
 0x1c9   : > { %v12609_v5 = vpop.f32.mrf.mxu1  ;;  %v1742_v11 = vpop.f32.mrf.mxu0 }
 0x1ca   : > { %v16281_v28 = vadd.f32 %v12609_v5, %v1795_v50  ;;  %v1801_v43 = vadd.f32 %v1742_v11, %v16184_v8 }
 0x1cb   : > { %v2020_v41 = vpop.f32.mrf.mxu1  ;;  %v12580_v32 = vpop.f32.mrf.mxu0 }
 0x1cc   : > { %v16284_v39 = vadd.f32 %v2020_v41, %v1793_v61  ;;  %v1804_v23 = vadd.f32 %v12580_v32, %v16191_v35 }
 0x1cd   : > { %v12610_v10 = vpop.f32.mrf.mxu1  ;;  %v16287_v29 = vpop.f32.mrf.mxu0 }
 0x1ce   : > { %v16289_v30 = vadd.f32 %v12610_v10, %v1796_v17 }
 0x1cf   : > { %v16291_v24 = vpop.f32.mrf.mxu1  ;;  %v12583_v19 = vpop.f32.mrf.mxu0 }
 0x1d0   : > { %20188 = vst [vmem:[#allocation112_spill] sm:$0xff] %v16291_v24  ;;  %v1807_v21 = vadd.f32 %v12583_v19, %v16201_v34 }
 0x1d1   : > { %v12613_v50 = vpop.f32.mrf.mxu1  ;;  %v1758_v5 = vpop.f32.mrf.mxu0 }
 0x1d2   : > { %v16294_v52 = vadd.f32 %v12613_v50, %v1799_v14  ;;  %v1805_v8 = vadd.f32 %v1758_v5, %v16204_v3 }
 0x1d3   : > { %v2036_v61 = vpop.f32.mrf.mxu1  ;;  %v12584_v11 = vpop.f32.mrf.mxu0 }
 0x1d4   : > { %v16297_v41 = vadd.f32 %v2036_v61, %v1797_v0  ;;  %v1808_v35 = vadd.f32 %v12584_v11, %v16210_v44 }
 0x1d5   : > { %v12614_v32 = vpop.f32.mrf.mxu1  ;;  %v16300_v17 = vpop.f32.mrf.mxu0 }
 0x1d6   : > { %v16302_v10 = vadd.f32 %v12614_v32, %v1800_v47 }
 0x1d7   : > { %v16304_v24 = vpop.f32.mrf.mxu1  ;;  %v12627_v34 = vpop.f32.mrf.mxu0 }
 0x1d8   : > { %20189 = vst [vmem:[#allocation116_spill] sm:$0xff] %v16304_v24  ;;  %v16307_v19 = vadd.f32 %v12627_v34, %v16216_v18 }
 0x1d9   : > { %v12617_v14 = vpop.f32.mrf.mxu1  ;;  %v2174_v50 = vpop.f32.mrf.mxu0 }
 0x1da   : > { %v16309_v3 = vadd.f32 %v12617_v14, %v1803_v12  ;;  %v16312_v0 = vadd.f32 %v2174_v50, %v16219_v15 }
 0x1db   : > { %v2052_v5 = vpop.f32.mrf.mxu1  ;;  %v12628_v44 = vpop.f32.mrf.mxu0 }
 0x1dc   : > { %v16314_v61 = vadd.f32 %v2052_v5, %v1801_v43  ;;  %v16317_v47 = vadd.f32 %v12628_v44, %v16224_v16  ;;  %v19860_v44 = vmov 0.0  }
 0x1dd   : > { %v12618_v11 = vpop.f32.mrf.mxu1  ;;  %v16319_v32 = vpop.f32.mrf.mxu0  ;;  %12737 = vmatprep.subr.mxu1 %v19860_v44  ;;  %12769 = vmatprep.mubr.msk.f32.mxu1 %vm14470_vm8, %v19860_v44 }
 0x1de   : > { %v16321_v24 = vadd.f32 %v12618_v11, %v1804_v23 }
 0x1df   : > { %v16323_v18 = vpop.f32.mrf.mxu1  ;;  %v12631_v34 = vpop.f32.mrf.mxu0 }
 0x1e0   : > { %20190 = vst [vmem:[#allocation119_spill] sm:$0xff] %v16323_v18  ;;  %v16326_v12 = vadd.f32 %v12631_v34, %v16229_v54  ;;  %v20192_v18 = vld [vmem:[#allocation86_spill] sm:$0xff] }
 0x1e1   : > { %v12621_v15 = vpop.f32.mrf.mxu1  ;;  %v2190_v14 = vpop.f32.mrf.mxu0  ;;  %12738 = vmatpush3.msra.mxu1 %v20192_v18 }
 0x1e2   : > { %v16328_v50 = vadd.f32 %v12621_v15, %v1807_v21  ;;  %v16331_v43 = vadd.f32 %v2190_v14, %v16232_v2  ;;  %12739 = vmatprep.subr.mxu1 %v19860_v44  ;;  %v20193_v2 = vld [vmem:[#allocation85_spill] sm:$0xff] }
 0x1e3   : > { %v2068_v16 = vpop.f32.mrf.mxu1  ;;  %v12632_v5 = vpop.f32.mrf.mxu0  ;;  %12740 = vmatpush3.msra.mxu1 %v20193_v2 }
 0x1e4   : > { %v16334_v23 = vadd.f32 %v2068_v16, %v1805_v8  ;;  %v16337_v11 = vadd.f32 %v12632_v5, %v16237_v51  ;;  %12741 = vmatprep.subr.mxu1 %v19860_v44  ;;  %v20195_v51 = vld [vmem:[#allocation84_spill] sm:$0xff] }
 0x1e5   : > { %v12622_v54 = vpop.f32.mrf.mxu1  ;;  %v16340_v34 = vpop.f32.mrf.mxu0  ;;  %12742 = vmatpush3.msra.mxu1 %v20195_v51 }
 0x1e6   : > { %20191 = vst [vmem:[#allocation117_spill] sm:$0xff] %v16337_v11  ;;  %v16343_v21 = vadd.f32 %v12622_v54, %v1808_v35  ;;  %12743 = vmatprep.subr.mxu1 %v19860_v44  ;;  %v20197_v54 = vld [vmem:[#allocation83_spill] sm:$0xff] }
 0x1e7   : > { %v16346_v15 = vpop.f32.mrf.mxu1  ;;  %v12635_v14 = vpop.f32.mrf.mxu0  ;;  %12744 = vmatpush3.msra.mxu1 %v20197_v54  ;;  %v20205_v11 = vld [vmem:[#allocation79_spill] sm:$0xff] }
 0x1e8   : > { %v16350_v8 = vadd.f32 %v12635_v14, %v16242_v56  ;;  %12745 = vmatprep.subr.mxu1 %v19860_v44  ;;  %v20199_v14 = vld [vmem:[#allocation82_spill] sm:$0xff] }
 0x1e9   : > { %v16353_v16 = vpop.f32.mrf.mxu1  ;;  %v2206_v5 = vpop.f32.mrf.mxu0  ;;  %12746 = vmatpush3.msra.mxu1 %v20199_v14 }
 0x1ea   : > { %20194 = vst [vmem:[#allocation115_spill] sm:$0xff] %v16350_v8  ;;  %v16357_v35 = vadd.f32 %v2206_v5, %v16245_v26  ;;  %12747 = vmatprep.subr.mxu1 %v19860_v44  ;;  %v20201_v26 = vld [vmem:[#allocation81_spill] sm:$0xff] }
 0x1eb   : > { %v16360_v2 = vpop.f32.mrf.mxu1  ;;  %v12636_v18 = vpop.f32.mrf.mxu0  ;;  %12748 = vmatpush3.msra.mxu1 %v20201_v26 }
 0x1ec   : > { %20196 = vst [vmem:[#allocation121_spill] sm:$0xff] %v16357_v35  ;;  %v16364_v56 = vadd.f32 %v12636_v18, %v16250_v62  ;;  %12749 = vmatprep.subr.mxu1 %v19860_v44  ;;  %v20203_v62 = vld [vmem:[#allocation80_spill] sm:$0xff] }
 0x1ed   : > { %v16367_v51 = vpop.f32.mrf.mxu1  ;;  %v16369_v8 = vpop.f32.mrf.mxu0  ;;  %12750 = vmatpush3.msra.mxu1 %v20203_v62 }
 0x1ee   : > { %20198 = vst [vmem:[#allocation122_spill] sm:$0xff] %v16364_v56  ;;  %20200 = vst [vmem:[#allocation123_spill] sm:$0xff] %v16369_v8  ;;  %12751 = vmatprep.subr.mxu1 %v19860_v44 }
 0x1ef   : > { %v16373_v5 = vpop.f32.mrf.mxu1  ;;  %v12639_v54 = vpop.f32.mrf.mxu0  ;;  %12752 = vmatpush3.msra.mxu1 %v20205_v11 }
 0x1f0   : > { %v16377_v35 = vadd.f32 %v12639_v54, %v16255_v13  ;;  %12753 = vmatprep.subr.mxu1 %v19860_v44  ;;  %v20207_v54 = vld [vmem:[#allocation78_spill] sm:$0xff] }
 0x1f1   : > { %v16380_v18 = vpop.f32.mrf.mxu1  ;;  %v2222_v14 = vpop.f32.mrf.mxu0  ;;  %12754 = vmatpush3.msra.mxu1 %v20207_v54 }
 0x1f2   : > { %20202 = vst [vmem:[#allocation124_spill] sm:$0xff] %v16377_v35  ;;  %v16384_v56 = vadd.f32 %v2222_v14, %v16258_v57  ;;  %12755 = vmatprep.subr.mxu1 %v19860_v44  ;;  %v20209_v57 = vld [vmem:[#allocation77_spill] sm:$0xff] }
 0x1f3   : > { %v16387_v26 = vpop.f32.mrf.mxu1  ;;  %v12640_v8 = vpop.f32.mrf.mxu0  ;;  %12756 = vmatpush3.msra.mxu1 %v20209_v57 }
 0x1f4   : > { %20204 = vst [vmem:[#allocation125_spill] sm:$0xff] %v16384_v56  ;;  %v16391_v13 = vadd.f32 %v12640_v8, %v16263_v33  ;;  %12757 = vmatprep.subr.mxu1 %v19860_v44  ;;  %v20212_v33 = vld [vmem:[#allocation76_spill] sm:$0xff] }
 0x1f5   : > { %v16394_v62 = vpop.f32.mrf.mxu1  ;;  %v16396_v35 = vpop.f32.mrf.mxu0  ;;  %12758 = vmatpush3.msra.mxu1 %v20212_v33 }
 0x1f6   : > { %20206 = vst [vmem:[#allocation126_spill] sm:$0xff] %v16391_v13  ;;  %20208 = vst [vmem:[#allocation127_spill] sm:$0xff] %v16396_v35  ;;  %12759 = vmatprep.subr.mxu1 %v19860_v44  ;;  %v20214_v35 = vld [vmem:[#allocation75_spill] sm:$0xff] }
 0x1f7   : > { %v16400_v14 = vpop.f32.mrf.mxu1  ;;  %v12643_v11 = vpop.f32.mrf.mxu0  ;;  %12760 = vmatpush3.msra.mxu1 %v20214_v35 }
 0x1f8   : > { %20210 = vst [vmem:[#allocation128_spill] sm:$0xff] %v16400_v14  ;;  %v16404_v56 = vadd.f32 %v12643_v11, %v16268_v48  ;;  %12761 = vmatprep.subr.mxu1 %v19860_v44  ;;  %v20216_v11 = vld [vmem:[#allocation74_spill] sm:$0xff] }
 0x1f9   : > { %v16407_v8 = vpop.f32.mrf.mxu1  ;;  %v2238_v54 = vpop.f32.mrf.mxu0  ;;  %12762 = vmatpush3.msra.mxu1 %v20216_v11 }
 0x1fa   : > { %20211 = vst [vmem:[#allocation129_spill] sm:$0xff] %v16404_v56  ;;  %v16411_v13 = vadd.f32 %v2238_v54, %v16271_v4  ;;  %12763 = vmatprep.subr.mxu1 %v19860_v44  ;;  %v20218_v4 = vld [vmem:[#allocation73_spill] sm:$0xff] }
 0x1fb   : > { %v16414_v57 = vpop.f32.mrf.mxu1  ;;  %v12644_v14 = vpop.f32.mrf.mxu0  ;;  %12764 = vmatpush3.msra.mxu1 %v20218_v4  ;;  %v20223_v4 = vld [vmem:[#allocation71_spill] sm:$0xff] }
 0x1fc   : > { %20213 = vst [vmem:[#allocation130_spill] sm:$0xff] %v16411_v13  ;;  %v16418_v48 = vadd.f32 %v12644_v14, %v16276_v42  ;;  %12765 = vmatprep.subr.mxu1 %v19860_v44  ;;  %v20220_v14 = vld [vmem:[#allocation72_spill] sm:$0xff] }
 0x1fd   : > { %v16421_v33 = vpop.f32.mrf.mxu1  ;;  %v16423_v56 = vpop.f32.mrf.mxu0  ;;  %12766 = vmatpush3.msra.mxu1 %v20220_v14 }
 0x1fe   : > { %20215 = vst [vmem:[#allocation131_spill] sm:$0xff] %v16418_v48  ;;  %20217 = vst [vmem:[#allocation132_spill] sm:$0xff] %v16423_v56  ;;  %12767 = vmatprep.subr.mxu1 %v19860_v44 }
 0x1ff   : > { %v12647_v54 = vpop.f32.mrf.mxu0  ;;  %v16434_v11 = vpop.f32.mrf.mxu1  ;;  %12768 = vmatpush3.msra.mxu1 %v20223_v4 }
 0x200   : > { %v16431_v42 = vadd.f32 %v12647_v54, %v16281_v28  ;;  %20221 = vst [vmem:[#allocation134_spill] sm:$0xff] %v16434_v11  ;;  %12772 = vmatprep.subr.mxu1 %v19860_v44  ;;  %v16456_v4 = vpop.permute.xlu1 %3109 }
 0x201   : > { %v2254_v35 = vpop.f32.mrf.mxu0  ;;  %v16445_v28 = vpop.f32.mrf.mxu1  ;;  %20230 = vst [vmem:[#allocation142_spill] sm:$0xff] %v16456_v4 }
 0x202   : > { %20219 = vst [vmem:[#allocation133_spill] sm:$0xff] %v16431_v42  ;;  %v16438_v48 = vadd.f32 %v2254_v35, %v16284_v39  ;;  %20225 = vst [vmem:[#allocation137_spill] sm:$0xff] %v16445_v28  ;;  %v16449_v42 = vpop.permute.xlu0 %3099 }
 0x203   : > { %v12648_v13 = vpop.f32.mrf.mxu0  ;;  %20227 = vst [vmem:[#allocation139_spill] sm:$0xff] %v16449_v42  ;;  %v16454_v39 = vpop.f32.mrf.mxu1 }
 0x204   : > { %20222 = vst [vmem:[#allocation135_spill] sm:$0xff] %v16438_v48  ;;  %v16443_v56 = vadd.f32 %v12648_v13, %v16289_v30  ;;  %20229 = vst [vmem:[#allocation141_spill] sm:$0xff] %v16454_v39 }
 0x205   : > { %v16447_v54 = vpop.f32.mrf.mxu0 }
 0x206   : > { %20224 = vst [vmem:[#allocation136_spill] sm:$0xff] %v16443_v56  ;;  %20226 = vst [vmem:[#allocation138_spill] sm:$0xff] %v16447_v54  ;;  %v16464_v56 = vpop.f32.mrf.mxu1  ;;  %v16468_v54 = vpop.permute.xlu0 %3104 }
 0x207   : > { %v12651_v14 = vpop.f32.mrf.mxu0  ;;  %20233 = vst [vmem:[#allocation145_spill] sm:$0xff] %v16464_v56  ;;  %20235 = vst [vmem:[#allocation147_spill] sm:$0xff] %v16468_v54 }
 0x208   : > { %v16452_v11 = vadd.f32 %v12651_v14, %v16294_v52  ;;  %v16470_v14 = vpop.permute.xlu1 %3114  ;;  %v16475_v39 = vpop.f32.mrf.mxu1 }
 0x209   : > { %v2270_v35 = vpop.f32.mrf.mxu0  ;;  %20236 = vst [vmem:[#allocation148_spill] sm:$0xff] %v16470_v14 }
 0x20a   : > { %20228 = vst [vmem:[#allocation140_spill] sm:$0xff] %v16452_v11  ;;  %v16459_v44 = vadd.f32 %v2270_v35, %v16297_v41 }
 0x20b   : > { %v12652_v30 = vpop.f32.mrf.mxu0 }
 0x20c   : > { %20231 = vst [vmem:[#allocation143_spill] sm:$0xff] %v16459_v44  ;;  %v16462_v13 = vadd.f32 %v12652_v30, %v16302_v10  ;;  %v16480_v30 = vpop.permute.xlu0 %3119  ;;  %v3021_v44 = vlaneseq  ;;  %v16489_v28 = vpop.permute.xlu1 %3124 }
 0x20d   : > { %v16466_v48 = vpop.f32.mrf.mxu0  ;;  %20239 = vst [vmem:[#allocation151_spill] sm:$0xff] %v16480_v30  ;;  %20243 = vst [vmem:[#allocation155_spill] sm:$0xff] %v16489_v28 }
 0x20e   : > { %20232 = vst [vmem:[#allocation144_spill] sm:$0xff] %v16462_v13  ;;  %20234 = vst [vmem:[#allocation146_spill] sm:$0xff] %v16466_v48  ;;  %v16485_v48 = vpop.f32.mrf.mxu1 }
 0x20f   : > { %v12655_v52 = vpop.f32.mrf.mxu0  ;;  %20241 = vst [vmem:[#allocation153_spill] sm:$0xff] %v16485_v48 }
 0x210   : > { %v16473_v11 = vadd.f32 %v12655_v52, %v16309_v3 }
 0x211   : > { %v2286_v41 = vpop.f32.mrf.mxu0 }
 0x212   : > { %20237 = vst [vmem:[#allocation149_spill] sm:$0xff] %v16473_v11  ;;  %v16478_v35 = vadd.f32 %v2286_v41, %v16314_v61  ;;  %v16494_v11 = vshrl.u32 %v3021_v44, 7  ;;  %v16496_v61 = vpop.f32.mrf.mxu1 }
 0x213   : > { %v12656_v10 = vpop.f32.mrf.mxu0  ;;  %20246 = vst [vmem:[#allocation158_spill] sm:$0xff] %v16496_v61 }
 0x214   : > { %20238 = vst [vmem:[#allocation150_spill] sm:$0xff] %v16478_v35  ;;  %v16483_v13 = vadd.f32 %v12656_v10, %v16321_v24  ;;  %20245 = vst [vmem:[#allocation157_spill] sm:$0xff] %v16494_v11  ;;  %v16498_v35 = vpop.permute.xlu0 %3129  ;;  %v16509_v48 = vsub.s32 0, %v16494_v11  ;;  %v20283_v11 = vld [vmem:[#allocation125_spill] sm:$0xff] }
 0x215   : > { %v16487_v56 = vpop.f32.mrf.mxu0  ;;  %20247 = vst [vmem:[#allocation159_spill] sm:$0xff] %v16498_v35 }
 0x216   : > { %20240 = vst [vmem:[#allocation152_spill] sm:$0xff] %v16483_v13  ;;  %20242 = vst [vmem:[#allocation154_spill] sm:$0xff] %v16487_v56  ;;  %v16503_v13 = vpop.permute.xlu1 %3134 }
 0x217   : > { %v12659_v3 = vpop.f32.mrf.mxu0  ;;  %20248 = vst [vmem:[#allocation160_spill] sm:$0xff] %v16503_v13  ;;  %20249 = vst [vmem:[#allocation161_spill] sm:$0xff] %v16509_v48 }
 0x218   : > { %v16492_v52 = vadd.f32 %v12659_v3, %v16328_v50  ;;  %v20250_v50 = vld [vmem:[#allocation118_spill] sm:$0xff]  ;;  %v1416_v3 = vadd.f32 %v16045_v45, %v15970_v38  ;;  %v1436_v38 = vadd.f32 %v16156_v7, %v16112_v6  ;;  %v1444_v6 = vadd.f32 %v16193_v36, %v16154_v58 }
 0x219   : > { %v2302_v41 = vpop.f32.mrf.mxu0  ;;  %v896_v44 = vadd.f32 %v16014_v1, %v20250_v50  ;;  %v1432_v1 = vadd.f32 %v16134_v59, %v16092_v60  ;;  %v20256_v58 = vld [vmem:[#allocation106_spill] sm:$0xff] }
 0x21a   : > { %20244 = vst [vmem:[#allocation156_spill] sm:$0xff] %v16492_v52  ;;  %v16501_v24 = vadd.f32 %v2302_v41, %v16334_v23  ;;  %v16515_v52 = vpop.f32.mrf.mxu1  ;;  %v1420_v23 = vadd.f32 %v16072_v27, %v16011_v20  ;;  %v1428_v41 = vadd.f32 %v16114_v46, %v16069_v22  ;;  %v1774_v50 = vadd.f32 %v16188_v9, %v1416_v3  ;;  %v16535_v27 = vpop.permute.xlu0 %3139  ;;  %v20252_v46 = vld [vmem:[#allocation103_spill] sm:$0xff]  ;;  %v20253_v9 = vld [vmem:[#allocation120_spill] sm:$0xff] }
 0x21b   : > { %v12660_v10 = vpop.f32.mrf.mxu0  ;;  %v1214_v45 = vadd.f32 %v16169_v63, %v896_v44  ;;  %20251 = vst [vmem:[#allocation118_spill] sm:$0xff] %v16535_v27  ;;  %v2675_v22 = vadd.f32 %v16360_v2, %v16312_v0  ;;  %v16541_v60 = vrot.slane %v20252_v46, %v16509_v48  ;;  %v20254_v0 = vld [vmem:[#allocation107_spill] sm:$0xff]  ;;  %v2678_v44 = vadd.f32 %v16367_v51, %v16317_v47  ;;  %v20260_v47 = vld [vmem:[#allocation108_spill] sm:$0xff] }
 0x21c   : > { %v16506_v56 = vadd.f32 %v12660_v10, %v16343_v21  ;;  %v1424_v21 = vadd.f32 %v16094_v31, %v16043_v55  ;;  %v2677_v10 = vadd.f32 %v16353_v16, %v16307_v19  ;;  %v1440_v55 = vadd.f32 %v16174_v40, %v16132_v49  ;;  %v16548_v49 = vpop.f32.mrf.mxu1  ;;  %v16552_v16 = vpop.permute.xlu1 %3144 }
 0x21d   : > { %v16517_v61 = vpop.f32.mrf.mxu0  ;;  %v1448_v59 = vadd.f32 %v16212_v25, %v1214_v45  ;;  %v1778_v7 = vadd.f32 %v16208_v53, %v1420_v23  ;;  %v2084_v63 = vadd.f32 %v16226_v37, %v1774_v50  ;;  %v1786_v2 = vadd.f32 %v20254_v0, %v1428_v41  ;;  %20255 = vst [vmem:[#allocation120_spill] sm:$0xff] %v16552_v16  ;;  %v20257_v25 = vld [vmem:[#allocation109_spill] sm:$0xff]  ;;  %v20258_v53 = vld [vmem:[#allocation114_spill] sm:$0xff]  ;;  %v20259_v50 = vld [vmem:[#allocation111_spill] sm:$0xff] }
 0x21e   : > { %v1782_v19 = vadd.f32 %v20253_v9, %v1424_v21  ;;  %v1794_v23 = vadd.f32 %v20258_v53, %v1436_v38  ;;  %v16571_v0 = vpop.f32.mrf.mxu1 }
 0x21f   : > { %v12703_v20 = vpop.f32.mrf.mxu0  ;;  %v2088_v36 = vadd.f32 %v20256_v58, %v1778_v7  ;;  %v2318_v37 = vadd.f32 %v16319_v32, %v2084_v63  ;;  %v20263_v63 = vld [vmem:[#allocation112_spill] sm:$0xff] }
 0x220   : > { %v2987_v31 = vadd.f32 %v12703_v20, %v2677_v10  ;;  %v1790_v10 = vadd.f32 %v20257_v25, %v1432_v1  ;;  %v1798_v20 = vadd.f32 %v20259_v50, %v1440_v55  ;;  %v2092_v51 = vadd.f32 %v20260_v47, %v1782_v19  ;;  %v20264_v58 = vld [vmem:[#allocation116_spill] sm:$0xff]  ;;  %v16581_v19 = vpop.permute.xlu0 %3149  ;;  %v16602_v50 = vpop.f32.mrf.mxu1 }
 0x221   : > { %v2842_v40 = vpop.f32.mrf.mxu0  ;;  %v2676_v38 = vadd.f32 %v16373_v5, %v2318_v37  ;;  %v1802_v55 = vadd.f32 %v16287_v29, %v1444_v6  ;;  %20265 = vst [vmem:[#allocation107_spill] sm:$0xff] %v16581_v19  ;;  %v20266_v6 = vld [vmem:[#allocation119_spill] sm:$0xff] }
 0x222   : > { %v2985_v3 = vadd.f32 %v2842_v40, %v2675_v22  ;;  %v16562_v21 = vadd.f32 %v16541_v60, %v2987_v31  ;;  %v20261_v22 = vld [vmem:[#allocation110_spill] sm:$0xff]  ;;  %v20262_v40 = vld [vmem:[#allocation113_spill] sm:$0xff]  ;;  %v16575_v31 = vadd.f32 %v20263_v63, %v1794_v23  ;;  %v2679_v23 = vadd.f32 %v16387_v26, %v16331_v43  ;;  %v20271_v43 = vld [vmem:[#allocation128_spill] sm:$0xff] }
 0x223   : > { %v12704_v45 = vpop.f32.mrf.mxu0  ;;  %v2096_v7 = vadd.f32 %v20261_v22, %v1786_v2  ;;  %v2100_v1 = vadd.f32 %v20262_v40, %v1790_v10  ;;  %v2681_v2 = vadd.f32 %v16380_v18, %v16326_v12  ;;  %v16590_v53 = vadd.f32 %v20266_v6, %v1802_v55  ;;  %v20268_v18 = vld [vmem:[#allocation123_spill] sm:$0xff]  ;;  %v20275_v6 = vld [vmem:[#allocation122_spill] sm:$0xff] }
 0x224   : > { %v16565_v41 = vadd.f32 %v16541_v60, %v2985_v3  ;;  %v2988_v9 = vadd.f32 %v12704_v45, %v2678_v44  ;;  %v1806_v3 = vadd.f32 %v16300_v17, %v1448_v59  ;;  %v16579_v44 = vadd.f32 %v20264_v58, %v1798_v20  ;;  %v16593_v59 = vpop.permute.xlu1 %3154  ;;  %v20270_v22 = vld [vmem:[#allocation127_spill] sm:$0xff]  ;;  %v16620_v58 = vpop.permute.xlu0 %3159 }
 0x225   : > { %v2845_v32 = vpop.f32.mrf.mxu0  ;;  %v2322_v17 = vadd.f32 %v16340_v34, %v2088_v36  ;;  %20267 = vst [vmem:[#allocation106_spill] sm:$0xff] %v16593_v59  ;;  %v19862_v37 = vmax.f32 %v16562_v21, 0.0  ;;  %v2326_v45 = vadd.f32 %v20268_v18, %v2092_v51  ;;  %v20269_v34 = vld [vmem:[#allocation117_spill] sm:$0xff]  ;;  %v16610_v40 = vadd.f32 %v20270_v22, %v2096_v7  ;;  %20273 = vst [vmem:[#allocation109_spill] sm:$0xff] %v16620_v58 }
 0x226   : > { %v19864_v5 = vmax.f32 %v16565_v41, 0.0  ;;  %v16587_v25 = vadd.f32 %v16541_v60, %v2988_v9  ;;  %v2986_v10 = vadd.f32 %v2845_v32, %v2676_v38  ;;  %v16599_v12 = vadd.f32 %v16346_v15, %v1806_v3  ;;  %v20272_v15 = vld [vmem:[#allocation115_spill] sm:$0xff] }
 0x227   : > { %v12707_v29 = vpop.f32.mrf.mxu0  ;;  %v2682_v36 = vadd.f32 %v16394_v62, %v20269_v34  ;;  %v2680_v26 = vadd.f32 %v20271_v43, %v2322_v17  ;;  %v2685_v32 = vadd.f32 %v16407_v8, %v20272_v15  ;;  %v3279_v62 = vmul.f32 %v16456_v4, %v19862_v37  ;;  %v20278_v43 = vld [vmem:[#allocation134_spill] sm:$0xff]  ;;  %v20281_v37 = vld [vmem:[#allocation137_spill] sm:$0xff] }
 0x228   : > { %v16605_v20 = vadd.f32 %v16541_v60, %v2986_v10  ;;  %v2991_v9 = vadd.f32 %v12707_v29, %v2681_v2  ;;  %v3277_v51 = vmul.f32 %v16449_v42, %v19864_v5  ;;  %v19865_v55 = vmax.f32 %v16587_v25, 0.0  ;;  %v20274_v10 = vld [vmem:[#allocation121_spill] sm:$0xff]  ;;  %v16643_v22 = vpop.permute.xlu1 %3164  ;;  %v16664_v46 = vpop.permute.xlu0 %3169  ;;  %v20285_v4 = vld [vmem:[#allocation126_spill] sm:$0xff] }
 0x229   : > { %v2858_v47 = vpop.f32.mrf.mxu0  ;;  %v2683_v29 = vadd.f32 %v16414_v57, %v20274_v10  ;;  %v2686_v17 = vadd.f32 %v16421_v33, %v20275_v6  ;;  %20277 = vst [vmem:[#allocation114_spill] sm:$0xff] %v16643_v22  ;;  %v3357_v5 = vmul.f32 %v3279_v62, %v3279_v62  ;;  %20282 = vst [vmem:[#allocation108_spill] sm:$0xff] %v16664_v46 }
 0x22a   : > { %v2989_v38 = vadd.f32 %v2858_v47, %v2679_v23  ;;  %v19863_v63 = vmax.f32 %v16605_v20, 0.0  ;;  %v16626_v7 = vadd.f32 %v16541_v60, %v2991_v9  ;;  %v20276_v23 = vld [vmem:[#allocation132_spill] sm:$0xff]  ;;  %v16638_v47 = vpop.f32.mrf.mxu1  ;;  %v3355_v15 = vmul.f32 %v3277_v51, %v3277_v51 }
 0x22b   : > { %v12708_v3 = vpop.f32.mrf.mxu0  ;;  %v16636_v18 = vadd.f32 %v20276_v23, %v2100_v1  ;;  %v3280_v1 = vmul.f32 %v16470_v14, %v19865_v55  ;;  %v20280_v23 = vld [vmem:[#allocation124_spill] sm:$0xff] }
 0x22c   : > { %v16629_v8 = vadd.f32 %v16541_v60, %v2989_v38  ;;  %v2992_v2 = vadd.f32 %v12708_v3, %v2682_v36  ;;  %v3278_v9 = vmul.f32 %v16468_v54, %v19863_v63  ;;  %v2684_v36 = vadd.f32 %v20278_v43, %v2326_v45  ;;  %v20286_v54 = vld [vmem:[#allocation145_spill] sm:$0xff] }
 0x22d   : > { %v2861_v34 = vpop.f32.mrf.mxu0  ;;  %v2689_v63 = vadd.f32 %v20281_v37, %v20280_v23  ;;  %v20284_v37 = vld [vmem:[#allocation141_spill] sm:$0xff] }
 0x22e   : > { %v19872_v38 = vmax.f32 %v16629_v8, 0.0  ;;  %v16648_v57 = vadd.f32 %v16541_v60, %v2992_v2  ;;  %v2990_v33 = vadd.f32 %v2861_v34, %v2680_v26  ;;  %v3313_v3 = vadd.f32 %v3278_v9, %v3277_v51  ;;  %v16659_v2 = vpop.f32.mrf.mxu1 }
 0x22f   : > { %v3356_v10 = vmul.f32 %v3278_v9, %v3278_v9  ;;  %v12711_v6 = vpop.f32.mrf.mxu0  ;;  %v2687_v23 = vadd.f32 %v20284_v37, %v20283_v11 }
 0x230   : > { %20279 = vst [vmem:[#allocation111_spill] sm:$0xff] %v16648_v57  ;;  %v16657_v43 = vadd.f32 %v16541_v60, %v2990_v33  ;;  %v3314_v26 = vadd.f32 %v3313_v3, %v3279_v62  ;;  %v3281_v55 = vmul.f32 %v16480_v30, %v19872_v38  ;;  %v2995_v51 = vadd.f32 %v12711_v6, %v2685_v32  ;;  %v16672_v38 = vpop.permute.xlu1 %3174 }
 0x231   : > { %v3391_v34 = vadd.f32 %v3356_v10, %v3355_v15  ;;  %v2874_v9 = vpop.f32.mrf.mxu0  ;;  %v19876_v45 = vmax.f32 %v16648_v57, 0.0  ;;  %v2690_v62 = vadd.f32 %v20286_v54, %v20285_v4  ;;  %v3358_v15 = vmul.f32 %v3280_v1, %v3280_v1  ;;  %20287 = vst [vmem:[#allocation110_spill] sm:$0xff] %v16672_v38 }
 0x232   : > { %v19873_v33 = vmax.f32 %v16657_v43, 0.0  ;;  %v2993_v14 = vadd.f32 %v2874_v9, %v2683_v29  ;;  %v3315_v10 = vadd.f32 %v3314_v26, %v3280_v1  ;;  %v16678_v11 = vadd.f32 %v16541_v60, %v2995_v51  ;;  %v16683_v9 = vpop.f32.mrf.mxu1 }
 0x233   : > { %v3392_v3 = vadd.f32 %v3391_v34, %v3357_v5  ;;  %v12712_v42 = vpop.f32.mrf.mxu0  ;;  %v20288_v4 = vmax.f32 %v16626_v7, 0.0  ;;  %v3359_v1 = vmul.f32 %v3281_v55, %v3281_v55  ;;  %v3284_v37 = vmul.f32 %v16503_v13, %v19876_v45  ;;  %v20295_v13 = vld [vmem:[#allocation158_spill] sm:$0xff] }
 0x234   : > { %v3282_v32 = vmul.f32 %v16489_v28, %v19873_v33  ;;  %v16681_v6 = vadd.f32 %v16541_v60, %v2993_v14  ;;  %v2996_v29 = vadd.f32 %v12712_v42, %v2686_v17  ;;  %v3316_v5 = vadd.f32 %v3315_v10, %v3281_v55  ;;  %v20289_v42 = vld [vmem:[#allocation138_spill] sm:$0xff] }
 0x235   : > { %v3283_v54 = vmul.f32 %v16498_v35, %v20288_v4  ;;  %v3393_v26 = vadd.f32 %v3392_v3, %v3358_v15  ;;  %v2877_v34 = vpop.f32.mrf.mxu0  ;;  %v16694_v17 = vadd.f32 %v20289_v42, %v16575_v31  ;;  %v16699_v15 = vpop.permute.xlu0 %3179  ;;  %v2688_v3 = vadd.f32 %v16475_v39, %v16610_v40  ;;  %v20292_v42 = vld [vmem:[#allocation129_spill] sm:$0xff]  ;;  %v20294_v10 = vld [vmem:[#allocation130_spill] sm:$0xff] }
 0x236   : > { %v3360_v51 = vmul.f32 %v3282_v32, %v3282_v32  ;;  %v19880_v33 = vmax.f32 %v16681_v6, 0.0  ;;  %v2994_v14 = vadd.f32 %v2877_v34, %v2684_v36  ;;  %v3317_v30 = vadd.f32 %v3316_v5, %v3282_v32  ;;  %20290 = vst [vmem:[#allocation113_spill] sm:$0xff] %v16699_v15  ;;  %v16707_v34 = vpop.f32.mrf.mxu1  ;;  %v20293_v39 = vld [vmem:[#allocation153_spill] sm:$0xff] }
 0x237   : > { %v3394_v28 = vadd.f32 %v3393_v26, %v3359_v1  ;;  %v16697_v4 = vadd.f32 %v16541_v60, %v2996_v29  ;;  %v12715_v55 = vpop.f32.mrf.mxu0  ;;  %v3361_v31 = vmul.f32 %v3283_v54, %v3283_v54  ;;  %v16712_v26 = vpop.permute.xlu1 %3184  ;;  %v2693_v40 = vadd.f32 %v20293_v39, %v20292_v42 }
 0x238   : > { %v16705_v45 = vadd.f32 %v16541_v60, %v2994_v14  ;;  %v2999_v36 = vadd.f32 %v12715_v55, %v2689_v63  ;;  %v3318_v1 = vadd.f32 %v3317_v30, %v3283_v54  ;;  %v3285_v29 = vmul.f32 %v16535_v27, %v19880_v33  ;;  %20291 = vst [vmem:[#allocation112_spill] sm:$0xff] %v16712_v26 }
 0x239   : > { %v3395_v32 = vadd.f32 %v3394_v28, %v3360_v51  ;;  %v2890_v5 = vpop.f32.mrf.mxu0  ;;  %v2691_v14 = vadd.f32 %v20295_v13, %v20294_v10  ;;  %v3362_v35 = vmul.f32 %v3284_v37, %v3284_v37  ;;  %v20296_v51 = vmax.f32 %v16678_v11, 0.0  ;;  %v16729_v10 = vpop.f32.mrf.mxu1 }
 0x23a   : > { %v19882_v63 = vmax.f32 %v16705_v45, 0.0  ;;  %v3319_v57 = vadd.f32 %v3318_v1, %v3284_v37  ;;  %v2997_v30 = vadd.f32 %v2890_v5, %v2687_v23  ;;  %v16727_v39 = vadd.f32 %v16541_v60, %v2999_v36  ;;  %v16734_v5 = vpop.permute.xlu0 %3189 }
 0x23b   : > { %v3396_v55 = vadd.f32 %v3395_v32, %v3361_v31  ;;  %v12716_v54 = vpop.f32.mrf.mxu0  ;;  %v3287_v33 = vmul.f32 %v16581_v19, %v20296_v51  ;;  %v3363_v37 = vmul.f32 %v3285_v29, %v3285_v29  ;;  %20297 = vst [vmem:[#allocation116_spill] sm:$0xff] %v16734_v5  ;;  %v20298_v51 = vld [vmem:[#allocation131_spill] sm:$0xff] }
 0x23c   : > { %v3286_v42 = vmul.f32 %v16552_v16, %v19882_v63  ;;  %v3000_v13 = vadd.f32 %v12716_v54, %v2690_v62  ;;  %v3320_v31 = vadd.f32 %v3319_v57, %v3285_v29  ;;  %v16732_v23 = vadd.f32 %v16541_v60, %v2997_v30  ;;  %v16745_v30 = vpop.permute.xlu1 %3194  ;;  %v20301_v16 = vld [vmem:[#allocation146_spill] sm:$0xff] }
 0x23d   : > { %v3397_v1 = vadd.f32 %v3396_v55, %v3362_v35  ;;  %v2893_v32 = vpop.f32.mrf.mxu0  ;;  %v2694_v28 = vadd.f32 %v16515_v52, %v20298_v51  ;;  %v20299_v54 = vmax.f32 %v16697_v4, 0.0  ;;  %20300 = vst [vmem:[#allocation119_spill] sm:$0xff] %v16745_v30  ;;  %v16749_v27 = vadd.f32 %v20301_v16, %v16579_v44 }
 0x23e   : > { %v3364_v19 = vmul.f32 %v3286_v42, %v3286_v42  ;;  %v16739_v63 = vadd.f32 %v16541_v60, %v3000_v13  ;;  %v2998_v36 = vadd.f32 %v2893_v32, %v2688_v3  ;;  %v3321_v35 = vadd.f32 %v3320_v31, %v3286_v42 }
 0x23f   : > { %v3398_v62 = vadd.f32 %v3397_v1, %v3363_v37  ;;  %v3288_v57 = vmul.f32 %v16593_v59, %v20299_v54  ;;  %v19886_v29 = vmax.f32 %v16732_v23, 0.0  ;;  %v12719_v55 = vpop.f32.mrf.mxu0  ;;  %v16755_v37 = vpop.f32.mrf.mxu1  ;;  %v3365_v1 = vmul.f32 %v3287_v33, %v3287_v33 }
 0x240   : > { %v16753_v13 = vadd.f32 %v16541_v60, %v2998_v36  ;;  %v3003_v3 = vadd.f32 %v12719_v55, %v2693_v40  ;;  %v3322_v32 = vadd.f32 %v3321_v35, %v3287_v33  ;;  %v2692_v16 = vadd.f32 %v16548_v49, %v16636_v18  ;;  %v16767_v33 = vpop.permute.xlu0 %3199  ;;  %v16782_v44 = vpop.permute.xlu1 %3204 }
 0x241   : > { %v3399_v42 = vadd.f32 %v3398_v62, %v3364_v19  ;;  %v3289_v31 = vmul.f32 %v16620_v58, %v19886_v29  ;;  %v2906_v51 = vpop.f32.mrf.mxu0  ;;  %v3366_v52 = vmul.f32 %v3288_v57, %v3288_v57  ;;  %20302 = vst [vmem:[#allocation123_spill] sm:$0xff] %v16767_v33  ;;  %v20303_v62 = vld [vmem:[#allocation133_spill] sm:$0xff]  ;;  %v20304_v29 = vmax.f32 %v16727_v39, 0.0  ;;  %20305 = vst [vmem:[#allocation117_spill] sm:$0xff] %v16782_v44 }
 0x242   : > { %v19888_v54 = vmax.f32 %v16753_v13, 0.0  ;;  %v3001_v36 = vadd.f32 %v2906_v51, %v2691_v14  ;;  %v3323_v55 = vadd.f32 %v3322_v32, %v3288_v57  ;;  %v16765_v59 = vadd.f32 %v16541_v60, %v3003_v3  ;;  %v16780_v57 = vpop.f32.mrf.mxu1 }
 0x243   : > { %v3400_v40 = vadd.f32 %v3399_v42, %v3365_v1  ;;  %v12720_v19 = vpop.f32.mrf.mxu0  ;;  %v2697_v35 = vadd.f32 %v16571_v0, %v20303_v62  ;;  %v3291_v49 = vmul.f32 %v16664_v46, %v20304_v29  ;;  %v3367_v1 = vmul.f32 %v3289_v31, %v3289_v31 }
 0x244   : > { %v3290_v18 = vmul.f32 %v16643_v22, %v19888_v54  ;;  %v16778_v14 = vadd.f32 %v16541_v60, %v3001_v36  ;;  %v3324_v3 = vadd.f32 %v3323_v55, %v3289_v31  ;;  %v3004_v42 = vadd.f32 %v12720_v19, %v2694_v28  ;;  %v20308_v28 = vld [vmem:[#allocation135_spill] sm:$0xff]  ;;  %v16799_v46 = vpop.f32.mrf.mxu1 }
 0x245   : > { %v3401_v32 = vadd.f32 %v3400_v40, %v3366_v52  ;;  %v2909_v51 = vpop.f32.mrf.mxu0  ;;  %v20306_v0 = vmax.f32 %v16739_v63, 0.0  ;;  %v19892_v58 = vmax.f32 %v16765_v59, 0.0  ;;  %v2695_v31 = vadd.f32 %v16602_v50, %v20308_v28  ;;  %v20309_v40 = vld [vmem:[#allocation136_spill] sm:$0xff]  ;;  %v20312_v50 = vld [vmem:[#allocation154_spill] sm:$0xff] }
 0x246   : > { %v3368_v62 = vmul.f32 %v3290_v18, %v3290_v18  ;;  %v3002_v54 = vadd.f32 %v2909_v51, %v2692_v16  ;;  %v3325_v36 = vadd.f32 %v3324_v3, %v3290_v18  ;;  %v16790_v55 = vadd.f32 %v16541_v60, %v3004_v42  ;;  %v16804_v51 = vpop.permute.xlu0 %3209 }
 0x247   : > { %v3292_v29 = vmul.f32 %v16672_v38, %v20306_v0  ;;  %v3402_v22 = vadd.f32 %v3401_v32, %v3367_v1  ;;  %v12723_v52 = vpop.f32.mrf.mxu0  ;;  %v2698_v19 = vadd.f32 %v16638_v47, %v20309_v40  ;;  %v3369_v16 = vmul.f32 %v3291_v49, %v3291_v49  ;;  %20311 = vst [vmem:[#allocation128_spill] sm:$0xff] %v16804_v51  ;;  %v20314_v47 = vld [vmem:[#allocation140_spill] sm:$0xff] }
 0x248   : > { %20307 = vst [vmem:[#allocation127_spill] sm:$0xff] %v16790_v55  ;;  %v16797_v0 = vadd.f32 %v16541_v60, %v3002_v54  ;;  %v3007_v38 = vadd.f32 %v12723_v52, %v2697_v35  ;;  %v3326_v18 = vadd.f32 %v3325_v36, %v3291_v49  ;;  %v20310_v1 = vmax.f32 %v16778_v14, 0.0  ;;  %v16815_v36 = vpop.permute.xlu1 %3214 }
 0x249   : > { %v3403_v3 = vadd.f32 %v3402_v22, %v3368_v62  ;;  %v2922_v42 = vpop.f32.mrf.mxu0  ;;  %v16808_v28 = vadd.f32 %v20312_v50, %v16590_v53  ;;  %v3370_v52 = vmul.f32 %v3292_v29, %v3292_v29  ;;  %v3295_v22 = vmul.f32 %v16734_v5, %v19892_v58  ;;  %20313 = vst [vmem:[#allocation115_spill] sm:$0xff] %v16815_v36 }
 0x24a   : > { %v3293_v32 = vmul.f32 %v16699_v15, %v20310_v1  ;;  %v19894_v54 = vmax.f32 %v16797_v0, 0.0  ;;  %v3005_v35 = vadd.f32 %v2922_v42, %v2695_v31  ;;  %v3327_v49 = vadd.f32 %v3326_v18, %v3292_v29 }
 0x24b   : > { %v3404_v40 = vadd.f32 %v3403_v3, %v3369_v16  ;;  %v12724_v62 = vpop.f32.mrf.mxu0  ;;  %v16821_v1 = vadd.f32 %v16541_v60, %v3007_v38  ;;  %v2696_v16 = vadd.f32 %v16659_v2, %v16694_v17  ;;  %v16828_v3 = vpop.f32.mrf.mxu1  ;;  %v2701_v5 = vadd.f32 %v16683_v9, %v20314_v47 }
 0x24c   : > { %v3294_v53 = vmul.f32 %v16712_v26, %v19894_v54  ;;  %v16824_v50 = vadd.f32 %v16541_v60, %v3005_v35  ;;  %v3008_v31 = vadd.f32 %v12724_v62, %v2698_v19  ;;  %v3328_v29 = vadd.f32 %v3327_v49, %v3293_v32 }
 0x24d   : > { %v3371_v18 = vmul.f32 %v3293_v32, %v3293_v32  ;;  %v3405_v42 = vadd.f32 %v3404_v40, %v3370_v52  ;;  %v2925_v58 = vpop.f32.mrf.mxu0  ;;  %v20315_v54 = vmax.f32 %v16790_v55, 0.0  ;;  %v16839_v32 = vpop.permute.xlu0 %3219  ;;  %v20316_v52 = vld [vmem:[#allocation143_spill] sm:$0xff]  ;;  %v3373_v9 = vmul.f32 %v3295_v22, %v3295_v22 }
 0x24e   : > { %v3372_v26 = vmul.f32 %v3294_v53, %v3294_v53  ;;  %v19901_v35 = vmax.f32 %v16824_v50, 0.0  ;;  %v3329_v62 = vadd.f32 %v3328_v29, %v3294_v53  ;;  %v16837_v2 = vadd.f32 %v16541_v60, %v3008_v31  ;;  %v20317_v29 = vld [vmem:[#allocation144_spill] sm:$0xff] }
 0x24f   : > { %v3296_v38 = vmul.f32 %v16745_v30, %v20315_v54  ;;  %v3406_v19 = vadd.f32 %v3405_v42, %v3371_v18  ;;  %v3006_v17 = vadd.f32 %v2925_v58, %v2696_v16  ;;  %v12727_v49 = vpop.f32.mrf.mxu0  ;;  %v2699_v40 = vadd.f32 %v16707_v34, %v20316_v52  ;;  %v2647_v54 = vpop.f32.mrf.mxu1 }
 0x250   : > { %v19899_v47 = vmax.f32 %v16821_v1, 0.0  ;;  %v3011_v15 = vadd.f32 %v12727_v49, %v2701_v5  ;;  %v3330_v30 = vadd.f32 %v3329_v62, %v3295_v22  ;;  %v3297_v53 = vmul.f32 %v16767_v33, %v19901_v35  ;;  %v16850_v16 = vpop.permute.xlu1 %3224  ;;  %v20321_v35 = vld [vmem:[#allocation150_spill] sm:$0xff] }
 0x251   : > { %v3407_v55 = vadd.f32 %v3406_v19, %v3372_v26  ;;  %v16848_v31 = vadd.f32 %v16541_v60, %v3006_v17  ;;  %v2938_v58 = vpop.f32.mrf.mxu0  ;;  %v2702_v34 = vadd.f32 %v16729_v10, %v20317_v29  ;;  %v2700_v18 = vadd.f32 %v16755_v37, %v16749_v27  ;;  %v12697_v37 = vpop.f32.mrf.mxu1  ;;  %v20319_v29 = vld [vmem:[#allocation149_spill] sm:$0xff] }
 0x252   : > { %v3374_v5 = vmul.f32 %v3296_v38, %v3296_v38  ;;  %v3009_v42 = vadd.f32 %v2938_v58, %v2699_v40  ;;  %v3331_v26 = vadd.f32 %v3330_v30, %v3296_v38  ;;  %v19903_v19 = vmax.f32 %v16837_v2, 0.0  ;;  %v16870_v58 = vpop.permute.xlu0 %3229 }
 0x253   : > { %v3408_v22 = vadd.f32 %v3407_v55, %v3373_v9  ;;  %v19900_v62 = vmax.f32 %v16848_v31, 0.0  ;;  %v12728_v49 = vpop.f32.mrf.mxu0  ;;  %v3299_v17 = vmul.f32 %v16804_v51, %v19899_v47  ;;  %v16862_v52 = vadd.f32 %v16541_v60, %v3011_v15  ;;  %20318 = vst [vmem:[#allocation121_spill] sm:$0xff] %v16870_v58 }
 0x254   : > { %v16865_v10 = vadd.f32 %v16541_v60, %v3009_v42  ;;  %v3012_v27 = vadd.f32 %v12728_v49, %v2702_v34  ;;  %v3332_v40 = vadd.f32 %v3331_v26, %v3297_v53  ;;  %v3375_v55 = vmul.f32 %v3297_v53, %v3297_v53 }
 0x255   : > { %v3409_v30 = vadd.f32 %v3408_v22, %v3374_v5  ;;  %v3298_v38 = vmul.f32 %v16782_v44, %v19900_v62  ;;  %v2941_v9 = vpop.f32.mrf.mxu0  ;;  %v2705_v47 = vadd.f32 %v16780_v57, %v20319_v29  ;;  %v3300_v53 = vmul.f32 %v16815_v36, %v19903_v19  ;;  %v16881_v62 = vpop.permute.xlu1 %3234  ;;  %v20322_v19 = vld [vmem:[#allocation152_spill] sm:$0xff] }
 0x256   : > { %v19907_v15 = vmax.f32 %v16865_v10, 0.0  ;;  %v16876_v42 = vadd.f32 %v16541_v60, %v3012_v27  ;;  %v3010_v34 = vadd.f32 %v2941_v9, %v2700_v18  ;;  %20320 = vst [vmem:[#allocation122_spill] sm:$0xff] %v16881_v62  ;;  %v2703_v51 = vadd.f32 %v16799_v46, %v20321_v35  ;;  %v2660_v18 = vpop.f32.mrf.mxu1 }
 0x257   : > { %v3410_v49 = vadd.f32 %v3409_v30, %v3375_v55  ;;  %v3333_v5 = vadd.f32 %v3332_v40, %v3298_v38  ;;  %v3376_v22 = vmul.f32 %v3298_v38, %v3298_v38  ;;  %v12731_v26 = vpop.f32.mrf.mxu0  ;;  %v3377_v57 = vmul.f32 %v3299_v17, %v3299_v17 }
 0x258   : > { %v16887_v27 = vadd.f32 %v16541_v60, %v3010_v34  ;;  %v3301_v40 = vmul.f32 %v16839_v32, %v19907_v15  ;;  %v19908_v38 = vmax.f32 %v16876_v42, 0.0  ;;  %v2706_v36 = vadd.f32 %v16828_v3, %v20322_v19 }
 0x259   : > { %v3334_v55 = vadd.f32 %v3333_v5, %v3299_v17  ;;  %v3411_v30 = vadd.f32 %v3410_v49, %v3376_v22  ;;  %v2954_v9 = vpop.f32.mrf.mxu0  ;;  %v3015_v35 = vadd.f32 %v12731_v26, %v2705_v47  ;;  %v2704_v34 = vadd.f32 %v2647_v54, %v16808_v28  ;;  %v16897_v5 = vpop.permute.xlu0 %3239 }
 0x25a   : > { %v19909_v46 = vmax.f32 %v16887_v27, 0.0  ;;  %v3013_v29 = vadd.f32 %v2954_v9, %v2703_v51  ;;  %v3378_v44 = vmul.f32 %v3300_v53, %v3300_v53  ;;  %20323 = vst [vmem:[#allocation132_spill] sm:$0xff] %v16897_v5  ;;  %v20324_v22 = vmax.f32 %v16862_v52, 0.0  ;;  %v12698_v47 = vpop.f32.mrf.mxu1 }
 0x25b   : > { %v3412_v33 = vadd.f32 %v3411_v30, %v3377_v57  ;;  %v3335_v17 = vadd.f32 %v3334_v55, %v3300_v53  ;;  %v12732_v49 = vpop.f32.mrf.mxu0  ;;  %v3379_v54 = vmul.f32 %v3301_v40, %v3301_v40  ;;  %v3304_v53 = vmul.f32 %v16881_v62, %v19908_v38  ;;  %v16911_v55 = vpop.permute.xlu1 %3244 }
 0x25c   : > { %v3303_v15 = vmul.f32 %v16870_v58, %v20324_v22  ;;  %v3302_v3 = vmul.f32 %v16850_v16, %v19909_v46  ;;  %v16906_v19 = vadd.f32 %v16541_v60, %v3013_v29  ;;  %v3016_v51 = vadd.f32 %v12732_v49, %v2706_v36  ;;  %20325 = vst [vmem:[#allocation134_spill] sm:$0xff] %v16911_v55  ;;  %v2663_v22 = vpop.f32.mrf.mxu1 }
 0x25d   : > { %v3336_v28 = vadd.f32 %v3335_v17, %v3301_v40  ;;  %v3413_v26 = vadd.f32 %v3412_v33, %v3378_v44  ;;  %v2957_v57 = vpop.f32.mrf.mxu0  ;;  %v16914_v9 = vadd.f32 %v16541_v60, %v3015_v35  ;;  %v2350_v36 = vadd.f32 %v16517_v61, %v16599_v12  ;;  %v20326_v33 = vld [vmem:[#allocation156_spill] sm:$0xff]  ;;  %v16928_v12 = vpop.permute.xlu0 %3249 }
 0x25e   : > { %v3380_v30 = vmul.f32 %v3302_v3, %v3302_v3  ;;  %v3014_v29 = vadd.f32 %v2957_v57, %v2704_v34  ;;  %v2709_v49 = vadd.f32 %v12697_v37, %v20326_v33  ;;  %v2707_v38 = vadd.f32 %v2660_v18, %v16501_v24  ;;  %20327 = vst [vmem:[#allocation124_spill] sm:$0xff] %v16928_v12 }
 0x25f   : > { %v3414_v17 = vadd.f32 %v3413_v26, %v3379_v54  ;;  %v3337_v40 = vadd.f32 %v3336_v28, %v3302_v3  ;;  %v12735_v44 = vpop.f32.mrf.mxu0  ;;  %v16922_v46 = vadd.f32 %v16541_v60, %v3016_v51  ;;  %v2710_v35 = vadd.f32 %v12698_v47, %v16506_v56 }
 0x260   : > { %v16925_v62 = vadd.f32 %v16541_v60, %v3014_v29  ;;  %v3381_v34 = vmul.f32 %v3303_v15, %v3303_v15  ;;  %v3382_v3 = vmul.f32 %v3304_v53, %v3304_v53  ;;  %v20328_v24 = vmax.f32 %v16906_v19, 0.0  ;;  %v16935_v29 = vpop.permute.xlu1 %3254 }
 0x261   : > { %v3338_v57 = vadd.f32 %v3337_v40, %v3303_v15  ;;  %v3415_v58 = vadd.f32 %v3414_v17, %v3380_v30  ;;  %v2970_v61 = vpop.f32.mrf.mxu0  ;;  %v3019_v26 = vadd.f32 %v12735_v44, %v2709_v49  ;;  %20329 = vst [vmem:[#allocation137_spill] sm:$0xff] %v16935_v29  ;;  %v2708_v15 = vadd.f32 %v2663_v22, %v2350_v36 }
 0x262   : > { %v3305_v18 = vmul.f32 %v16897_v5, %v20328_v24  ;;  %v19915_v51 = vmax.f32 %v16925_v62, 0.0  ;;  %v3017_v56 = vadd.f32 %v2970_v61, %v2707_v38  ;;  %v19914_v30 = vmax.f32 %v16922_v46, 0.0 }
 0x263   : > { %v3416_v28 = vadd.f32 %v3415_v58, %v3381_v34  ;;  %v3339_v54 = vadd.f32 %v3338_v57, %v3304_v53  ;;  %v12736_v47 = vpop.f32.mrf.mxu0  ;;  %v20330_v53 = vmax.f32 %v16914_v9, 0.0  ;;  %v16948_v36 = vadd.f32 %v16541_v60, %v3019_v26  ;;  %v16951_v57 = vpop.permute.xlu0 %3259 }
 0x264   : > { %v3306_v17 = vmul.f32 %v16911_v55, %v19915_v51  ;;  %v16942_v24 = vadd.f32 %v16541_v60, %v3017_v56  ;;  %v3020_v37 = vadd.f32 %v12736_v47, %v2710_v35  ;;  %v3383_v49 = vmul.f32 %v3305_v18, %v3305_v18  ;;  %20331 = vst [vmem:[#allocation125_spill] sm:$0xff] %v16951_v57  ;;  %v16962_v56 = vpop.permute.xlu1 %3264 }
 0x265   : > { %v3340_v40 = vadd.f32 %v3339_v54, %v3305_v18  ;;  %v3417_v33 = vadd.f32 %v3416_v28, %v3382_v3  ;;  %v2973_v58 = vpop.f32.mrf.mxu0  ;;  %v3307_v38 = vmul.f32 %v16928_v12, %v20330_v53  ;;  %v3308_v61 = vmul.f32 %v16935_v29, %v19914_v30  ;;  %20332 = vst [vmem:[#allocation141_spill] sm:$0xff] %v16962_v56 }
 0x266   : > { %v3018_v44 = vadd.f32 %v2973_v58, %v2708_v15  ;;  %v19912_v34 = vmax.f32 %v16942_v24, 0.0  ;;  %v3384_v54 = vmul.f32 %v3306_v17, %v3306_v17  ;;  %v16960_v18 = vadd.f32 %v16541_v60, %v3020_v37 }
 0x267   : > { %v3341_v22 = vadd.f32 %v3340_v40, %v3306_v17  ;;  %v3418_v3 = vadd.f32 %v3417_v33, %v3383_v49  ;;  %v19920_v47 = vmax.f32 %v16948_v36, 0.0  ;;  %v16973_v37 = vpop.permute.xlu0 %3269  ;;  %v3385_v53 = vmul.f32 %v3307_v38, %v3307_v38 }
 0x268   : > { %v16957_v35 = vadd.f32 %v16541_v60, %v3018_v44  ;;  %v3309_v15 = vmul.f32 %v16951_v57, %v19912_v34  ;;  %v19924_v60 = vmax.f32 %v16960_v18, 0.0  ;;  %20333 = vst [vmem:[#allocation126_spill] sm:$0xff] %v16973_v37 }
 0x269   : > { %v3342_v28 = vadd.f32 %v3341_v22, %v3307_v38  ;;  %v3419_v58 = vadd.f32 %v3418_v3, %v3384_v54  ;;  %v3311_v44 = vmul.f32 %v16973_v37, %v19920_v47  ;;  %v16978_v22 = vpop.permute.xlu1 %3274  ;;  %v3386_v3 = vmul.f32 %v3308_v61, %v3308_v61 }
 0x26a   : > { %v19913_v26 = vmax.f32 %v16957_v35, 0.0  ;;  %v3387_v51 = vmul.f32 %v3309_v15, %v3309_v15 }
 0x26b   : > { %v3343_v40 = vadd.f32 %v3342_v28, %v3308_v61  ;;  %v3420_v34 = vadd.f32 %v3419_v58, %v3385_v53  ;;  %v3312_v28 = vmul.f32 %v16978_v22, %v19924_v60  ;;  %v3389_v37 = vmul.f32 %v3311_v44, %v3311_v44  ;;  %v20334_v60 = vld [vmem:[#allocation86_spill] sm:$0xff] }
 0x26c   : > { %v3310_v33 = vmul.f32 %v16962_v56, %v19913_v26  ;;  %v20335_v61 = vmov 0.0  }
 0x26d   : > { %v3344_v17 = vadd.f32 %v3343_v40, %v3309_v15  ;;  %v3421_v40 = vadd.f32 %v3420_v34, %v3386_v3  ;;  %v3390_v5 = vmul.f32 %v3312_v28, %v3312_v28  ;;  %v20343_v15 = vld [vmem:[#allocation78_spill] sm:$0xff] }
 0x26e   : > { %v3388_v29 = vmul.f32 %v3310_v33, %v3310_v33 }
 0x26f   : > { %v3345_v49 = vadd.f32 %v3344_v17, %v3310_v33  ;;  %v3422_v38 = vadd.f32 %v3421_v40, %v3387_v51  ;;  %v20336_v51 = vld [vmem:[#allocation85_spill] sm:$0xff]  ;;  %v20349_v40 = vld [vmem:[#allocation72_spill] sm:$0xff] }
 0x271   : > { %v3346_v26 = vadd.f32 %v3345_v49, %v3311_v44  ;;  %v3423_v17 = vadd.f32 %v3422_v38, %v3388_v29  ;;  %v20346_v49 = vld [vmem:[#allocation75_spill] sm:$0xff] }
 0x273   : > { %v3347_v54 = vadd.f32 %v3346_v26, %v3312_v28  ;;  %v3424_v58 = vadd.f32 %v3423_v17, %v3389_v37  ;;  %v20345_v37 = vld [vmem:[#allocation76_spill] sm:$0xff]  ;;  %v20347_v28 = vld [vmem:[#allocation74_spill] sm:$0xff]  ;;  %v20350_v17 = vld [vmem:[#allocation71_spill] sm:$0xff] }
 0x275   : > { %v3348_v30 = vrot.slane %v3347_v54, 4  ;;  %v3425_v34 = vadd.f32 %v3424_v58, %v3390_v5  ;;  %v20340_v5 = vld [vmem:[#allocation81_spill] sm:$0xff] }
 0x276   : > { %v14206_v58 = vld [vmem:[%s19777_s2 + $0x78] sm:$0xff]  }
 0x277   : > { %v3349_v56 = vadd.f32 %v3348_v30, %v3347_v54  ;;  %v20337_v30 = vld [vmem:[#allocation84_spill] sm:$0xff]  ;;  %v3426_v29 = vrot.slane %v3425_v34, 4  ;;  %v20348_v54 = vld [vmem:[#allocation73_spill] sm:$0xff] }
 0x279   : > { %v3350_v57 = vrot.slane %v3349_v56, 2 }
 0x27b   : > { %v3351_v12 = vadd.f32 %v3350_v57, %v3349_v56  ;;  %v3427_v57 = vadd.f32 %v3426_v29, %v3425_v34  ;;  %v20341_v56 = vld [vmem:[#allocation80_spill] sm:$0xff]  ;;  %v14211_v29 = vld [vmem:[%s19777_s2 + $0x28] sm:$0xff]  }
 0x27c   : > { %v14208_v34 = vld [vmem:[%s19777_s2 + $0x70] sm:$0xff]  }
 0x27d   : > { %v3352_v47 = vrot.slane %v3351_v12, 1  ;;  %v3428_v26 = vrot.slane %v3427_v57, 2 }
 0x27f   : > { %v3353_v55 = vadd.f32 %v3352_v47, %v3351_v12  ;;  %v20339_v12 = vld [vmem:[#allocation82_spill] sm:$0xff]  ;;  %v20342_v47 = vld [vmem:[#allocation79_spill] sm:$0xff]  ;;  %v3429_v33 = vadd.f32 %v3428_v26, %v3427_v57  ;;  %v14214_v57 = vld [vmem:[%s19777_s2 + $0x58] sm:$0xff]  }
 0x280   : > { %v14217_v26 = vld [vmem:[%s19777_s2 + $0x10] sm:$0xff]  }
 0x281   : > { %v3354_v53 = vmul.f32 0.00390625, %v3353_v55  ;;  %v20338_v55 = vld [vmem:[#allocation83_spill] sm:$0xff]  ;;  %v3430_v44 = vrot.slane %v3429_v33, 1 }
 0x283   : > { %12770 = vmatmul.mubr.f32.vlgmr.msra.gmra.mxu1 %v3354_v53  ;;  %v3431_v3 = vadd.f32 %v3430_v44, %v3429_v33  ;;  %v14207_v53 = vld [vmem:[%s19777_s2 + $0x38] sm:$0xff]   ;;  %v14220_v33 = vld [vmem:[%s19777_s2 + $0x40] sm:$0xff]   ;;  %v3842_v44 = vld [vmem:[#allocation2 + $0x9] sm:$0xff] }
 0x284   : > { %12773 = vmatpush3.msra.mxu1 %v20334_v60  ;;  %12804 = vmatprep.mubr.msk.f32.mxu1 %vm14470_vm8, %v20335_v61  ;;  %v20344_v60 = vld [vmem:[#allocation77_spill] sm:$0xff] }
 0x285   : > { %12774 = vmatprep.subr.mxu1 %v20335_v61  ;;  %v3432_v38 = vmul.f32 0.00390625, %v3431_v3  ;;  %12859 = vmatprep.subr.bf16.mxu0 %v14207_v53  ;;  %v3772_v3 = vld [vmem:[#allocation2 + $0x8] sm:$0xff] }
 0x286   : > { %12775 = vmatpush3.msra.mxu1 %v20336_v51  ;;  %12860 = vmatpush3.bf16.msra.mxu0 %v14207_v53  ;;  %v14209_v51 = vld [vmem:[%s19777_s2 + $0x30] sm:$0xff]  }
 0x287   : > { %12776 = vmatprep.subr.mxu1 %v20335_v61  ;;  %12861 = vmatprep.subr.bf16.mxu0 %v14209_v51 }
 0x288   : > { %12777 = vmatpush3.msra.mxu1 %v20337_v30  ;;  %v14210_v30 = vld [vmem:[%s19777_s2 + $0x68] sm:$0xff]  }
 0x289   : > { %12778 = vmatprep.subr.mxu1 %v20335_v61 }
 0x28a   : > { %12779 = vmatpush3.msra.mxu1 %v20338_v55  ;;  %12862 = vmatpush3.bf16.msra.mxu0 %v14209_v51  ;;  %v14212_v55 = vld [vmem:[%s19777_s2 + $0x60] sm:$0xff]  }
 0x28b   : > { %12780 = vmatprep.subr.mxu1 %v20335_v61  ;;  %12863 = vmatprep.subr.bf16.mxu0 %v14211_v29 }
 0x28c   : > { %12781 = vmatpush3.msra.mxu1 %v20339_v12  ;;  %v14213_v12 = vld [vmem:[%s19777_s2 + $0x20] sm:$0xff]  }
 0x28d   : > { %12782 = vmatprep.subr.mxu1 %v20335_v61 }
 0x28e   : > { %12783 = vmatpush3.msra.mxu1 %v20340_v5  ;;  %12864 = vmatpush3.bf16.msra.mxu0 %v14211_v29  ;;  %v14215_v5 = vld [vmem:[%s19777_s2 + $0x18] sm:$0xff]  }
 0x28f   : > { %12784 = vmatprep.subr.mxu1 %v20335_v61  ;;  %12865 = vmatprep.subr.bf16.mxu0 %v14213_v12 }
 0x290   : > { %12785 = vmatpush3.msra.mxu1 %v20341_v56  ;;  %v14216_v56 = vld [vmem:[%s19777_s2 + $0x50] sm:$0xff]  }
 0x291   : > { %12786 = vmatprep.subr.mxu1 %v20335_v61 }
 0x292   : > { %12787 = vmatpush3.msra.mxu1 %v20342_v47  ;;  %12866 = vmatpush3.bf16.msra.mxu0 %v14213_v12  ;;  %v14218_v47 = vld [vmem:[%s19777_s2 + $0x48] sm:$0xff]  }
 0x293   : > { %12788 = vmatprep.subr.mxu1 %v20335_v61  ;;  %12867 = vmatprep.subr.bf16.mxu0 %v14215_v5 }
 0x294   : > { %12789 = vmatpush3.msra.mxu1 %v20343_v15  ;;  %v14219_v15 = vld [vmem:[%s19777_s2 + $0x8] sm:$0xff]  }
 0x295   : > { %12790 = vmatprep.subr.mxu1 %v20335_v61 }
 0x296   : > { %12791 = vmatpush3.msra.mxu1 %v20344_v60  ;;  %12868 = vmatpush3.bf16.msra.mxu0 %v14215_v5  ;;  %v14221_v60 = vld [vmem:[%s19777_s2] sm:$0xff]  }
 0x297   : > { %12792 = vmatprep.subr.mxu1 %v20335_v61  ;;  %12869 = vmatprep.subr.bf16.mxu0 %v14217_v26 }
 0x298   : > { %12793 = vmatpush3.msra.mxu1 %v20345_v37  ;;  %v3841_v37 = vld [vmem:[#allocation2 + $0x1] sm:$0xff] }
 0x299   : > { %12794 = vmatprep.subr.mxu1 %v20335_v61 }
 0x29a   : > { %12795 = vmatpush3.msra.mxu1 %v20346_v49  ;;  %12870 = vmatpush3.bf16.msra.mxu0 %v14217_v26  ;;  %v3877_v49 = vpack.c.bf16 %v3842_v44, %v3841_v37  ;;  %v20355_v37 = vmax.f32 %v16587_v25, 0.0  ;;  %v20363_v25 = vmax.f32 %v16678_v11, 0.0  ;;  %v20370_v11 = vmax.f32 %v16797_v0, 0.0 }
 0x29b   : > { %12796 = vmatprep.subr.mxu1 %v20335_v61  ;;  %12871 = vmatprep.subr.bf16.mxu0 %v14219_v15 }
 0x29c   : > { %12797 = vmatpush3.msra.mxu1 %v20347_v28  ;;  %v3771_v28 = vld [vmem:[#allocation2] sm:$0xff] }
 0x29d   : > { %12798 = vmatprep.subr.mxu1 %v20335_v61 }
 0x29e   : > { %12799 = vmatpush3.msra.mxu1 %v20348_v54  ;;  %12872 = vmatpush3.bf16.msra.mxu0 %v14219_v15  ;;  %v3807_v54 = vpack.c.bf16 %v3772_v3, %v3771_v28  ;;  %v20357_v3 = vmax.f32 %v16657_v43, 0.0  ;;  %v20365_v43 = vmax.f32 %v16732_v23, 0.0 }
 0x29f   : > { %12800 = vmatprep.subr.mxu1 %v20335_v61  ;;  %12873 = vmatprep.subr.bf16.mxu0 %v14221_v60 }
 0x2a0   : > { %12801 = vmatpush3.msra.mxu1 %v20349_v40  ;;  %12875 = vmatprep.mubr.bf16.mxu0 %v3807_v54 }
 0x2a1   : > { %12802 = vmatprep.subr.mxu1 %v20335_v61 }
 0x2a2   : > { %12803 = vmatpush3.msra.mxu1 %v20350_v17  ;;  %12874 = vmatpush3.bf16.msra.mxu0 %v14221_v60  ;;  %v17072_v17 = vld [vmem:[%s19777_s2 + $0xf8] sm:$0xff]  }
 0x2a3   : > { %12805 = vmatmul.mubr.f32.vlgmr.msra.gmra.mxu1 %v3432_v38  ;;  %12807 = vmatprep.subr.bf16.mxu1 %v14206_v58  ;;  %v17067_v38 = vld [vmem:[%s19777_s2 + $0xb8] sm:$0xff]  }
 0x2a4   : > { %12808 = vmatpush3.bf16.msra.mxu1 %v14206_v58  ;;  %12823 = vmatprep.mubr.bf16.mxu1 %v3877_v49  ;;  %v20356_v49 = vmax.f32 %v16629_v8, 0.0  ;;  %v20364_v8 = vmax.f32 %v16697_v4, 0.0 }
 0x2a5   : > { %12809 = vmatprep.subr.bf16.mxu1 %v14208_v34  ;;  %12963 = vmatprep.subr.bf16.mxu0 %v17072_v17 }
 0x2a8   : > { %12810 = vmatpush3.bf16.msra.mxu1 %v14208_v34 }
 0x2a9   : > { %12811 = vmatprep.subr.bf16.mxu1 %v14210_v30 }
 0x2ac   : > { %12812 = vmatpush3.bf16.msra.mxu1 %v14210_v30 }
 0x2ad   : > { %12813 = vmatprep.subr.bf16.mxu1 %v14212_v55 }
 0x2b0   : > { %12814 = vmatpush3.bf16.msra.mxu1 %v14212_v55 }
 0x2b1   : > { %12815 = vmatprep.subr.bf16.mxu1 %v14214_v57 }
 0x2b4   : > { %12816 = vmatpush3.bf16.msra.mxu1 %v14214_v57  ;;  %v20351_v57 = vld [vmem:[#allocation105_spill] sm:$0xff] }
 0x2b5   : > { %12817 = vmatprep.subr.bf16.mxu1 %v14216_v56  ;;  %v17079_v5 = vrot.slane %v20351_v57, %v16509_v48 }
 0x2b8   : > { %12818 = vmatpush3.bf16.msra.mxu1 %v14216_v56  ;;  %v20352_v56 = vmax.f32 %v16565_v41, 0.0  ;;  %v20359_v41 = vld [vmem:[#allocation111_spill] sm:$0xff] }
 0x2b9   : > { %12819 = vmatprep.subr.bf16.mxu1 %v14218_v47 }
 0x2bc   : > { %12820 = vmatpush3.bf16.msra.mxu1 %v14218_v47  ;;  %v20353_v47 = vmax.f32 %v16605_v20, 0.0  ;;  %v20361_v20 = vmax.f32 %v16681_v6, 0.0  ;;  %v20368_v6 = vmax.f32 %v16739_v63, 0.0 }
 0x2bd   : > { %12821 = vmatprep.subr.bf16.mxu1 %v14220_v33 }
 0x2c0   : > { %12822 = vmatpush3.bf16.msra.mxu1 %v14220_v33  ;;  %v20354_v33 = vmax.f32 %v16562_v21, 0.0  ;;  %v20362_v21 = vmax.f32 %v16705_v45, 0.0  ;;  %v20369_v45 = vmax.f32 %v16778_v14, 0.0 }
 0x2c1   : > { %12911 = vmatprep.subr.bf16.mxu1 %v17067_v38 }
 0x343   : > { %v3499_v40 = vpop.f32.mrf.mxu1 }
 0x344   : > { %v3573_v53 = vmul.f32 %v3499_v40, %v3499_v40  ;;  %v3582_v12 = vrot.slane %v3499_v40, %v16509_v48  ;;  %v20358_v40 = vmax.f32 %v16626_v7, 0.0  ;;  %v20366_v7 = vmax.f32 %v16753_v13, 0.0 }
 0x345   : > { %v12771_v58 = vpop.f32.mrf.mxu1 }
 0x346   : > { %v3583_v26 = vsub.f32 %v20352_v56, %v3582_v12  ;;  %v3584_v15 = vsub.f32 %v20353_v47, %v3582_v12  ;;  %v3585_v60 = vsub.f32 %v20354_v33, %v3582_v12  ;;  %v3586_v44 = vsub.f32 %v20355_v37, %v3582_v12 }
 0x347   : > { %v3587_v28 = vsub.f32 %v20356_v49, %v3582_v12  ;;  %v3588_v54 = vsub.f32 %v20357_v3, %v3582_v12  ;;  %v3589_v58 = vsub.f32 %v20358_v40, %v3582_v12  ;;  %v3595_v56 = vsub.f32 %v20365_v43, %v3582_v12 }
 0x348   : > { %v3596_v47 = vsub.f32 %v20366_v7, %v3582_v12  ;;  %v20367_v33 = vmax.f32 %v16727_v39, 0.0  ;;  %v3598_v49 = vsub.f32 %v20368_v6, %v3582_v12  ;;  %v3599_v3 = vsub.f32 %v20369_v45, %v3582_v12 }
 0x349   : > { %v3600_v40 = vsub.f32 %v20370_v11, %v3582_v12  ;;  %v20377_v43 = vmax.f32 %v16837_v2, 0.0  ;;  %v20378_v7 = vmax.f32 %v16865_v10, 0.0  ;;  %v20380_v45 = vmax.f32 %v16887_v27, 0.0 }
 0x34a   : > { %v3597_v37 = vsub.f32 %v20367_v33, %v3582_v12  ;;  %v20384_v2 = vmax.f32 %v16925_v62, 0.0  ;;  %v20385_v10 = vmax.f32 %v16914_v9, 0.0  ;;  %v20390_v62 = vmax.f32 %v16960_v18, 0.0 }
 0x34b   : > { %v3606_v0 = vsub.f32 %v20377_v43, %v3582_v12  ;;  %v3607_v33 = vsub.f32 %v20378_v7, %v3582_v12  ;;  %v3608_v11 = vsub.f32 %v20380_v45, %v3582_v12 }
 0x363   : > { %v3569_v34 = vpop.f32.mrf.mxu1 }
 0x364   : > { %v3574_v51 = vsub.f32 %v3569_v34, %v3573_v53  ;;  %v20360_v53 = vmax.f32 %v20359_v41, 0.0  ;;  %v20371_v41 = vmax.f32 %v16765_v59, 0.0  ;;  %v20379_v59 = vld [vmem:[#allocation104_spill] sm:$0xff] }
 0x365   : > { %v12806_v30 = vpop.f32.mrf.mxu1 }
 0x366   : > { %v3575_v29 = vmax.f32 %v3574_v51, 0.0  ;;  %v3590_v34 = vsub.f32 %v20360_v53, %v3582_v12  ;;  %v3591_v51 = vsub.f32 %v20361_v20, %v3582_v12  ;;  %v3592_v30 = vsub.f32 %v20362_v21, %v3582_v12  ;;  %v20372_v53 = vld [vmem:[#allocation127_spill] sm:$0xff] }
 0x367   : > { %v3601_v23 = vsub.f32 %v20371_v41, %v3582_v12  ;;  %v20373_v20 = vmax.f32 %v20372_v53, 0.0  ;;  %v20374_v21 = vmax.f32 %v16824_v50, 0.0  ;;  %v20381_v50 = vmax.f32 %v16862_v52, 0.0 }
 0x368   : > { %v3576_v55 = vadd.f32 1e-05, %v3575_v29  ;;  %v3593_v29 = vsub.f32 %v20363_v25, %v3582_v12  ;;  %v20375_v25 = vmax.f32 %v16848_v31, 0.0  ;;  %v20382_v31 = vmax.f32 %v16876_v42, 0.0 }
 0x369   : > { %v3602_v13 = vsub.f32 %v20373_v20, %v3582_v12  ;;  %v3603_v39 = vsub.f32 %v20374_v21, %v3582_v12  ;;  %v3609_v41 = vsub.f32 %v20381_v50, %v3582_v12  ;;  %v3612_v21 = vsub.f32 %v20384_v2, %v3582_v12 }
 0x36a   : > { %14422 = vrsqrt.f32 %v3576_v55  ;;  %v3594_v55 = vsub.f32 %v20364_v8, %v3582_v12  ;;  %v3604_v63 = vsub.f32 %v20375_v25, %v3582_v12  ;;  %v20376_v8 = vmax.f32 %v16821_v1, 0.0 }
 0x36b   : > { %v3610_v53 = vsub.f32 %v20382_v31, %v3582_v12  ;;  %v20383_v1 = vmax.f32 %v16906_v19, 0.0  ;;  %v3613_v25 = vsub.f32 %v20385_v10, %v3582_v12  ;;  %v20387_v52 = vmax.f32 %v16942_v24, 0.0 }
 0x36c   : > { %v3605_v14 = vsub.f32 %v20376_v8, %v3582_v12  ;;  %v20388_v42 = vmax.f32 %v16957_v35, 0.0  ;;  %v20389_v19 = vmax.f32 %v16948_v36, 0.0  ;;  %v3618_v50 = vsub.f32 %v20390_v62, %v3582_v12 }
 0x36d   : > { %v3611_v20 = vsub.f32 %v20383_v1, %v3582_v12  ;;  %v3615_v43 = vsub.f32 %v20387_v52, %v3582_v12 }
 0x36e   : > { %v3616_v7 = vsub.f32 %v20388_v42, %v3582_v12  ;;  %v3617_v45 = vsub.f32 %v20389_v19, %v3582_v12 }
 0x377   : > { %v14423_v4 = vpop.eup %14422 }
 0x378   : > { %v3578_v6 = vmul.f32 %v14423_v4, %v20379_v59  ;;  %v20386_v4 = vmax.f32 %v16922_v46, 0.0 }
 0x37a   : > { %v3614_v8 = vsub.f32 %v20386_v4, %v3582_v12  ;;  %v3622_v27 = vrot.slane %v3578_v6, %v16509_v48 }
 0x37c   : > { %v3623_v31 = vmul.f32 %v3622_v27, %v3583_v26  ;;  %v3624_v9 = vmul.f32 %v3622_v27, %v3584_v15  ;;  %v3625_v1 = vmul.f32 %v3622_v27, %v3585_v60  ;;  %v3626_v2 = vmul.f32 %v3622_v27, %v3586_v44 }
 0x37d   : > { %v3627_v46 = vmul.f32 %v3622_v27, %v3587_v28  ;;  %v3628_v10 = vmul.f32 %v3622_v27, %v3588_v54  ;;  %v3629_v4 = vmul.f32 %v3622_v27, %v3589_v58  ;;  %v3630_v6 = vmul.f32 %v3622_v27, %v3590_v34 }
 0x37e   : > { %v3631_v57 = vmul.f32 %v3622_v27, %v3591_v51  ;;  %v3632_v24 = vmul.f32 %v3622_v27, %v3592_v30  ;;  %v3633_v52 = vmul.f32 %v3622_v27, %v3593_v29  ;;  %v3634_v48 = vmul.f32 %v3622_v27, %v3594_v55 }
 0x37f   : > { %v3635_v35 = vmul.f32 %v3622_v27, %v3595_v56  ;;  %v3636_v42 = vmul.f32 %v3622_v27, %v3596_v47  ;;  %v3637_v59 = vmul.f32 %v3622_v27, %v3597_v37  ;;  %v3638_v36 = vmul.f32 %v3622_v27, %v3598_v49 }
 0x380   : > { %v3639_v19 = vmul.f32 %v3622_v27, %v3599_v3  ;;  %v3640_v61 = vmul.f32 %v3622_v27, %v3600_v40  ;;  %v3641_v18 = vmul.f32 %v3622_v27, %v3601_v23  ;;  %v3642_v12 = vmul.f32 %v3622_v27, %v3602_v13 }
 0x381   : > { %v3643_v26 = vmul.f32 %v3622_v27, %v3603_v39  ;;  %v3644_v15 = vmul.f32 %v3622_v27, %v3604_v63  ;;  %v3645_v60 = vmul.f32 %v3622_v27, %v3605_v14  ;;  %v3646_v44 = vmul.f32 %v3622_v27, %v3606_v0 }
 0x382   : > { %v3647_v28 = vmul.f32 %v3622_v27, %v3607_v33  ;;  %v3648_v54 = vmul.f32 %v3622_v27, %v3608_v11  ;;  %v3649_v58 = vmul.f32 %v3622_v27, %v3609_v41  ;;  %v3650_v34 = vmul.f32 %v3622_v27, %v3610_v53 }
 0x383   : > { %v3651_v51 = vmul.f32 %v3622_v27, %v3611_v20  ;;  %v3652_v30 = vmul.f32 %v3622_v27, %v3612_v21  ;;  %v3653_v29 = vmul.f32 %v3622_v27, %v3613_v25  ;;  %v3654_v55 = vmul.f32 %v3622_v27, %v3614_v8 }
 0x384   : > { %v3655_v56 = vmul.f32 %v3622_v27, %v3615_v43  ;;  %v3656_v47 = vmul.f32 %v3622_v27, %v3616_v7  ;;  %v3657_v37 = vmul.f32 %v3622_v27, %v3617_v45  ;;  %v3658_v49 = vmul.f32 %v3622_v27, %v3618_v50 }
 0x385   : > { %v3663_v3 = vadd.f32 %v17079_v5, %v3623_v31  ;;  %v3664_v40 = vadd.f32 %v17079_v5, %v3624_v9  ;;  %v3665_v23 = vadd.f32 %v17079_v5, %v3625_v1  ;;  %v3666_v13 = vadd.f32 %v17079_v5, %v3626_v2 }
 0x386   : > { %v3667_v39 = vadd.f32 %v17079_v5, %v3627_v46  ;;  %v3668_v63 = vadd.f32 %v17079_v5, %v3628_v10  ;;  %v3669_v14 = vadd.f32 %v17079_v5, %v3629_v4  ;;  %v3670_v0 = vadd.f32 %v17079_v5, %v3630_v6 }
 0x387   : > { %v3671_v33 = vadd.f32 %v17079_v5, %v3631_v57  ;;  %v3672_v11 = vadd.f32 %v17079_v5, %v3632_v24  ;;  %v3673_v41 = vadd.f32 %v17079_v5, %v3633_v52  ;;  %v3674_v53 = vadd.f32 %v17079_v5, %v3634_v48 }
 0x388   : > { %v3675_v20 = vadd.f32 %v17079_v5, %v3635_v35  ;;  %v3676_v21 = vadd.f32 %v17079_v5, %v3636_v42  ;;  %v3677_v25 = vadd.f32 %v17079_v5, %v3637_v59  ;;  %v3678_v8 = vadd.f32 %v17079_v5, %v3638_v36  ;;  %v20391_v35 = vld [vmem:[#allocation139_spill] sm:$0xff] }
 0x389   : > { %v3679_v27 = vadd.f32 %v17079_v5, %v3639_v19  ;;  %v3680_v43 = vadd.f32 %v17079_v5, %v3640_v61  ;;  %v3681_v57 = vadd.f32 %v17079_v5, %v3641_v18  ;;  %v3682_v7 = vadd.f32 %v17079_v5, %v3642_v12  ;;  %v20392_v36 = vld [vmem:[#allocation147_spill] sm:$0xff]  ;;  %v20393_v18 = vld [vmem:[#allocation142_spill] sm:$0xff] }
 0x38a   : > { %v3683_v45 = vadd.f32 %v17079_v5, %v3643_v26  ;;  %v3684_v48 = vadd.f32 %v17079_v5, %v3644_v15  ;;  %v3685_v62 = vadd.f32 %v17079_v5, %v3645_v60  ;;  %v3686_v50 = vadd.f32 %v17079_v5, %v3646_v44  ;;  %v20394_v26 = vld [vmem:[#allocation148_spill] sm:$0xff]  ;;  %v20395_v60 = vld [vmem:[#allocation151_spill] sm:$0xff] }
 0x38b   : > { %v3687_v59 = vadd.f32 %v17079_v5, %v3647_v28  ;;  %v3688_v31 = vadd.f32 %v17079_v5, %v3648_v54  ;;  %v3689_v9 = vadd.f32 %v17079_v5, %v3649_v58  ;;  %v3690_v61 = vadd.f32 %v17079_v5, %v3650_v34  ;;  %v20396_v28 = vld [vmem:[#allocation155_spill] sm:$0xff] }
 0x38c   : > { %v3691_v1 = vadd.f32 %v17079_v5, %v3651_v51  ;;  %v3692_v2 = vadd.f32 %v17079_v5, %v3652_v30  ;;  %v3693_v46 = vadd.f32 %v17079_v5, %v3653_v29  ;;  %v3694_v10 = vadd.f32 %v17079_v5, %v3654_v55  ;;  %v20397_v58 = vld [vmem:[#allocation159_spill] sm:$0xff]  ;;  %v20398_v51 = vld [vmem:[#allocation160_spill] sm:$0xff]  ;;  %v20399_v29 = vld [vmem:[#allocation118_spill] sm:$0xff] }
 0x38d   : > { %v3695_v4 = vadd.f32 %v17079_v5, %v3655_v56  ;;  %v3696_v6 = vadd.f32 %v17079_v5, %v3656_v47  ;;  %v3697_v24 = vadd.f32 %v17079_v5, %v3657_v37  ;;  %v3698_v52 = vadd.f32 %v17079_v5, %v3658_v49  ;;  %v20400_v56 = vld [vmem:[#allocation120_spill] sm:$0xff]  ;;  %v20401_v47 = vld [vmem:[#allocation107_spill] sm:$0xff]  ;;  %v20402_v49 = vld [vmem:[#allocation106_spill] sm:$0xff] }
 0x38e   : > { %v3699_v42 = vmul.f32 %v3663_v3, %v20391_v35  ;;  %v3700_v19 = vmul.f32 %v3664_v40, %v20392_v36  ;;  %v3701_v12 = vmul.f32 %v3665_v23, %v20393_v18  ;;  %v3702_v15 = vmul.f32 %v3666_v13, %v20394_v26  ;;  %v20403_v40 = vld [vmem:[#allocation109_spill] sm:$0xff]  ;;  %v20404_v13 = vld [vmem:[#allocation114_spill] sm:$0xff] }
 0x38f   : > { %v3703_v44 = vmul.f32 %v3667_v39, %v20395_v60  ;;  %v3704_v54 = vmul.f32 %v3668_v63, %v20396_v28  ;;  %v3705_v34 = vmul.f32 %v3669_v14, %v20397_v58  ;;  %v3706_v30 = vmul.f32 %v3670_v0, %v20398_v51  ;;  %v20405_v63 = vld [vmem:[#allocation108_spill] sm:$0xff]  ;;  %v20406_v35 = vld [vmem:[#allocation110_spill] sm:$0xff] }
 0x390   : > { %v3707_v55 = vmul.f32 %v3671_v33, %v20399_v29  ;;  %v3708_v5 = vmul.f32 %v3672_v11, %v20400_v56  ;;  %v3709_v37 = vmul.f32 %v3673_v41, %v20401_v47  ;;  %v3710_v3 = vmul.f32 %v3674_v53, %v20402_v49  ;;  %3735 = vst [vmem:[#allocation2 + $0x13] sm:$0xff] %v3699_v42  ;;  %v20407_v33 = vld [vmem:[#allocation113_spill] sm:$0xff]  ;;  %v20408_v41 = vld [vmem:[#allocation112_spill] sm:$0xff]  ;;  %v14227_v49 = vld [vmem:[%s19777_s2 + $0xe8] sm:$0xff]  }
 0x391   : > { %3736 = vst [vmem:[#allocation2 + $0x1b] sm:$0xff] %v3700_v19  ;;  %3737 = vst [vmem:[#allocation2 + $0x23] sm:$0xff] %v3701_v12  ;;  %v3711_v23 = vmul.f32 %v3675_v20, %v20403_v40  ;;  %v3712_v39 = vmul.f32 %v3676_v21, %v20404_v13  ;;  %v3713_v14 = vmul.f32 %v3677_v25, %v20405_v63  ;;  %v20409_v42 = vld [vmem:[#allocation116_spill] sm:$0xff]  ;;  %v20410_v19 = vld [vmem:[#allocation119_spill] sm:$0xff] }
 0x392   : > { %3738 = vst [vmem:[#allocation2 + $0x2b] sm:$0xff] %v3702_v15  ;;  %v3714_v0 = vmul.f32 %v3678_v8, %v20406_v35  ;;  %3739 = vst [vmem:[#allocation2 + $0x33] sm:$0xff] %v3703_v44  ;;  %v3715_v11 = vmul.f32 %v3679_v27, %v20407_v33  ;;  %v3716_v53 = vmul.f32 %v3680_v43, %v20408_v41  ;;  %v20411_v20 = vld [vmem:[#allocation123_spill] sm:$0xff]  ;;  %v20412_v25 = vld [vmem:[#allocation117_spill] sm:$0xff] }
 0x393   : > { %3740 = vst [vmem:[#allocation2 + $0x3b] sm:$0xff] %v3704_v54  ;;  %3741 = vst [vmem:[#allocation2 + $0x43] sm:$0xff] %v3705_v34  ;;  %v3717_v36 = vmul.f32 %v3681_v57, %v20409_v42  ;;  %v3718_v18 = vmul.f32 %v3682_v7, %v20410_v19  ;;  %v3719_v21 = vmul.f32 %v3683_v45, %v20411_v20  ;;  %v20413_v12 = vld [vmem:[#allocation128_spill] sm:$0xff]  ;;  %v20414_v15 = vld [vmem:[#allocation115_spill] sm:$0xff] }
 0x394   : > { %3742 = vst [vmem:[#allocation2 + $0x4b] sm:$0xff] %v3706_v30  ;;  %3743 = vst [vmem:[#allocation2 + $0x53] sm:$0xff] %v3707_v55  ;;  %v3720_v8 = vmul.f32 %v3684_v48, %v20412_v25  ;;  %v3721_v26 = vmul.f32 %v3685_v62, %v20413_v12  ;;  %v3722_v60 = vmul.f32 %v3686_v50, %v20414_v15  ;;  %v20415_v57 = vld [vmem:[#allocation121_spill] sm:$0xff]  ;;  %v20416_v44 = vld [vmem:[#allocation122_spill] sm:$0xff] }
 0x395   : > { %3744 = vst [vmem:[#allocation2 + $0x5b] sm:$0xff] %v3708_v5  ;;  %3745 = vst [vmem:[#allocation2 + $0x63] sm:$0xff] %v3709_v37  ;;  %v3723_v27 = vmul.f32 %v3687_v59, %v16839_v32  ;;  %v3724_v43 = vmul.f32 %v3688_v31, %v16850_v16  ;;  %v3725_v7 = vmul.f32 %v3689_v9, %v20415_v57  ;;  %v20417_v45 = vld [vmem:[#allocation132_spill] sm:$0xff]  ;;  %v20418_v62 = vld [vmem:[#allocation134_spill] sm:$0xff] }
 0x396   : > { %3746 = vst [vmem:[#allocation2 + $0x6b] sm:$0xff] %v3710_v3  ;;  %3747 = vst [vmem:[#allocation2 + $0x73] sm:$0xff] %v3711_v23  ;;  %v3726_v28 = vmul.f32 %v3690_v61, %v20416_v44  ;;  %v3727_v48 = vmul.f32 %v3691_v1, %v20417_v45  ;;  %v3728_v50 = vmul.f32 %v3692_v2, %v20418_v62  ;;  %v20419_v54 = vld [vmem:[#allocation124_spill] sm:$0xff]  ;;  %v20420_v34 = vld [vmem:[#allocation137_spill] sm:$0xff] }
 0x397   : > { %3748 = vst [vmem:[#allocation2 + $0x7b] sm:$0xff] %v3712_v39  ;;  %3749 = vst [vmem:[#allocation2 + $0x83] sm:$0xff] %v3713_v14  ;;  %v3729_v58 = vmul.f32 %v3693_v46, %v20419_v54  ;;  %v3730_v51 = vmul.f32 %v3694_v10, %v20420_v34  ;;  %v20421_v32 = vld [vmem:[#allocation125_spill] sm:$0xff]  ;;  %v20423_v9 = vld [vmem:[#allocation126_spill] sm:$0xff]  ;;  %v3734_v30 = vmul.f32 %v3698_v52, %v16978_v22 }
 0x398   : > { %3750 = vst [vmem:[#allocation2 + $0x8b] sm:$0xff] %v3714_v0  ;;  %3751 = vst [vmem:[#allocation2 + $0x93] sm:$0xff] %v3715_v11  ;;  %v3731_v16 = vmul.f32 %v3695_v4, %v20421_v32  ;;  %v20422_v59 = vld [vmem:[#allocation141_spill] sm:$0xff]  ;;  %v3733_v61 = vmul.f32 %v3697_v24, %v20423_v9  ;;  %v3773_v46 = vld [vmem:[#allocation2 + $0x10] sm:$0xff] }
 0x399   : > { %3752 = vst [vmem:[#allocation2 + $0x9b] sm:$0xff] %v3716_v53  ;;  %3753 = vst [vmem:[#allocation2 + $0xa3] sm:$0xff] %v3717_v36  ;;  %v3732_v31 = vmul.f32 %v3696_v6, %v20422_v59  ;;  %v3843_v1 = vld [vmem:[#allocation2 + $0x11] sm:$0xff]  ;;  %v3844_v2 = vld [vmem:[#allocation2 + $0x19] sm:$0xff] }
 0x39a   : > { %3754 = vst [vmem:[#allocation2 + $0xab] sm:$0xff] %v3718_v18  ;;  %3755 = vst [vmem:[#allocation2 + $0xb3] sm:$0xff] %v3719_v21  ;;  %v3878_v10 = vpack.c.bf16 %v3844_v2, %v3843_v1  ;;  %v3774_v4 = vld [vmem:[#allocation2 + $0x18] sm:$0xff]  ;;  %v3845_v6 = vld [vmem:[#allocation2 + $0x21] sm:$0xff] }
 0x39b   : > { %3756 = vst [vmem:[#allocation2 + $0xbb] sm:$0xff] %v3720_v8  ;;  %3757 = vst [vmem:[#allocation2 + $0xc3] sm:$0xff] %v3721_v26  ;;  %v3846_v24 = vld [vmem:[#allocation2 + $0x29] sm:$0xff]  ;;  %v3808_v22 = vpack.c.bf16 %v3774_v4, %v3773_v46  ;;  %v3775_v29 = vld [vmem:[#allocation2 + $0x20] sm:$0xff] }
 0x39c   : > { %3758 = vst [vmem:[#allocation2 + $0xcb] sm:$0xff] %v3722_v60  ;;  %3759 = vst [vmem:[#allocation2 + $0xd3] sm:$0xff] %v3723_v27  ;;  %v3879_v52 = vpack.c.bf16 %v3846_v24, %v3845_v6  ;;  %v3776_v55 = vld [vmem:[#allocation2 + $0x28] sm:$0xff]  ;;  %v14224_v56 = vld [vmem:[%s19777_s2 + $0xb0] sm:$0xff]   ;;  %12824 = vmatmul.mubr.bf16.vlgmr.msra.gmra.mxu1 %v3878_v10 }
 0x39d   : > { %3760 = vst [vmem:[#allocation2 + $0xdb] sm:$0xff] %v3724_v43  ;;  %3761 = vst [vmem:[#allocation2 + $0xe3] sm:$0xff] %v3725_v7  ;;  %v3809_v5 = vpack.c.bf16 %v3776_v55, %v3775_v29  ;;  %v14225_v47 = vld [vmem:[%s19777_s2 + $0xf0] sm:$0xff]   ;;  %12876 = vmatmul.mubr.bf16.vlgmr.msra.gmra.mxu0 %v3808_v22  ;;  %12912 = vmatpush3.bf16.msra.mxu1 %v17067_v38  ;;  %v14226_v37 = vld [vmem:[%s19777_s2 + $0xa8] sm:$0xff]  }
 0x39e   : > { %3762 = vst [vmem:[#allocation2 + $0xeb] sm:$0xff] %v3726_v28  ;;  %3763 = vst [vmem:[#allocation2 + $0xf3] sm:$0xff] %v3727_v48  ;;  %12827 = vmatprep.mubr.bf16.mxu1 %v3879_v52  ;;  %v3847_v3 = vld [vmem:[#allocation2 + $0x31] sm:$0xff]  ;;  %v3848_v40 = vld [vmem:[#allocation2 + $0x39] sm:$0xff]  ;;  %12964 = vmatpush3.bf16.msra.mxu0 %v17072_v17 }
 0x39f   : > { %3764 = vst [vmem:[#allocation2 + $0xfb] sm:$0xff] %v3728_v50  ;;  %3765 = vst [vmem:[#allocation2 + $0x103] sm:$0xff] %v3729_v58  ;;  %12879 = vmatprep.mubr.bf16.mxu0 %v3809_v5  ;;  %v3777_v23 = vld [vmem:[#allocation2 + $0x30] sm:$0xff]  ;;  %12913 = vmatprep.subr.bf16.mxu1 %v14224_v56  ;;  %v3778_v13 = vld [vmem:[#allocation2 + $0x38] sm:$0xff]  ;;  %v3880_v35 = vpack.c.bf16 %v3848_v40, %v3847_v3 }
 0x3a0   : > { %3766 = vst [vmem:[#allocation2 + $0x10b] sm:$0xff] %v3730_v51  ;;  %3767 = vst [vmem:[#allocation2 + $0x113] sm:$0xff] %v3731_v16  ;;  %v3849_v39 = vld [vmem:[#allocation2 + $0x41] sm:$0xff]  ;;  %v3850_v63 = vld [vmem:[#allocation2 + $0x49] sm:$0xff]  ;;  %12965 = vmatprep.subr.bf16.mxu0 %v14225_v47  ;;  %v3810_v0 = vpack.c.bf16 %v3778_v13, %v3777_v23 }
 0x3a1   : > { %3768 = vst [vmem:[#allocation2 + $0x11b] sm:$0xff] %v3732_v31  ;;  %3769 = vst [vmem:[#allocation2 + $0x123] sm:$0xff] %v3733_v61  ;;  %v3779_v14 = vld [vmem:[#allocation2 + $0x40] sm:$0xff]  ;;  %v3780_v38 = vld [vmem:[#allocation2 + $0x48] sm:$0xff]  ;;  %12914 = vmatpush3.bf16.msra.mxu1 %v14224_v56  ;;  %v3881_v33 = vpack.c.bf16 %v3850_v63, %v3849_v39 }
 0x3a2   : > { %3770 = vst [vmem:[#allocation2 + $0x12b] sm:$0xff] %v3734_v30  ;;  %12966 = vmatpush3.bf16.msra.mxu0 %v14225_v47  ;;  %12915 = vmatprep.subr.bf16.mxu1 %v14226_v37  ;;  %v14228_v11 = vld [vmem:[%s19777_s2 + $0xa0] sm:$0xff]   ;;  %v3811_v41 = vpack.c.bf16 %v3780_v38, %v3779_v14  ;;  %v14230_v53 = vld [vmem:[%s19777_s2 + $0x98] sm:$0xff]   ;;  %v3781_v18 = vld [vmem:[#allocation2 + $0x50] sm:$0xff] }
 0x3a3   : > { %12967 = vmatprep.subr.bf16.mxu0 %v14227_v49  ;;  %v14229_v17 = vld [vmem:[%s19777_s2 + $0xe0] sm:$0xff]   ;;  %v14231_v42 = vld [vmem:[%s19777_s2 + $0xd8] sm:$0xff]   ;;  %v3854_v25 = vld [vmem:[#allocation2 + $0x69] sm:$0xff] }
 0x3a4   : > { %12828 = vmatmul.mubr.bf16.gmra.mxu1 %v3880_v35  ;;  %v3851_v36 = vld [vmem:[#allocation2 + $0x51] sm:$0xff]  ;;  %v3852_v19 = vld [vmem:[#allocation2 + $0x59] sm:$0xff]  ;;  %v3853_v21 = vld [vmem:[#allocation2 + $0x61] sm:$0xff] }
 0x3a5   : > { %12880 = vmatmul.mubr.bf16.gmra.mxu0 %v3810_v0  ;;  %12831 = vmatprep.mubr.bf16.mxu1 %v3881_v33  ;;  %v3782_v20 = vld [vmem:[#allocation2 + $0x58] sm:$0xff]  ;;  %v3783_v8 = vld [vmem:[#allocation2 + $0x60] sm:$0xff]  ;;  %v3784_v12 = vld [vmem:[#allocation2 + $0x68] sm:$0xff]  ;;  %v3882_v26 = vpack.c.bf16 %v3852_v19, %v3851_v36  ;;  %v3883_v60 = vpack.c.bf16 %v3854_v25, %v3853_v21 }
 0x3a6   : > { %12883 = vmatprep.mubr.bf16.mxu0 %v3811_v41  ;;  %12916 = vmatpush3.bf16.msra.mxu1 %v14226_v37  ;;  %v3812_v15 = vpack.c.bf16 %v3782_v20, %v3781_v18  ;;  %v14232_v27 = vld [vmem:[%s19777_s2 + $0x90] sm:$0xff]   ;;  %v3813_v43 = vpack.c.bf16 %v3784_v12, %v3783_v8  ;;  %v14234_v7 = vld [vmem:[%s19777_s2 + $0x88] sm:$0xff]   ;;  %v3856_v45 = vld [vmem:[#allocation2 + $0x79] sm:$0xff] }
 0x3a7   : > { %12968 = vmatpush3.bf16.msra.mxu0 %v14227_v49  ;;  %12917 = vmatprep.subr.bf16.mxu1 %v14228_v11  ;;  %v14233_v57 = vld [vmem:[%s19777_s2 + $0xd0] sm:$0xff]   ;;  %v14235_v44 = vld [vmem:[%s19777_s2 + $0xc8] sm:$0xff]   ;;  %v3786_v62 = vld [vmem:[#allocation2 + $0x78] sm:$0xff] }
 0x3a8   : > { %12969 = vmatprep.subr.bf16.mxu0 %v14229_v17  ;;  %v3855_v28 = vld [vmem:[#allocation2 + $0x71] sm:$0xff]  ;;  %v3857_v50 = vld [vmem:[#allocation2 + $0x81] sm:$0xff]  ;;  %v3858_v54 = vld [vmem:[#allocation2 + $0x89] sm:$0xff] }
 0x3a9   : > { %v3785_v48 = vld [vmem:[#allocation2 + $0x70] sm:$0xff]  ;;  %v3787_v58 = vld [vmem:[#allocation2 + $0x80] sm:$0xff]  ;;  %v3788_v34 = vld [vmem:[#allocation2 + $0x88] sm:$0xff]  ;;  %v3884_v51 = vpack.c.bf16 %v3856_v45, %v3855_v28  ;;  %v3885_v16 = vpack.c.bf16 %v3858_v54, %v3857_v50 }
 0x3aa   : > { %12918 = vmatpush3.bf16.msra.mxu1 %v14228_v11  ;;  %v3814_v32 = vpack.c.bf16 %v3786_v62, %v3785_v48  ;;  %v14236_v59 = vld [vmem:[%s19777_s2 + $0x80] sm:$0xff]   ;;  %v3815_v31 = vpack.c.bf16 %v3788_v34, %v3787_v58  ;;  %v17274_v61 = vld [vmem:[%s19777_s2 + $0x138] sm:$0xff]   ;;  %v3789_v46 = vld [vmem:[#allocation2 + $0x90] sm:$0xff] }
 0x3ab   : > { %12970 = vmatpush3.bf16.msra.mxu0 %v14229_v17  ;;  %12919 = vmatprep.subr.bf16.mxu1 %v14230_v53  ;;  %v14237_v9 = vld [vmem:[%s19777_s2 + $0xc0] sm:$0xff]   ;;  %v17279_v30 = vld [vmem:[%s19777_s2 + $0x178] sm:$0xff]   ;;  %v3862_v6 = vld [vmem:[#allocation2 + $0xa9] sm:$0xff] }
 0x3ac   : > { %12832 = vmatmul.mubr.bf16.gmra.mxu1 %v3882_v26  ;;  %12971 = vmatprep.subr.bf16.mxu0 %v14231_v42  ;;  %v3859_v1 = vld [vmem:[#allocation2 + $0x91] sm:$0xff]  ;;  %v3860_v2 = vld [vmem:[#allocation2 + $0x99] sm:$0xff]  ;;  %v3861_v4 = vld [vmem:[#allocation2 + $0xa1] sm:$0xff] }
 0x3ad   : > { %12884 = vmatmul.mubr.bf16.gmra.mxu0 %v3812_v15  ;;  %12835 = vmatprep.mubr.bf16.mxu1 %v3883_v60  ;;  %v3790_v10 = vld [vmem:[#allocation2 + $0x98] sm:$0xff]  ;;  %v3791_v24 = vld [vmem:[#allocation2 + $0xa0] sm:$0xff]  ;;  %v3792_v22 = vld [vmem:[#allocation2 + $0xa8] sm:$0xff]  ;;  %v3886_v52 = vpack.c.bf16 %v3860_v2, %v3859_v1  ;;  %v3887_v55 = vpack.c.bf16 %v3862_v6, %v3861_v4 }
 0x3ae   : > { %12887 = vmatprep.mubr.bf16.mxu0 %v3813_v43  ;;  %12920 = vmatpush3.bf16.msra.mxu1 %v14230_v53  ;;  %v3816_v29 = vpack.c.bf16 %v3790_v10, %v3789_v46  ;;  %v3817_v56 = vpack.c.bf16 %v3792_v22, %v3791_v24  ;;  %v3863_v5 = vld [vmem:[#allocation2 + $0xb1] sm:$0xff]  ;;  %v3864_v47 = vld [vmem:[#allocation2 + $0xb9] sm:$0xff]  ;;  %v3865_v3 = vld [vmem:[#allocation2 + $0xc1] sm:$0xff] }
 0x3af   : > { %12972 = vmatpush3.bf16.msra.mxu0 %v14231_v42  ;;  %12921 = vmatprep.subr.bf16.mxu1 %v14232_v27  ;;  %v3793_v37 = vld [vmem:[#allocation2 + $0xb0] sm:$0xff]  ;;  %v3794_v49 = vld [vmem:[#allocation2 + $0xb8] sm:$0xff]  ;;  %v3795_v23 = vld [vmem:[#allocation2 + $0xc0] sm:$0xff]  ;;  %v3888_v39 = vpack.c.bf16 %v3864_v47, %v3863_v5 }
 0x3b0   : > { %12973 = vmatprep.subr.bf16.mxu0 %v14233_v57  ;;  %v3866_v40 = vld [vmem:[#allocation2 + $0xc9] sm:$0xff]  ;;  %v3818_v63 = vpack.c.bf16 %v3794_v49, %v3793_v37  ;;  %v3867_v35 = vld [vmem:[#allocation2 + $0xd1] sm:$0xff]  ;;  %v3868_v0 = vld [vmem:[#allocation2 + $0xd9] sm:$0xff] }
 0x3b1   : > { %v3796_v13 = vld [vmem:[#allocation2 + $0xc8] sm:$0xff]  ;;  %v3889_v14 = vpack.c.bf16 %v3866_v40, %v3865_v3  ;;  %v3797_v33 = vld [vmem:[#allocation2 + $0xd0] sm:$0xff]  ;;  %v3798_v11 = vld [vmem:[#allocation2 + $0xd8] sm:$0xff]  ;;  %v3890_v36 = vpack.c.bf16 %v3868_v0, %v3867_v35 }
 0x3b2   : > { %12922 = vmatpush3.bf16.msra.mxu1 %v14232_v27  ;;  %v3819_v38 = vpack.c.bf16 %v3796_v13, %v3795_v23  ;;  %v3869_v41 = vld [vmem:[#allocation2 + $0xe1] sm:$0xff]  ;;  %v3870_v17 = vld [vmem:[#allocation2 + $0xe9] sm:$0xff]  ;;  %v3820_v19 = vpack.c.bf16 %v3798_v11, %v3797_v33  ;;  %v3871_v21 = vld [vmem:[#allocation2 + $0xf1] sm:$0xff] }
 0x3b3   : > { %12974 = vmatpush3.bf16.msra.mxu0 %v14233_v57  ;;  %12923 = vmatprep.subr.bf16.mxu1 %v14234_v7  ;;  %v3799_v53 = vld [vmem:[#allocation2 + $0xe0] sm:$0xff]  ;;  %v3800_v42 = vld [vmem:[#allocation2 + $0xe8] sm:$0xff]  ;;  %v3891_v18 = vpack.c.bf16 %v3870_v17, %v3869_v41  ;;  %v3801_v8 = vld [vmem:[#allocation2 + $0xf0] sm:$0xff] }
 0x3b4   : > { %12836 = vmatmul.mubr.bf16.gmra.mxu1 %v3884_v51  ;;  %12975 = vmatprep.subr.bf16.mxu0 %v14235_v44  ;;  %v3821_v20 = vpack.c.bf16 %v3800_v42, %v3799_v53  ;;  %v3872_v25 = vld [vmem:[#allocation2 + $0xf9] sm:$0xff]  ;;  %v3873_v26 = vld [vmem:[#allocation2 + $0x101] sm:$0xff]  ;;  %v3874_v15 = vld [vmem:[#allocation2 + $0x109] sm:$0xff] }
 0x3b5   : > { %12888 = vmatmul.mubr.bf16.gmra.mxu0 %v3814_v32  ;;  %12839 = vmatprep.mubr.bf16.mxu1 %v3885_v16  ;;  %v3802_v12 = vld [vmem:[#allocation2 + $0xf8] sm:$0xff]  ;;  %v3803_v60 = vld [vmem:[#allocation2 + $0x100] sm:$0xff]  ;;  %v3804_v27 = vld [vmem:[#allocation2 + $0x108] sm:$0xff]  ;;  %v3892_v43 = vpack.c.bf16 %v3872_v25, %v3871_v21 }
 0x3b6   : > { %12891 = vmatprep.mubr.bf16.mxu0 %v3815_v31  ;;  %12924 = vmatpush3.bf16.msra.mxu1 %v14234_v7  ;;  %v3822_v57 = vpack.c.bf16 %v3802_v12, %v3801_v8  ;;  %v3893_v7 = vpack.c.bf16 %v3874_v15, %v3873_v26  ;;  %v4362_v28 = vld [vmem:[#allocation2 + $0x2] sm:$0xff]  ;;  %v4363_v45 = vld [vmem:[#allocation2 + $0xa] sm:$0xff]  ;;  %v3876_v62 = vld [vmem:[#allocation2 + $0x119] sm:$0xff] }
 0x3b7   : > { %12976 = vmatpush3.bf16.msra.mxu0 %v14235_v44  ;;  %12925 = vmatprep.subr.bf16.mxu1 %v14236_v59  ;;  %v3823_v44 = vpack.c.bf16 %v3804_v27, %v3803_v60  ;;  %v3875_v48 = vld [vmem:[#allocation2 + $0x111] sm:$0xff]  ;;  %v4695_v34 = vld [vmem:[#allocation2 + $0x1a] sm:$0xff]  ;;  %v4398_v51 = vpack.c.bf16 %v4363_v45, %v4362_v28  ;;  %v4696_v31 = vld [vmem:[#allocation2 + $0x22] sm:$0xff] }
 0x3b8   : > { %12977 = vmatprep.subr.bf16.mxu0 %v14237_v9  ;;  %v3805_v50 = vld [vmem:[#allocation2 + $0x110] sm:$0xff]  ;;  %v3806_v54 = vld [vmem:[#allocation2 + $0x118] sm:$0xff]  ;;  %v3894_v32 = vpack.c.bf16 %v3876_v62, %v3875_v48  ;;  %v14242_v24 = vld [vmem:[%s19777_s2 + $0x128] sm:$0xff]  }
 0x3b9   : > { %v4694_v58 = vld [vmem:[#allocation2 + $0x12] sm:$0xff]  ;;  %v3824_v16 = vpack.c.bf16 %v3806_v54, %v3805_v50  ;;  %v4699_v2 = vld [vmem:[#allocation2 + $0x3a] sm:$0xff]  ;;  %v4700_v22 = vld [vmem:[#allocation2 + $0x42] sm:$0xff] }
 0x3ba   : > { %12926 = vmatpush3.bf16.msra.mxu1 %v14236_v59  ;;  %v4730_v59 = vpack.c.bf16 %v4695_v34, %v4694_v58  ;;  %v4698_v1 = vld [vmem:[#allocation2 + $0x32] sm:$0xff]  ;;  %v14245_v47 = vld [vmem:[%s19777_s2 + $0x160] sm:$0xff]   ;;  %v4705_v3 = vld [vmem:[#allocation2 + $0x6a] sm:$0xff] }
 0x3bb   : > { %12978 = vmatpush3.bf16.msra.mxu0 %v14237_v9  ;;  %13015 = vmatprep.subr.bf16.mxu1 %v17274_v61  ;;  %v4697_v9 = vld [vmem:[#allocation2 + $0x2a] sm:$0xff]  ;;  %v4732_v4 = vpack.c.bf16 %v4699_v2, %v4698_v1  ;;  %v14246_v37 = vld [vmem:[%s19777_s2 + $0x118] sm:$0xff]   ;;  %v4704_v49 = vld [vmem:[#allocation2 + $0x62] sm:$0xff] }
 0x3bc   : > { %12840 = vmatmul.mubr.bf16.gmra.mxu1 %v3886_v52  ;;  %13067 = vmatprep.subr.bf16.mxu0 %v17279_v30  ;;  %v4731_v46 = vpack.c.bf16 %v4697_v9, %v4696_v31  ;;  %v14240_v10 = vld [vmem:[%s19777_s2 + $0x130] sm:$0xff]   ;;  %v14247_v40 = vld [vmem:[%s19777_s2 + $0x158] sm:$0xff]   ;;  %v14250_v35 = vld [vmem:[%s19777_s2 + $0x108] sm:$0xff]  }
 0x3bd   : > { %12892 = vmatmul.mubr.bf16.gmra.mxu0 %v3816_v29  ;;  %12843 = vmatprep.mubr.bf16.mxu1 %v3887_v55  ;;  %v14241_v6 = vld [vmem:[%s19777_s2 + $0x170] sm:$0xff]   ;;  %v14243_v29 = vld [vmem:[%s19777_s2 + $0x168] sm:$0xff]   ;;  %v4707_v13 = vld [vmem:[#allocation2 + $0x7a] sm:$0xff] }
 0x3be   : > { %12895 = vmatprep.mubr.bf16.mxu0 %v3817_v56  ;;  %v4701_v52 = vld [vmem:[#allocation2 + $0x4a] sm:$0xff]  ;;  %v4702_v55 = vld [vmem:[#allocation2 + $0x52] sm:$0xff]  ;;  %v4703_v56 = vld [vmem:[#allocation2 + $0x5a] sm:$0xff] }
 0x3bf   : > { %v4733_v5 = vpack.c.bf16 %v4701_v52, %v4700_v22  ;;  %v4706_v23 = vld [vmem:[#allocation2 + $0x72] sm:$0xff]  ;;  %v4708_v0 = vld [vmem:[#allocation2 + $0x82] sm:$0xff]  ;;  %v4709_v33 = vld [vmem:[#allocation2 + $0x8a] sm:$0xff] }
 0x3c0   : > { %v14251_v11 = vld [vmem:[%s19777_s2 + $0x148] sm:$0xff]   ;;  %v4710_v41 = vld [vmem:[#allocation2 + $0x92] sm:$0xff]  ;;  %v4711_v17 = vld [vmem:[#allocation2 + $0x9a] sm:$0xff]  ;;  %v4737_v53 = vpack.c.bf16 %v4709_v33, %v4708_v0 }
 0x3c1   : > { %v14252_v42 = vld [vmem:[%s19777_s2 + $0x100] sm:$0xff]   ;;  %v4713_v21 = vld [vmem:[#allocation2 + $0xaa] sm:$0xff]  ;;  %v17335_v25 = vld [vmem:[%s19777_s2 + $0x1f8] sm:$0xff]  }
 0x3c2   : > { %v4714_v8 = vld [vmem:[#allocation2 + $0xb2] sm:$0xff]  ;;  %v4715_v12 = vld [vmem:[#allocation2 + $0xba] sm:$0xff]  ;;  %v4716_v60 = vld [vmem:[#allocation2 + $0xc2] sm:$0xff] }
 0x3c3   : > { %v4740_v15 = vpack.c.bf16 %v4715_v12, %v4714_v8  ;;  %v4717_v27 = vld [vmem:[#allocation2 + $0xca] sm:$0xff]  ;;  %v4720_v28 = vld [vmem:[#allocation2 + $0xe2] sm:$0xff]  ;;  %v4722_v48 = vld [vmem:[#allocation2 + $0xf2] sm:$0xff] }
 0x3c4   : > { %12844 = vmatmul.mubr.bf16.gmra.mxu1 %v3888_v39  ;;  %v4735_v39 = vpack.c.bf16 %v4705_v3, %v4704_v49  ;;  %v4721_v45 = vld [vmem:[#allocation2 + $0xea] sm:$0xff]  ;;  %v4723_v62 = vld [vmem:[#allocation2 + $0xfa] sm:$0xff]  ;;  %v4724_v58 = vld [vmem:[#allocation2 + $0x102] sm:$0xff] }
 0x3c5   : > { %12896 = vmatmul.mubr.bf16.gmra.mxu0 %v3818_v63  ;;  %12847 = vmatprep.mubr.bf16.mxu1 %v3889_v14  ;;  %v14248_v63 = vld [vmem:[%s19777_s2 + $0x110] sm:$0xff]   ;;  %v4736_v14 = vpack.c.bf16 %v4707_v13, %v4706_v23  ;;  %v4743_v50 = vpack.c.bf16 %v4721_v45, %v4720_v28  ;;  %v4744_v54 = vpack.c.bf16 %v4723_v62, %v4722_v48  ;;  %v4728_v31 = vld [vmem:[#allocation2 + $0x122] sm:$0xff]  ;;  %v14262_v12 = vld [vmem:[%s19777_s2 + $0x198] sm:$0xff]  }
 0x3c6   : > { %12899 = vmatprep.mubr.bf16.mxu0 %v3819_v38  ;;  %v14249_v38 = vld [vmem:[%s19777_s2 + $0x150] sm:$0xff]   ;;  %v5027_v2 = vld [vmem:[#allocation2 + $0x1b] sm:$0xff]  ;;  %v5028_v22 = vld [vmem:[#allocation2 + $0x23] sm:$0xff] }
 0x3c7   : > { %v4725_v34 = vld [vmem:[#allocation2 + $0x10a] sm:$0xff]  ;;  %v5026_v1 = vld [vmem:[#allocation2 + $0x13] sm:$0xff]  ;;  %v5035_v0 = vld [vmem:[#allocation2 + $0x5b] sm:$0xff] }
 0x3c8   : > { %v4729_v9 = vld [vmem:[#allocation2 + $0x12a] sm:$0xff] }
 0x3c9   : > { %v5029_v52 = vld [vmem:[#allocation2 + $0x2b] sm:$0xff]  ;;  %v5032_v13 = vld [vmem:[#allocation2 + $0x43] sm:$0xff] }
 0x3ca   : > { %v14256_v3 = vld [vmem:[%s19777_s2 + $0x1b0] sm:$0xff]   ;;  %v14259_v33 = vld [vmem:[%s19777_s2 + $0x1e8] sm:$0xff]  }
 0x3cb   : > { %v14257_v23 = vld [vmem:[%s19777_s2 + $0x1f0] sm:$0xff]   ;;  %v5040_v62 = vld [vmem:[#allocation2 + $0x83] sm:$0xff] }
 0x3cc   : > { %12848 = vmatmul.mubr.bf16.gmra.mxu1 %v3890_v36  ;;  %v4738_v36 = vpack.c.bf16 %v4711_v17, %v4710_v41  ;;  %v5367_v41 = vld [vmem:[#allocation2 + $0x5c] sm:$0xff]  ;;  %v5369_v8 = vld [vmem:[#allocation2 + $0x6c] sm:$0xff] }
 0x3cd   : > { %12900 = vmatmul.mubr.bf16.gmra.mxu0 %v3820_v19  ;;  %12851 = vmatprep.mubr.bf16.mxu1 %v3891_v18  ;;  %v14253_v19 = vld [vmem:[%s19777_s2 + $0x140] sm:$0xff]   ;;  %v17330_v18 = vld [vmem:[%s19777_s2 + $0x1b8] sm:$0xff]   ;;  %v14264_v28 = vld [vmem:[%s19777_s2 + $0x190] sm:$0xff]  }
 0x3ce   : > { %12903 = vmatprep.mubr.bf16.mxu0 %v3821_v20  ;;  %v4712_v20 = vld [vmem:[#allocation2 + $0xa2] sm:$0xff]  ;;  %v14265_v48 = vld [vmem:[%s19777_s2 + $0x1d0] sm:$0xff]  }
 0x3cf   : > { %v4739_v26 = vpack.c.bf16 %v4713_v21, %v4712_v20  ;;  %v5036_v20 = vld [vmem:[#allocation2 + $0x63] sm:$0xff]  ;;  %v5037_v21 = vld [vmem:[#allocation2 + $0x6b] sm:$0xff] }
 0x3d4   : > { %12852 = vmatmul.mubr.bf16.gmra.mxu1 %v3892_v43  ;;  %v4718_v43 = vld [vmem:[#allocation2 + $0xd2] sm:$0xff] }
 0x3d5   : > { %12904 = vmatmul.mubr.bf16.gmra.mxu0 %v3822_v57  ;;  %12855 = vmatprep.mubr.bf16.mxu1 %v3893_v7  ;;  %v4719_v57 = vld [vmem:[#allocation2 + $0xda] sm:$0xff]  ;;  %v4741_v7 = vpack.c.bf16 %v4717_v27, %v4716_v60 }
 0x3d6   : > { %12907 = vmatprep.mubr.bf16.mxu0 %v3823_v44  ;;  %v4742_v44 = vpack.c.bf16 %v4719_v57, %v4718_v43  ;;  %v14263_v60 = vld [vmem:[%s19777_s2 + $0x1d8] sm:$0xff]   ;;  %v5067_v57 = vpack.c.bf16 %v5037_v21, %v5036_v20  ;;  %v5385_v20 = vld [vmem:[#allocation2 + $0xec] sm:$0xff] }
 0x3d7   : > { %v5370_v27 = vld [vmem:[#allocation2 + $0x74] sm:$0xff]  ;;  %v5371_v43 = vld [vmem:[#allocation2 + $0x7c] sm:$0xff] }
 0x3d8   : > { %v17382_v45 = vpack.c.bf16 %v5371_v43, %v5370_v27  ;;  %v5054_v21 = vld [vmem:[#allocation2 + $0xf3] sm:$0xff] }
 0x3dc   : > { %12856 = vmatmul.mubr.bf16.gmra.mxu1 %v3894_v32  ;;  %v4727_v32 = vld [vmem:[#allocation2 + $0x11a] sm:$0xff] }
 0x3dd   : > { %12908 = vmatmul.mubr.bf16.gmra.mxu0 %v3824_v16  ;;  %12927 = vmatprep.mubr.bf16.mxu1 %v4398_v51  ;;  %v4726_v51 = vld [vmem:[#allocation2 + $0x112] sm:$0xff]  ;;  %v4745_v16 = vpack.c.bf16 %v4725_v34, %v4724_v58  ;;  %v14266_v34 = vld [vmem:[%s19777_s2 + $0x188] sm:$0xff]  }
 0x3de   : > { %12979 = vmatprep.mubr.bf16.mxu0 %v4730_v59  ;;  %v5373_v58 = vld [vmem:[#allocation2 + $0x8c] sm:$0xff] }
 0x3e4   : > { %12928 = vmatmul.mubr.bf16.vlgmr.msra.gmra.mxu1 %v4730_v59  ;;  %v4746_v59 = vpack.c.bf16 %v4727_v32, %v4726_v51  ;;  %v5042_v51 = vld [vmem:[#allocation2 + $0x93] sm:$0xff]  ;;  %v5043_v32 = vld [vmem:[#allocation2 + $0x9b] sm:$0xff] }
 0x3e5   : > { %12980 = vmatmul.mubr.bf16.vlgmr.msra.gmra.mxu0 %v4731_v46  ;;  %12931 = vmatprep.mubr.bf16.mxu1 %v4731_v46  ;;  %v5358_v46 = vld [vmem:[#allocation2 + $0x14] sm:$0xff] }
 0x3e6   : > { %12983 = vmatprep.mubr.bf16.mxu0 %v4732_v4  ;;  %13016 = vmatpush3.bf16.msra.mxu1 %v17274_v61  ;;  %v14244_v61 = vld [vmem:[%s19777_s2 + $0x120] sm:$0xff]  }
 0x3e7   : > { %13068 = vmatpush3.bf16.msra.mxu0 %v17279_v30  ;;  %13017 = vmatprep.subr.bf16.mxu1 %v14240_v10  ;;  %v4734_v30 = vpack.c.bf16 %v4703_v56, %v4702_v55  ;;  %v5361_v55 = vld [vmem:[#allocation2 + $0x2c] sm:$0xff] }
 0x3e8   : > { %13069 = vmatprep.subr.bf16.mxu0 %v14241_v6  ;;  %v5030_v56 = vld [vmem:[#allocation2 + $0x33] sm:$0xff] }
 0x3ea   : > { %13018 = vmatpush3.bf16.msra.mxu1 %v14240_v10  ;;  %v5359_v10 = vld [vmem:[#allocation2 + $0x1c] sm:$0xff] }
 0x3eb   : > { %13070 = vmatpush3.bf16.msra.mxu0 %v14241_v6  ;;  %13019 = vmatprep.subr.bf16.mxu1 %v14242_v24  ;;  %v5062_v6 = vpack.c.bf16 %v5027_v2, %v5026_v1  ;;  %v5070_v2 = vpack.c.bf16 %v5043_v32, %v5042_v51  ;;  %v5389_v51 = vld [vmem:[#allocation2 + $0x10c] sm:$0xff] }
 0x3ec   : > { %12932 = vmatmul.mubr.bf16.gmra.mxu1 %v4732_v4  ;;  %13071 = vmatprep.subr.bf16.mxu0 %v14243_v29  ;;  %v4747_v4 = vpack.c.bf16 %v4729_v9, %v4728_v31  ;;  %v5375_v31 = vld [vmem:[#allocation2 + $0x9c] sm:$0xff]  ;;  %v5058_v32 = vld [vmem:[#allocation2 + $0x113] sm:$0xff] }
 0x3ed   : > { %12984 = vmatmul.mubr.bf16.gmra.mxu0 %v4733_v5  ;;  %12935 = vmatprep.mubr.bf16.mxu1 %v4733_v5  ;;  %v5031_v5 = vld [vmem:[#allocation2 + $0x3b] sm:$0xff] }
 0x3ee   : > { %12987 = vmatprep.mubr.bf16.mxu0 %v4734_v30  ;;  %13020 = vmatpush3.bf16.msra.mxu1 %v14242_v24  ;;  %v5394_v24 = vpack.c.bf16 %v5359_v10, %v5358_v46  ;;  %v5064_v49 = vpack.c.bf16 %v5031_v5, %v5030_v56  ;;  %v14268_v46 = vld [vmem:[%s19777_s2 + $0x180] sm:$0xff]   ;;  %v5378_v5 = vld [vmem:[#allocation2 + $0xb4] sm:$0xff] }
 0x3ef   : > { %13072 = vmatpush3.bf16.msra.mxu0 %v14243_v29  ;;  %13021 = vmatprep.subr.bf16.mxu1 %v14244_v61  ;;  %v5360_v29 = vld [vmem:[#allocation2 + $0x24] sm:$0xff]  ;;  %v5047_v56 = vld [vmem:[#allocation2 + $0xbb] sm:$0xff] }
 0x3f0   : > { %13073 = vmatprep.subr.bf16.mxu0 %v14245_v47 }
 0x3f2   : > { %13022 = vmatpush3.bf16.msra.mxu1 %v14244_v61  ;;  %v5362_v61 = vld [vmem:[#allocation2 + $0x34] sm:$0xff] }
 0x3f3   : > { %13074 = vmatpush3.bf16.msra.mxu0 %v14245_v47  ;;  %13023 = vmatprep.subr.bf16.mxu1 %v14246_v37  ;;  %v5063_v47 = vpack.c.bf16 %v5029_v52, %v5028_v22  ;;  %v5376_v22 = vld [vmem:[#allocation2 + $0xa4] sm:$0xff]  ;;  %v17410_v52 = vld [vmem:[%s19777_s2 + $0x238] sm:$0xff]  }
 0x3f4   : > { %12936 = vmatmul.mubr.bf16.gmra.mxu1 %v4734_v30  ;;  %13075 = vmatprep.subr.bf16.mxu0 %v14247_v40  ;;  %v5363_v30 = vld [vmem:[#allocation2 + $0x3c] sm:$0xff] }
 0x3f5   : > { %12988 = vmatmul.mubr.bf16.gmra.mxu0 %v4735_v39  ;;  %12939 = vmatprep.mubr.bf16.mxu1 %v4735_v39  ;;  %v5033_v39 = vld [vmem:[#allocation2 + $0x4b] sm:$0xff] }
 0x3f6   : > { %12991 = vmatprep.mubr.bf16.mxu0 %v4736_v14  ;;  %13024 = vmatpush3.bf16.msra.mxu1 %v14246_v37  ;;  %v17339_v37 = vpack.c.bf16 %v5361_v55, %v5360_v29  ;;  %v5065_v17 = vpack.c.bf16 %v5033_v39, %v5032_v13  ;;  %v5377_v29 = vld [vmem:[#allocation2 + $0xac] sm:$0xff]  ;;  %v5380_v39 = vld [vmem:[#allocation2 + $0xc4] sm:$0xff] }
 0x3f7   : > { %13076 = vmatpush3.bf16.msra.mxu0 %v14247_v40  ;;  %13025 = vmatprep.subr.bf16.mxu1 %v14248_v63  ;;  %v17344_v40 = vpack.c.bf16 %v5363_v30, %v5362_v61  ;;  %v5046_v55 = vld [vmem:[#allocation2 + $0xb3] sm:$0xff]  ;;  %v5379_v61 = vld [vmem:[#allocation2 + $0xbc] sm:$0xff]  ;;  %v5049_v13 = vld [vmem:[#allocation2 + $0xcb] sm:$0xff] }
 0x3f8   : > { %13077 = vmatprep.subr.bf16.mxu0 %v14249_v38 }
 0x3fa   : > { %13026 = vmatpush3.bf16.msra.mxu1 %v14248_v63  ;;  %v5364_v63 = vld [vmem:[#allocation2 + $0x44] sm:$0xff] }
 0x3fb   : > { %13078 = vmatpush3.bf16.msra.mxu0 %v14249_v38  ;;  %13027 = vmatprep.subr.bf16.mxu1 %v14250_v35  ;;  %v14258_v38 = vld [vmem:[%s19777_s2 + $0x1a8] sm:$0xff]  }
 0x3fc   : > { %12940 = vmatmul.mubr.bf16.gmra.mxu1 %v4736_v14  ;;  %13079 = vmatprep.subr.bf16.mxu0 %v14251_v11  ;;  %v5365_v14 = vld [vmem:[#allocation2 + $0x4c] sm:$0xff] }
 0x3fd   : > { %12992 = vmatmul.mubr.bf16.gmra.mxu0 %v4737_v53  ;;  %12943 = vmatprep.mubr.bf16.mxu1 %v4737_v53  ;;  %v17359_v53 = vpack.c.bf16 %v5365_v14, %v5364_v63  ;;  %v5381_v63 = vld [vmem:[#allocation2 + $0xcc] sm:$0xff] }
 0x3fe   : > { %12995 = vmatprep.mubr.bf16.mxu0 %v4738_v36  ;;  %13028 = vmatpush3.bf16.msra.mxu1 %v14250_v35  ;;  %v5034_v35 = vld [vmem:[#allocation2 + $0x53] sm:$0xff] }
 0x3ff   : > { %13080 = vmatpush3.bf16.msra.mxu0 %v14251_v11  ;;  %13029 = vmatprep.subr.bf16.mxu1 %v14252_v42  ;;  %v5366_v11 = vld [vmem:[#allocation2 + $0x54] sm:$0xff] }
 0x400   : > { %13081 = vmatprep.subr.bf16.mxu0 %v14253_v19  ;;  %v5050_v14 = vld [vmem:[#allocation2 + $0xd3] sm:$0xff] }
 0x402   : > { %13030 = vmatpush3.bf16.msra.mxu1 %v14252_v42  ;;  %v5066_v42 = vpack.c.bf16 %v5035_v0, %v5034_v35  ;;  %v5382_v35 = vld [vmem:[#allocation2 + $0xd4] sm:$0xff]  ;;  %v5383_v0 = vld [vmem:[#allocation2 + $0xdc] sm:$0xff] }
 0x403   : > { %13082 = vmatpush3.bf16.msra.mxu0 %v14253_v19  ;;  %13119 = vmatprep.subr.bf16.mxu1 %v17330_v18  ;;  %v17364_v19 = vpack.c.bf16 %v5367_v41, %v5366_v11  ;;  %v17419_v11 = vpack.c.bf16 %v5381_v63, %v5380_v39 }
 0x404   : > { %12944 = vmatmul.mubr.bf16.gmra.mxu1 %v4738_v36  ;;  %13171 = vmatprep.subr.bf16.mxu0 %v17335_v25  ;;  %v14260_v36 = vld [vmem:[%s19777_s2 + $0x1a0] sm:$0xff]  }
 0x405   : > { %12996 = vmatmul.mubr.bf16.gmra.mxu0 %v4739_v26  ;;  %12947 = vmatprep.mubr.bf16.mxu1 %v4739_v26  ;;  %v5038_v26 = vld [vmem:[#allocation2 + $0x73] sm:$0xff] }
 0x406   : > { %12999 = vmatprep.mubr.bf16.mxu0 %v4740_v15 }
 0x40c   : > { %12948 = vmatmul.mubr.bf16.gmra.mxu1 %v4740_v15  ;;  %v5039_v15 = vld [vmem:[#allocation2 + $0x7b] sm:$0xff] }
 0x40d   : > { %13000 = vmatmul.mubr.bf16.gmra.mxu0 %v4741_v7  ;;  %12951 = vmatprep.mubr.bf16.mxu1 %v4741_v7 }
 0x40e   : > { %13003 = vmatprep.mubr.bf16.mxu0 %v4742_v44 }
 0x414   : > { %12952 = vmatmul.mubr.bf16.gmra.mxu1 %v4742_v44  ;;  %v5068_v44 = vpack.c.bf16 %v5039_v15, %v5038_v26 }
 0x415   : > { %13004 = vmatmul.mubr.bf16.gmra.mxu0 %v4743_v50  ;;  %12955 = vmatprep.mubr.bf16.mxu1 %v4743_v50  ;;  %v5041_v50 = vld [vmem:[#allocation2 + $0x8b] sm:$0xff] }
 0x416   : > { %13007 = vmatprep.mubr.bf16.mxu0 %v4744_v54  ;;  %v5069_v9 = vpack.c.bf16 %v5041_v50, %v5040_v62  ;;  %v5056_v62 = vld [vmem:[#allocation2 + $0x103] sm:$0xff]  ;;  %v5057_v50 = vld [vmem:[#allocation2 + $0x10b] sm:$0xff] }
 0x41c   : > { %12956 = vmatmul.mubr.bf16.gmra.mxu1 %v4744_v54  ;;  %v5372_v54 = vld [vmem:[#allocation2 + $0x84] sm:$0xff] }
 0x41d   : > { %13008 = vmatmul.mubr.bf16.gmra.mxu0 %v4745_v16  ;;  %12959 = vmatprep.mubr.bf16.mxu1 %v4745_v16  ;;  %v14267_v16 = vld [vmem:[%s19777_s2 + $0x1c8] sm:$0xff]   ;;  %v17395_v1 = vpack.c.bf16 %v5373_v58, %v5372_v54 }
 0x41e   : > { %13011 = vmatprep.mubr.bf16.mxu0 %v4746_v59  ;;  %v5388_v54 = vld [vmem:[#allocation2 + $0x104] sm:$0xff] }
 0x424   : > { %12960 = vmatmul.mubr.bf16.gmra.mxu1 %v4746_v59  ;;  %v5374_v59 = vld [vmem:[#allocation2 + $0x94] sm:$0xff] }
 0x425   : > { %13012 = vmatmul.mubr.bf16.gmra.mxu0 %v4747_v4  ;;  %13031 = vmatprep.mubr.bf16.mxu1 %v5062_v6  ;;  %v17400_v10 = vpack.c.bf16 %v5375_v31, %v5374_v59  ;;  %v14269_v4 = vld [vmem:[%s19777_s2 + $0x1c0] sm:$0xff]   ;;  %v5390_v31 = vld [vmem:[#allocation2 + $0x114] sm:$0xff] }
 0x426   : > { %13083 = vmatprep.mubr.bf16.mxu0 %v5394_v24  ;;  %v5044_v6 = vld [vmem:[#allocation2 + $0xa3] sm:$0xff]  ;;  %v5045_v24 = vld [vmem:[#allocation2 + $0xab] sm:$0xff] }
 0x427   : > { %v5071_v30 = vpack.c.bf16 %v5045_v24, %v5044_v6  ;;  %v17437_v24 = vpack.c.bf16 %v5389_v51, %v5388_v54  ;;  %v6026_v54 = vld [vmem:[#allocation2 + $0x45] sm:$0xff] }
 0x42c   : > { %13032 = vmatmul.mubr.bf16.vlgmr.msra.gmra.mxu1 %v5063_v47  ;;  %v17412_v47 = vpack.c.bf16 %v5377_v29, %v5376_v22 }
 0x42d   : > { %13084 = vmatmul.mubr.bf16.vlgmr.msra.gmra.mxu0 %v17339_v37  ;;  %13035 = vmatprep.mubr.bf16.mxu1 %v5064_v49  ;;  %v5072_v49 = vpack.c.bf16 %v5047_v56, %v5046_v55 }
 0x42e   : > { %13087 = vmatprep.mubr.bf16.mxu0 %v17344_v40  ;;  %13120 = vmatpush3.bf16.msra.mxu1 %v17330_v18  ;;  %v14261_v18 = vld [vmem:[%s19777_s2 + $0x1e0] sm:$0xff]  }
 0x42f   : > { %13172 = vmatpush3.bf16.msra.mxu0 %v17335_v25  ;;  %13121 = vmatprep.subr.bf16.mxu1 %v14256_v3  ;;  %v5368_v25 = vld [vmem:[#allocation2 + $0x64] sm:$0xff] }
 0x430   : > { %13173 = vmatprep.subr.bf16.mxu0 %v14257_v23  ;;  %v17377_v7 = vpack.c.bf16 %v5369_v8, %v5368_v25  ;;  %v5055_v25 = vld [vmem:[#allocation2 + $0xfb] sm:$0xff] }
 0x431   : > { %v5386_v8 = vld [vmem:[#allocation2 + $0xf4] sm:$0xff] }
 0x432   : > { %13122 = vmatpush3.bf16.msra.mxu1 %v14256_v3  ;;  %v17415_v3 = vpack.c.bf16 %v5379_v61, %v5378_v5 }
 0x433   : > { %13174 = vmatpush3.bf16.msra.mxu0 %v14257_v23  ;;  %13123 = vmatprep.subr.bf16.mxu1 %v14258_v38  ;;  %v5048_v23 = vld [vmem:[#allocation2 + $0xc3] sm:$0xff] }
 0x434   : > { %13036 = vmatmul.mubr.bf16.gmra.mxu1 %v5065_v17  ;;  %13175 = vmatprep.subr.bf16.mxu0 %v14259_v33  ;;  %v17421_v17 = vpack.c.bf16 %v5383_v0, %v5382_v35  ;;  %v6022_v0 = vld [vmem:[#allocation2 + $0x25] sm:$0xff] }
 0x435   : > { %13088 = vmatmul.mubr.bf16.gmra.mxu0 %v17359_v53  ;;  %13039 = vmatprep.mubr.bf16.mxu1 %v5066_v42  ;;  %v5052_v42 = vld [vmem:[#allocation2 + $0xe3] sm:$0xff] }
 0x436   : > { %13091 = vmatprep.mubr.bf16.mxu0 %v17364_v19  ;;  %13124 = vmatpush3.bf16.msra.mxu1 %v14258_v38  ;;  %v5051_v38 = vld [vmem:[#allocation2 + $0xdb] sm:$0xff] }
 0x437   : > { %13176 = vmatpush3.bf16.msra.mxu0 %v14259_v33  ;;  %13125 = vmatprep.subr.bf16.mxu1 %v14260_v36  ;;  %v5073_v33 = vpack.c.bf16 %v5049_v13, %v5048_v23  ;;  %v5074_v41 = vpack.c.bf16 %v5051_v38, %v5050_v14  ;;  %v5060_v23 = vld [vmem:[#allocation2 + $0x123] sm:$0xff]  ;;  %v5061_v13 = vld [vmem:[#allocation2 + $0x12b] sm:$0xff] }
 0x438   : > { %13177 = vmatprep.subr.bf16.mxu0 %v14261_v18  ;;  %v5392_v14 = vld [vmem:[#allocation2 + $0x124] sm:$0xff]  ;;  %v5393_v38 = vld [vmem:[#allocation2 + $0x12c] sm:$0xff] }
 0x43a   : > { %13126 = vmatpush3.bf16.msra.mxu1 %v14260_v36  ;;  %v5053_v36 = vld [vmem:[#allocation2 + $0xeb] sm:$0xff] }
 0x43b   : > { %13178 = vmatpush3.bf16.msra.mxu0 %v14261_v18  ;;  %13127 = vmatprep.subr.bf16.mxu1 %v14262_v12  ;;  %v5384_v18 = vld [vmem:[#allocation2 + $0xe4] sm:$0xff]  ;;  %v5075_v26 = vpack.c.bf16 %v5053_v36, %v5052_v42  ;;  %v5079_v36 = vpack.c.bf16 %v5061_v13, %v5060_v23 }
 0x43c   : > { %13040 = vmatmul.mubr.bf16.gmra.mxu1 %v5067_v57  ;;  %13179 = vmatprep.subr.bf16.mxu0 %v14263_v60  ;;  %v17425_v15 = vpack.c.bf16 %v5385_v20, %v5384_v18  ;;  %v17451_v20 = vpack.c.bf16 %v5393_v38, %v5392_v14  ;;  %v6029_v23 = vld [vmem:[#allocation2 + $0x5d] sm:$0xff] }
 0x43d   : > { %13092 = vmatmul.mubr.bf16.gmra.mxu0 %v17377_v7  ;;  %13043 = vmatprep.mubr.bf16.mxu1 %v5068_v44 }
 0x43e   : > { %13095 = vmatprep.mubr.bf16.mxu0 %v17382_v45  ;;  %13128 = vmatpush3.bf16.msra.mxu1 %v14262_v12  ;;  %v5387_v12 = vld [vmem:[#allocation2 + $0xfc] sm:$0xff] }
 0x43f   : > { %13180 = vmatpush3.bf16.msra.mxu0 %v14263_v60  ;;  %13129 = vmatprep.subr.bf16.mxu1 %v14264_v28  ;;  %v5076_v60 = vpack.c.bf16 %v5055_v25, %v5054_v21  ;;  %v17427_v43 = vpack.c.bf16 %v5387_v12, %v5386_v8 }
 0x440   : > { %13181 = vmatprep.subr.bf16.mxu0 %v14265_v48 }
 0x442   : > { %13130 = vmatpush3.bf16.msra.mxu1 %v14264_v28 }
 0x443   : > { %13182 = vmatpush3.bf16.msra.mxu0 %v14265_v48  ;;  %13131 = vmatprep.subr.bf16.mxu1 %v14266_v34 }
 0x444   : > { %13044 = vmatmul.mubr.bf16.gmra.mxu1 %v5069_v9  ;;  %13183 = vmatprep.subr.bf16.mxu0 %v14267_v16  ;;  %v5391_v9 = vld [vmem:[#allocation2 + $0x11c] sm:$0xff] }
 0x445   : > { %13096 = vmatmul.mubr.bf16.gmra.mxu0 %v17395_v1  ;;  %13047 = vmatprep.mubr.bf16.mxu1 %v5070_v2  ;;  %v17441_v56 = vpack.c.bf16 %v5391_v9, %v5390_v31 }
 0x446   : > { %13099 = vmatprep.mubr.bf16.mxu0 %v17400_v10  ;;  %13132 = vmatpush3.bf16.msra.mxu1 %v14266_v34 }
 0x447   : > { %13184 = vmatpush3.bf16.msra.mxu0 %v14267_v16  ;;  %13133 = vmatprep.subr.bf16.mxu1 %v14268_v46  ;;  %v5059_v16 = vld [vmem:[#allocation2 + $0x11b] sm:$0xff] }
 0x448   : > { %13185 = vmatprep.subr.bf16.mxu0 %v14269_v4  ;;  %v5078_v22 = vpack.c.bf16 %v5059_v16, %v5058_v32 }
 0x44a   : > { %13134 = vmatpush3.bf16.msra.mxu1 %v14268_v46 }
 0x44b   : > { %13186 = vmatpush3.bf16.msra.mxu0 %v14269_v4  ;;  %13223 = vmatprep.subr.bf16.mxu1 %v17410_v52  ;;  %v5077_v4 = vpack.c.bf16 %v5057_v50, %v5056_v62  ;;  %v6025_v62 = vld [vmem:[#allocation2 + $0x3d] sm:$0xff] }
 0x44c   : > { %13048 = vmatmul.mubr.bf16.gmra.mxu1 %v5071_v30 }
 0x44d   : > { %13100 = vmatmul.mubr.bf16.gmra.mxu0 %v17412_v47  ;;  %13051 = vmatprep.mubr.bf16.mxu1 %v5072_v49 }
 0x44e   : > { %13103 = vmatprep.mubr.bf16.mxu0 %v17415_v3 }
 0x454   : > { %13052 = vmatmul.mubr.bf16.gmra.mxu1 %v5073_v33  ;;  %v6023_v33 = vld [vmem:[#allocation2 + $0x2d] sm:$0xff] }
 0x455   : > { %13104 = vmatmul.mubr.bf16.gmra.mxu0 %v17419_v11  ;;  %13055 = vmatprep.mubr.bf16.mxu1 %v5074_v41  ;;  %v6058_v8 = vpack.c.bf16 %v6023_v33, %v6022_v0  ;;  %v14273_v0 = vld [vmem:[%s19777_s2 + $0x220] sm:$0xff]  }
 0x456   : > { %13107 = vmatprep.mubr.bf16.mxu0 %v17421_v17 }
 0x45c   : > { %v12825_v27 = vpop.f32.mrf.mxu1  ;;  %13056 = vmatmul.mubr.bf16.gmra.mxu1 %v5075_v26 }
 0x45d   : > { %v12877_v57 = vpop.f32.mrf.mxu0  ;;  %13108 = vmatmul.mubr.bf16.gmra.mxu0 %v17425_v15  ;;  %13059 = vmatprep.mubr.bf16.mxu1 %v5076_v60 }
 0x45e   : > { %v17430_v44 = vadd.f32 %v12877_v57, %v12825_v27  ;;  %13111 = vmatprep.mubr.bf16.mxu0 %v17427_v43  ;;  %v3994_v28 = vpop.f32.mrf.mxu1 }
 0x45f   : > { %v4219_v48 = vpop.f32.mrf.mxu0 }
 0x460   : > { %v17433_v58 = vadd.f32 %v4219_v48, %v3994_v28  ;;  %v12826_v34 = vpop.f32.mrf.mxu1  ;;  %v6024_v48 = vld [vmem:[#allocation2 + $0x35] sm:$0xff] }
 0x461   : > { %v12878_v59 = vpop.f32.mrf.mxu0 }
 0x462   : > { %v17435_v2 = vadd.f32 %v12878_v59, %v12826_v34  ;;  %v3997_v46 = vpop.f32.mrf.mxu1  ;;  %v6027_v34 = vld [vmem:[#allocation2 + $0x4d] sm:$0xff]  ;;  %v6059_v59 = vpack.c.bf16 %v6025_v62, %v6024_v48  ;;  %v6033_v48 = vld [vmem:[#allocation2 + $0x7d] sm:$0xff] }
 0x463   : > { %v4222_v6 = vpop.f32.mrf.mxu0 }
 0x464   : > { %v17439_v29 = vadd.f32 %v4222_v6, %v3997_v46  ;;  %v12829_v55 = vpop.f32.mrf.mxu1  ;;  %13060 = vmatmul.mubr.bf16.gmra.mxu1 %v5077_v4  ;;  %v6060_v46 = vpack.c.bf16 %v6027_v34, %v6026_v54  ;;  %v6035_v54 = vld [vmem:[#allocation2 + $0x8d] sm:$0xff] }
 0x465   : > { %v12881_v5 = vpop.f32.mrf.mxu0  ;;  %13112 = vmatmul.mubr.bf16.gmra.mxu0 %v17437_v24  ;;  %13063 = vmatprep.mubr.bf16.mxu1 %v5078_v22 }
 0x466   : > { %v17444_v61 = vadd.f32 %v12881_v5, %v12829_v55  ;;  %13115 = vmatprep.mubr.bf16.mxu0 %v17441_v56  ;;  %v4010_v30 = vpop.f32.mrf.mxu1  ;;  %v14272_v5 = vld [vmem:[%s19777_s2 + $0x228] sm:$0xff]  }
 0x467   : > { %v4235_v49 = vpop.f32.mrf.mxu0 }
 0x468   : > { %v17447_v39 = vadd.f32 %v4235_v49, %v4010_v30  ;;  %v12830_v63 = vpop.f32.mrf.mxu1  ;;  %v6028_v49 = vld [vmem:[#allocation2 + $0x55] sm:$0xff] }
 0x469   : > { %v12882_v35 = vpop.f32.mrf.mxu0 }
 0x46a   : > { %v17449_v41 = vadd.f32 %v12882_v35, %v12830_v63  ;;  %v4013_v42 = vpop.f32.mrf.mxu1  ;;  %v6030_v63 = vld [vmem:[#allocation2 + $0x65] sm:$0xff] }
 0x46b   : > { %v4238_v18 = vpop.f32.mrf.mxu0 }
 0x46c   : > { %v17453_v21 = vadd.f32 %v4238_v18, %v4013_v42  ;;  %v12833_v25 = vpop.f32.mrf.mxu1  ;;  %13064 = vmatmul.mubr.bf16.gmra.mxu1 %v5079_v36 }
 0x46d   : > { %v12885_v12 = vpop.f32.mrf.mxu0  ;;  %13116 = vmatmul.mubr.bf16.gmra.mxu0 %v17451_v20  ;;  %13135 = vmatprep.mubr.bf16.mxu1 %v17339_v37  ;;  %v14271_v37 = vld [vmem:[%s19777_s2 + $0x230] sm:$0xff]  }
 0x46e   : > { %v17457_v26 = vadd.f32 %v12885_v12, %v12833_v25  ;;  %13187 = vmatprep.mubr.bf16.mxu0 %v6058_v8  ;;  %v4026_v60 = vpop.f32.mrf.mxu1 }
 0x46f   : > { %v4251_v27 = vpop.f32.mrf.mxu0 }
 0x470   : > { %v17459_v57 = vadd.f32 %v4251_v27, %v4026_v60  ;;  %v12834_v28 = vpop.f32.mrf.mxu1  ;;  %v14274_v60 = vld [vmem:[%s19777_s2 + $0x218] sm:$0xff]  }
 0x471   : > { %v12886_v50 = vpop.f32.mrf.mxu0 }
 0x472   : > { %v17461_v51 = vadd.f32 %v12886_v50, %v12834_v28  ;;  %v4029_v32 = vpop.f32.mrf.mxu1  ;;  %v6034_v50 = vld [vmem:[#allocation2 + $0x85] sm:$0xff] }
 0x473   : > { %v4254_v16 = vpop.f32.mrf.mxu0 }
 0x474   : > { %v17466_v31 = vadd.f32 %v4254_v16, %v4029_v32  ;;  %v12837_v9 = vpop.f32.mrf.mxu1  ;;  %13136 = vmatmul.mubr.bf16.vlgmr.msra.gmra.mxu1 %v17344_v40 }
 0x475   : > { %v12889_v4 = vpop.f32.mrf.mxu0  ;;  %13188 = vmatmul.mubr.bf16.vlgmr.msra.gmra.mxu0 %v6059_v59  ;;  %13139 = vmatprep.mubr.bf16.mxu1 %v17359_v53  ;;  %v6031_v53 = vld [vmem:[#allocation2 + $0x6d] sm:$0xff] }
 0x476   : > { %v17470_v6 = vadd.f32 %v12889_v4, %v12837_v9  ;;  %13191 = vmatprep.mubr.bf16.mxu0 %v6060_v46  ;;  %v4042_v22 = vpop.f32.mrf.mxu1  ;;  %13224 = vmatpush3.bf16.msra.mxu1 %v17410_v52  ;;  %v6061_v52 = vpack.c.bf16 %v6029_v23, %v6028_v49  ;;  %v6062_v36 = vpack.c.bf16 %v6031_v53, %v6030_v63  ;;  %v14275_v59 = vld [vmem:[%s19777_s2 + $0x210] sm:$0xff]   ;;  %v6038_v53 = vld [vmem:[#allocation2 + $0xa5] sm:$0xff] }
 0x477   : > { %v4267_v55 = vpop.f32.mrf.mxu0  ;;  %13225 = vmatprep.subr.bf16.mxu1 %v14271_v37  ;;  %v6064_v46 = vpack.c.bf16 %v6035_v54, %v6034_v50  ;;  %v6040_v50 = vld [vmem:[#allocation2 + $0xb5] sm:$0xff]  ;;  %v6041_v54 = vld [vmem:[#allocation2 + $0xbd] sm:$0xff] }
 0x478   : > { %v17476_v30 = vadd.f32 %v4267_v55, %v4042_v22  ;;  %v12838_v40 = vpop.f32.mrf.mxu1 }
 0x479   : > { %v12890_v13 = vpop.f32.mrf.mxu0 }
 0x47a   : > { %v17478_v14 = vadd.f32 %v12890_v13, %v12838_v40  ;;  %v4045_v38 = vpop.f32.mrf.mxu1  ;;  %13226 = vmatpush3.bf16.msra.mxu1 %v14271_v37  ;;  %v14276_v40 = vld [vmem:[%s19777_s2 + $0x208] sm:$0xff]   ;;  %v6037_v13 = vld [vmem:[#allocation2 + $0x9d] sm:$0xff] }
 0x47b   : > { %v4270_v35 = vpop.f32.mrf.mxu0  ;;  %13227 = vmatprep.subr.bf16.mxu1 %v14272_v5 }
 0x47c   : > { %v17483_v33 = vadd.f32 %v4270_v35, %v4045_v38  ;;  %v12841_v42 = vpop.f32.mrf.mxu1  ;;  %13140 = vmatmul.mubr.bf16.gmra.mxu1 %v17364_v19  ;;  %v6032_v19 = vld [vmem:[#allocation2 + $0x75] sm:$0xff]  ;;  %v6039_v38 = vld [vmem:[#allocation2 + $0xad] sm:$0xff] }
 0x47d   : > { %v12893_v18 = vpop.f32.mrf.mxu0  ;;  %13192 = vmatmul.mubr.bf16.gmra.mxu0 %v6061_v52  ;;  %13143 = vmatprep.mubr.bf16.mxu1 %v17377_v7  ;;  %v6063_v16 = vpack.c.bf16 %v6033_v48, %v6032_v19 }
 0x47e   : > { %v17487_v25 = vadd.f32 %v12893_v18, %v12841_v42  ;;  %13195 = vmatprep.mubr.bf16.mxu0 %v6062_v36  ;;  %v4058_v8 = vpop.f32.mrf.mxu1  ;;  %13228 = vmatpush3.bf16.msra.mxu1 %v14272_v5  ;;  %v14277_v42 = vld [vmem:[%s19777_s2 + $0x200] sm:$0xff]  }
 0x47f   : > { %v4283_v12 = vpop.f32.mrf.mxu0  ;;  %13229 = vmatprep.subr.bf16.mxu1 %v14273_v0 }
 0x480   : > { %v17492_v27 = vadd.f32 %v4283_v12, %v4058_v8  ;;  %v12842_v28 = vpop.f32.mrf.mxu1  ;;  %v6066_v8 = vpack.c.bf16 %v6039_v38, %v6038_v53  ;;  %v6044_v38 = vld [vmem:[#allocation2 + $0xd5] sm:$0xff] }
 0x481   : > { %v12894_v62 = vpop.f32.mrf.mxu0 }
 0x482   : > { %v17494_v7 = vadd.f32 %v12894_v62, %v12842_v28  ;;  %v4061_v34 = vpop.f32.mrf.mxu1  ;;  %13230 = vmatpush3.bf16.msra.mxu1 %v14273_v0 }
 0x483   : > { %v4286_v32 = vpop.f32.mrf.mxu0  ;;  %13231 = vmatprep.subr.bf16.mxu1 %v14274_v60 }
 0x484   : > { %v17499_v37 = vadd.f32 %v4286_v32, %v4061_v34  ;;  %v12845_v9 = vpop.f32.mrf.mxu1  ;;  %13144 = vmatmul.mubr.bf16.gmra.mxu1 %v17382_v45  ;;  %v6036_v45 = vld [vmem:[#allocation2 + $0x95] sm:$0xff]  ;;  %v6042_v32 = vld [vmem:[#allocation2 + $0xc5] sm:$0xff] }
 0x485   : > { %v12897_v4 = vpop.f32.mrf.mxu0  ;;  %13196 = vmatmul.mubr.bf16.gmra.mxu0 %v6063_v16  ;;  %13147 = vmatprep.mubr.bf16.mxu1 %v17395_v1  ;;  %v6065_v0 = vpack.c.bf16 %v6037_v13, %v6036_v45 }
 0x486   : > { %v17503_v22 = vadd.f32 %v12897_v4, %v12845_v9  ;;  %13199 = vmatprep.mubr.bf16.mxu0 %v6064_v46  ;;  %v4074_v55 = vpop.f32.mrf.mxu1  ;;  %13232 = vmatpush3.bf16.msra.mxu1 %v14274_v60  ;;  %v6067_v9 = vpack.c.bf16 %v6041_v54, %v6040_v50  ;;  %v20424_v46 = vmov 0.0  }
 0x487   : > { %v4299_v5 = vpop.f32.mrf.mxu0  ;;  %13233 = vmatprep.subr.bf16.mxu1 %v14275_v59 }
 0x488   : > { %v17508_v49 = vadd.f32 %v4299_v5, %v4074_v55  ;;  %v12846_v23 = vpop.f32.mrf.mxu1 }
 0x489   : > { %v12898_v63 = vpop.f32.mrf.mxu0 }
 0x48a   : > { %v17510_v1 = vadd.f32 %v12898_v63, %v12846_v23  ;;  %v4077_v35 = vpop.f32.mrf.mxu1  ;;  %13234 = vmatpush3.bf16.msra.mxu1 %v14275_v59 }
 0x48b   : > { %v4302_v52 = vpop.f32.mrf.mxu0  ;;  %13235 = vmatprep.subr.bf16.mxu1 %v14276_v40 }
 0x48c   : > { %v17515_v36 = vadd.f32 %v4302_v52, %v4077_v35  ;;  %v12849_v18 = vpop.f32.mrf.mxu1  ;;  %13148 = vmatmul.mubr.bf16.gmra.mxu1 %v17400_v10  ;;  %v6043_v10 = vld [vmem:[#allocation2 + $0xcd] sm:$0xff]  ;;  %v6045_v35 = vld [vmem:[#allocation2 + $0xdd] sm:$0xff] }
 0x48d   : > { %v12901_v12 = vpop.f32.mrf.mxu0  ;;  %13200 = vmatmul.mubr.bf16.gmra.mxu0 %v6065_v0  ;;  %13151 = vmatprep.mubr.bf16.mxu1 %v17412_v47  ;;  %v6068_v5 = vpack.c.bf16 %v6043_v10, %v6042_v32  ;;  %v6046_v0 = vld [vmem:[#allocation2 + $0xe5] sm:$0xff] }
 0x48e   : > { %v17519_v60 = vadd.f32 %v12901_v12, %v12849_v18  ;;  %13203 = vmatprep.mubr.bf16.mxu0 %v6066_v8  ;;  %v4090_v28 = vpop.f32.mrf.mxu1  ;;  %13236 = vmatpush3.bf16.msra.mxu1 %v14276_v40  ;;  %v6069_v12 = vpack.c.bf16 %v6045_v35, %v6044_v38 }
 0x48f   : > { %v4315_v19 = vpop.f32.mrf.mxu0  ;;  %13237 = vmatprep.subr.bf16.mxu1 %v14277_v42 }
 0x490   : > { %v17521_v48 = vadd.f32 %v4315_v19, %v4090_v28  ;;  %v12850_v62 = vpop.f32.mrf.mxu1 }
 0x491   : > { %v12902_v34 = vpop.f32.mrf.mxu0 }
 0x492   : > { %v17523_v16 = vadd.f32 %v12902_v34, %v12850_v62  ;;  %v4093_v59 = vpop.f32.mrf.mxu1  ;;  %13238 = vmatpush3.bf16.msra.mxu1 %v14277_v42  ;;  %v6047_v42 = vld [vmem:[#allocation2 + $0xed] sm:$0xff] }
 0x493   : > { %v4318_v47 = vpop.f32.mrf.mxu0  ;;  %13299 = vmatprep.subr.mxu1 %v20424_v46  ;;  %v6070_v19 = vpack.c.bf16 %v6047_v42, %v6046_v0 }
 0x494   : > { %v17526_v4 = vadd.f32 %v4318_v47, %v4093_v59  ;;  %v12853_v55 = vpop.f32.mrf.mxu1  ;;  %13152 = vmatmul.mubr.bf16.gmra.mxu1 %v17415_v3  ;;  %v6048_v59 = vld [vmem:[#allocation2 + $0xf5] sm:$0xff]  ;;  %v6049_v47 = vld [vmem:[#allocation2 + $0xfd] sm:$0xff] }
 0x495   : > { %v12905_v40 = vpop.f32.mrf.mxu0  ;;  %13204 = vmatmul.mubr.bf16.gmra.mxu0 %v6067_v9  ;;  %13155 = vmatprep.mubr.bf16.mxu1 %v17419_v11 }
 0x496   : > { %v17530_v23 = vadd.f32 %v12905_v40, %v12853_v55  ;;  %13207 = vmatprep.mubr.bf16.mxu0 %v6068_v5  ;;  %v4106_v45 = vpop.f32.mrf.mxu1  ;;  %v6050_v55 = vld [vmem:[#allocation2 + $0x105] sm:$0xff]  ;;  %v6051_v5 = vld [vmem:[#allocation2 + $0x10d] sm:$0xff] }
 0x497   : > { %v4331_v13 = vpop.f32.mrf.mxu0 }
 0x498   : > { %v17532_v63 = vadd.f32 %v4331_v13, %v4106_v45  ;;  %v12854_v53 = vpop.f32.mrf.mxu1 }
 0x499   : > { %v12906_v52 = vpop.f32.mrf.mxu0 }
 0x49a   : > { %v17534_v18 = vadd.f32 %v12906_v52, %v12854_v53  ;;  %v4109_v3 = vpop.f32.mrf.mxu1  ;;  %v6072_v53 = vpack.c.bf16 %v6051_v5, %v6050_v55 }
 0x49b   : > { %v4334_v8 = vpop.f32.mrf.mxu0 }
 0x49c   : > { %v17536_v28 = vadd.f32 %v4334_v8, %v4109_v3  ;;  %v12857_v11 = vpop.f32.mrf.mxu1  ;;  %13156 = vmatmul.mubr.bf16.gmra.mxu1 %v17421_v17 }
 0x49d   : > { %v12909_v62 = vpop.f32.mrf.mxu0  ;;  %13208 = vmatmul.mubr.bf16.gmra.mxu0 %v6069_v12  ;;  %13159 = vmatprep.mubr.bf16.mxu1 %v17425_v15  ;;  %v6071_v15 = vpack.c.bf16 %v6049_v47, %v6048_v59  ;;  %v6052_v12 = vld [vmem:[#allocation2 + $0x115] sm:$0xff] }
 0x49e   : > { %v17540_v50 = vadd.f32 %v12909_v62, %v12857_v11  ;;  %13211 = vmatprep.mubr.bf16.mxu0 %v6070_v19  ;;  %v4122_v54 = vpop.f32.mrf.mxu1  ;;  %v6053_v11 = vld [vmem:[#allocation2 + $0x11d] sm:$0xff] }
 0x49f   : > { %v4347_v34 = vpop.f32.mrf.mxu0 }
 0x4a0   : > { %v17542_v32 = vadd.f32 %v4347_v34, %v4122_v54  ;;  %v12858_v10 = vpop.f32.mrf.mxu1  ;;  %v6055_v54 = vld [vmem:[#allocation2 + $0x12d] sm:$0xff] }
 0x4a1   : > { %v12910_v9 = vpop.f32.mrf.mxu0 }
 0x4a2   : > { %v17544_v40 = vadd.f32 %v12910_v9, %v12858_v10  ;;  %v17546_v17 = vpop.f32.mrf.mxu1 }
 0x4a3   : > { %v17548_v45 = vpop.f32.mrf.mxu0 }
 0x4a4   : > { %v12929_v13 = vpop.f32.mrf.mxu1  ;;  %13160 = vmatmul.mubr.bf16.gmra.mxu1 %v17427_v43 }
 0x4a5   : > { %v4660_v38 = vadd.f32 %v12929_v13, %v17430_v44  ;;  %v12981_v35 = vpop.f32.mrf.mxu0  ;;  %13212 = vmatmul.mubr.bf16.gmra.mxu0 %v6071_v15  ;;  %13163 = vmatprep.mubr.bf16.mxu1 %v17437_v24  ;;  %v6054_v44 = vld [vmem:[#allocation2 + $0x125] sm:$0xff]  ;;  %v5725_v15 = vld [vmem:[#allocation2 + $0x13c] sm:$0xff] }
 0x4a6   : > { %13215 = vmatprep.mubr.bf16.mxu0 %v6072_v53  ;;  %v4515_v52 = vpop.f32.mrf.mxu1  ;;  %v6074_v9 = vpack.c.bf16 %v6055_v54, %v6054_v44  ;;  %v6056_v53 = vld [vmem:[#allocation2 + $0x135] sm:$0xff] }
 0x4a7   : > { %v17553_v0 = vadd.f32 %v12981_v35, %v4660_v38  ;;  %v4658_v42 = vadd.f32 %v4515_v52, %v17433_v58  ;;  %v4847_v3 = vpop.f32.mrf.mxu0  ;;  %v6073_v58 = vpack.c.bf16 %v6053_v11, %v6052_v12 }
 0x4a8   : > { %v12930_v8 = vpop.f32.mrf.mxu1 }
 0x4a9   : > { %v17556_v19 = vadd.f32 %v4847_v3, %v4658_v42  ;;  %v4661_v43 = vadd.f32 %v12930_v8, %v17435_v2  ;;  %v12982_v62 = vpop.f32.mrf.mxu0  ;;  %v5724_v2 = vld [vmem:[#allocation2 + $0x134] sm:$0xff]  ;;  %v6354_v3 = vld [vmem:[#allocation2 + $0x26] sm:$0xff] }
 0x4aa   : > { %v4518_v34 = vpop.f32.mrf.mxu1  ;;  %v6355_v8 = vld [vmem:[#allocation2 + $0x2e] sm:$0xff] }
 0x4ab   : > { %v17559_v10 = vadd.f32 %v12982_v62, %v4661_v43  ;;  %v17562_v24 = vadd.f32 %v4518_v34, %v17439_v29  ;;  %v17564_v59 = vpop.f32.mrf.mxu0  ;;  %v6057_v29 = vld [vmem:[#allocation2 + $0x13d] sm:$0xff] }
 0x4ac   : > { %v12933_v47 = vpop.f32.mrf.mxu1  ;;  %13164 = vmatmul.mubr.bf16.gmra.mxu1 %v17441_v56  ;;  %v5743_v56 = vpack.c.bf16 %v5725_v15, %v5724_v2  ;;  %v6075_v11 = vpack.c.bf16 %v6057_v29, %v6056_v53  ;;  %v6356_v2 = vld [vmem:[#allocation2 + $0x36] sm:$0xff]  ;;  %v6357_v15 = vld [vmem:[#allocation2 + $0x3e] sm:$0xff]  ;;  %v6359_v53 = vld [vmem:[#allocation2 + $0x4e] sm:$0xff] }
 0x4ad   : > { %v4664_v55 = vadd.f32 %v12933_v47, %v17444_v61  ;;  %v12985_v5 = vpop.f32.mrf.mxu0  ;;  %13216 = vmatmul.mubr.bf16.gmra.mxu0 %v6073_v58  ;;  %13167 = vmatprep.mubr.bf16.mxu1 %v17451_v20 }
 0x4ae   : > { %13219 = vmatprep.mubr.bf16.mxu0 %v6074_v9  ;;  %v4531_v13 = vpop.f32.mrf.mxu1 }
 0x4af   : > { %v17569_v38 = vadd.f32 %v12985_v5, %v4664_v55  ;;  %v4662_v35 = vadd.f32 %v4531_v13, %v17447_v39  ;;  %v4863_v52 = vpop.f32.mrf.mxu0  ;;  %v6390_v39 = vpack.c.bf16 %v6355_v8, %v6354_v3  ;;  %v6358_v13 = vld [vmem:[#allocation2 + $0x46] sm:$0xff] }
 0x4b0   : > { %v12934_v42 = vpop.f32.mrf.mxu1 }
 0x4b1   : > { %v17572_v61 = vadd.f32 %v4863_v52, %v4662_v35  ;;  %v4665_v12 = vadd.f32 %v12934_v42, %v17449_v41  ;;  %v12986_v20 = vpop.f32.mrf.mxu0  ;;  %v6391_v42 = vpack.c.bf16 %v6357_v15, %v6356_v2  ;;  %v6363_v2 = vld [vmem:[#allocation2 + $0x6e] sm:$0xff] }
 0x4b2   : > { %v4534_v43 = vpop.f32.mrf.mxu1 }
 0x4b3   : > { %v17575_v62 = vadd.f32 %v12986_v20, %v4665_v12  ;;  %v17578_v44 = vadd.f32 %v4534_v43, %v17453_v21  ;;  %v17580_v54 = vpop.f32.mrf.mxu0  ;;  %v20425_v43 = vld [vmem:[#allocation102_spill] sm:$0xff] }
 0x4b4   : > { %v12937_v34 = vpop.f32.mrf.mxu1  ;;  %13168 = vmatmul.mubr.bf16.gmra.mxu1 %v5743_v56 }
 0x4b5   : > { %v4668_v58 = vadd.f32 %v12937_v34, %v17457_v26  ;;  %v12989_v47 = vpop.f32.mrf.mxu0  ;;  %13239 = vmatprep.mubr.bf16.mxu1 %v6390_v39  ;;  %13220 = vmatmul.mubr.bf16.gmra.mxu0 %v6075_v11 }
 0x4b6   : > { %v4547_v9 = vpop.f32.mrf.mxu1 }
 0x4b7   : > { %v17583_v41 = vadd.f32 %v12989_v47, %v4668_v58  ;;  %v4666_v55 = vadd.f32 %v4547_v9, %v17459_v57  ;;  %v4879_v5 = vpop.f32.mrf.mxu0  ;;  %v6392_v57 = vpack.c.bf16 %v6359_v53, %v6358_v13  ;;  %v6360_v58 = vld [vmem:[#allocation2 + $0x56] sm:$0xff]  ;;  %v6361_v47 = vld [vmem:[#allocation2 + $0x5e] sm:$0xff] }
 0x4b8   : > { %v12938_v21 = vpop.f32.mrf.mxu1  ;;  %v20426_v9 = vld [vmem:[#allocation101_spill] sm:$0xff]  ;;  %v20427_v13 = vld [vmem:[#allocation100_spill] sm:$0xff] }
 0x4b9   : > { %v17586_v29 = vadd.f32 %v4879_v5, %v4666_v55  ;;  %v4669_v35 = vadd.f32 %v12938_v21, %v17461_v51  ;;  %v12990_v52 = vpop.f32.mrf.mxu0  ;;  %v6362_v5 = vld [vmem:[#allocation2 + $0x66] sm:$0xff] }
 0x4ba   : > { %v4550_v26 = vpop.f32.mrf.mxu1 }
 0x4bb   : > { %v17589_v56 = vadd.f32 %v12990_v52, %v4669_v35  ;;  %v17592_v3 = vadd.f32 %v4550_v26, %v17466_v31  ;;  %v17594_v8 = vpop.f32.mrf.mxu0  ;;  %v6393_v35 = vpack.c.bf16 %v6361_v47, %v6360_v58  ;;  %v6364_v58 = vld [vmem:[#allocation2 + $0x76] sm:$0xff]  ;;  %v6365_v47 = vld [vmem:[#allocation2 + $0x7e] sm:$0xff] }
 0x4bc   : > { %v12941_v12 = vpop.f32.mrf.mxu1  ;;  %13240 = vmatmul.mubr.bf16.vlgmr.msra.gmra.mxu1 %v6391_v42  ;;  %v6394_v42 = vpack.c.bf16 %v6363_v2, %v6362_v5  ;;  %v6366_v2 = vld [vmem:[#allocation2 + $0x86] sm:$0xff] }
 0x4bd   : > { %v4672_v20 = vadd.f32 %v12941_v12, %v17470_v6  ;;  %v12993_v11 = vpop.f32.mrf.mxu0  ;;  %13243 = vmatprep.mubr.bf16.mxu1 %v6392_v57  ;;  %13300 = vmatpush3.msra.mxu1 %v20425_v43  ;;  %v20428_v57 = vld [vmem:[#allocation99_spill] sm:$0xff] }
 0x4be   : > { %v4563_v51 = vpop.f32.mrf.mxu1  ;;  %13301 = vmatprep.subr.mxu1 %v20424_v46 }
 0x4bf   : > { %v17599_v39 = vadd.f32 %v12993_v11, %v4672_v20  ;;  %v4670_v34 = vadd.f32 %v4563_v51, %v17476_v30  ;;  %v4895_v31 = vpop.f32.mrf.mxu0  ;;  %13302 = vmatpush3.msra.mxu1 %v20426_v9  ;;  %v20429_v11 = vld [vmem:[#allocation98_spill] sm:$0xff] }
 0x4c0   : > { %v12942_v55 = vpop.f32.mrf.mxu1  ;;  %13303 = vmatprep.subr.mxu1 %v20424_v46 }
 0x4c1   : > { %v17604_v6 = vadd.f32 %v4895_v31, %v4670_v34  ;;  %v4673_v15 = vadd.f32 %v12942_v55, %v17478_v14  ;;  %v12994_v21 = vpop.f32.mrf.mxu0  ;;  %13304 = vmatpush3.msra.mxu1 %v20427_v13  ;;  %v20430_v55 = vld [vmem:[#allocation97_spill] sm:$0xff] }
 0x4c2   : > { %v4566_v53 = vpop.f32.mrf.mxu1  ;;  %13305 = vmatprep.subr.mxu1 %v20424_v46 }
 0x4c3   : > { %v17609_v30 = vadd.f32 %v12994_v21, %v4673_v15  ;;  %v17612_v52 = vadd.f32 %v4566_v53, %v17483_v33  ;;  %v17614_v26 = vpop.f32.mrf.mxu0  ;;  %13306 = vmatpush3.msra.mxu1 %v20428_v57  ;;  %v6367_v15 = vld [vmem:[#allocation2 + $0x8e] sm:$0xff] }
 0x4c4   : > { %v12945_v12 = vpop.f32.mrf.mxu1  ;;  %13244 = vmatmul.mubr.bf16.gmra.mxu1 %v6393_v35  ;;  %13307 = vmatprep.subr.mxu1 %v20424_v46  ;;  %v20431_v35 = vld [vmem:[#allocation96_spill] sm:$0xff]  ;;  %v20441_v57 = vld [vmem:[#allocation87_spill] sm:$0xff] }
 0x4c5   : > { %v4676_v14 = vadd.f32 %v12945_v12, %v17487_v25  ;;  %v12997_v20 = vpop.f32.mrf.mxu0  ;;  %13247 = vmatprep.mubr.bf16.mxu1 %v6394_v42  ;;  %13308 = vmatpush3.msra.mxu1 %v20429_v11  ;;  %v6395_v12 = vpack.c.bf16 %v6365_v47, %v6364_v58  ;;  %v20433_v58 = vld [vmem:[#allocation94_spill] sm:$0xff]  ;;  %v20436_v11 = vld [vmem:[#allocation91_spill] sm:$0xff] }
 0x4c6   : > { %v4579_v51 = vpop.f32.mrf.mxu1  ;;  %13309 = vmatprep.subr.mxu1 %v20424_v46 }
 0x4c7   : > { %v17621_v33 = vadd.f32 %v12997_v20, %v4676_v14  ;;  %v4674_v34 = vadd.f32 %v4579_v51, %v17492_v27  ;;  %v4911_v31 = vpop.f32.mrf.mxu0  ;;  %13310 = vmatpush3.msra.mxu1 %v20430_v55  ;;  %v6396_v51 = vpack.c.bf16 %v6367_v15, %v6366_v2  ;;  %v20432_v55 = vld [vmem:[#allocation95_spill] sm:$0xff]  ;;  %v6368_v15 = vld [vmem:[#allocation2 + $0x96] sm:$0xff] }
 0x4c8   : > { %v12946_v5 = vpop.f32.mrf.mxu1  ;;  %13311 = vmatprep.subr.mxu1 %v20424_v46 }
 0x4c9   : > { %v17626_v25 = vadd.f32 %v4911_v31, %v4674_v34  ;;  %v4677_v21 = vadd.f32 %v12946_v5, %v17494_v7  ;;  %v12998_v53 = vpop.f32.mrf.mxu0  ;;  %13312 = vmatpush3.msra.mxu1 %v20431_v35 }
 0x4ca   : > { %v4582_v42 = vpop.f32.mrf.mxu1  ;;  %13313 = vmatprep.subr.mxu1 %v20424_v46 }
 0x4cb   : > { %v17631_v27 = vadd.f32 %v12998_v53, %v4677_v21  ;;  %v17634_v14 = vadd.f32 %v4582_v42, %v17499_v37  ;;  %v17636_v20 = vpop.f32.mrf.mxu0  ;;  %13314 = vmatpush3.msra.mxu1 %v20432_v55  ;;  %v6369_v21 = vld [vmem:[#allocation2 + $0x9e] sm:$0xff]  ;;  %v6371_v55 = vld [vmem:[#allocation2 + $0xae] sm:$0xff] }
 0x4cc   : > { %v12949_v34 = vpop.f32.mrf.mxu1  ;;  %13248 = vmatmul.mubr.bf16.gmra.mxu1 %v6395_v12  ;;  %13315 = vmatprep.subr.mxu1 %v20424_v46  ;;  %v20434_v53 = vld [vmem:[#allocation93_spill] sm:$0xff]  ;;  %v6370_v12 = vld [vmem:[#allocation2 + $0xa6] sm:$0xff] }
 0x4cd   : > { %v4680_v7 = vadd.f32 %v12949_v34, %v17503_v22  ;;  %v13001_v31 = vpop.f32.mrf.mxu0  ;;  %13251 = vmatprep.mubr.bf16.mxu1 %v6396_v51  ;;  %13316 = vmatpush3.msra.mxu1 %v20433_v58  ;;  %v20435_v58 = vld [vmem:[#allocation92_spill] sm:$0xff]  ;;  %v6398_v35 = vpack.c.bf16 %v6371_v55, %v6370_v12 }
 0x4ce   : > { %v4595_v47 = vpop.f32.mrf.mxu1  ;;  %13317 = vmatprep.subr.mxu1 %v20424_v46  ;;  %v6372_v12 = vld [vmem:[#allocation2 + $0xb6] sm:$0xff] }
 0x4cf   : > { %v17643_v37 = vadd.f32 %v13001_v31, %v4680_v7  ;;  %v4678_v5 = vadd.f32 %v4595_v47, %v17508_v49  ;;  %v4927_v2 = vpop.f32.mrf.mxu0  ;;  %13318 = vmatpush3.msra.mxu1 %v20434_v53  ;;  %v6397_v31 = vpack.c.bf16 %v6369_v21, %v6368_v15  ;;  %v20437_v15 = vld [vmem:[#allocation90_spill] sm:$0xff] }
 0x4d0   : > { %v12950_v42 = vpop.f32.mrf.mxu1  ;;  %13319 = vmatprep.subr.mxu1 %v20424_v46 }
 0x4d1   : > { %v17648_v22 = vadd.f32 %v4927_v2, %v4678_v5  ;;  %v4681_v51 = vadd.f32 %v12950_v42, %v17510_v1  ;;  %v13002_v34 = vpop.f32.mrf.mxu0  ;;  %13320 = vmatpush3.msra.mxu1 %v20435_v58 }
 0x4d2   : > { %v4598_v7 = vpop.f32.mrf.mxu1  ;;  %13321 = vmatprep.subr.mxu1 %v20424_v46 }
 0x4d3   : > { %v17653_v49 = vadd.f32 %v13002_v34, %v4681_v51  ;;  %v17656_v47 = vadd.f32 %v4598_v7, %v17515_v36  ;;  %v17658_v53 = vpop.f32.mrf.mxu0  ;;  %13322 = vmatpush3.msra.mxu1 %v20436_v11  ;;  %v6373_v51 = vld [vmem:[#allocation2 + $0xbe] sm:$0xff]  ;;  %v6375_v11 = vld [vmem:[#allocation2 + $0xce] sm:$0xff] }
 0x4d4   : > { %v12953_v5 = vpop.f32.mrf.mxu1  ;;  %13252 = vmatmul.mubr.bf16.gmra.mxu1 %v6397_v31  ;;  %13323 = vmatprep.subr.mxu1 %v20424_v46  ;;  %v20438_v34 = vld [vmem:[#allocation89_spill] sm:$0xff]  ;;  %v6374_v31 = vld [vmem:[#allocation2 + $0xc6] sm:$0xff] }
 0x4d5   : > { %v4684_v1 = vadd.f32 %v12953_v5, %v17519_v60  ;;  %v13005_v2 = vpop.f32.mrf.mxu0  ;;  %13255 = vmatprep.mubr.bf16.mxu1 %v6398_v35  ;;  %13324 = vmatpush3.msra.mxu1 %v20437_v15  ;;  %v20440_v15 = vld [vmem:[#allocation88_spill] sm:$0xff]  ;;  %v6400_v58 = vpack.c.bf16 %v6375_v11, %v6374_v31  ;;  %v6378_v11 = vld [vmem:[#allocation2 + $0xe6] sm:$0xff] }
 0x4d6   : > { %v4611_v21 = vpop.f32.mrf.mxu1  ;;  %13325 = vmatprep.subr.mxu1 %v20424_v46  ;;  %v6379_v31 = vld [vmem:[#allocation2 + $0xee] sm:$0xff] }
 0x4d7   : > { %v17665_v36 = vadd.f32 %v13005_v2, %v4684_v1  ;;  %v4682_v42 = vadd.f32 %v4611_v21, %v17521_v48  ;;  %v4943_v55 = vpop.f32.mrf.mxu0  ;;  %13326 = vmatpush3.msra.mxu1 %v20438_v34  ;;  %v6399_v2 = vpack.c.bf16 %v6373_v51, %v6372_v12 }
 0x4d8   : > { %v12954_v7 = vpop.f32.mrf.mxu1  ;;  %13327 = vmatprep.subr.mxu1 %v20424_v46 }
 0x4d9   : > { %v17670_v60 = vadd.f32 %v4943_v55, %v4682_v42  ;;  %v4685_v35 = vadd.f32 %v12954_v7, %v17523_v16  ;;  %v13006_v5 = vpop.f32.mrf.mxu0  ;;  %13328 = vmatpush3.msra.mxu1 %v20440_v15 }
 0x4da   : > { %v4614_v1 = vpop.f32.mrf.mxu1  ;;  %13329 = vmatprep.subr.mxu1 %v20424_v46 }
 0x4db   : > { %20439 = vst [vmem:[#allocation145_spill] sm:$0xff] %v17670_v60  ;;  %v17675_v48 = vadd.f32 %v13006_v5, %v4685_v35  ;;  %v17678_v21 = vadd.f32 %v4614_v1, %v17526_v4  ;;  %v17680_v34 = vpop.f32.mrf.mxu0  ;;  %13330 = vmatpush3.msra.mxu1 %v20441_v57  ;;  %v6376_v35 = vld [vmem:[#allocation2 + $0xd6] sm:$0xff]  ;;  %v6377_v5 = vld [vmem:[#allocation2 + $0xde] sm:$0xff] }
 0x4dc   : > { %v12957_v42 = vpop.f32.mrf.mxu1  ;;  %13256 = vmatmul.mubr.bf16.gmra.mxu1 %v6399_v2  ;;  %13369 = vmatprep.subr.bf16.mxu1 %v20424_v46  ;;  %v6388_v60 = vld [vmem:[#allocation2 + $0x136] sm:$0xff] }
 0x4dd   : > { %v4688_v16 = vadd.f32 %v12957_v42, %v17530_v23  ;;  %v13009_v55 = vpop.f32.mrf.mxu0  ;;  %13259 = vmatprep.mubr.bf16.mxu1 %v6400_v58  ;;  %v6401_v23 = vpack.c.bf16 %v6377_v5, %v6376_v35  ;;  %v6381_v5 = vld [vmem:[#allocation2 + $0xfe] sm:$0xff] }
 0x4de   : > { %v4627_v12 = vpop.f32.mrf.mxu1 }
 0x4df   : > { %v17685_v51 = vadd.f32 %v13009_v55, %v4688_v16  ;;  %v4686_v7 = vadd.f32 %v4627_v12, %v17532_v63  ;;  %v4959_v4 = vpop.f32.mrf.mxu0  ;;  %v6402_v63 = vpack.c.bf16 %v6379_v31, %v6378_v11  ;;  %v4351_v11 = vadd.f32 %v17548_v45, %v17546_v17 }
 0x4e0   : > { %v12958_v1 = vpop.f32.mrf.mxu1 }
 0x4e1   : > { %v17688_v57 = vadd.f32 %v4959_v4, %v4686_v7  ;;  %v4689_v2 = vadd.f32 %v12958_v1, %v17534_v18  ;;  %v13010_v15 = vpop.f32.mrf.mxu0 }
 0x4e2   : > { %v4630_v13 = vpop.f32.mrf.mxu1 }
 0x4e3   : > { %20442 = vst [vmem:[#allocation138_spill] sm:$0xff] %v17688_v57  ;;  %v17691_v42 = vadd.f32 %v13010_v15, %v4689_v2  ;;  %v17694_v58 = vadd.f32 %v4630_v13, %v17536_v28  ;;  %v17696_v16 = vpop.f32.mrf.mxu0  ;;  %v6380_v15 = vld [vmem:[#allocation2 + $0xf6] sm:$0xff]  ;;  %v6382_v28 = vld [vmem:[#allocation2 + $0x106] sm:$0xff]  ;;  %v6383_v13 = vld [vmem:[#allocation2 + $0x10e] sm:$0xff] }
 0x4e4   : > { %v12961_v55 = vpop.f32.mrf.mxu1  ;;  %13260 = vmatmul.mubr.bf16.gmra.mxu1 %v6401_v23 }
 0x4e5   : > { %v4692_v12 = vadd.f32 %v12961_v55, %v17540_v50  ;;  %v13013_v9 = vpop.f32.mrf.mxu0  ;;  %13263 = vmatprep.mubr.bf16.mxu1 %v6402_v63  ;;  %v6403_v63 = vpack.c.bf16 %v6381_v5, %v6380_v15  ;;  %v6386_v5 = vld [vmem:[#allocation2 + $0x126] sm:$0xff] }
 0x4e6   : > { %v4643_v7 = vpop.f32.mrf.mxu1 }
 0x4e7   : > { %v17699_v4 = vadd.f32 %v13013_v9, %v4692_v12  ;;  %v4690_v18 = vadd.f32 %v4643_v7, %v17542_v32  ;;  %v4975_v35 = vpop.f32.mrf.mxu0  ;;  %v6404_v12 = vpack.c.bf16 %v6383_v13, %v6382_v28  ;;  %v4991_v28 = vadd.f32 %v17564_v59, %v17562_v24  ;;  %v6389_v24 = vld [vmem:[#allocation2 + $0x13e] sm:$0xff] }
 0x4e8   : > { %v12962_v1 = vpop.f32.mrf.mxu1 }
 0x4e9   : > { %v17704_v31 = vadd.f32 %v4975_v35, %v4690_v18  ;;  %v4693_v50 = vadd.f32 %v12962_v1, %v17544_v40  ;;  %v13014_v2 = vpop.f32.mrf.mxu0  ;;  %v6384_v18 = vld [vmem:[#allocation2 + $0x116] sm:$0xff]  ;;  %v6385_v35 = vld [vmem:[#allocation2 + $0x11e] sm:$0xff]  ;;  %v6387_v1 = vld [vmem:[#allocation2 + $0x12e] sm:$0xff] }
 0x4ea   : > { %v4646_v23 = vpop.f32.mrf.mxu1 }
 0x4eb   : > { %20443 = vst [vmem:[#allocation129_spill] sm:$0xff] %v17704_v31  ;;  %v17707_v9 = vadd.f32 %v13014_v2, %v4693_v50  ;;  %v17709_v55 = vadd.f32 %v4646_v23, %v4351_v11  ;;  %v17711_v32 = vpop.f32.mrf.mxu0  ;;  %v6405_v50 = vpack.c.bf16 %v6385_v35, %v6384_v18 }
 0x4ec   : > { %v13033_v7 = vpop.f32.mrf.mxu1  ;;  %13264 = vmatmul.mubr.bf16.gmra.mxu1 %v6403_v63 }
 0x4ed   : > { %v5324_v43 = vadd.f32 %v13033_v7, %v17553_v0  ;;  %v13085_v57 = vpop.f32.mrf.mxu0  ;;  %13267 = vmatprep.mubr.bf16.mxu1 %v6404_v12 }
 0x4ee   : > { %v17714_v17 = vpop.f32.mrf.mxu1 }
 0x4ef   : > { %v17716_v45 = vadd.f32 %v13085_v57, %v5324_v43  ;;  %v17718_v40 = vpop.f32.mrf.mxu0  ;;  %v6406_v57 = vpack.c.bf16 %v6387_v1, %v6386_v5  ;;  %v4995_v5 = vadd.f32 %v17580_v54, %v17578_v44 }
 0x4f0   : > { %v13034_v15 = vpop.f32.mrf.mxu1 }
 0x4f1   : > { %v5325_v13 = vadd.f32 %v13034_v15, %v17559_v10  ;;  %v13086_v11 = vpop.f32.mrf.mxu0  ;;  %v6407_v15 = vpack.c.bf16 %v6389_v24, %v6388_v60 }
 0x4f2   : > { %v5182_v0 = vpop.f32.mrf.mxu1 }
 0x4f3   : > { %v17723_v2 = vadd.f32 %v13086_v11, %v5325_v13  ;;  %v5323_v23 = vadd.f32 %v5182_v0, %v4991_v28  ;;  %v5514_v43 = vpop.f32.mrf.mxu0 }
 0x4f4   : > { %v13037_v63 = vpop.f32.mrf.mxu1  ;;  %13268 = vmatmul.mubr.bf16.gmra.mxu1 %v6405_v50 }
 0x4f5   : > { %v17725_v12 = vadd.f32 %v5514_v43, %v5323_v23  ;;  %v5328_v7 = vadd.f32 %v13037_v63, %v17569_v38  ;;  %v13089_v31 = vpop.f32.mrf.mxu0  ;;  %13271 = vmatprep.mubr.bf16.mxu1 %v6406_v57  ;;  %v4999_v57 = vadd.f32 %v17594_v8, %v17592_v3 }
 0x4f6   : > { %v17728_v59 = vpop.f32.mrf.mxu1 }
 0x4f7   : > { %v17730_v10 = vadd.f32 %v13089_v31, %v5328_v7  ;;  %v17732_v18 = vpop.f32.mrf.mxu0 }
 0x4f8   : > { %v13038_v35 = vpop.f32.mrf.mxu1 }
 0x4f9   : > { %v5329_v1 = vadd.f32 %v13038_v35, %v17575_v62  ;;  %v13090_v28 = vpop.f32.mrf.mxu0 }
 0x4fa   : > { %v5198_v13 = vpop.f32.mrf.mxu1 }
 0x4fb   : > { %v17737_v38 = vadd.f32 %v13090_v28, %v5329_v1  ;;  %v5327_v11 = vadd.f32 %v5198_v13, %v4995_v5  ;;  %v5530_v0 = vpop.f32.mrf.mxu0 }
 0x4fc   : > { %v13041_v50 = vpop.f32.mrf.mxu1  ;;  %13272 = vmatmul.mubr.bf16.gmra.mxu1 %v6407_v15 }
 0x4fd   : > { %v17739_v23 = vadd.f32 %v5530_v0, %v5327_v11  ;;  %v5332_v31 = vadd.f32 %v13041_v50, %v17583_v41  ;;  %v13093_v43 = vpop.f32.mrf.mxu0  ;;  %13331 = vmatprep.mubr.msk.f32.mxu1 %vm14470_vm8, %v20424_v46 }
 0x4fe   : > { %v17744_v60 = vpop.f32.mrf.mxu1 }
 0x4ff   : > { %v17746_v44 = vadd.f32 %v13093_v43, %v5332_v31  ;;  %v17748_v62 = vpop.f32.mrf.mxu0 }
 0x500   : > { %v13042_v54 = vpop.f32.mrf.mxu1 }
 0x501   : > { %v5333_v63 = vadd.f32 %v13042_v54, %v17589_v56  ;;  %v13094_v7 = vpop.f32.mrf.mxu0  ;;  %v5003_v56 = vadd.f32 %v17614_v26, %v17612_v52 }
 0x502   : > { %v5214_v24 = vpop.f32.mrf.mxu1 }
 0x503   : > { %v17753_v35 = vadd.f32 %v13094_v7, %v5333_v63  ;;  %v5331_v41 = vadd.f32 %v5214_v24, %v4999_v57  ;;  %v5546_v15 = vpop.f32.mrf.mxu0 }
 0x504   : > { %v13045_v5 = vpop.f32.mrf.mxu1 }
 0x505   : > { %v17755_v1 = vadd.f32 %v5546_v15, %v5331_v41  ;;  %v5336_v28 = vadd.f32 %v13045_v5, %v17599_v39  ;;  %v13097_v13 = vpop.f32.mrf.mxu0 }
 0x506   : > { %v17758_v11 = vpop.f32.mrf.mxu1 }
 0x507   : > { %v17760_v0 = vadd.f32 %v13097_v13, %v5336_v28  ;;  %v17762_v50 = vpop.f32.mrf.mxu0 }
 0x508   : > { %v13046_v3 = vpop.f32.mrf.mxu1 }
 0x509   : > { %v5337_v8 = vadd.f32 %v13046_v3, %v17609_v30  ;;  %v13098_v31 = vpop.f32.mrf.mxu0  ;;  %v5007_v30 = vadd.f32 %v17636_v20, %v17634_v14 }
 0x50a   : > { %v5230_v43 = vpop.f32.mrf.mxu1 }
 0x50b   : > { %v17767_v54 = vadd.f32 %v13098_v31, %v5337_v8  ;;  %v5335_v57 = vadd.f32 %v5230_v43, %v5003_v56  ;;  %v5562_v63 = vpop.f32.mrf.mxu0 }
 0x50c   : > { %v13049_v39 = vpop.f32.mrf.mxu1 }
 0x50d   : > { %v17769_v7 = vadd.f32 %v5562_v63, %v5335_v57  ;;  %v5340_v24 = vadd.f32 %v13049_v39, %v17621_v33  ;;  %v13101_v41 = vpop.f32.mrf.mxu0 }
 0x50e   : > { %v17772_v15 = vpop.f32.mrf.mxu1 }
 0x50f   : > { %v17774_v5 = vadd.f32 %v13101_v41, %v5340_v24  ;;  %v17776_v28 = vpop.f32.mrf.mxu0 }
 0x510   : > { %v13050_v52 = vpop.f32.mrf.mxu1 }
 0x511   : > { %v5341_v26 = vadd.f32 %v13050_v52, %v17631_v27  ;;  %v13102_v13 = vpop.f32.mrf.mxu0  ;;  %v5011_v27 = vadd.f32 %v17658_v53, %v17656_v47 }
 0x512   : > { %v5246_v3 = vpop.f32.mrf.mxu1 }
 0x513   : > { %v17781_v56 = vadd.f32 %v13102_v13, %v5341_v26  ;;  %v5339_v8 = vadd.f32 %v5246_v3, %v5007_v30  ;;  %v5578_v31 = vpop.f32.mrf.mxu0 }
 0x514   : > { %v13053_v33 = vpop.f32.mrf.mxu1 }
 0x515   : > { %v17783_v43 = vadd.f32 %v5578_v31, %v5339_v8  ;;  %v5344_v57 = vadd.f32 %v13053_v33, %v17643_v37  ;;  %v13105_v63 = vpop.f32.mrf.mxu0 }
 0x516   : > { %v17786_v39 = vpop.f32.mrf.mxu1 }
 0x517   : > { %v17788_v24 = vadd.f32 %v13105_v63, %v5344_v57  ;;  %v17790_v41 = vpop.f32.mrf.mxu0 }
 0x518   : > { %20444 = vst [vmem:[#allocation153_spill] sm:$0xff] %v17790_v41  ;;  %v13054_v14 = vpop.f32.mrf.mxu1 }
 0x519   : > { %v5345_v20 = vadd.f32 %v13054_v14, %v17653_v49  ;;  %v13106_v52 = vpop.f32.mrf.mxu0  ;;  %v5015_v49 = vadd.f32 %v17680_v34, %v17678_v21 }
 0x51a   : > { %v5262_v30 = vpop.f32.mrf.mxu1 }
 0x51b   : > { %v17795_v26 = vadd.f32 %v13106_v52, %v5345_v20  ;;  %v5343_v13 = vadd.f32 %v5262_v30, %v5011_v27  ;;  %v5594_v3 = vpop.f32.mrf.mxu0 }
 0x51c   : > { %v13057_v37 = vpop.f32.mrf.mxu1 }
 0x51d   : > { %v17797_v8 = vadd.f32 %v5594_v3, %v5343_v13  ;;  %v5348_v31 = vadd.f32 %v13057_v37, %v17665_v36  ;;  %v13109_v33 = vpop.f32.mrf.mxu0 }
 0x51e   : > { %v17800_v57 = vpop.f32.mrf.mxu1 }
 0x51f   : > { %20445 = vst [vmem:[#allocation130_spill] sm:$0xff] %v17800_v57  ;;  %v17802_v63 = vadd.f32 %v13109_v33, %v5348_v31  ;;  %v17804_v46 = vpop.f32.mrf.mxu0 }
 0x520   : > { %20446 = vst [vmem:[#allocation158_spill] sm:$0xff] %v17804_v46  ;;  %v13058_v53 = vpop.f32.mrf.mxu1 }
 0x521   : > { %v5349_v47 = vadd.f32 %v13058_v53, %v17675_v48  ;;  %v13110_v14 = vpop.f32.mrf.mxu0  ;;  %v5019_v48 = vadd.f32 %v17696_v16, %v17694_v58 }
 0x522   : > { %v5278_v27 = vpop.f32.mrf.mxu1 }
 0x523   : > { %v17809_v20 = vadd.f32 %v13110_v14, %v5349_v47  ;;  %v5347_v52 = vadd.f32 %v5278_v27, %v5015_v49  ;;  %v5610_v30 = vpop.f32.mrf.mxu0 }
 0x524   : > { %v13061_v36 = vpop.f32.mrf.mxu1 }
 0x525   : > { %v17811_v13 = vadd.f32 %v5610_v30, %v5347_v52  ;;  %v5352_v3 = vadd.f32 %v13061_v36, %v17685_v51  ;;  %v13113_v37 = vpop.f32.mrf.mxu0 }
 0x526   : > { %v17814_v31 = vpop.f32.mrf.mxu1 }
 0x527   : > { %20447 = vst [vmem:[#allocation131_spill] sm:$0xff] %v17814_v31  ;;  %v17816_v33 = vadd.f32 %v13113_v37, %v5352_v3  ;;  %v17818_v46 = vpop.f32.mrf.mxu0  ;;  %v20454_v31 = vld [vmem:[#allocation51_spill] sm:$0xff] }
 0x528   : > { %20448 = vst [vmem:[#allocation146_spill] sm:$0xff] %v17818_v46  ;;  %v13062_v34 = vpop.f32.mrf.mxu1 }
 0x529   : > { %v5353_v21 = vadd.f32 %v13062_v34, %v17691_v42  ;;  %v13114_v53 = vpop.f32.mrf.mxu0  ;;  %v5023_v42 = vadd.f32 %v17711_v32, %v17709_v55 }
 0x52a   : > { %v5294_v49 = vpop.f32.mrf.mxu1 }
 0x52b   : > { %v17823_v47 = vadd.f32 %v13114_v53, %v5353_v21  ;;  %v5351_v14 = vadd.f32 %v5294_v49, %v5019_v48  ;;  %v5626_v27 = vpop.f32.mrf.mxu0 }
 0x52c   : > { %v13065_v51 = vpop.f32.mrf.mxu1 }
 0x52d   : > { %v17825_v52 = vadd.f32 %v5626_v27, %v5351_v14  ;;  %v5356_v30 = vadd.f32 %v13065_v51, %v17699_v4  ;;  %v13117_v36 = vpop.f32.mrf.mxu0 }
 0x52e   : > { %v17828_v3 = vpop.f32.mrf.mxu1 }
 0x52f   : > { %20449 = vst [vmem:[#allocation133_spill] sm:$0xff] %v17828_v3  ;;  %v17830_v37 = vadd.f32 %v13117_v36, %v5356_v30  ;;  %v17832_v46 = vpop.f32.mrf.mxu0 }
 0x530   : > { %20450 = vst [vmem:[#allocation135_spill] sm:$0xff] %v17832_v46  ;;  %v13066_v58 = vpop.f32.mrf.mxu1 }
 0x531   : > { %v5357_v16 = vadd.f32 %v13066_v58, %v17707_v9  ;;  %v13118_v34 = vpop.f32.mrf.mxu0 }
 0x532   : > { %v5310_v48 = vpop.f32.mrf.mxu1 }
 0x533   : > { %v17837_v21 = vadd.f32 %v13118_v34, %v5357_v16  ;;  %v5355_v53 = vadd.f32 %v5310_v48, %v5023_v42  ;;  %v5642_v49 = vpop.f32.mrf.mxu0 }
 0x534   : > { %v13137_v4 = vpop.f32.mrf.mxu1 }
 0x535   : > { %v17839_v14 = vadd.f32 %v5642_v49, %v5355_v53  ;;  %v5988_v27 = vadd.f32 %v13137_v4, %v17716_v45  ;;  %v13189_v51 = vpop.f32.mrf.mxu0 }
 0x536   : > { %v17842_v30 = vpop.f32.mrf.mxu1 }
 0x537   : > { %v17844_v36 = vadd.f32 %v13189_v51, %v5988_v27  ;;  %v17846_v46 = vpop.f32.mrf.mxu0 }
 0x538   : > { %v13138_v55 = vpop.f32.mrf.mxu1 }
 0x539   : > { %v5989_v9 = vadd.f32 %v13138_v55, %v17723_v2  ;;  %v13190_v32 = vpop.f32.mrf.mxu0 }
 0x53a   : > { %v5846_v58 = vpop.f32.mrf.mxu1 }
 0x53b   : > { %v17849_v16 = vadd.f32 %v13190_v32, %v5989_v9  ;;  %v5987_v42 = vadd.f32 %v5846_v58, %v17725_v12  ;;  %v6178_v34 = vpop.f32.mrf.mxu0 }
 0x53c   : > { %v13141_v48 = vpop.f32.mrf.mxu1 }
 0x53d   : > { %v17852_v53 = vadd.f32 %v6178_v34, %v5987_v42  ;;  %v5992_v45 = vadd.f32 %v13141_v48, %v17730_v10  ;;  %v13193_v49 = vpop.f32.mrf.mxu0 }
 0x53e   : > { %v17855_v4 = vpop.f32.mrf.mxu1 }
 0x53f   : > { %v17857_v27 = vadd.f32 %v13193_v49, %v5992_v45  ;;  %v17859_v51 = vpop.f32.mrf.mxu0 }
 0x540   : > { %v13142_v2 = vpop.f32.mrf.mxu1 }
 0x541   : > { %v5993_v55 = vadd.f32 %v13142_v2, %v17737_v38  ;;  %v13194_v9 = vpop.f32.mrf.mxu0 }
 0x542   : > { %v5862_v32 = vpop.f32.mrf.mxu1 }
 0x543   : > { %v17862_v3 = vadd.f32 %v13194_v9, %v5993_v55  ;;  %v5991_v12 = vadd.f32 %v5862_v32, %v17739_v23  ;;  %v6194_v58 = vpop.f32.mrf.mxu0 }
 0x544   : > { %v13145_v42 = vpop.f32.mrf.mxu1 }
 0x545   : > { %v17865_v34 = vadd.f32 %v6194_v58, %v5991_v12  ;;  %v17868_v10 = vadd.f32 %v13145_v42, %v17746_v44 }
 0x546   : > { %v17870_v48 = vpop.f32.mrf.mxu1 }
 0x548   : > { %v13146_v45 = vpop.f32.mrf.mxu1 }
 0x549   : > { %v17873_v49 = vadd.f32 %v13146_v45, %v17753_v35  ;;  %v17889_v35 = vpop.f32.mrf.mxu0 }
 0x54a   : > { %v5878_v38 = vpop.f32.mrf.mxu1 }
 0x54b   : > { %v17876_v2 = vadd.f32 %v5878_v38, %v17755_v1 }
 0x54c   : > { %v13149_v55 = vpop.f32.mrf.mxu1 }
 0x54d   : > { %v17879_v23 = vadd.f32 %v13149_v55, %v17760_v0  ;;  %v17896_v0 = vpop.f32.mrf.mxu0 }
 0x54e   : > { %v17881_v9 = vpop.f32.mrf.mxu1 }
 0x550   : > { %v13150_v32 = vpop.f32.mrf.mxu1 }
 0x551   : > { %v17884_v44 = vadd.f32 %v13150_v32, %v17767_v54  ;;  %v20453_v32 = vld [vmem:[#allocation53_spill] sm:$0xff] }
 0x552   : > { %v5894_v12 = vpop.f32.mrf.mxu1  ;;  %v11147_v57 = vcombine.high %v20454_v31, %v20453_v32 }
 0x553   : > { %v17887_v58 = vadd.f32 %v5894_v12, %v17769_v7  ;;  %v17906_v12 = vpop.f32.mrf.mxu0 }
 0x554   : > { %v13153_v42 = vpop.f32.mrf.mxu1  ;;  %6831 = vmatprep.mubr.bf16.mxu0 %v11147_v57 }
 0x555   : > { %v17892_v1 = vadd.f32 %v13153_v42, %v17774_v5 }
 0x556   : > { %v17894_v45 = vpop.f32.mrf.mxu1 }
 0x557   : > { %20451 = vst [vmem:[#allocation136_spill] sm:$0xff] %v17892_v1  ;;  %v17913_v1 = vpop.f32.mrf.mxu0 }
 0x558   : > { %v13154_v38 = vpop.f32.mrf.mxu1 }
 0x559   : > { %v17899_v55 = vadd.f32 %v13154_v38, %v17781_v56 }
 0x55a   : > { %v5910_v54 = vpop.f32.mrf.mxu1 }
 0x55b   : > { %20452 = vst [vmem:[#allocation154_spill] sm:$0xff] %v17899_v55  ;;  %v17904_v7 = vadd.f32 %v5910_v54, %v17783_v43  ;;  %v17921_v43 = vpop.f32.mrf.mxu0 }
 0x55c   : > { %v13157_v41 = vpop.f32.mrf.mxu1 }
 0x55d   : > { %v17909_v5 = vadd.f32 %v13157_v41, %v17788_v24  ;;  %v17928_v41 = vpop.f32.mrf.mxu0 }
 0x55e   : > { %v17911_v42 = vpop.f32.mrf.mxu1 }
 0x55f   : > { %20455 = vst [vmem:[#allocation140_spill] sm:$0xff] %v17909_v5 }
 0x560   : > { %v13158_v56 = vpop.f32.mrf.mxu1 }
 0x561   : > { %v17916_v38 = vadd.f32 %v13158_v56, %v17795_v26 }
 0x562   : > { %v5926_v55 = vpop.f32.mrf.mxu1 }
 0x563   : > { %v17919_v31 = vadd.f32 %v5926_v55, %v17797_v8  ;;  %v17936_v8 = vpop.f32.mrf.mxu0 }
 0x564   : > { %v13161_v54 = vpop.f32.mrf.mxu1 }
 0x565   : > { %20456 = vst [vmem:[#allocation143_spill] sm:$0xff] %v17919_v31  ;;  %v17924_v57 = vadd.f32 %v13161_v54, %v17802_v63  ;;  %v17943_v54 = vpop.f32.mrf.mxu0 }
 0x566   : > { %v17926_v24 = vpop.f32.mrf.mxu1 }
 0x567   : > { %20457 = vst [vmem:[#allocation144_spill] sm:$0xff] %v17924_v57  ;;  %20458 = vst [vmem:[#allocation149_spill] sm:$0xff] %v17926_v24 }
 0x568   : > { %v13162_v32 = vpop.f32.mrf.mxu1 }
 0x569   : > { %v17931_v5 = vadd.f32 %v13162_v32, %v17809_v20 }
 0x56a   : > { %v5942_v26 = vpop.f32.mrf.mxu1 }
 0x56b   : > { %v17934_v56 = vadd.f32 %v5942_v26, %v17811_v13  ;;  %v17951_v13 = vpop.f32.mrf.mxu0 }
 0x56c   : > { %v13165_v55 = vpop.f32.mrf.mxu1 }
 0x56d   : > { %20459 = vst [vmem:[#allocation150_spill] sm:$0xff] %v17934_v56  ;;  %v17939_v31 = vadd.f32 %v13165_v55, %v17816_v33  ;;  %v5322_v55 = vadd.f32 %v17714_v17, %v17556_v19  ;;  %v5326_v17 = vadd.f32 %v17728_v59, %v17572_v61 }
 0x56e   : > { %v17941_v63 = vpop.f32.mrf.mxu1 }
 0x56f   : > { %20460 = vst [vmem:[#allocation152_spill] sm:$0xff] %v17939_v31  ;;  %20461 = vst [vmem:[#allocation156_spill] sm:$0xff] %v17941_v63  ;;  %v17960_v31 = vpop.f32.mrf.mxu0 }
 0x570   : > { %v13166_v57 = vpop.f32.mrf.mxu1 }
 0x571   : > { %v17946_v24 = vadd.f32 %v13166_v57, %v17823_v47 }
 0x572   : > { %v5958_v20 = vpop.f32.mrf.mxu1 }
 0x573   : > { %v17949_v32 = vadd.f32 %v5958_v20, %v17825_v52  ;;  %v5654_v52 = vadd.f32 %v17718_v40, %v5322_v55 }
 0x574   : > { %v13169_v26 = vpop.f32.mrf.mxu1 }
 0x575   : > { %20462 = vst [vmem:[#allocation111_spill] sm:$0xff] %v17949_v32  ;;  %v17954_v56 = vadd.f32 %v13169_v26, %v17830_v37  ;;  %v17969_v32 = vpop.f32.mrf.mxu0  ;;  %v5986_v26 = vadd.f32 %v17842_v30, %v5654_v52 }
 0x576   : > { %v17956_v33 = vpop.f32.mrf.mxu1 }
 0x577   : > { %20463 = vst [vmem:[#allocation127_spill] sm:$0xff] %v17954_v56  ;;  %v6318_v40 = vadd.f32 %v17846_v46, %v5986_v26 }
 0x578   : > { %v13170_v63 = vpop.f32.mrf.mxu1 }
 0x579   : > { %v17963_v47 = vadd.f32 %v13170_v63, %v17837_v21  ;;  %v17977_v21 = vpop.f32.mrf.mxu0 }
 0x57a   : > { %v5974_v57 = vpop.f32.mrf.mxu1 }
 0x57b   : > { %v17967_v20 = vadd.f32 %v5974_v57, %v17839_v14  ;;  %v5658_v57 = vadd.f32 %v17732_v18, %v5326_v17  ;;  %v17991_v61 = vpop.f32.mrf.mxu0 }
 0x57c   : > { %v13241_v37 = vpop.f32.mrf.mxu1 }
 0x57d   : > { %20464 = vst [vmem:[#allocation139_spill] sm:$0xff] %v17967_v20  ;;  %v17973_v56 = vadd.f32 %v13241_v37, %v17844_v36  ;;  %v5990_v52 = vadd.f32 %v17855_v4, %v5658_v57  ;;  %v5330_v37 = vadd.f32 %v17744_v60, %v17586_v29  ;;  %v18001_v26 = vpop.f32.mrf.mxu0 }
 0x57e   : > { %v6507_v19 = vpop.f32.mrf.mxu1 }
 0x57f   : > { %v17984_v20 = vadd.f32 %v6507_v19, %v6318_v40  ;;  %v5662_v4 = vadd.f32 %v17748_v62, %v5330_v37  ;;  %v18015_v29 = vpop.f32.mrf.mxu0  ;;  %v5334_v62 = vadd.f32 %v17758_v11, %v17604_v6 }
 0x580   : > { %v13242_v63 = vpop.f32.mrf.mxu1 }
 0x581   : > { %v17981_v14 = vadd.f32 %v13242_v63, %v17849_v16  ;;  %v5994_v57 = vadd.f32 %v17870_v48, %v5662_v4  ;;  %v6327_v48 = vadd.f32 %v17913_v1, %v17876_v2  ;;  %v5666_v6 = vadd.f32 %v17762_v50, %v5334_v62 }
 0x582   : > { %v6510_v55 = vpop.f32.mrf.mxu1  ;;  %v5338_v4 = vadd.f32 %v17772_v15, %v17626_v25  ;;  %v6332_v50 = vadd.f32 %v17921_v43, %v17879_v23 }
 0x583   : > { %v17989_v36 = vadd.f32 %v6510_v55, %v17852_v53  ;;  %v6322_v53 = vadd.f32 %v17859_v51, %v5990_v52  ;;  %v6329_v52 = vadd.f32 %v17906_v12, %v17873_v49  ;;  %v6326_v37 = vadd.f32 %v17896_v0, %v5994_v57 }
 0x584   : > { %v13245_v59 = vpop.f32.mrf.mxu1  ;;  %v5998_v12 = vadd.f32 %v17881_v9, %v5666_v6  ;;  %v6331_v9 = vadd.f32 %v17943_v54, %v17887_v58  ;;  %v5670_v25 = vadd.f32 %v17776_v28, %v5338_v4 }
 0x585   : > { %v17997_v16 = vadd.f32 %v13245_v59, %v17857_v27  ;;  %v6328_v59 = vadd.f32 %v17889_v35, %v17868_v10  ;;  %v20481_v27 = vld [vmem:[#allocation133_spill] sm:$0xff] }
 0x586   : > { %v6523_v18 = vpop.f32.mrf.mxu1  ;;  %v6330_v62 = vadd.f32 %v17928_v41, %v5998_v12  ;;  %v6002_v41 = vadd.f32 %v17894_v45, %v5670_v25  ;;  %v6335_v45 = vadd.f32 %v17977_v21, %v17904_v7  ;;  %v20469_v25 = vld [vmem:[#allocation130_spill] sm:$0xff] }
 0x587   : > { %v18008_v40 = vadd.f32 %v6523_v18, %v6322_v53  ;;  %v20478_v7 = vld [vmem:[#allocation146_spill] sm:$0xff] }
 0x588   : > { %v13246_v19 = vpop.f32.mrf.mxu1 }
 0x589   : > { %v18005_v17 = vadd.f32 %v13246_v19, %v17862_v3 }
 0x58a   : > { %v6526_v63 = vpop.f32.mrf.mxu1 }
 0x58b   : > { %v18013_v55 = vadd.f32 %v6526_v63, %v17865_v34  ;;  %v6258_v34 = vpop.f32.mrf.mxu0 }
 0x58c   : > { %v13249_v60 = vpop.f32.mrf.mxu1 }
 0x58d   : > { %v18029_v19 = vadd.f32 %v13249_v60, %v6328_v59  ;;  %v18040_v35 = vpop.f32.mrf.mxu0  ;;  %v6333_v60 = vadd.f32 %v17936_v8, %v17884_v44 }
 0x58e   : > { %v6539_v51 = vpop.f32.mrf.mxu1 }
 0x58f   : > { %v18034_v11 = vadd.f32 %v6539_v51, %v6326_v37  ;;  %v6271_v57 = vpop.f32.mrf.mxu0  ;;  %v5342_v37 = vadd.f32 %v17786_v39, %v17648_v22 }
 0x590   : > { %v13250_v18 = vpop.f32.mrf.mxu1 }
 0x591   : > { %v18031_v53 = vadd.f32 %v13250_v18, %v6329_v52  ;;  %v13214_v43 = vpop.f32.mrf.mxu0 }
 0x592   : > { %v6542_v63 = vpop.f32.mrf.mxu1 }
 0x593   : > { %v6691_v10 = vpack.c.bf16 %v18031_v53, %v18029_v19  ;;  %v18038_v49 = vadd.f32 %v6542_v63, %v6327_v48  ;;  %v20465_v48 = vld [vmem:[#allocation136_spill] sm:$0xff]  ;;  %v20466_v63 = vld [vmem:[#allocation154_spill] sm:$0xff]  ;;  %v20490_v53 = vpack.c.bf16 %v17981_v14, %v17973_v56  ;;  %v20498_v14 = vld [vmem:[#allocation61_spill] sm:$0xff] }
 0x594   : > { %v13253_v0 = vpop.f32.mrf.mxu1  ;;  %v6336_v28 = vadd.f32 %v17951_v13, %v20465_v48  ;;  %v6337_v6 = vadd.f32 %v17969_v32, %v20466_v63 }
 0x595   : > { %v6690_v2 = vpack.c.bf16 %v18038_v49, %v18034_v11  ;;  %v18054_v59 = vadd.f32 %v13253_v0, %v6332_v50  ;;  %v6274_v0 = vpop.f32.mrf.mxu0  ;;  %v20494_v49 = vpack.c.bf16 %v17989_v36, %v17984_v20  ;;  %v20500_v36 = vld [vmem:[#allocation65_spill] sm:$0xff] }
 0x596   : > { %v6555_v1 = vpop.f32.mrf.mxu1 }
 0x597   : > { %v18059_v15 = vadd.f32 %v6555_v1, %v6330_v62  ;;  %v6334_v1 = vadd.f32 %v17960_v31, %v6002_v41  ;;  %v13217_v62 = vpop.f32.mrf.mxu0  ;;  %v20470_v41 = vld [vmem:[#allocation140_spill] sm:$0xff] }
 0x598   : > { %v13254_v51 = vpop.f32.mrf.mxu1 }
 0x599   : > { %v18056_v52 = vadd.f32 %v13254_v51, %v6333_v60  ;;  %v20467_v51 = vld [vmem:[#allocation153_spill] sm:$0xff]  ;;  %v6287_v48 = vpop.f32.mrf.mxu0 }
 0x59a   : > { %v6558_v18 = vpop.f32.mrf.mxu1  ;;  %v5674_v22 = vadd.f32 %v20467_v51, %v5342_v37  ;;  %v6341_v37 = vadd.f32 %v18015_v29, %v17916_v38 }
 0x59b   : > { %v6693_v23 = vpack.c.bf16 %v18056_v52, %v18054_v59  ;;  %v18063_v44 = vadd.f32 %v6558_v18, %v6331_v9  ;;  %v20468_v18 = vld [vmem:[#allocation145_spill] sm:$0xff]  ;;  %v13218_v38 = vpop.f32.mrf.mxu0 }
 0x59c   : > { %v13257_v8 = vpop.f32.mrf.mxu1  ;;  %v6006_v31 = vadd.f32 %v17911_v42, %v5674_v22 }
 0x59d   : > { %v6692_v58 = vpack.c.bf16 %v18063_v44, %v18059_v15  ;;  %v18077_v4 = vadd.f32 %v13257_v8, %v6336_v28  ;;  %v5346_v8 = vadd.f32 %v20469_v25, %v20468_v18  ;;  %v20473_v25 = vld [vmem:[#allocation149_spill] sm:$0xff]  ;;  %v20497_v15 = vmov 0.0  }
 0x59e   : > { %v6571_v54 = vpop.f32.mrf.mxu1  ;;  %v6338_v63 = vadd.f32 %v18001_v26, %v6006_v31  ;;  %v20474_v31 = vld [vmem:[#allocation138_spill] sm:$0xff] }
 0x59f   : > { %v18082_v39 = vadd.f32 %v6571_v54, %v6334_v1  ;;  %v6340_v54 = vadd.f32 %v17991_v61, %v20470_v41  ;;  %v20475_v41 = vld [vmem:[#allocation131_spill] sm:$0xff] }
 0x5a0   : > { %v13258_v12 = vpop.f32.mrf.mxu1 }
 0x5a1   : > { %v18079_v50 = vadd.f32 %v13258_v12, %v6337_v6  ;;  %v20471_v6 = vld [vmem:[#allocation143_spill] sm:$0xff] }
 0x5a2   : > { %v6574_v60 = vpop.f32.mrf.mxu1  ;;  %v6339_v12 = vadd.f32 %v6258_v34, %v20471_v6 }
 0x5a3   : > { %v18086_v32 = vadd.f32 %v6574_v60, %v6335_v45  ;;  %v20472_v60 = vld [vmem:[#allocation158_spill] sm:$0xff]  ;;  %v20489_v19 = vpack.c.bf16 %v18079_v50, %v18077_v4 }
 0x5a4   : > { %v13261_v9 = vpop.f32.mrf.mxu1  ;;  %v5678_v51 = vadd.f32 %v20472_v60, %v5346_v8  ;;  %v6345_v8 = vadd.f32 %v13214_v43, %v17931_v5  ;;  %v20480_v43 = vld [vmem:[#allocation129_spill] sm:$0xff] }
 0x5a5   : > { %v18099_v42 = vadd.f32 %v13261_v9, %v6340_v54  ;;  %v5350_v54 = vadd.f32 %v20475_v41, %v20474_v31  ;;  %v20479_v41 = vld [vmem:[#allocation156_spill] sm:$0xff]  ;;  %v20491_v11 = vpack.c.bf16 %v18086_v32, %v18082_v39  ;;  %v20502_v39 = vld [vmem:[#allocation69_spill] sm:$0xff]  ;;  %v20503_v32 = vld [vmem:[#allocation67_spill] sm:$0xff] }
 0x5a6   : > { %v6587_v21 = vpop.f32.mrf.mxu1  ;;  %v6010_v26 = vadd.f32 %v20473_v25, %v5678_v51 }
 0x5a7   : > { %v18104_v22 = vadd.f32 %v6587_v21, %v6338_v63 }
 0x5a8   : > { %v13262_v28 = vpop.f32.mrf.mxu1  ;;  %v6342_v6 = vadd.f32 %v6271_v57, %v6010_v26  ;;  %v5354_v57 = vadd.f32 %v20481_v27, %v20480_v43  ;;  %v20482_v26 = vld [vmem:[#allocation152_spill] sm:$0xff] }
 0x5a9   : > { %v18101_v1 = vadd.f32 %v13262_v28, %v6341_v37  ;;  %v20476_v37 = vld [vmem:[#allocation144_spill] sm:$0xff]  ;;  %v6290_v28 = vpop.f32.mrf.mxu0 }
 0x5aa   : > { %v6590_v45 = vpop.f32.mrf.mxu1  ;;  %v6344_v21 = vadd.f32 %v18040_v35, %v20476_v37 }
 0x5ab   : > { %v6697_v61 = vpack.c.bf16 %v18101_v1, %v18099_v42  ;;  %v18108_v18 = vadd.f32 %v6590_v45, %v6339_v12  ;;  %v20477_v12 = vld [vmem:[#allocation150_spill] sm:$0xff]  ;;  %v13221_v51 = vpop.f32.mrf.mxu0  ;;  %v11159_v42 = vcombine.high %v20503_v32, %v20502_v39  ;;  %v11158_v1 = vcombine.low %v20503_v32, %v20502_v39 }
 0x5ac   : > { %v13265_v29 = vpop.f32.mrf.mxu1  ;;  %v6343_v45 = vadd.f32 %v6274_v0, %v20477_v12  ;;  %v6348_v0 = vadd.f32 %v13217_v62, %v20482_v26  ;;  %v20484_v12 = vld [vmem:[#allocation135_spill] sm:$0xff] }
 0x5ad   : > { %v6696_v34 = vpack.c.bf16 %v18108_v18, %v18104_v22  ;;  %v6676_v60 = vadd.f32 %v13265_v29, %v6344_v21  ;;  %v5682_v22 = vadd.f32 %v20478_v7, %v5350_v54  ;;  %v6303_v37 = vpop.f32.mrf.mxu0  ;;  %v6349_v29 = vadd.f32 %v13218_v38, %v17946_v24 }
 0x5ae   : > { %v6603_v9 = vpop.f32.mrf.mxu1 }
 0x5af   : > { %v6674_v18 = vadd.f32 %v6603_v9, %v6342_v6  ;;  %v6014_v3 = vadd.f32 %v20479_v41, %v5682_v22  ;;  %v13222_v54 = vpop.f32.mrf.mxu0  ;;  %v20486_v41 = vld [vmem:[#allocation139_spill] sm:$0xff] }
 0x5b0   : > { %v13266_v63 = vpop.f32.mrf.mxu1  ;;  %v6353_v38 = vadd.f32 %v13222_v54, %v17963_v47  ;;  %v20487_v47 = vpack.c.bf16 %v18005_v17, %v17997_v16  ;;  %v20493_v16 = vld [vmem:[#allocation51_spill] sm:$0xff]  ;;  %v20514_v54 = vld [vmem:[#allocation62_spill] sm:$0xff] }
 0x5b1   : > { %v6677_v46 = vadd.f32 %v13266_v63, %v6345_v8  ;;  %v6346_v8 = vadd.f32 %v6287_v48, %v6014_v3  ;;  %v20483_v63 = vld [vmem:[#allocation111_spill] sm:$0xff]  ;;  %v6306_v62 = vpop.f32.mrf.mxu0 }
 0x5b2   : > { %v6606_v25 = vpop.f32.mrf.mxu1  ;;  %v6347_v7 = vadd.f32 %v6290_v28, %v20483_v63  ;;  %v20485_v3 = vld [vmem:[#allocation127_spill] sm:$0xff]  ;;  %v20510_v63 = vld [vmem:[#allocation100_spill] sm:$0xff] }
 0x5b3   : > { %v6699_v30 = vpack.c.bf16 %v6677_v46, %v6676_v60  ;;  %v6675_v13 = vadd.f32 %v6606_v25, %v6343_v45  ;;  %v5686_v45 = vadd.f32 %v20484_v12, %v5354_v57  ;;  %v6352_v48 = vadd.f32 %v13221_v51, %v20485_v3  ;;  %v20524_v3 = vld [vmem:[#allocation90_spill] sm:$0xff] }
 0x5b4   : > { %v13269_v31 = vpop.f32.mrf.mxu1 }
 0x5b5   : > { %v6698_v35 = vpack.c.bf16 %v6675_v13, %v6674_v18  ;;  %v6680_v9 = vadd.f32 %v13269_v31, %v6348_v0  ;;  %v6018_v27 = vadd.f32 %v17956_v33, %v5686_v45  ;;  %v20516_v45 = vld [vmem:[#allocation96_spill] sm:$0xff] }
 0x5b6   : > { %v6619_v5 = vpop.f32.mrf.mxu1 }
 0x5b7   : > { %v6678_v13 = vadd.f32 %v6619_v5, %v6346_v8  ;;  %v6350_v31 = vadd.f32 %v6303_v37, %v6018_v27  ;;  %v6351_v5 = vadd.f32 %v6306_v62, %v20486_v41  ;;  %v20507_v37 = vld [vmem:[#allocation101_spill] sm:$0xff]  ;;  %v20521_v27 = vld [vmem:[#allocation64_spill] sm:$0xff] }
 0x5b8   : > { %v13270_v21 = vpop.f32.mrf.mxu1  ;;  %v20522_v62 = vld [vmem:[#allocation92_spill] sm:$0xff] }
 0x5b9   : > { %v6681_v46 = vadd.f32 %v13270_v21, %v6349_v29  ;;  %v20508_v29 = vld [vmem:[#allocation58_spill] sm:$0xff]  ;;  %v20509_v21 = vld [vmem:[#allocation56_spill] sm:$0xff] }
 0x5ba   : > { %v6622_v6 = vpop.f32.mrf.mxu1  ;;  %v11151_v8 = vcombine.low %v20509_v21, %v20508_v29  ;;  %v20528_v41 = vld [vmem:[#allocation88_spill] sm:$0xff] }
 0x5bb   : > { %v6701_v60 = vpack.c.bf16 %v6681_v46, %v6680_v9  ;;  %v6679_v25 = vadd.f32 %v6622_v6, %v6347_v7  ;;  %v20511_v7 = vld [vmem:[#allocation99_spill] sm:$0xff]  ;;  %v20512_v9 = vld [vmem:[#allocation98_spill] sm:$0xff]  ;;  %v20513_v46 = vld [vmem:[#allocation97_spill] sm:$0xff] }
 0x5bc   : > { %v13273_v22 = vpop.f32.mrf.mxu1  ;;  %v20515_v6 = vld [vmem:[#allocation60_spill] sm:$0xff] }
 0x5bd   : > { %v6700_v18 = vpack.c.bf16 %v6679_v25, %v6678_v13  ;;  %12006 = vmatprep.subr.bf16.mxu0 %v6701_v60  ;;  %v6684_v43 = vadd.f32 %v13273_v22, %v6352_v48  ;;  %v11154_v12 = vcombine.low %v20515_v6, %v20514_v54  ;;  %v20517_v13 = vld [vmem:[#allocation95_spill] sm:$0xff]  ;;  %v20518_v60 = vld [vmem:[#allocation94_spill] sm:$0xff]  ;;  %v20519_v25 = vld [vmem:[#allocation93_spill] sm:$0xff] }
 0x5be   : > { %v6635_v24 = vpop.f32.mrf.mxu1  ;;  %12007 = vmatpush3.bf16.msra.mxu0 %v6693_v23  ;;  %v20499_v23 = vld [vmem:[#allocation59_spill] sm:$0xff]  ;;  %v20520_v22 = vld [vmem:[#allocation66_spill] sm:$0xff]  ;;  %v20525_v48 = vld [vmem:[#allocation89_spill] sm:$0xff] }
 0x5bf   : > { %12008 = vmatprep.subr.bf16.mxu0 %v6700_v18  ;;  %v6682_v26 = vadd.f32 %v6635_v24, %v6350_v31  ;;  %v11153_v44 = vcombine.high %v20499_v23, %v20498_v14  ;;  %v11152_v20 = vcombine.low %v20499_v23, %v20498_v14  ;;  %v11157_v18 = vcombine.low %v20521_v27, %v20520_v22  ;;  %v20523_v24 = vld [vmem:[#allocation91_spill] sm:$0xff] }
 0x5c0   : > { %v13274_v28 = vpop.f32.mrf.mxu1 }
 0x5c1   : > { %v6685_v57 = vadd.f32 %v13274_v28, %v6353_v38  ;;  %v20526_v38 = vld [vmem:[#allocation70_spill] sm:$0xff]  ;;  %v20527_v28 = vld [vmem:[#allocation68_spill] sm:$0xff] }
 0x5c2   : > { %v6638_v33 = vpop.f32.mrf.mxu1  ;;  %12009 = vmatpush3.bf16.msra.mxu0 %v6692_v58  ;;  %v20501_v58 = vld [vmem:[#allocation63_spill] sm:$0xff]  ;;  %v11160_v31 = vcombine.low %v20527_v28, %v20526_v38 }
 0x5c3   : > { %v6703_v0 = vpack.c.bf16 %v6685_v57, %v6684_v43  ;;  %v6683_v59 = vadd.f32 %v6638_v33, %v6351_v5  ;;  %12010 = vmatprep.subr.bf16.mxu0 %v6699_v30  ;;  %v20488_v30 = vpack.c.bf16 %v18013_v55, %v18008_v40  ;;  %v20495_v40 = vld [vmem:[#allocation57_spill] sm:$0xff]  ;;  %v20496_v55 = vld [vmem:[#allocation55_spill] sm:$0xff]  ;;  %v11156_v4 = vcombine.high %v20501_v58, %v20500_v36 }
 0x5c4   : > { %v11149_v56 = vcombine.low %v20496_v55, %v20495_v40  ;;  %v11155_v50 = vcombine.low %v20501_v58, %v20500_v36  ;;  %v20529_v5 = vld [vmem:[#allocation87_spill] sm:$0xff] }
 0x5c5   : > { %v6702_v52 = vpack.c.bf16 %v6683_v59, %v6682_v26 }
 0x5c6   : > { %12011 = vmatpush3.bf16.msra.mxu0 %v6691_v10  ;;  %v20492_v10 = vld [vmem:[#allocation53_spill] sm:$0xff] }
 0x5c7   : > { %12012 = vmatprep.subr.bf16.mxu0 %v6698_v35  ;;  %v11146_v17 = vcombine.low %v20493_v16, %v20492_v10  ;;  %v20506_v35 = vld [vmem:[#allocation102_spill] sm:$0xff] }
 0x5ca   : > { %12013 = vmatpush3.bf16.msra.mxu0 %v6690_v2  ;;  %v11150_v2 = vcombine.high %v20496_v55, %v20495_v40 }
 0x5cb   : > { %12014 = vmatprep.subr.bf16.mxu0 %v6697_v61  ;;  %v20504_v61 = vld [vmem:[#allocation54_spill] sm:$0xff] }
 0x5ce   : > { %12015 = vmatpush3.bf16.msra.mxu0 %v20487_v47 }
 0x5cf   : > { %12016 = vmatprep.subr.bf16.mxu0 %v6696_v34  ;;  %v20505_v34 = vld [vmem:[#allocation52_spill] sm:$0xff] }
 0x5d0   : > { %v11148_v51 = vcombine.low %v20505_v34, %v20504_v61 }
 0x5d2   : > { %12017 = vmatpush3.bf16.msra.mxu0 %v20488_v30 }
 0x5d3   : > { %12018 = vmatprep.subr.bf16.mxu0 %v20489_v19 }
 0x5d6   : > { %12019 = vmatpush3.bf16.msra.mxu0 %v20490_v53 }
 0x5d7   : > { %12020 = vmatprep.subr.bf16.mxu0 %v20491_v11 }
 0x5da   : > { %12021 = vmatpush3.bf16.msra.mxu0 %v20494_v49 }
 0x5db   : > { %13275 = vmatprep.subr.bf16.mxu0 %v20497_v15 }
 0x5dd   : > { %6832 = vmatmul.mubr.bf16.vlgmr.msra.gmra.mxu0 %v11146_v17 }
 0x5de   : > { %13276 = vmatpush3.bf16.msra.mxu0 %v6703_v0  ;;  %6839 = vmatprep.mubr.bf16.mxu0 %v11150_v2 }
 0x5df   : > { %13277 = vmatprep.subr.bf16.mxu0 %v20497_v15 }
 0x5e2   : > { %13278 = vmatpush3.bf16.msra.mxu0 %v6702_v52 }
 0x5e3   : > { %13334 = vmatprep.subr.mxu0 %v20497_v15 }
 0x5e5   : > { %6840 = vmatmul.mubr.bf16.gmra.mxu0 %v11149_v56 }
 0x5e6   : > { %6847 = vmatprep.mubr.bf16.mxu0 %v11153_v44 }
 0x5ed   : > { %6848 = vmatmul.mubr.bf16.gmra.mxu0 %v11152_v20 }
 0x5ee   : > { %6855 = vmatprep.mubr.bf16.mxu0 %v11156_v4 }
 0x5f5   : > { %6856 = vmatmul.mubr.bf16.gmra.mxu0 %v11155_v50 }
 0x5f6   : > { %6863 = vmatprep.mubr.bf16.mxu0 %v11159_v42  ;;  %v20530_v42 = vld [vmem:[#allocation157_spill] sm:$0xff] }
 0x5fd   : > { %6864 = vmatmul.mubr.bf16.gmra.mxu0 %v11158_v1  ;;  %v19933_v1 = vsub.s32 1, %v20530_v42 }
 0x5fe   : > { %13279 = vmatprep.mubr.msk.bf16.mxu0 %vm14470_vm8, %v20497_v15 }
 0x605   : > { %13280 = vmatmul.mubr.msk.bf16.vlgmr.msra.gmra.mxu0 %vm6783_vm9, %v11148_v51 }
 0x606   : > { %13283 = vmatprep.mubr.msk.bf16.mxu0 %vm14470_vm8, %v20497_v15  ;;  %13335 = vmatpush3.msra.mxu0 %v20506_v35 }
 0x607   : > { %13336 = vmatprep.subr.mxu0 %v20497_v15 }
 0x608   : > { %13337 = vmatpush3.msra.mxu0 %v20507_v37 }
 0x609   : > { %13338 = vmatprep.subr.mxu0 %v20497_v15 }
 0x60a   : > { %13339 = vmatpush3.msra.mxu0 %v20510_v63 }
 0x60b   : > { %13340 = vmatprep.subr.mxu0 %v20497_v15 }
 0x60c   : > { %13341 = vmatpush3.msra.mxu0 %v20511_v7 }
 0x60d   : > { %13284 = vmatmul.mubr.msk.bf16.gmra.mxu0 %vm6783_vm9, %v11151_v8  ;;  %13342 = vmatprep.subr.mxu0 %v20497_v15  ;;  %v20531_v8 = vld [vmem:[#allocation103_spill] sm:$0xff] }
 0x60e   : > { %13287 = vmatprep.mubr.msk.bf16.mxu0 %vm14470_vm8, %v20497_v15  ;;  %13343 = vmatpush3.msra.mxu0 %v20512_v9  ;;  %v18252_v54 = vrot.slane %v20531_v8, %v19933_v1 }
 0x60f   : > { %13344 = vmatprep.subr.mxu0 %v20497_v15 }
 0x610   : > { %13345 = vmatpush3.msra.mxu0 %v20513_v46 }
 0x611   : > { %13346 = vmatprep.subr.mxu0 %v20497_v15 }
 0x612   : > { %13347 = vmatpush3.msra.mxu0 %v20516_v45 }
 0x613   : > { %13348 = vmatprep.subr.mxu0 %v20497_v15 }
 0x614   : > { %13349 = vmatpush3.msra.mxu0 %v20517_v13 }
 0x615   : > { %13288 = vmatmul.mubr.msk.bf16.gmra.mxu0 %vm6783_vm9, %v11154_v12  ;;  %13350 = vmatprep.subr.mxu0 %v20497_v15 }
 0x616   : > { %13291 = vmatprep.mubr.msk.bf16.mxu0 %vm14470_vm8, %v20497_v15  ;;  %13351 = vmatpush3.msra.mxu0 %v20518_v60 }
 0x617   : > { %13352 = vmatprep.subr.mxu0 %v20497_v15 }
 0x618   : > { %13353 = vmatpush3.msra.mxu0 %v20519_v25 }
 0x619   : > { %13354 = vmatprep.subr.mxu0 %v20497_v15 }
 0x61a   : > { %13355 = vmatpush3.msra.mxu0 %v20522_v62 }
 0x61b   : > { %13356 = vmatprep.subr.mxu0 %v20497_v15 }
 0x61c   : > { %13357 = vmatpush3.msra.mxu0 %v20523_v24 }
 0x61d   : > { %13292 = vmatmul.mubr.msk.bf16.gmra.mxu0 %vm6783_vm9, %v11157_v18  ;;  %13358 = vmatprep.subr.mxu0 %v20497_v15  ;;  %v18255_v18 = vpop.permute.xlu0 %6957 }
 0x61e   : > { %13295 = vmatprep.mubr.msk.bf16.mxu0 %vm14470_vm8, %v20497_v15  ;;  %13359 = vmatpush3.msra.mxu0 %v20524_v3 }
 0x61f   : > { %13360 = vmatprep.subr.mxu0 %v20497_v15 }
 0x620   : > { %13361 = vmatpush3.msra.mxu0 %v20525_v48 }
 0x621   : > { %13362 = vmatprep.subr.mxu0 %v20497_v15 }
 0x622   : > { %13363 = vmatpush3.msra.mxu0 %v20528_v41 }
 0x623   : > { %13364 = vmatprep.subr.mxu0 %v20497_v15 }
 0x624   : > { %13365 = vmatpush3.msra.mxu0 %v20529_v5 }
 0x625   : > { %13296 = vmatmul.mubr.msk.bf16.gmra.mxu0 %vm6783_vm9, %v11160_v31  ;;  %13405 = vmatprep.subr.bf16.mxu0 %v20497_v15 }
 0x626   : > { %13366 = vmatprep.mubr.msk.f32.mxu0 %vm14470_vm8, %v20497_v15 }
 0x69d   : > { %v12022_v43 = vpop.f32.mrf.mxu0 }
 0x69f   : > { %v12023_v57 = vpop.f32.mrf.mxu0 }
 0x6a0   : > { %v12024_v29 = vadd.f32 %v12023_v57, %v12022_v43 }
 0x6a1   : > { %v12025_v33 = vpop.f32.mrf.mxu0 }
 0x6a2   : > { %v6834_v28 = vadd.f32 %v12024_v29, %v18252_v54 }
 0x6a3   : > { %v12026_v26 = vpop.f32.mrf.mxu0 }
 0x6a4   : > { %v12027_v34 = vadd.f32 %v12026_v26, %v12025_v33  ;;  %v18261_v33 = vpop.permute.xlu1 %6962 }
 0x6a5   : > { %v12028_v0 = vpop.f32.mrf.mxu0 }
 0x6a6   : > { %v6837_v22 = vadd.f32 %v12027_v34, %v18252_v54  ;;  %v18272_v34 = vpop.permute.xlu0 %6967 }
 0x6a7   : > { %v12029_v59 = vpop.f32.mrf.mxu0 }
 0x6a8   : > { %v12030_v21 = vadd.f32 %v12029_v59, %v12028_v0 }
 0x6a9   : > { %v12031_v52 = vpop.f32.mrf.mxu0 }
 0x6aa   : > { %v6842_v43 = vadd.f32 %v12030_v21, %v18252_v54 }
 0x6ab   : > { %v12032_v47 = vpop.f32.mrf.mxu0 }
 0x6ac   : > { %v12033_v12 = vadd.f32 %v12032_v47, %v12031_v52 }
 0x6ad   : > { %v12034_v30 = vpop.f32.mrf.mxu0 }
 0x6ae   : > { %v6845_v59 = vadd.f32 %v12033_v12, %v18252_v54 }
 0x6af   : > { %v12035_v19 = vpop.f32.mrf.mxu0 }
 0x6b0   : > { %v12036_v38 = vadd.f32 %v12035_v19, %v12034_v30 }
 0x6b1   : > { %v12037_v53 = vpop.f32.mrf.mxu0 }
 0x6b2   : > { %v6850_v19 = vadd.f32 %v12036_v38, %v18252_v54 }
 0x6b3   : > { %v12038_v11 = vpop.f32.mrf.mxu0 }
 0x6b4   : > { %v12039_v47 = vadd.f32 %v12038_v11, %v12037_v53  ;;  %v18279_v53 = vpop.permute.xlu1 %6972 }
 0x6b5   : > { %v12040_v10 = vpop.f32.mrf.mxu0 }
 0x6b6   : > { %v6853_v12 = vadd.f32 %v12039_v47, %v18252_v54 }
 0x6b7   : > { %v12041_v16 = vpop.f32.mrf.mxu0 }
 0x6b9   : > { %v12043_v17 = vpop.f32.mrf.mxu0 }
 0x6bb   : > { %v12044_v49 = vpop.f32.mrf.mxu0 }
 0x6bd   : > { %v12046_v2 = vpop.f32.mrf.mxu0 }
 0x6bf   : > { %v12047_v56 = vpop.f32.mrf.mxu0 }
 0x6c1   : > { %v18244_v44 = vpop.f32.mrf.mxu0 }
 0x6c3   : > { %v18246_v20 = vpop.f32.mrf.mxu0 }
 0x6c5   : > { %v6906_v4 = vpop.f32.mrf.mxu0 }
 0x6c6   : > { %v18263_v26 = vadd.f32 %v6906_v4, %v6834_v28 }
 0x6c7   : > { %v13281_v50 = vpop.f32.mrf.mxu0 }
 0x6c9   : > { %v6909_v61 = vpop.f32.mrf.mxu0 }
 0x6ca   : > { %v18258_v31 = vadd.f32 %v6909_v61, %v6837_v22 }
 0x6cb   : > { %v13282_v51 = vpop.f32.mrf.mxu0 }
 0x6cc   : > { %v19930_v50 = vmax.f32 %v18258_v31, 0.0  ;;  %v19931_v51 = vmax.f32 %v18263_v26, 0.0 }
 0x6cd   : > { %v6914_v6 = vpop.f32.mrf.mxu0 }
 0x6ce   : > { %v18265_v0 = vadd.f32 %v6914_v6, %v6842_v43  ;;  %v12042_v6 = vadd.f32 %v12041_v16, %v12040_v10  ;;  %v7006_v11 = vmul.f32 %v18261_v33, %v19930_v50  ;;  %v7005_v28 = vmul.f32 %v18255_v18, %v19931_v51 }
 0x6cf   : > { %v13285_v27 = vpop.f32.mrf.mxu0 }
 0x6d0   : > { %v19929_v4 = vmax.f32 %v18265_v0, 0.0  ;;  %v7032_v47 = vmul.f32 %v7006_v11, %v7006_v11  ;;  %v7031_v50 = vmul.f32 %v7005_v28, %v7005_v28 }
 0x6d1   : > { %v6917_v57 = vpop.f32.mrf.mxu0 }
 0x6d2   : > { %v18269_v30 = vadd.f32 %v6917_v57, %v6845_v59  ;;  %v7007_v10 = vmul.f32 %v18272_v34, %v19929_v4  ;;  %v12045_v57 = vadd.f32 %v12044_v49, %v12043_v17  ;;  %v6858_v59 = vadd.f32 %v12042_v6, %v18252_v54 }
 0x6d3   : > { %v13286_v52 = vpop.f32.mrf.mxu0  ;;  %v12048_v4 = vadd.f32 %v12047_v56, %v12046_v2  ;;  %v7015_v6 = vadd.f32 %v7006_v11, %v7005_v28  ;;  %v7041_v1 = vadd.f32 %v7032_v47, %v7031_v50  ;;  %v12051_v28 = vadd.f32 %v18246_v20, %v18244_v44 }
 0x6d4   : > { %v19932_v22 = vmax.f32 %v18269_v30, 0.0  ;;  %v18295_v52 = vpop.permute.xlu0 %6977 }
 0x6d5   : > { %v6922_v61 = vpop.f32.mrf.mxu0  ;;  %v7016_v2 = vadd.f32 %v7015_v6, %v7007_v10  ;;  %v6866_v11 = vadd.f32 %v12048_v4, %v18252_v54 }
 0x6d6   : > { %v18276_v29 = vadd.f32 %v6922_v61, %v6850_v19  ;;  %v7008_v19 = vmul.f32 %v18279_v53, %v19932_v22  ;;  %v6861_v22 = vadd.f32 %v12045_v57, %v18252_v54 }
 0x6d7   : > { %v13289_v21 = vpop.f32.mrf.mxu0 }
 0x6d8   : > { %v19937_v16 = vmax.f32 %v18276_v29, 0.0  ;;  %v7034_v61 = vmul.f32 %v7008_v19, %v7008_v19  ;;  %v18315_v23 = vpop.permute.xlu0 %6987  ;;  %v7017_v50 = vadd.f32 %v7016_v2, %v7008_v19 }
 0x6d9   : > { %v6925_v27 = vpop.f32.mrf.mxu0 }
 0x6da   : > { %v18285_v38 = vadd.f32 %v6925_v27, %v6853_v12  ;;  %v18303_v27 = vpop.permute.xlu1 %6982  ;;  %v7009_v17 = vmul.f32 %v18295_v52, %v19937_v16 }
 0x6db   : > { %v13290_v43 = vpop.f32.mrf.mxu0 }
 0x6dc   : > { %v7033_v43 = vmul.f32 %v7007_v10, %v7007_v10  ;;  %v7035_v16 = vmul.f32 %v7009_v17, %v7009_v17 }
 0x6dd   : > { %v6930_v21 = vpop.f32.mrf.mxu0 }
 0x6de   : > { %v18301_v12 = vadd.f32 %v6930_v21, %v6858_v59  ;;  %v20532_v59 = vmax.f32 %v18285_v38, 0.0  ;;  %v7042_v32 = vadd.f32 %v7041_v1, %v7033_v43  ;;  %v18324_v10 = vpop.permute.xlu1 %6992  ;;  %v7018_v1 = vadd.f32 %v7017_v50, %v7009_v17 }
 0x6df   : > { %v13293_v49 = vpop.f32.mrf.mxu0 }
 0x6e0   : > { %v19938_v51 = vmax.f32 %v18301_v12, 0.0  ;;  %v7010_v21 = vmul.f32 %v18303_v27, %v20532_v59 }
 0x6e1   : > { %v6933_v14 = vpop.f32.mrf.mxu0 }
 0x6e2   : > { %v18313_v56 = vadd.f32 %v6933_v14, %v6861_v22  ;;  %v7011_v57 = vmul.f32 %v18315_v23, %v19938_v51  ;;  %v7043_v14 = vadd.f32 %v7042_v32, %v7034_v61  ;;  %v7036_v22 = vmul.f32 %v7010_v21, %v7010_v21  ;;  %v18333_v51 = vpop.permute.xlu0 %6997 }
 0x6e3   : > { %v13294_v49 = vpop.f32.mrf.mxu0  ;;  %v7019_v19 = vadd.f32 %v7018_v1, %v7010_v21 }
 0x6e4   : > { %v19941_v47 = vmax.f32 %v18313_v56, 0.0  ;;  %v7044_v44 = vadd.f32 %v7043_v14, %v7035_v16  ;;  %v7037_v59 = vmul.f32 %v7011_v57, %v7011_v57  ;;  %v6869_v49 = vadd.f32 %v12051_v28, %v18252_v54 }
 0x6e5   : > { %v6938_v6 = vpop.f32.mrf.mxu0  ;;  %v7020_v36 = vadd.f32 %v7019_v19, %v7011_v57 }
 0x6e6   : > { %v7012_v4 = vmul.f32 %v18324_v10, %v19941_v47  ;;  %v18329_v43 = vadd.f32 %v6938_v6, %v6866_v11  ;;  %v7045_v32 = vadd.f32 %v7044_v44, %v7036_v22 }
 0x6e7   : > { %v13297_v20 = vpop.f32.mrf.mxu0 }
 0x6e8   : > { %v19940_v2 = vmax.f32 %v18329_v43, 0.0  ;;  %v7038_v17 = vmul.f32 %v7012_v4, %v7012_v4  ;;  %v7046_v14 = vadd.f32 %v7045_v32, %v7037_v59  ;;  %v7021_v21 = vadd.f32 %v7020_v36, %v7012_v4  ;;  %v18341_v20 = vpop.permute.xlu1 %7002 }
 0x6e9   : > { %v6941_v61 = vpop.f32.mrf.mxu0 }
 0x6ea   : > { %v7013_v50 = vmul.f32 %v18333_v51, %v19940_v2  ;;  %v18338_v11 = vadd.f32 %v6941_v61, %v6869_v49  ;;  %v7047_v54 = vadd.f32 %v7046_v14, %v7038_v17 }
 0x6eb   : > { %v13298_v16 = vpop.f32.mrf.mxu0 }
 0x6ec   : > { %v7039_v6 = vmul.f32 %v7013_v50, %v7013_v50  ;;  %v6954_v1 = vmax.f32 %v18338_v11, 0.0  ;;  %v7022_v28 = vadd.f32 %v7021_v21, %v7013_v50 }
 0x6ee   : > { %v7014_v57 = vmul.f32 %v18341_v20, %v6954_v1  ;;  %v7048_v22 = vadd.f32 %v7047_v54, %v7039_v6  ;;  %v14282_v6 = vld [vmem:[%s19778_s3 + $0x68] sm:$0xff]  }
 0x6ef   : > { %v14283_v54 = vld [vmem:[%s19778_s3 + $0x28] sm:$0xff]  }
 0x6f0   : > { %v7023_v44 = vadd.f32 %v7022_v28, %v7014_v57  ;;  %v7040_v19 = vmul.f32 %v7014_v57, %v7014_v57  ;;  %v14284_v28 = vld [vmem:[%s19778_s3 + $0x60] sm:$0xff]  }
 0x6f1   : > { %v14285_v57 = vld [vmem:[%s19778_s3 + $0x20] sm:$0xff]  }
 0x6f2   : > { %v7024_v2 = vrot.slane %v7023_v44, 4  ;;  %v7049_v49 = vadd.f32 %v7048_v22, %v7040_v19  ;;  %v14286_v22 = vld [vmem:[%s19778_s3 + $0x58] sm:$0xff]   ;;  %v14288_v19 = vld [vmem:[%s19778_s3 + $0x50] sm:$0xff]  }
 0x6f4   : > { %v7025_v61 = vadd.f32 %v7024_v2, %v7023_v44  ;;  %v7050_v16 = vrot.slane %v7049_v49, 4  ;;  %v14278_v2 = vld [vmem:[%s19778_s3 + $0x78] sm:$0xff]  }
 0x6f5   : > { %v14287_v44 = vld [vmem:[%s19778_s3 + $0x18] sm:$0xff]  }
 0x6f6   : > { %v7026_v59 = vrot.slane %v7025_v61, 2  ;;  %v7051_v36 = vadd.f32 %v7050_v16, %v7049_v49  ;;  %v14289_v49 = vld [vmem:[%s19778_s3 + $0x10] sm:$0xff]   ;;  %v14291_v16 = vld [vmem:[%s19778_s3 + $0x8] sm:$0xff]  }
 0x6f8   : > { %v7027_v4 = vadd.f32 %v7026_v59, %v7025_v61  ;;  %v7052_v32 = vrot.slane %v7051_v36, 2  ;;  %v14290_v61 = vld [vmem:[%s19778_s3 + $0x48] sm:$0xff]   ;;  %v14292_v59 = vld [vmem:[%s19778_s3 + $0x40] sm:$0xff]  }
 0x6fa   : > { %v7028_v47 = vrot.slane %v7027_v4, 1  ;;  %v7053_v39 = vadd.f32 %v7052_v32, %v7051_v36  ;;  %v14293_v36 = vld [vmem:[%s19778_s3] sm:$0xff]  }
 0x6fc   : > { %v7029_v40 = vadd.f32 %v7028_v47, %v7027_v4  ;;  %v7054_v17 = vrot.slane %v7053_v39, 1  ;;  %v14279_v47 = vld [vmem:[%s19778_s3 + $0x38] sm:$0xff]  }
 0x6fe   : > { %v7030_v50 = vmul.f32 0.015625, %v7029_v40  ;;  %v7055_v14 = vadd.f32 %v7054_v17, %v7053_v39  ;;  %v14280_v40 = vld [vmem:[%s19778_s3 + $0x70] sm:$0xff]  }
 0x6ff   : > { %v14281_v39 = vld [vmem:[%s19778_s3 + $0x30] sm:$0xff]  }
 0x700   : > { %v7056_v21 = vmul.f32 0.015625, %v7055_v14  ;;  %13332 = vmatmul.mubr.f32.vlgmr.msra.gmra.mxu1 %v7030_v50 }
 0x701   : > { %13385 = vmatprep.mubr.msk.bf16.mxu1 %vm14470_vm8, %v20497_v15  ;;  %13370 = vmatpush3.bf16.msra.mxu1 %v14278_v2 }
 0x702   : > { %13367 = vmatmul.mubr.f32.vlgmr.msra.gmra.mxu0 %v7056_v21  ;;  %13371 = vmatprep.subr.bf16.mxu1 %v20497_v15 }
 0x703   : > { %13421 = vmatprep.mubr.msk.bf16.mxu0 %vm14470_vm8, %v20497_v15  ;;  %13406 = vmatpush3.bf16.msra.mxu0 %v14279_v47 }
 0x704   : > { %13407 = vmatprep.subr.bf16.mxu0 %v20497_v15 }
 0x705   : > { %13372 = vmatpush3.bf16.msra.mxu1 %v14280_v40  ;;  %v20533_v40 = vld [vmem:[#allocation104_spill] sm:$0xff] }
 0x706   : > { %13373 = vmatprep.subr.bf16.mxu1 %v20497_v15 }
 0x707   : > { %13408 = vmatpush3.bf16.msra.mxu0 %v14281_v39  ;;  %v7203_v39 = vrot.slane %v20533_v40, 1 }
 0x708   : > { %13409 = vmatprep.subr.bf16.mxu0 %v20497_v15 }
 0x709   : > { %13374 = vmatpush3.bf16.msra.mxu1 %v14282_v6  ;;  %v20534_v6 = vld [vmem:[#allocation161_spill] sm:$0xff] }
 0x70a   : > { %13375 = vmatprep.subr.bf16.mxu1 %v20497_v15 }
 0x70b   : > { %13410 = vmatpush3.bf16.msra.mxu0 %v14283_v54 }
 0x70c   : > { %13411 = vmatprep.subr.bf16.mxu0 %v20497_v15 }
 0x70d   : > { %13376 = vmatpush3.bf16.msra.mxu1 %v14284_v28 }
 0x70e   : > { %13377 = vmatprep.subr.bf16.mxu1 %v20497_v15 }
 0x70f   : > { %13412 = vmatpush3.bf16.msra.mxu0 %v14285_v57 }
 0x710   : > { %13413 = vmatprep.subr.bf16.mxu0 %v20497_v15 }
 0x711   : > { %13378 = vmatpush3.bf16.msra.mxu1 %v14286_v22  ;;  %v20535_v22 = vsub.s32 1, %v20530_v42 }
 0x712   : > { %13379 = vmatprep.subr.bf16.mxu1 %v20497_v15 }
 0x713   : > { %13414 = vmatpush3.bf16.msra.mxu0 %v14287_v44  ;;  %v20536_v44 = vld [vmem:[#allocation105_spill] sm:$0xff] }
 0x714   : > { %13415 = vmatprep.subr.bf16.mxu0 %v20497_v15 }
 0x715   : > { %13380 = vmatpush3.bf16.msra.mxu1 %v14288_v19  ;;  %v7237_v19 = vrot.slane %v20536_v44, %v20535_v22 }
 0x716   : > { %13381 = vmatprep.subr.bf16.mxu1 %v20497_v15 }
 0x717   : > { %13416 = vmatpush3.bf16.msra.mxu0 %v14289_v49  ;;  %v20537_v49 = vmax.f32 %v18263_v26, 0.0  ;;  %v20543_v26 = vmax.f32 %v18301_v12, 0.0 }
 0x718   : > { %13417 = vmatprep.subr.bf16.mxu0 %v20497_v15 }
 0x719   : > { %13382 = vmatpush3.bf16.msra.mxu1 %v14290_v61 }
 0x71a   : > { %13383 = vmatprep.subr.bf16.mxu1 %v20497_v15 }
 0x71b   : > { %13418 = vmatpush3.bf16.msra.mxu0 %v14291_v16  ;;  %v20538_v16 = vmax.f32 %v18258_v31, 0.0  ;;  %v20544_v31 = vmax.f32 %v18313_v56, 0.0 }
 0x71c   : > { %13419 = vmatprep.subr.bf16.mxu0 %v20497_v15 }
 0x71d   : > { %13384 = vmatpush3.bf16.msra.mxu1 %v14292_v59 }
 0x71e   : > { %13441 = vmatprep.subr.bf16.mxu1 %v20497_v15 }
 0x71f   : > { %13420 = vmatpush3.bf16.msra.mxu0 %v14293_v36  ;;  %v20539_v36 = vmax.f32 %v18265_v0, 0.0  ;;  %v20545_v0 = vmax.f32 %v18329_v43, 0.0 }
 0x720   : > { %13477 = vmatprep.subr.bf16.mxu0 %v20497_v15 }
 0x7c0   : > { %v7123_v4 = vpop.f32.mrf.mxu1 }
 0x7c1   : > { %v7197_v32 = vmul.f32 %v7123_v4, %v7123_v4  ;;  %v7209_v54 = vrot.slane %v7123_v4, %v20534_v6 }
 0x7c2   : > { %v13333_v17 = vpop.f32.mrf.mxu1  ;;  %v7193_v50 = vpop.f32.mrf.mxu0 }
 0x7c3   : > { %v7198_v14 = vsub.f32 %v7193_v50, %v7197_v32  ;;  %v7210_v61 = vsub.f32 %v20537_v49, %v7209_v54  ;;  %v7211_v59 = vsub.f32 %v20538_v16, %v7209_v54  ;;  %v7212_v32 = vsub.f32 %v20539_v36, %v7209_v54 }
 0x7c4   : > { %v13368_v21 = vpop.f32.mrf.mxu0  ;;  %v20540_v50 = vmax.f32 %v18269_v30, 0.0  ;;  %v7218_v22 = vsub.f32 %v20545_v0, %v7209_v54 }
 0x7c5   : > { %v7199_v2 = vmax.f32 %v7198_v14, 0.0  ;;  %v20541_v14 = vmax.f32 %v18276_v29, 0.0 }
 0x7c6   : > { %v7213_v4 = vsub.f32 %v20540_v50, %v7209_v54 }
 0x7c7   : > { %v7200_v47 = vadd.f32 1e-05, %v7199_v2  ;;  %v7214_v21 = vsub.f32 %v20541_v14, %v7209_v54  ;;  %v20542_v2 = vmax.f32 %v18285_v38, 0.0 }
 0x7c9   : > { %14424 = vrsqrt.f32 %v7200_v47  ;;  %v7215_v47 = vsub.f32 %v20542_v2, %v7209_v54 }
 0x7d6   : > { %v14425_v28 = vpop.eup %14424 }
 0x7d7   : > { %v7205_v57 = vmul.f32 %v14425_v28, %v7203_v39  ;;  %v7216_v39 = vsub.f32 %v20543_v26, %v7209_v54  ;;  %v7217_v28 = vsub.f32 %v20544_v31, %v7209_v54 }
 0x7d9   : > { %v7223_v17 = vrot.slane %v7205_v57, %v20534_v6  ;;  %v7219_v57 = vsub.f32 %v6954_v1, %v7209_v54 }
 0x7db   : > { %v7224_v30 = vmul.f32 %v7223_v17, %v7210_v61  ;;  %v7225_v49 = vmul.f32 %v7223_v17, %v7211_v59  ;;  %v7226_v16 = vmul.f32 %v7223_v17, %v7212_v32  ;;  %v7227_v29 = vmul.f32 %v7223_v17, %v7213_v4 }
 0x7dc   : > { %v7228_v36 = vmul.f32 %v7223_v17, %v7214_v21  ;;  %v7229_v50 = vmul.f32 %v7223_v17, %v7215_v47  ;;  %v7230_v38 = vmul.f32 %v7223_v17, %v7216_v39  ;;  %v7231_v14 = vmul.f32 %v7223_v17, %v7217_v28 }
 0x7dd   : > { %v7238_v2 = vadd.f32 %v7237_v19, %v7224_v30  ;;  %v7239_v12 = vadd.f32 %v7237_v19, %v7225_v49  ;;  %v7240_v26 = vadd.f32 %v7237_v19, %v7226_v16  ;;  %v7241_v55 = vadd.f32 %v7237_v19, %v7227_v29  ;;  %v7299_v49 = vld [vmem:[#allocation3 + $0x1] sm:$0xff] }
 0x7de   : > { %v7242_v56 = vadd.f32 %v7237_v19, %v7228_v36  ;;  %v7243_v31 = vadd.f32 %v7237_v19, %v7229_v50  ;;  %v7244_v58 = vadd.f32 %v7237_v19, %v7230_v38  ;;  %v7232_v43 = vmul.f32 %v7223_v17, %v7218_v22  ;;  %v7268_v16 = vld [vmem:[#allocation3] sm:$0xff] }
 0x7df   : > { %v18441_v0 = vmul.f32 %v7238_v2, %v18255_v18  ;;  %v18444_v11 = vmul.f32 %v7239_v12, %v18261_v33  ;;  %v18447_v1 = vmul.f32 %v7240_v26, %v18272_v34  ;;  %v18450_v54 = vmul.f32 %v7241_v55, %v18279_v53  ;;  %v14295_v2 = vld [vmem:[%s19778_s3 + $0xf8] sm:$0xff]   ;;  %v14296_v26 = vld [vmem:[%s19778_s3 + $0xb0] sm:$0xff]  }
 0x7e0   : > { %v18453_v61 = vmul.f32 %v7242_v56, %v18295_v52  ;;  %v18456_v59 = vmul.f32 %v7243_v31, %v18303_v27  ;;  %v18459_v32 = vmul.f32 %v7244_v58, %v18315_v23  ;;  %v7245_v4 = vadd.f32 %v7237_v19, %v7231_v14  ;;  %v14294_v14 = vld [vmem:[%s19778_s3 + $0xb8] sm:$0xff]   ;;  %v14297_v56 = vld [vmem:[%s19778_s3 + $0xf0] sm:$0xff]  }
 0x7e1   : > { %7258 = vst [vmem:[#allocation3 + $0xb] sm:$0xff] %v18441_v0  ;;  %7259 = vst [vmem:[#allocation3 + $0x13] sm:$0xff] %v18444_v11  ;;  %v7246_v55 = vadd.f32 %v7237_v19, %v7232_v43  ;;  %v7233_v21 = vmul.f32 %v7223_v17, %v7219_v57  ;;  %v7909_v47 = vpack.c.bf16 %v18444_v11, %v18441_v0 }
 0x7e2   : > { %7260 = vst [vmem:[#allocation3 + $0x1b] sm:$0xff] %v18447_v1  ;;  %7261 = vst [vmem:[#allocation3 + $0x23] sm:$0xff] %v18450_v54  ;;  %v7910_v39 = vpack.c.bf16 %v18450_v54, %v18447_v1  ;;  %v18473_v58 = vmul.f32 %v7245_v4, %v18324_v10  ;;  %v7911_v28 = vpack.c.bf16 %v18456_v59, %v18453_v61 }
 0x7e3   : > { %7262 = vst [vmem:[#allocation3 + $0x2b] sm:$0xff] %v18453_v61  ;;  %7263 = vst [vmem:[#allocation3 + $0x33] sm:$0xff] %v18456_v59  ;;  %v18478_v17 = vmul.f32 %v7246_v55, %v18333_v51  ;;  %v7247_v22 = vadd.f32 %v7237_v19, %v7233_v21 }
 0x7e4   : > { %7264 = vst [vmem:[#allocation3 + $0x3b] sm:$0xff] %v18459_v32  ;;  %7265 = vst [vmem:[#allocation3 + $0x43] sm:$0xff] %v18473_v58  ;;  %v7912_v57 = vpack.c.bf16 %v18473_v58, %v18459_v32 }
 0x7e5   : > { %7266 = vst [vmem:[#allocation3 + $0x4b] sm:$0xff] %v18478_v17  ;;  %v18485_v30 = vmul.f32 %v7247_v22, %v18341_v20  ;;  %v14298_v22 = vld [vmem:[%s19778_s3 + $0xa8] sm:$0xff]  }
 0x7e7   : > { %7267 = vst [vmem:[#allocation3 + $0x53] sm:$0xff] %v18485_v30  ;;  %v7913_v29 = vpack.c.bf16 %v18485_v30, %v18478_v17  ;;  %v14343_v17 = vld [vmem:[%s19778_s3 + $0x230] sm:$0xff]  }
 0x7e8   : > { %v7300_v36 = vld [vmem:[#allocation3 + $0x9] sm:$0xff]  ;;  %v7301_v12 = vld [vmem:[#allocation3 + $0x11] sm:$0xff] }
 0x7e9   : > { %v7269_v50 = vld [vmem:[#allocation3 + $0x8] sm:$0xff]  ;;  %v7309_v19 = vpack.c.bf16 %v7300_v36, %v7299_v49  ;;  %v7302_v31 = vld [vmem:[#allocation3 + $0x19] sm:$0xff]  ;;  %v7270_v43 = vld [vmem:[#allocation3 + $0x10] sm:$0xff] }
 0x7ea   : > { %v7278_v38 = vpack.c.bf16 %v7269_v50, %v7268_v16  ;;  %v7271_v4 = vld [vmem:[#allocation3 + $0x18] sm:$0xff]  ;;  %v7310_v55 = vpack.c.bf16 %v7302_v31, %v7301_v12  ;;  %v14299_v49 = vld [vmem:[%s19778_s3 + $0xe8] sm:$0xff]  }
 0x7eb   : > { %13386 = vmatmul.mubr.bf16.vlgmr.msra.gmra.mxu1 %v7309_v19  ;;  %v7279_v21 = vpack.c.bf16 %v7271_v4, %v7270_v43  ;;  %v7303_v16 = vld [vmem:[#allocation3 + $0x21] sm:$0xff]  ;;  %v14300_v36 = vld [vmem:[%s19778_s3 + $0xa0] sm:$0xff]   ;;  %v7304_v19 = vld [vmem:[#allocation3 + $0x29] sm:$0xff] }
 0x7ec   : > { %13422 = vmatmul.mubr.bf16.vlgmr.msra.gmra.mxu0 %v7278_v38  ;;  %13389 = vmatprep.mubr.msk.bf16.mxu1 %vm14470_vm8, %v20497_v15  ;;  %v14301_v50 = vld [vmem:[%s19778_s3 + $0xe0] sm:$0xff]   ;;  %v7272_v38 = vld [vmem:[#allocation3 + $0x20] sm:$0xff]  ;;  %v14304_v43 = vld [vmem:[%s19778_s3 + $0x90] sm:$0xff]  }
 0x7ed   : > { %13425 = vmatprep.mubr.msk.bf16.mxu0 %vm14470_vm8, %v20497_v15  ;;  %13442 = vmatpush3.bf16.msra.mxu1 %v14294_v14  ;;  %v7273_v14 = vld [vmem:[#allocation3 + $0x28] sm:$0xff]  ;;  %v7305_v31 = vld [vmem:[#allocation3 + $0x31] sm:$0xff] }
 0x7ee   : > { %13478 = vmatpush3.bf16.msra.mxu0 %v14295_v2  ;;  %13443 = vmatprep.subr.bf16.mxu1 %v20497_v15  ;;  %v7311_v2 = vpack.c.bf16 %v7304_v19, %v7303_v16  ;;  %v7280_v12 = vpack.c.bf16 %v7273_v14, %v7272_v38  ;;  %v14305_v4 = vld [vmem:[%s19778_s3 + $0xd0] sm:$0xff]   ;;  %v14308_v38 = vld [vmem:[%s19778_s3 + $0x80] sm:$0xff]  }
 0x7ef   : > { %13479 = vmatprep.subr.bf16.mxu0 %v20497_v15  ;;  %v7307_v19 = vld [vmem:[#allocation3 + $0x41] sm:$0xff]  ;;  %v14309_v14 = vld [vmem:[%s19778_s3 + $0xc0] sm:$0xff]  }
 0x7f0   : > { %v18682_v0 = vld [vmem:[#allocation3 + $0x24] sm:$0xff]  ;;  %v18711_v1 = vld [vmem:[#allocation3 + $0x34] sm:$0xff] }
 0x7f1   : > { %13444 = vmatpush3.bf16.msra.mxu1 %v14296_v26  ;;  %v14302_v26 = vld [vmem:[%s19778_s3 + $0x98] sm:$0xff]   ;;  %v18740_v61 = vld [vmem:[#allocation3 + $0x44] sm:$0xff] }
 0x7f2   : > { %13480 = vmatpush3.bf16.msra.mxu0 %v14297_v56  ;;  %13445 = vmatprep.subr.bf16.mxu1 %v20497_v15  ;;  %v14303_v56 = vld [vmem:[%s19778_s3 + $0xd8] sm:$0xff]   ;;  %v8390_v30 = vld [vmem:[#allocation3 + $0x25] sm:$0xff] }
 0x7f3   : > { %13481 = vmatprep.subr.bf16.mxu0 %v20497_v15  ;;  %13390 = vmatmul.mubr.bf16.gmra.mxu1 %v7310_v55  ;;  %v7306_v55 = vld [vmem:[#allocation3 + $0x39] sm:$0xff] }
 0x7f4   : > { %13426 = vmatmul.mubr.bf16.gmra.mxu0 %v7279_v21  ;;  %13393 = vmatprep.mubr.msk.bf16.mxu1 %vm14470_vm8, %v20497_v15  ;;  %v7274_v21 = vld [vmem:[#allocation3 + $0x30] sm:$0xff] }
 0x7f5   : > { %13429 = vmatprep.mubr.msk.bf16.mxu0 %vm14470_vm8, %v20497_v15  ;;  %13446 = vmatpush3.bf16.msra.mxu1 %v14298_v22  ;;  %v7275_v22 = vld [vmem:[#allocation3 + $0x38] sm:$0xff] }
 0x7f6   : > { %13482 = vmatpush3.bf16.msra.mxu0 %v14299_v49  ;;  %13447 = vmatprep.subr.bf16.mxu1 %v20497_v15  ;;  %v7312_v49 = vpack.c.bf16 %v7306_v55, %v7305_v31  ;;  %v7281_v16 = vpack.c.bf16 %v7275_v22, %v7274_v21  ;;  %v7737_v55 = vld [vmem:[#allocation3 + $0x12] sm:$0xff] }
 0x7f7   : > { %13483 = vmatprep.subr.bf16.mxu0 %v20497_v15  ;;  %v18769_v32 = vld [vmem:[#allocation3 + $0x54] sm:$0xff] }
 0x7f9   : > { %13448 = vmatpush3.bf16.msra.mxu1 %v14300_v36  ;;  %v14306_v36 = vld [vmem:[%s19778_s3 + $0x88] sm:$0xff]  }
 0x7fa   : > { %13484 = vmatpush3.bf16.msra.mxu0 %v14301_v50  ;;  %13449 = vmatprep.subr.bf16.mxu1 %v20497_v15  ;;  %v14307_v50 = vld [vmem:[%s19778_s3 + $0xc8] sm:$0xff]  }
 0x7fb   : > { %13485 = vmatprep.subr.bf16.mxu0 %v20497_v15  ;;  %13394 = vmatmul.mubr.bf16.gmra.mxu1 %v7311_v2  ;;  %v7308_v2 = vld [vmem:[#allocation3 + $0x49] sm:$0xff] }
 0x7fc   : > { %13430 = vmatmul.mubr.bf16.gmra.mxu0 %v7280_v12  ;;  %13397 = vmatprep.mubr.msk.bf16.mxu1 %vm14470_vm8, %v20497_v15  ;;  %v7276_v12 = vld [vmem:[#allocation3 + $0x40] sm:$0xff] }
 0x7fd   : > { %13433 = vmatprep.mubr.msk.bf16.mxu0 %vm14470_vm8, %v20497_v15  ;;  %13450 = vmatpush3.bf16.msra.mxu1 %v14302_v26  ;;  %v7277_v26 = vld [vmem:[#allocation3 + $0x48] sm:$0xff] }
 0x7fe   : > { %13486 = vmatpush3.bf16.msra.mxu0 %v14303_v56  ;;  %13451 = vmatprep.subr.bf16.mxu1 %v20497_v15  ;;  %v7313_v56 = vpack.c.bf16 %v7308_v2, %v7307_v19  ;;  %v7282_v31 = vpack.c.bf16 %v7277_v26, %v7276_v12  ;;  %v7576_v19 = vld [vmem:[#allocation3 + $0x1a] sm:$0xff] }
 0x7ff   : > { %13487 = vmatprep.subr.bf16.mxu0 %v20497_v15  ;;  %v14314_v12 = vld [vmem:[%s19778_s3 + $0x128] sm:$0xff]  }
 0x800   : > { %v14315_v26 = vld [vmem:[%s19778_s3 + $0x168] sm:$0xff]  }
 0x801   : > { %13452 = vmatpush3.bf16.msra.mxu1 %v14304_v43  ;;  %v7573_v43 = vld [vmem:[#allocation3 + $0x2] sm:$0xff] }
 0x802   : > { %13488 = vmatpush3.bf16.msra.mxu0 %v14305_v4  ;;  %13453 = vmatprep.subr.bf16.mxu1 %v20497_v15  ;;  %v7574_v4 = vld [vmem:[#allocation3 + $0xa] sm:$0xff] }
 0x803   : > { %13489 = vmatprep.subr.bf16.mxu0 %v20497_v15  ;;  %13398 = vmatmul.mubr.bf16.gmra.mxu1 %v7312_v49  ;;  %v7583_v21 = vpack.c.bf16 %v7574_v4, %v7573_v43  ;;  %v7746_v22 = vpack.c.bf16 %v7737_v55, %v7574_v4  ;;  %v14310_v49 = vld [vmem:[%s19778_s3 + $0x138] sm:$0xff]  }
 0x804   : > { %13434 = vmatmul.mubr.bf16.gmra.mxu0 %v7281_v16  ;;  %13401 = vmatprep.mubr.msk.bf16.mxu1 %vm14470_vm8, %v20497_v15  ;;  %v14311_v16 = vld [vmem:[%s19778_s3 + $0x178] sm:$0xff]  }
 0x805   : > { %13437 = vmatprep.mubr.msk.bf16.mxu0 %vm14470_vm8, %v20497_v15  ;;  %13454 = vmatpush3.bf16.msra.mxu1 %v14306_v36  ;;  %v14312_v36 = vld [vmem:[%s19778_s3 + $0x130] sm:$0xff]   ;;  %v7741_v4 = vld [vmem:[#allocation3 + $0x32] sm:$0xff] }
 0x806   : > { %13490 = vmatpush3.bf16.msra.mxu0 %v14307_v50  ;;  %13455 = vmatprep.subr.bf16.mxu1 %v20497_v15  ;;  %v14313_v50 = vld [vmem:[%s19778_s3 + $0x170] sm:$0xff]  }
 0x807   : > { %13491 = vmatprep.subr.bf16.mxu0 %v20497_v15  ;;  %v7578_v43 = vld [vmem:[#allocation3 + $0x2a] sm:$0xff] }
 0x809   : > { %13456 = vmatpush3.bf16.msra.mxu1 %v14308_v38  ;;  %v7739_v38 = vld [vmem:[#allocation3 + $0x22] sm:$0xff] }
 0x80a   : > { %13492 = vmatpush3.bf16.msra.mxu0 %v14309_v14  ;;  %13513 = vmatprep.subr.bf16.mxu1 %v20497_v15  ;;  %v7584_v14 = vpack.c.bf16 %v7576_v19, %v7737_v55  ;;  %v7747_v2 = vpack.c.bf16 %v7739_v38, %v7576_v19  ;;  %v7585_v55 = vpack.c.bf16 %v7578_v43, %v7739_v38  ;;  %v7743_v19 = vld [vmem:[#allocation3 + $0x42] sm:$0xff] }
 0x80b   : > { %13549 = vmatprep.subr.bf16.mxu0 %v20497_v15  ;;  %13402 = vmatmul.mubr.bf16.gmra.mxu1 %v7313_v56  ;;  %v14316_v56 = vld [vmem:[%s19778_s3 + $0x120] sm:$0xff]  }
 0x80c   : > { %13438 = vmatmul.mubr.bf16.gmra.mxu0 %v7282_v31  ;;  %13457 = vmatprep.mubr.msk.bf16.mxu1 %vm14470_vm8, %v20497_v15  ;;  %v14317_v31 = vld [vmem:[%s19778_s3 + $0x160] sm:$0xff]  }
 0x80d   : > { %13493 = vmatprep.mubr.msk.bf16.mxu0 %vm14470_vm8, %v20497_v15 }
 0x813   : > { %13458 = vmatmul.mubr.bf16.vlgmr.msra.gmra.mxu1 %v7583_v21  ;;  %v7748_v21 = vpack.c.bf16 %v7741_v4, %v7578_v43  ;;  %v7745_v43 = vld [vmem:[#allocation3 + $0x52] sm:$0xff] }
 0x814   : > { %13494 = vmatmul.mubr.bf16.vlgmr.msra.gmra.mxu0 %v7746_v22  ;;  %13461 = vmatprep.mubr.msk.bf16.mxu1 %vm14470_vm8, %v20497_v15  ;;  %v14318_v22 = vld [vmem:[%s19778_s3 + $0x118] sm:$0xff]  }
 0x815   : > { %13497 = vmatprep.mubr.msk.bf16.mxu0 %vm14470_vm8, %v20497_v15  ;;  %13514 = vmatpush3.bf16.msra.mxu1 %v14310_v49  ;;  %v14319_v49 = vld [vmem:[%s19778_s3 + $0x158] sm:$0xff]  }
 0x816   : > { %13550 = vmatpush3.bf16.msra.mxu0 %v14311_v16  ;;  %13515 = vmatprep.subr.bf16.mxu1 %v20497_v15  ;;  %v14320_v16 = vld [vmem:[%s19778_s3 + $0x110] sm:$0xff]  }
 0x817   : > { %13551 = vmatprep.subr.bf16.mxu0 %v20497_v15 }
 0x819   : > { %13516 = vmatpush3.bf16.msra.mxu1 %v14312_v36  ;;  %v14321_v36 = vld [vmem:[%s19778_s3 + $0x150] sm:$0xff]  }
 0x81a   : > { %13552 = vmatpush3.bf16.msra.mxu0 %v14313_v50  ;;  %13517 = vmatprep.subr.bf16.mxu1 %v20497_v15  ;;  %v7580_v50 = vld [vmem:[#allocation3 + $0x3a] sm:$0xff] }
 0x81b   : > { %13553 = vmatprep.subr.bf16.mxu0 %v20497_v15  ;;  %13462 = vmatmul.mubr.bf16.gmra.mxu1 %v7584_v14  ;;  %v7586_v38 = vpack.c.bf16 %v7580_v50, %v7741_v4  ;;  %v7749_v14 = vpack.c.bf16 %v7743_v19, %v7580_v50  ;;  %v14328_v50 = vld [vmem:[%s19778_s3 + $0x1b0] sm:$0xff]  }
 0x81c   : > { %13498 = vmatmul.mubr.bf16.gmra.mxu0 %v7747_v2  ;;  %13465 = vmatprep.mubr.msk.bf16.mxu1 %vm14470_vm8, %v20497_v15  ;;  %v14322_v2 = vld [vmem:[%s19778_s3 + $0x108] sm:$0xff]  }
 0x81d   : > { %13501 = vmatprep.mubr.msk.bf16.mxu0 %vm14470_vm8, %v20497_v15  ;;  %13518 = vmatpush3.bf16.msra.mxu1 %v14314_v12  ;;  %v14323_v12 = vld [vmem:[%s19778_s3 + $0x148] sm:$0xff]  }
 0x81e   : > { %13554 = vmatpush3.bf16.msra.mxu0 %v14315_v26  ;;  %13519 = vmatprep.subr.bf16.mxu1 %v20497_v15  ;;  %v14324_v26 = vld [vmem:[%s19778_s3 + $0x100] sm:$0xff]  }
 0x81f   : > { %13555 = vmatprep.subr.bf16.mxu0 %v20497_v15 }
 0x821   : > { %13520 = vmatpush3.bf16.msra.mxu1 %v14316_v56  ;;  %v14325_v56 = vld [vmem:[%s19778_s3 + $0x140] sm:$0xff]  }
 0x822   : > { %13556 = vmatpush3.bf16.msra.mxu0 %v14317_v31  ;;  %13521 = vmatprep.subr.bf16.mxu1 %v20497_v15  ;;  %v7582_v31 = vld [vmem:[#allocation3 + $0x4a] sm:$0xff] }
 0x823   : > { %13557 = vmatprep.subr.bf16.mxu0 %v20497_v15  ;;  %13466 = vmatmul.mubr.bf16.gmra.mxu1 %v7585_v55  ;;  %v7587_v4 = vpack.c.bf16 %v7582_v31, %v7743_v19  ;;  %v7750_v55 = vpack.c.bf16 %v7745_v43, %v7582_v31  ;;  %v14329_v19 = vld [vmem:[%s19778_s3 + $0x1f0] sm:$0xff]  }
 0x824   : > { %13502 = vmatmul.mubr.bf16.gmra.mxu0 %v7748_v21  ;;  %13469 = vmatprep.mubr.msk.bf16.mxu1 %vm14470_vm8, %v20497_v15  ;;  %v8062_v21 = vld [vmem:[#allocation3 + $0xc] sm:$0xff] }
 0x825   : > { %13505 = vmatprep.mubr.msk.bf16.mxu0 %vm14470_vm8, %v20497_v15  ;;  %13522 = vmatpush3.bf16.msra.mxu1 %v14318_v22  ;;  %v18658_v22 = vld [vmem:[#allocation3 + $0x14] sm:$0xff]  ;;  %v14336_v31 = vld [vmem:[%s19778_s3 + $0x190] sm:$0xff]  }
 0x826   : > { %13558 = vmatpush3.bf16.msra.mxu0 %v14319_v49  ;;  %13523 = vmatprep.subr.bf16.mxu1 %v20497_v15  ;;  %v8072_v49 = vpack.c.bf16 %v18658_v22, %v8062_v21  ;;  %v14337_v43 = vld [vmem:[%s19778_s3 + $0x1d0] sm:$0xff]   ;;  %v14340_v21 = vld [vmem:[%s19778_s3 + $0x180] sm:$0xff]  }
 0x827   : > { %13559 = vmatprep.subr.bf16.mxu0 %v20497_v15 }
 0x829   : > { %13524 = vmatpush3.bf16.msra.mxu1 %v14320_v16  ;;  %v14326_v16 = vld [vmem:[%s19778_s3 + $0x1b8] sm:$0xff]  }
 0x82a   : > { %13560 = vmatpush3.bf16.msra.mxu0 %v14321_v36  ;;  %13525 = vmatprep.subr.bf16.mxu1 %v20497_v15  ;;  %v14327_v36 = vld [vmem:[%s19778_s3 + $0x1f8] sm:$0xff]  }
 0x82b   : > { %13561 = vmatprep.subr.bf16.mxu0 %v20497_v15  ;;  %13470 = vmatmul.mubr.bf16.gmra.mxu1 %v7586_v38  ;;  %v18680_v38 = vld [vmem:[#allocation3 + $0x1c] sm:$0xff] }
 0x82c   : > { %13506 = vmatmul.mubr.bf16.gmra.mxu0 %v7749_v14  ;;  %13473 = vmatprep.mubr.msk.bf16.mxu1 %vm14470_vm8, %v20497_v15  ;;  %v8073_v11 = vpack.c.bf16 %v18682_v0, %v18680_v38  ;;  %v14331_v14 = vld [vmem:[%s19778_s3 + $0x1e8] sm:$0xff]  }
 0x82d   : > { %13509 = vmatprep.mubr.msk.bf16.mxu0 %vm14470_vm8, %v20497_v15  ;;  %13526 = vmatpush3.bf16.msra.mxu1 %v14322_v2  ;;  %v14332_v2 = vld [vmem:[%s19778_s3 + $0x1a0] sm:$0xff]  }
 0x82e   : > { %13562 = vmatpush3.bf16.msra.mxu0 %v14323_v12  ;;  %13527 = vmatprep.subr.bf16.mxu1 %v20497_v15  ;;  %v14333_v12 = vld [vmem:[%s19778_s3 + $0x1e0] sm:$0xff]  }
 0x82f   : > { %13563 = vmatprep.subr.bf16.mxu0 %v20497_v15 }
 0x831   : > { %13528 = vmatpush3.bf16.msra.mxu1 %v14324_v26  ;;  %v18709_v26 = vld [vmem:[#allocation3 + $0x2c] sm:$0xff] }
 0x832   : > { %13564 = vmatpush3.bf16.msra.mxu0 %v14325_v56  ;;  %13585 = vmatprep.subr.bf16.mxu1 %v20497_v15  ;;  %v8074_v54 = vpack.c.bf16 %v18711_v1, %v18709_v26  ;;  %v14335_v56 = vld [vmem:[%s19778_s3 + $0x1d8] sm:$0xff]  }
 0x833   : > { %13621 = vmatprep.subr.bf16.mxu0 %v20497_v15  ;;  %13474 = vmatmul.mubr.bf16.gmra.mxu1 %v7587_v4  ;;  %v18738_v4 = vld [vmem:[#allocation3 + $0x3c] sm:$0xff] }
 0x834   : > { %13510 = vmatmul.mubr.bf16.gmra.mxu0 %v7750_v55  ;;  %13529 = vmatprep.mubr.msk.bf16.mxu1 %vm14470_vm8, %v20497_v15  ;;  %v8075_v59 = vpack.c.bf16 %v18740_v61, %v18738_v4  ;;  %v14339_v55 = vld [vmem:[%s19778_s3 + $0x1c8] sm:$0xff]  }
 0x835   : > { %13565 = vmatprep.mubr.msk.bf16.mxu0 %vm14470_vm8, %v20497_v15 }
 0x83b   : > { %13530 = vmatmul.mubr.bf16.vlgmr.msra.gmra.mxu1 %v7909_v47  ;;  %v14330_v47 = vld [vmem:[%s19778_s3 + $0x1a8] sm:$0xff]  }
 0x83c   : > { %13566 = vmatmul.mubr.bf16.vlgmr.msra.gmra.mxu0 %v8072_v49  ;;  %13533 = vmatprep.mubr.msk.bf16.mxu1 %vm14470_vm8, %v20497_v15  ;;  %v14341_v49 = vld [vmem:[%s19778_s3 + $0x1c0] sm:$0xff]  }
 0x83d   : > { %13569 = vmatprep.mubr.msk.bf16.mxu0 %vm14470_vm8, %v20497_v15  ;;  %13586 = vmatpush3.bf16.msra.mxu1 %v14326_v16  ;;  %v18767_v16 = vld [vmem:[#allocation3 + $0x4c] sm:$0xff] }
 0x83e   : > { %13622 = vmatpush3.bf16.msra.mxu0 %v14327_v36  ;;  %13587 = vmatprep.subr.bf16.mxu1 %v20497_v15  ;;  %v8076_v58 = vpack.c.bf16 %v18769_v32, %v18767_v16  ;;  %v8389_v36 = vld [vmem:[#allocation3 + $0x1d] sm:$0xff] }
 0x83f   : > { %13623 = vmatprep.subr.bf16.mxu0 %v20497_v15 }
 0x841   : > { %13588 = vmatpush3.bf16.msra.mxu1 %v14328_v50  ;;  %v8235_v50 = vpack.c.bf16 %v18680_v38, %v18658_v22  ;;  %v8236_v22 = vpack.c.bf16 %v18709_v26, %v18682_v0  ;;  %v14345_v0 = vld [vmem:[%s19778_s3 + $0x220] sm:$0xff]  }
 0x842   : > { %13624 = vmatpush3.bf16.msra.mxu0 %v14329_v19  ;;  %13589 = vmatprep.subr.bf16.mxu1 %v20497_v15 }
 0x843   : > { %13625 = vmatprep.subr.bf16.mxu0 %v20497_v15  ;;  %13534 = vmatmul.mubr.bf16.gmra.mxu1 %v7910_v39  ;;  %v14334_v39 = vld [vmem:[%s19778_s3 + $0x198] sm:$0xff]  }
 0x844   : > { %13570 = vmatmul.mubr.bf16.gmra.mxu0 %v8073_v11  ;;  %13537 = vmatprep.mubr.msk.bf16.mxu1 %vm14470_vm8, %v20497_v15  ;;  %v14342_v11 = vld [vmem:[%s19778_s3 + $0x238] sm:$0xff]  }
 0x845   : > { %13573 = vmatprep.mubr.msk.bf16.mxu0 %vm14470_vm8, %v20497_v15  ;;  %13590 = vmatpush3.bf16.msra.mxu1 %v14330_v47  ;;  %v14344_v47 = vld [vmem:[%s19778_s3 + $0x228] sm:$0xff]  }
 0x846   : > { %13626 = vmatpush3.bf16.msra.mxu0 %v14331_v14  ;;  %13591 = vmatprep.subr.bf16.mxu1 %v20497_v15  ;;  %v8392_v14 = vld [vmem:[#allocation3 + $0x35] sm:$0xff] }
 0x847   : > { %13627 = vmatprep.subr.bf16.mxu0 %v20497_v15 }
 0x849   : > { %13592 = vmatpush3.bf16.msra.mxu1 %v14332_v2  ;;  %v8393_v2 = vld [vmem:[#allocation3 + $0x3d] sm:$0xff] }
 0x84a   : > { %13628 = vmatpush3.bf16.msra.mxu0 %v14333_v12  ;;  %13593 = vmatprep.subr.bf16.mxu1 %v20497_v15  ;;  %v8237_v12 = vpack.c.bf16 %v18738_v4, %v18711_v1  ;;  %v8400_v26 = vpack.c.bf16 %v8393_v2, %v8392_v14  ;;  %v14347_v1 = vld [vmem:[%s19778_s3 + $0x210] sm:$0xff]   ;;  %v14348_v4 = vld [vmem:[%s19778_s3 + $0x208] sm:$0xff]  }
 0x84b   : > { %13629 = vmatprep.subr.bf16.mxu0 %v20497_v15  ;;  %13538 = vmatmul.mubr.bf16.gmra.mxu1 %v7911_v28  ;;  %v14338_v28 = vld [vmem:[%s19778_s3 + $0x188] sm:$0xff]  }
 0x84c   : > { %13574 = vmatmul.mubr.bf16.gmra.mxu0 %v8074_v54  ;;  %13541 = vmatprep.mubr.msk.bf16.mxu1 %vm14470_vm8, %v20497_v15  ;;  %v14346_v54 = vld [vmem:[%s19778_s3 + $0x218] sm:$0xff]  }
 0x84d   : > { %13577 = vmatprep.mubr.msk.bf16.mxu0 %vm14470_vm8, %v20497_v15  ;;  %13594 = vmatpush3.bf16.msra.mxu1 %v14334_v39  ;;  %v8394_v39 = vld [vmem:[#allocation3 + $0x45] sm:$0xff] }
 0x84e   : > { %13630 = vmatpush3.bf16.msra.mxu0 %v14335_v56  ;;  %13595 = vmatprep.subr.bf16.mxu1 %v20497_v15  ;;  %v8395_v56 = vld [vmem:[#allocation3 + $0x4d] sm:$0xff] }
 0x84f   : > { %13631 = vmatprep.subr.bf16.mxu0 %v20497_v15 }
 0x851   : > { %13596 = vmatpush3.bf16.msra.mxu1 %v14336_v31  ;;  %v8238_v31 = vpack.c.bf16 %v18767_v16, %v18740_v61  ;;  %v14349_v61 = vld [vmem:[%s19778_s3 + $0x200] sm:$0xff]  }
 0x852   : > { %13632 = vmatpush3.bf16.msra.mxu0 %v14337_v43  ;;  %13597 = vmatprep.subr.bf16.mxu1 %v20497_v15  ;;  %v8401_v43 = vpack.c.bf16 %v8395_v56, %v8394_v39  ;;  %v8551_v16 = vld [vmem:[#allocation3 + $0x16] sm:$0xff] }
 0x853   : > { %13633 = vmatprep.subr.bf16.mxu0 %v20497_v15  ;;  %13542 = vmatmul.mubr.bf16.gmra.mxu1 %v7912_v57  ;;  %v8388_v57 = vld [vmem:[#allocation3 + $0x15] sm:$0xff] }
 0x854   : > { %13578 = vmatmul.mubr.bf16.gmra.mxu0 %v8075_v59  ;;  %13545 = vmatprep.mubr.msk.bf16.mxu1 %vm14470_vm8, %v20497_v15  ;;  %v8398_v19 = vpack.c.bf16 %v8389_v36, %v8388_v57  ;;  %v8234_v59 = vld [vmem:[#allocation3 + $0x5c] sm:$0xff]  ;;  %v8553_v57 = vld [vmem:[#allocation3 + $0x26] sm:$0xff]  ;;  %v8554_v36 = vld [vmem:[#allocation3 + $0x2e] sm:$0xff] }
 0x855   : > { %13581 = vmatprep.mubr.msk.bf16.mxu0 %vm14470_vm8, %v20497_v15  ;;  %13598 = vmatpush3.bf16.msra.mxu1 %v14338_v28  ;;  %v8396_v28 = vld [vmem:[#allocation3 + $0x55] sm:$0xff] }
 0x856   : > { %13634 = vmatpush3.bf16.msra.mxu0 %v14339_v55  ;;  %13599 = vmatprep.subr.bf16.mxu1 %v20497_v15  ;;  %v8397_v55 = vld [vmem:[#allocation3 + $0x5d] sm:$0xff] }
 0x857   : > { %13635 = vmatprep.subr.bf16.mxu0 %v20497_v15 }
 0x859   : > { %13600 = vmatpush3.bf16.msra.mxu1 %v14340_v21  ;;  %v8239_v21 = vpack.c.bf16 %v8234_v59, %v18769_v32  ;;  %v8552_v32 = vld [vmem:[#allocation3 + $0x1e] sm:$0xff] }
 0x85a   : > { %13636 = vmatpush3.bf16.msra.mxu0 %v14341_v49  ;;  %13657 = vmatprep.subr.bf16.mxu1 %v20497_v15  ;;  %v8402_v49 = vpack.c.bf16 %v8397_v55, %v8396_v28 }
 0x85b   : > { %13693 = vmatprep.subr.mxu0 %v20497_v15  ;;  %13546 = vmatmul.mubr.bf16.gmra.mxu1 %v7913_v29  ;;  %v8391_v29 = vld [vmem:[#allocation3 + $0x2d] sm:$0xff] }
 0x85c   : > { %13582 = vmatmul.mubr.bf16.gmra.mxu0 %v8076_v58  ;;  %13601 = vmatprep.mubr.msk.bf16.mxu1 %vm14470_vm8, %v20497_v15  ;;  %v8399_v38 = vpack.c.bf16 %v8391_v29, %v8390_v30  ;;  %v8561_v58 = vpack.c.bf16 %v8552_v32, %v8551_v16  ;;  %v8557_v30 = vld [vmem:[#allocation3 + $0x46] sm:$0xff]  ;;  %v8558_v29 = vld [vmem:[#allocation3 + $0x4e] sm:$0xff] }
 0x85d   : > { %13637 = vmatprep.mubr.msk.bf16.mxu0 %vm14470_vm8, %v20497_v15 }
 0x863   : > { %13602 = vmatmul.mubr.bf16.vlgmr.msra.gmra.mxu1 %v8235_v50  ;;  %v8562_v50 = vpack.c.bf16 %v8554_v36, %v8553_v57 }
 0x864   : > { %13638 = vmatmul.mubr.bf16.vlgmr.msra.gmra.mxu0 %v8398_v19  ;;  %13605 = vmatprep.mubr.msk.bf16.mxu1 %vm14470_vm8, %v20497_v15  ;;  %v8555_v19 = vld [vmem:[#allocation3 + $0x36] sm:$0xff] }
 0x865   : > { %13641 = vmatprep.mubr.msk.bf16.mxu0 %vm14470_vm8, %v20497_v15  ;;  %13658 = vmatpush3.bf16.msra.mxu1 %v14342_v11  ;;  %v8556_v11 = vld [vmem:[#allocation3 + $0x3e] sm:$0xff] }
 0x866   : > { %13694 = vmatpush3.msra.mxu0 %v20506_v35  ;;  %13659 = vmatprep.subr.bf16.mxu1 %v20497_v15 }
 0x867   : > { %13695 = vmatprep.subr.mxu0 %v20497_v15 }
 0x868   : > { %13696 = vmatpush3.msra.mxu0 %v20507_v37 }
 0x869   : > { %13697 = vmatprep.subr.mxu0 %v20497_v15  ;;  %13660 = vmatpush3.bf16.msra.mxu1 %v14343_v17  ;;  %v8563_v17 = vpack.c.bf16 %v8556_v11, %v8555_v19 }
 0x86a   : > { %13698 = vmatpush3.msra.mxu0 %v20510_v63  ;;  %13661 = vmatprep.subr.bf16.mxu1 %v20497_v15 }
 0x86b   : > { %13699 = vmatprep.subr.mxu0 %v20497_v15  ;;  %13606 = vmatmul.mubr.bf16.gmra.mxu1 %v8236_v22  ;;  %v8564_v22 = vpack.c.bf16 %v8558_v29, %v8557_v30 }
 0x86c   : > { %13642 = vmatmul.mubr.bf16.gmra.mxu0 %v8399_v38  ;;  %13609 = vmatprep.mubr.msk.bf16.mxu1 %vm14470_vm8, %v20497_v15  ;;  %v8559_v38 = vld [vmem:[#allocation3 + $0x56] sm:$0xff] }
 0x86d   : > { %13645 = vmatprep.mubr.msk.bf16.mxu0 %vm14470_vm8, %v20497_v15  ;;  %13662 = vmatpush3.bf16.msra.mxu1 %v14344_v47  ;;  %v8560_v47 = vld [vmem:[#allocation3 + $0x5e] sm:$0xff] }
 0x86e   : > { %13700 = vmatpush3.msra.mxu0 %v20511_v7  ;;  %13663 = vmatprep.subr.bf16.mxu1 %v20497_v15 }
 0x86f   : > { %13701 = vmatprep.subr.mxu0 %v20497_v15 }
 0x870   : > { %13702 = vmatpush3.msra.mxu0 %v20512_v9 }
 0x871   : > { %13703 = vmatprep.subr.mxu0 %v20497_v15  ;;  %13664 = vmatpush3.bf16.msra.mxu1 %v14345_v0  ;;  %v8565_v0 = vpack.c.bf16 %v8560_v47, %v8559_v38 }
 0x872   : > { %13704 = vmatpush3.msra.mxu0 %v20513_v46  ;;  %13665 = vmatprep.subr.bf16.mxu1 %v20497_v15 }
 0x873   : > { %13705 = vmatprep.subr.mxu0 %v20497_v15  ;;  %13610 = vmatmul.mubr.bf16.gmra.mxu1 %v8237_v12 }
 0x874   : > { %13646 = vmatmul.mubr.bf16.gmra.mxu0 %v8400_v26  ;;  %13613 = vmatprep.mubr.msk.bf16.mxu1 %vm14470_vm8, %v20497_v15 }
 0x875   : > { %13649 = vmatprep.mubr.msk.bf16.mxu0 %vm14470_vm8, %v20497_v15  ;;  %13666 = vmatpush3.bf16.msra.mxu1 %v14346_v54 }
 0x876   : > { %13706 = vmatpush3.msra.mxu0 %v20516_v45  ;;  %13667 = vmatprep.subr.bf16.mxu1 %v20497_v15 }
 0x877   : > { %13707 = vmatprep.subr.mxu0 %v20497_v15 }
 0x878   : > { %13708 = vmatpush3.msra.mxu0 %v20517_v13 }
 0x879   : > { %13709 = vmatprep.subr.mxu0 %v20497_v15  ;;  %13668 = vmatpush3.bf16.msra.mxu1 %v14347_v1 }
 0x87a   : > { %13710 = vmatpush3.msra.mxu0 %v20518_v60  ;;  %13669 = vmatprep.subr.bf16.mxu1 %v20497_v15 }
 0x87b   : > { %13711 = vmatprep.subr.mxu0 %v20497_v15  ;;  %13614 = vmatmul.mubr.bf16.gmra.mxu1 %v8238_v31 }
 0x87c   : > { %13650 = vmatmul.mubr.bf16.gmra.mxu0 %v8401_v43  ;;  %13617 = vmatprep.mubr.msk.bf16.mxu1 %vm14470_vm8, %v20497_v15 }
 0x87d   : > { %13653 = vmatprep.mubr.msk.bf16.mxu0 %vm14470_vm8, %v20497_v15  ;;  %13670 = vmatpush3.bf16.msra.mxu1 %v14348_v4 }
 0x87e   : > { %13712 = vmatpush3.msra.mxu0 %v20519_v25  ;;  %13671 = vmatprep.subr.bf16.mxu1 %v20497_v15 }
 0x87f   : > { %13713 = vmatprep.subr.mxu0 %v20497_v15 }
 0x880   : > { %13714 = vmatpush3.msra.mxu0 %v20522_v62 }
 0x881   : > { %13715 = vmatprep.subr.mxu0 %v20497_v15  ;;  %13672 = vmatpush3.bf16.msra.mxu1 %v14349_v61 }
 0x882   : > { %13716 = vmatpush3.msra.mxu0 %v20523_v24  ;;  %13728 = vmatprep.subr.mxu1 %v20497_v15 }
 0x883   : > { %13717 = vmatprep.subr.mxu0 %v20497_v15  ;;  %13618 = vmatmul.mubr.bf16.gmra.mxu1 %v8239_v21 }
 0x884   : > { %13654 = vmatmul.mubr.bf16.gmra.mxu0 %v8402_v49  ;;  %13673 = vmatprep.mubr.msk.bf16.mxu1 %vm14470_vm8, %v20497_v15 }
 0x885   : > { %13718 = vmatpush3.msra.mxu0 %v20524_v3  ;;  %13725 = vmatprep.mubr.msk.f32.mxu0 %vm14470_vm8, %v20497_v15 }
 0x886   : > { %13719 = vmatprep.subr.mxu0 %v20497_v15 }
 0x887   : > { %13720 = vmatpush3.msra.mxu0 %v20525_v48 }
 0x888   : > { %13721 = vmatprep.subr.mxu0 %v20497_v15 }
 0x889   : > { %13722 = vmatpush3.msra.mxu0 %v20528_v41 }
 0x88a   : > { %13723 = vmatprep.subr.mxu0 %v20497_v15 }
 0x88b   : > { %13724 = vmatpush3.msra.mxu0 %v20529_v5  ;;  %13674 = vmatmul.mubr.bf16.vlgmr.msra.gmra.mxu1 %v8561_v58 }
 0x88c   : > { %13763 = vmatprep.subr.bf16.mxu0 %v20497_v15  ;;  %13677 = vmatprep.mubr.msk.bf16.mxu1 %vm14470_vm8, %v20497_v15 }
 0x88d   : > { %13729 = vmatpush3.msra.mxu1 %v20506_v35 }
 0x88e   : > { %13730 = vmatprep.subr.mxu1 %v20497_v15 }
 0x88f   : > { %13731 = vmatpush3.msra.mxu1 %v20507_v37 }
 0x890   : > { %13732 = vmatprep.subr.mxu1 %v20497_v15 }
 0x891   : > { %13733 = vmatpush3.msra.mxu1 %v20510_v63 }
 0x892   : > { %13734 = vmatprep.subr.mxu1 %v20497_v15 }
 0x893   : > { %13735 = vmatpush3.msra.mxu1 %v20511_v7 }
 0x894   : > { %13678 = vmatmul.mubr.bf16.gmra.mxu1 %v8562_v50  ;;  %13736 = vmatprep.subr.mxu1 %v20497_v15 }
 0x895   : > { %13681 = vmatprep.mubr.msk.bf16.mxu1 %vm14470_vm8, %v20497_v15  ;;  %13737 = vmatpush3.msra.mxu1 %v20512_v9 }
 0x896   : > { %13738 = vmatprep.subr.mxu1 %v20497_v15 }
 0x897   : > { %13739 = vmatpush3.msra.mxu1 %v20513_v46 }
 0x898   : > { %13740 = vmatprep.subr.mxu1 %v20497_v15 }
 0x899   : > { %13741 = vmatpush3.msra.mxu1 %v20516_v45 }
 0x89a   : > { %13742 = vmatprep.subr.mxu1 %v20497_v15 }
 0x89b   : > { %13743 = vmatpush3.msra.mxu1 %v20517_v13 }
 0x89c   : > { %13682 = vmatmul.mubr.bf16.gmra.mxu1 %v8563_v17  ;;  %13744 = vmatprep.subr.mxu1 %v20497_v15 }
 0x89d   : > { %13685 = vmatprep.mubr.msk.bf16.mxu1 %vm14470_vm8, %v20497_v15  ;;  %13745 = vmatpush3.msra.mxu1 %v20518_v60 }
 0x89e   : > { %13746 = vmatprep.subr.mxu1 %v20497_v15 }
 0x89f   : > { %13747 = vmatpush3.msra.mxu1 %v20519_v25 }
 0x8a0   : > { %13748 = vmatprep.subr.mxu1 %v20497_v15 }
 0x8a1   : > { %13749 = vmatpush3.msra.mxu1 %v20522_v62 }
 0x8a2   : > { %13750 = vmatprep.subr.mxu1 %v20497_v15 }
 0x8a3   : > { %13751 = vmatpush3.msra.mxu1 %v20523_v24 }
 0x8a4   : > { %13686 = vmatmul.mubr.bf16.gmra.mxu1 %v8564_v22  ;;  %13752 = vmatprep.subr.mxu1 %v20497_v15 }
 0x8a5   : > { %13689 = vmatprep.mubr.msk.bf16.mxu1 %vm14470_vm8, %v20497_v15  ;;  %13753 = vmatpush3.msra.mxu1 %v20524_v3 }
 0x8a6   : > { %13754 = vmatprep.subr.mxu1 %v20497_v15 }
 0x8a7   : > { %13755 = vmatpush3.msra.mxu1 %v20525_v48 }
 0x8a8   : > { %13756 = vmatprep.subr.mxu1 %v20497_v15 }
 0x8a9   : > { %13757 = vmatpush3.msra.mxu1 %v20528_v41 }
 0x8aa   : > { %13758 = vmatprep.subr.mxu1 %v20497_v15 }
 0x8ab   : > { %13759 = vmatpush3.msra.mxu1 %v20529_v5  ;;  %v7413_v14 = vpop.f32.mrf.mxu1 }
 0x8ac   : > { %v7534_v2 = vpop.f32.mrf.mxu0  ;;  %13690 = vmatmul.mubr.bf16.gmra.mxu1 %v8565_v0  ;;  %13799 = vmatprep.subr.bf16.mxu1 %v20497_v15 }
 0x8ad   : > { %v7535_v12 = vadd.f32 %v7534_v2, %v7413_v14  ;;  %13760 = vmatprep.mubr.msk.f32.mxu1 %vm14470_vm8, %v20497_v15  ;;  %v13387_v26 = vpop.f32.mrf.mxu1 }
 0x8ae   : > { %v13423_v54 = vpop.f32.mrf.mxu0 }
 0x8af   : > { %v7416_v1 = vpop.f32.mrf.mxu1 }
 0x8b0   : > { %v7537_v39 = vpop.f32.mrf.mxu0 }
 0x8b1   : > { %v7538_v56 = vadd.f32 %v7537_v39, %v7416_v1  ;;  %v13388_v31 = vpop.f32.mrf.mxu1 }
 0x8b2   : > { %v13424_v43 = vpop.f32.mrf.mxu0 }
 0x8b3   : > { %v7421_v4 = vpop.f32.mrf.mxu1 }
 0x8b4   : > { %v7542_v61 = vpop.f32.mrf.mxu0 }
 0x8b5   : > { %v7543_v59 = vadd.f32 %v7542_v61, %v7421_v4  ;;  %v13391_v28 = vpop.f32.mrf.mxu1 }
 0x8b6   : > { %v13427_v55 = vpop.f32.mrf.mxu0 }
 0x8b7   : > { %v7424_v21 = vpop.f32.mrf.mxu1 }
 0x8b8   : > { %v7545_v49 = vpop.f32.mrf.mxu0 }
 0x8b9   : > { %v7546_v16 = vadd.f32 %v7545_v49, %v7424_v21  ;;  %v13392_v32 = vpop.f32.mrf.mxu1 }
 0x8ba   : > { %v13428_v58 = vpop.f32.mrf.mxu0 }
 0x8bb   : > { %v7429_v57 = vpop.f32.mrf.mxu1 }
 0x8bc   : > { %v7550_v36 = vpop.f32.mrf.mxu0 }
 0x8bd   : > { %v7551_v50 = vadd.f32 %v7550_v36, %v7429_v57  ;;  %v13395_v19 = vpop.f32.mrf.mxu1 }
 0x8be   : > { %v13431_v11 = vpop.f32.mrf.mxu0 }
 0x8bf   : > { %v7432_v17 = vpop.f32.mrf.mxu1 }
 0x8c0   : > { %v7553_v30 = vpop.f32.mrf.mxu0 }
 0x8c1   : > { %v7554_v29 = vadd.f32 %v7553_v30, %v7432_v17  ;;  %v13396_v22 = vpop.f32.mrf.mxu1 }
 0x8c2   : > { %v13432_v38 = vpop.f32.mrf.mxu0 }
 0x8c3   : > { %v7437_v47 = vpop.f32.mrf.mxu1 }
 0x8c4   : > { %v7558_v0 = vpop.f32.mrf.mxu0 }
 0x8c5   : > { %v7559_v14 = vadd.f32 %v7558_v0, %v7437_v47  ;;  %v13399_v2 = vpop.f32.mrf.mxu1 }
 0x8c6   : > { %v13435_v26 = vpop.f32.mrf.mxu0 }
 0x8c7   : > { %v7440_v54 = vpop.f32.mrf.mxu1 }
 0x8c8   : > { %v7561_v1 = vpop.f32.mrf.mxu0 }
 0x8c9   : > { %v7562_v39 = vadd.f32 %v7561_v1, %v7440_v54  ;;  %v13400_v31 = vpop.f32.mrf.mxu1 }
 0x8ca   : > { %v13436_v43 = vpop.f32.mrf.mxu0 }
 0x8cb   : > { %v7445_v4 = vpop.f32.mrf.mxu1 }
 0x8cc   : > { %v7566_v61 = vpop.f32.mrf.mxu0 }
 0x8cd   : > { %v7567_v28 = vadd.f32 %v7566_v61, %v7445_v4  ;;  %v13403_v55 = vpop.f32.mrf.mxu1 }
 0x8ce   : > { %v13439_v21 = vpop.f32.mrf.mxu0 }
 0x8cf   : > { %v7448_v49 = vpop.f32.mrf.mxu1 }
 0x8d0   : > { %v7569_v32 = vpop.f32.mrf.mxu0 }
 0x8d1   : > { %v7570_v58 = vadd.f32 %v7569_v32, %v7448_v49  ;;  %v13404_v57 = vpop.f32.mrf.mxu1 }
 0x8d2   : > { %v13440_v36 = vpop.f32.mrf.mxu0 }
 0x8d3   : > { %v7687_v19 = vpop.f32.mrf.mxu1 }
 0x8d4   : > { %v7850_v11 = vpop.f32.mrf.mxu0  ;;  %v7726_v17 = vadd.f32 %v7687_v19, %v7535_v12 }
 0x8d5   : > { %v13459_v30 = vpop.f32.mrf.mxu1 }
 0x8d6   : > { %v13495_v22 = vpop.f32.mrf.mxu0  ;;  %v7889_v38 = vadd.f32 %v7850_v11, %v7726_v17 }
 0x8d7   : > { %v7690_v47 = vpop.f32.mrf.mxu1 }
 0x8d8   : > { %v7853_v0 = vpop.f32.mrf.mxu0  ;;  %v7727_v2 = vadd.f32 %v7690_v47, %v7538_v56 }
 0x8d9   : > { %v13460_v26 = vpop.f32.mrf.mxu1 }
 0x8da   : > { %v13496_v54 = vpop.f32.mrf.mxu0  ;;  %v7890_v1 = vadd.f32 %v7853_v0, %v7727_v2 }
 0x8db   : > { %v7695_v31 = vpop.f32.mrf.mxu1 }
 0x8dc   : > { %v7858_v43 = vpop.f32.mrf.mxu0  ;;  %v7728_v4 = vadd.f32 %v7695_v31, %v7543_v59 }
 0x8dd   : > { %v13463_v61 = vpop.f32.mrf.mxu1 }
 0x8de   : > { %v13499_v55 = vpop.f32.mrf.mxu0  ;;  %v7891_v21 = vadd.f32 %v7858_v43, %v7728_v4 }
 0x8df   : > { %v7698_v49 = vpop.f32.mrf.mxu1 }
 0x8e0   : > { %v7861_v32 = vpop.f32.mrf.mxu0  ;;  %v7729_v57 = vadd.f32 %v7698_v49, %v7546_v16 }
 0x8e1   : > { %v13464_v36 = vpop.f32.mrf.mxu1 }
 0x8e2   : > { %v13500_v12 = vpop.f32.mrf.mxu0  ;;  %v7892_v19 = vadd.f32 %v7861_v32, %v7729_v57 }
 0x8e3   : > { %v7703_v30 = vpop.f32.mrf.mxu1 }
 0x8e4   : > { %v7866_v11 = vpop.f32.mrf.mxu0  ;;  %v7730_v17 = vadd.f32 %v7703_v30, %v7551_v50 }
 0x8e5   : > { %v13467_v22 = vpop.f32.mrf.mxu1 }
 0x8e6   : > { %v13503_v56 = vpop.f32.mrf.mxu0  ;;  %v7893_v47 = vadd.f32 %v7866_v11, %v7730_v17 }
 0x8e7   : > { %v7706_v26 = vpop.f32.mrf.mxu1 }
 0x8e8   : > { %v7869_v0 = vpop.f32.mrf.mxu0  ;;  %v7731_v2 = vadd.f32 %v7706_v26, %v7554_v29 }
 0x8e9   : > { %v13468_v54 = vpop.f32.mrf.mxu1 }
 0x8ea   : > { %v13504_v59 = vpop.f32.mrf.mxu0  ;;  %v7894_v31 = vadd.f32 %v7869_v0, %v7731_v2 }
 0x8eb   : > { %v7711_v61 = vpop.f32.mrf.mxu1 }
 0x8ec   : > { %v7874_v43 = vpop.f32.mrf.mxu0  ;;  %v7732_v4 = vadd.f32 %v7711_v61, %v7559_v14 }
 0x8ed   : > { %v13471_v55 = vpop.f32.mrf.mxu1 }
 0x8ee   : > { %v13507_v16 = vpop.f32.mrf.mxu0  ;;  %v7895_v49 = vadd.f32 %v7874_v43, %v7732_v4 }
 0x8ef   : > { %v7714_v36 = vpop.f32.mrf.mxu1 }
 0x8f0   : > { %v7877_v32 = vpop.f32.mrf.mxu0  ;;  %v7733_v57 = vadd.f32 %v7714_v36, %v7562_v39 }
 0x8f1   : > { %v13472_v12 = vpop.f32.mrf.mxu1 }
 0x8f2   : > { %v13508_v50 = vpop.f32.mrf.mxu0  ;;  %v7896_v30 = vadd.f32 %v7877_v32, %v7733_v57 }
 0x8f3   : > { %v7719_v22 = vpop.f32.mrf.mxu1 }
 0x8f4   : > { %v7882_v11 = vpop.f32.mrf.mxu0  ;;  %v7734_v17 = vadd.f32 %v7719_v22, %v7567_v28 }
 0x8f5   : > { %v13475_v56 = vpop.f32.mrf.mxu1 }
 0x8f6   : > { %v13511_v29 = vpop.f32.mrf.mxu0  ;;  %v7897_v26 = vadd.f32 %v7882_v11, %v7734_v17 }
 0x8f7   : > { %v7722_v54 = vpop.f32.mrf.mxu1 }
 0x8f8   : > { %v7885_v0 = vpop.f32.mrf.mxu0  ;;  %v7735_v2 = vadd.f32 %v7722_v54, %v7570_v58 }
 0x8f9   : > { %v13476_v59 = vpop.f32.mrf.mxu1 }
 0x8fa   : > { %v13512_v14 = vpop.f32.mrf.mxu0  ;;  %v7898_v61 = vadd.f32 %v7885_v0, %v7735_v2 }
 0x8fb   : > { %v8013_v55 = vpop.f32.mrf.mxu1 }
 0x8fc   : > { %v8176_v43 = vpop.f32.mrf.mxu0  ;;  %v8052_v4 = vadd.f32 %v8013_v55, %v7889_v38 }
 0x8fd   : > { %v13531_v16 = vpop.f32.mrf.mxu1 }
 0x8fe   : > { %v13567_v39 = vpop.f32.mrf.mxu0  ;;  %v18919_v36 = vadd.f32 %v8176_v43, %v8052_v4 }
 0x8ff   : > { %v8016_v32 = vpop.f32.mrf.mxu1 }
 0x900   : > { %v8179_v57 = vpop.f32.mrf.mxu0  ;;  %v8053_v12 = vadd.f32 %v8016_v32, %v7890_v1 }
 0x901   : > { %v13532_v28 = vpop.f32.mrf.mxu1 }
 0x902   : > { %v13568_v50 = vpop.f32.mrf.mxu0  ;;  %v18921_v22 = vadd.f32 %v8179_v57, %v8053_v12 }
 0x903   : > { %v8021_v11 = vpop.f32.mrf.mxu1 }
 0x904   : > { %v8184_v17 = vpop.f32.mrf.mxu0  ;;  %v8054_v58 = vadd.f32 %v8021_v11, %v7891_v21 }
 0x905   : > { %v13535_v56 = vpop.f32.mrf.mxu1 }
 0x906   : > { %v13571_v29 = vpop.f32.mrf.mxu0  ;;  %v18923_v54 = vadd.f32 %v8184_v17, %v8054_v58 }
 0x907   : > { %v8024_v0 = vpop.f32.mrf.mxu1 }
 0x908   : > { %v8187_v38 = vpop.f32.mrf.mxu0  ;;  %v8055_v2 = vadd.f32 %v8024_v0, %v7892_v19 }
 0x909   : > { %v13536_v59 = vpop.f32.mrf.mxu1 }
 0x90a   : > { %v13572_v14 = vpop.f32.mrf.mxu0  ;;  %v18925_v55 = vadd.f32 %v8187_v38, %v8055_v2 }
 0x90b   : > { %v8029_v43 = vpop.f32.mrf.mxu1 }
 0x90c   : > { %v8192_v1 = vpop.f32.mrf.mxu0  ;;  %v8056_v4 = vadd.f32 %v8029_v43, %v7893_v47 }
 0x90d   : > { %v13539_v16 = vpop.f32.mrf.mxu1 }
 0x90e   : > { %v13575_v39 = vpop.f32.mrf.mxu0  ;;  %v18927_v32 = vadd.f32 %v8192_v1, %v8056_v4 }
 0x90f   : > { %v8032_v57 = vpop.f32.mrf.mxu1 }
 0x910   : > { %v8195_v21 = vpop.f32.mrf.mxu0  ;;  %v8057_v12 = vadd.f32 %v8032_v57, %v7894_v31 }
 0x911   : > { %v13540_v28 = vpop.f32.mrf.mxu1 }
 0x912   : > { %v13576_v50 = vpop.f32.mrf.mxu0  ;;  %v18929_v11 = vadd.f32 %v8195_v21, %v8057_v12 }
 0x913   : > { %v8037_v17 = vpop.f32.mrf.mxu1 }
 0x914   : > { %v8200_v19 = vpop.f32.mrf.mxu0  ;;  %v8058_v58 = vadd.f32 %v8037_v17, %v7895_v49 }
 0x915   : > { %v13543_v56 = vpop.f32.mrf.mxu1 }
 0x916   : > { %v13579_v29 = vpop.f32.mrf.mxu0  ;;  %v18931_v0 = vadd.f32 %v8200_v19, %v8058_v58 }
 0x917   : > { %v8040_v38 = vpop.f32.mrf.mxu1 }
 0x918   : > { %v8203_v47 = vpop.f32.mrf.mxu0  ;;  %v8059_v2 = vadd.f32 %v8040_v38, %v7896_v30 }
 0x919   : > { %v13544_v59 = vpop.f32.mrf.mxu1 }
 0x91a   : > { %v13580_v14 = vpop.f32.mrf.mxu0  ;;  %v18933_v43 = vadd.f32 %v8203_v47, %v8059_v2 }
 0x91b   : > { %v8045_v1 = vpop.f32.mrf.mxu1 }
 0x91c   : > { %v8208_v31 = vpop.f32.mrf.mxu0  ;;  %v8060_v4 = vadd.f32 %v8045_v1, %v7897_v26 }
 0x91d   : > { %v13547_v16 = vpop.f32.mrf.mxu1 }
 0x91e   : > { %v13583_v39 = vpop.f32.mrf.mxu0  ;;  %v18935_v57 = vadd.f32 %v8208_v31, %v8060_v4 }
 0x91f   : > { %v8048_v21 = vpop.f32.mrf.mxu1 }
 0x920   : > { %v8211_v49 = vpop.f32.mrf.mxu0  ;;  %v8061_v12 = vadd.f32 %v8048_v21, %v7898_v61 }
 0x921   : > { %v13548_v28 = vpop.f32.mrf.mxu1 }
 0x922   : > { %v13584_v50 = vpop.f32.mrf.mxu0  ;;  %v18937_v17 = vadd.f32 %v8211_v49, %v8061_v12 }
 0x923   : > { %v8339_v19 = vpop.f32.mrf.mxu1 }
 0x924   : > { %v8502_v30 = vpop.f32.mrf.mxu0 }
 0x925   : > { %v13603_v58 = vpop.f32.mrf.mxu1 }
 0x926   : > { %v13639_v56 = vpop.f32.mrf.mxu0 }
 0x927   : > { %v8342_v29 = vpop.f32.mrf.mxu1 }
 0x928   : > { %v8505_v38 = vpop.f32.mrf.mxu0 }
 0x929   : > { %v13604_v47 = vpop.f32.mrf.mxu1 }
 0x92a   : > { %v13640_v2 = vpop.f32.mrf.mxu0 }
 0x92b   : > { %v8347_v26 = vpop.f32.mrf.mxu1 }
 0x92c   : > { %v8510_v59 = vpop.f32.mrf.mxu0 }
 0x92d   : > { %v13607_v14 = vpop.f32.mrf.mxu1 }
 0x92e   : > { %v13643_v1 = vpop.f32.mrf.mxu0 }
 0x92f   : > { %v8350_v31 = vpop.f32.mrf.mxu1 }
 0x930   : > { %v8513_v4 = vpop.f32.mrf.mxu0 }
 0x931   : > { %v13608_v16 = vpop.f32.mrf.mxu1 }
 0x932   : > { %v13644_v61 = vpop.f32.mrf.mxu0 }
 0x933   : > { %v8355_v39 = vpop.f32.mrf.mxu1 }
 0x934   : > { %v8518_v21 = vpop.f32.mrf.mxu0 }
 0x935   : > { %v13611_v49 = vpop.f32.mrf.mxu1 }
 0x936   : > { %v13647_v12 = vpop.f32.mrf.mxu0 }
 0x937   : > { %v8358_v28 = vpop.f32.mrf.mxu1 }
 0x938   : > { %v8521_v50 = vpop.f32.mrf.mxu0 }
 0x939   : > { %v13612_v58 = vpop.f32.mrf.mxu1 }
 0x93a   : > { %v13648_v56 = vpop.f32.mrf.mxu0 }
 0x93b   : > { %v8363_v5 = vpop.f32.mrf.mxu1 }
 0x93c   : > { %v8526_v41 = vpop.f32.mrf.mxu0 }
 0x93d   : > { %v13615_v47 = vpop.f32.mrf.mxu1 }
 0x93e   : > { %v13651_v2 = vpop.f32.mrf.mxu0 }
 0x93f   : > { %v8366_v48 = vpop.f32.mrf.mxu1  ;;  %v8379_v2 = vadd.f32 %v8342_v29, %v18921_v22 }
 0x940   : > { %v18939_v3 = vpop.f32.mrf.mxu0 }
 0x941   : > { %v13616_v14 = vpop.f32.mrf.mxu1  ;;  %v8542_v45 = vadd.f32 %v8505_v38, %v8379_v2 }
 0x942   : > { %v13652_v1 = vpop.f32.mrf.mxu0  ;;  %v8378_v14 = vadd.f32 %v8339_v19, %v18919_v36 }
 0x943   : > { %v18941_v24 = vpop.f32.mrf.mxu1  ;;  %v8380_v1 = vadd.f32 %v8347_v26, %v18923_v54 }
 0x944   : > { %v18943_v16 = vpop.f32.mrf.mxu0  ;;  %v8541_v9 = vadd.f32 %v8502_v30, %v8378_v14 }
 0x945   : > { %v13619_v61 = vpop.f32.mrf.mxu1  ;;  %v8543_v7 = vadd.f32 %v8510_v59, %v8380_v1 }
 0x946   : > { %v13655_v49 = vpop.f32.mrf.mxu0  ;;  %v8381_v61 = vadd.f32 %v8350_v31, %v18925_v55 }
 0x947   : > { %v18945_v12 = vpop.f32.mrf.mxu1  ;;  %v8716_v49 = vsub.s32 2, %v20530_v42 }
 0x948   : > { %v18947_v62 = vpop.f32.mrf.mxu0  ;;  %v8544_v63 = vadd.f32 %v8513_v4, %v8381_v61 }
 0x949   : > { %v13620_v58 = vpop.f32.mrf.mxu1  ;;  %v18958_v36 = vrot.slane %v20531_v8, %v8716_v49 }
 0x94a   : > { %v13656_v56 = vpop.f32.mrf.mxu0 }
 0x94b   : > { %v8665_v25 = vpop.f32.mrf.mxu1 }
 0x94c   : > { %v8704_v22 = vadd.f32 %v8665_v25, %v8541_v9 }
 0x94d   : > { %v13675_v47 = vpop.f32.mrf.mxu1 }
 0x94e   : > { %v8382_v47 = vadd.f32 %v8355_v39, %v18927_v32 }
 0x94f   : > { %v8668_v60 = vpop.f32.mrf.mxu1 }
 0x950   : > { %v8705_v58 = vadd.f32 %v8668_v60, %v8542_v45  ;;  %v8545_v30 = vadd.f32 %v8518_v21, %v8382_v47  ;;  %v8383_v45 = vadd.f32 %v8358_v28, %v18929_v11  ;;  %v18965_v60 = vadd.f32 %v18958_v36, %v8704_v22 }
 0x951   : > { %v13676_v13 = vpop.f32.mrf.mxu1 }
 0x952   : > { %v18961_v55 = vadd.f32 %v18958_v36, %v8705_v58  ;;  %v8546_v26 = vadd.f32 %v8521_v50, %v8383_v45  ;;  %v8728_v59 = vmax.f32 %v18965_v60, 0.0  ;;  %v8385_v50 = vadd.f32 %v8366_v48, %v18933_v43 }
 0x954   : > { %v8673_v46 = vpop.f32.mrf.mxu1  ;;  %v8729_v38 = vmax.f32 %v18961_v55, 0.0  ;;  %v8548_v22 = vadd.f32 %v18939_v3, %v8385_v50 }
 0x955   : > { %v8706_v13 = vadd.f32 %v8673_v46, %v8543_v7 }
 0x956   : > { %v13679_v56 = vpop.f32.mrf.mxu1  ;;  %v8739_v21 = vmul.f32 %v8729_v38, %v18261_v33 }
 0x957   : > { %v18968_v9 = vadd.f32 %v18958_v36, %v8706_v13  ;;  %v8386_v13 = vadd.f32 %v18941_v24, %v18935_v57 }
 0x958   : > { %v8676_v54 = vpop.f32.mrf.mxu1  ;;  %v8765_v47 = vmul.f32 %v8739_v21, %v8739_v21 }
 0x959   : > { %v8707_v19 = vadd.f32 %v8676_v54, %v8544_v63  ;;  %v8384_v63 = vadd.f32 %v8363_v5, %v18931_v0  ;;  %v8730_v11 = vmax.f32 %v18968_v9, 0.0  ;;  %v8738_v0 = vmul.f32 %v8728_v59, %v18255_v18 }
 0x95a   : > { %v13680_v29 = vpop.f32.mrf.mxu1  ;;  %v8549_v57 = vadd.f32 %v18943_v16, %v8386_v13 }
 0x95b   : > { %v18972_v7 = vadd.f32 %v18958_v36, %v8707_v19  ;;  %v8547_v14 = vadd.f32 %v8526_v41, %v8384_v63  ;;  %v8740_v1 = vmul.f32 %v8730_v11, %v18272_v34  ;;  %v8764_v19 = vmul.f32 %v8738_v0, %v8738_v0 }
 0x95c   : > { %v8681_v25 = vpop.f32.mrf.mxu1 }
 0x95d   : > { %v8708_v32 = vadd.f32 %v8681_v25, %v8545_v30  ;;  %v8731_v28 = vmax.f32 %v18972_v7, 0.0  ;;  %v8766_v29 = vmul.f32 %v8740_v1, %v8740_v1  ;;  %v8748_v25 = vadd.f32 %v8739_v21, %v8738_v0 }
 0x95e   : > { %v13683_v46 = vpop.f32.mrf.mxu1 }
 0x95f   : > { %v18978_v31 = vadd.f32 %v18958_v36, %v8708_v32  ;;  %v8741_v48 = vmul.f32 %v8731_v28, %v18279_v53 }
 0x960   : > { %v8684_v4 = vpop.f32.mrf.mxu1 }
 0x961   : > { %v8709_v39 = vadd.f32 %v8684_v4, %v8546_v26  ;;  %v8732_v61 = vmax.f32 %v18978_v31, 0.0  ;;  %v8774_v26 = vadd.f32 %v8765_v47, %v8764_v19  ;;  %v8767_v63 = vmul.f32 %v8741_v48, %v8741_v48 }
 0x962   : > { %v13684_v2 = vpop.f32.mrf.mxu1  ;;  %v8387_v4 = vadd.f32 %v18945_v12, %v18937_v17 }
 0x963   : > { %v18986_v5 = vadd.f32 %v18958_v36, %v8709_v39  ;;  %v8742_v30 = vmul.f32 %v8732_v61, %v18295_v52  ;;  %v8749_v39 = vadd.f32 %v8748_v25, %v8740_v1  ;;  %v8775_v21 = vadd.f32 %v8774_v26, %v8766_v29 }
 0x964   : > { %v8689_v58 = vpop.f32.mrf.mxu1  ;;  %v8550_v17 = vadd.f32 %v18947_v62, %v8387_v4 }
 0x965   : > { %v8710_v56 = vadd.f32 %v8689_v58, %v8547_v14  ;;  %v8733_v41 = vmax.f32 %v18986_v5, 0.0  ;;  %v8768_v14 = vmul.f32 %v8742_v30, %v8742_v30  ;;  %v8750_v0 = vadd.f32 %v8749_v39, %v8741_v48 }
 0x966   : > { %v13687_v43 = vpop.f32.mrf.mxu1 }
 0x967   : > { %v19003_v54 = vadd.f32 %v18958_v36, %v8710_v56  ;;  %v8743_v24 = vmul.f32 %v8733_v41, %v18303_v27  ;;  %v8776_v43 = vadd.f32 %v8775_v21, %v8767_v63  ;;  %v8751_v12 = vadd.f32 %v8750_v0, %v8742_v30 }
 0x968   : > { %v8692_v45 = vpop.f32.mrf.mxu1 }
 0x969   : > { %v8734_v32 = vmax.f32 %v19003_v54, 0.0  ;;  %v8711_v46 = vadd.f32 %v8692_v45, %v8548_v22  ;;  %v8769_v16 = vmul.f32 %v8743_v24, %v8743_v24  ;;  %v8777_v48 = vadd.f32 %v8776_v43, %v8768_v14 }
 0x96a   : > { %v13688_v3 = vpop.f32.mrf.mxu1  ;;  %v8752_v29 = vadd.f32 %v8751_v12, %v8743_v24 }
 0x96b   : > { %v19016_v2 = vadd.f32 %v18958_v36, %v8711_v46  ;;  %v8744_v58 = vmul.f32 %v8734_v32, %v18315_v23  ;;  %v8778_v26 = vadd.f32 %v8777_v48, %v8769_v16 }
 0x96c   : > { %v8697_v50 = vpop.f32.mrf.mxu1 }
 0x96d   : > { %v8735_v56 = vmax.f32 %v19016_v2, 0.0  ;;  %v8712_v47 = vadd.f32 %v8697_v50, %v8549_v57  ;;  %v8770_v45 = vmul.f32 %v8744_v58, %v8744_v58  ;;  %v8753_v3 = vadd.f32 %v8752_v29, %v8744_v58 }
 0x96e   : > { %v13691_v22 = vpop.f32.mrf.mxu1 }
 0x96f   : > { %v8745_v1 = vmul.f32 %v8735_v56, %v18324_v10  ;;  %v19027_v13 = vadd.f32 %v18958_v36, %v8712_v47  ;;  %v8779_v4 = vadd.f32 %v8778_v26, %v8770_v45 }
 0x970   : > { %v8700_v19 = vpop.f32.mrf.mxu1 }
 0x971   : > { %v8736_v25 = vmax.f32 %v19027_v13, 0.0  ;;  %v8713_v46 = vadd.f32 %v8700_v19, %v8550_v17  ;;  %v8771_v57 = vmul.f32 %v8745_v1, %v8745_v1  ;;  %v8754_v39 = vadd.f32 %v8753_v3, %v8745_v1 }
 0x972   : > { %v13692_v63 = vpop.f32.mrf.mxu1 }
 0x973   : > { %v8746_v62 = vmul.f32 %v8736_v25, %v18333_v51  ;;  %v19034_v30 = vadd.f32 %v18958_v36, %v8713_v46  ;;  %v8780_v14 = vadd.f32 %v8779_v4, %v8771_v57  ;;  %v14351_v4 = vld [vmem:[%s19779_s4 + $0x38] sm:$0xff]  }
 0x975   : > { %v8772_v21 = vmul.f32 %v8746_v62, %v8746_v62  ;;  %v8737_v24 = vmax.f32 %v19034_v30, 0.0  ;;  %v8755_v50 = vadd.f32 %v8754_v39, %v8746_v62  ;;  %v14350_v62 = vld [vmem:[%s19779_s4 + $0x78] sm:$0xff]   ;;  %v14352_v39 = vld [vmem:[%s19779_s4 + $0x70] sm:$0xff]  }
 0x977   : > { %v8747_v0 = vmul.f32 %v8737_v24, %v18341_v20  ;;  %v8781_v58 = vadd.f32 %v8780_v14, %v8772_v21  ;;  %v14353_v21 = vld [vmem:[%s19779_s4 + $0x30] sm:$0xff]   ;;  %v14354_v14 = vld [vmem:[%s19779_s4 + $0x68] sm:$0xff]  }
 0x979   : > { %v8756_v47 = vadd.f32 %v8755_v50, %v8747_v0  ;;  %v8773_v43 = vmul.f32 %v8747_v0, %v8747_v0  ;;  %v14355_v50 = vld [vmem:[%s19779_s4 + $0x28] sm:$0xff]   ;;  %v14356_v0 = vld [vmem:[%s19779_s4 + $0x60] sm:$0xff]  }
 0x97b   : > { %v8757_v16 = vrot.slane %v8756_v47, 4  ;;  %v8782_v22 = vadd.f32 %v8781_v58, %v8773_v43  ;;  %v14357_v58 = vld [vmem:[%s19779_s4 + $0x20] sm:$0xff]   ;;  %v14359_v43 = vld [vmem:[%s19779_s4 + $0x18] sm:$0xff]  }
 0x97d   : > { %v8758_v17 = vadd.f32 %v8757_v16, %v8756_v47  ;;  %v8783_v12 = vrot.slane %v8782_v22, 4  ;;  %v14358_v47 = vld [vmem:[%s19779_s4 + $0x58] sm:$0xff]   ;;  %v14360_v16 = vld [vmem:[%s19779_s4 + $0x50] sm:$0xff]  }
 0x97f   : > { %v8759_v36 = vrot.slane %v8758_v17, 2  ;;  %v8784_v48 = vadd.f32 %v8783_v12, %v8782_v22  ;;  %v14361_v22 = vld [vmem:[%s19779_s4 + $0x10] sm:$0xff]   ;;  %v14363_v12 = vld [vmem:[%s19779_s4 + $0x8] sm:$0xff]  }
 0x981   : > { %v8760_v19 = vadd.f32 %v8759_v36, %v8758_v17  ;;  %v8785_v1 = vrot.slane %v8784_v48, 2  ;;  %v14362_v17 = vld [vmem:[%s19779_s4 + $0x48] sm:$0xff]   ;;  %v14364_v36 = vld [vmem:[%s19779_s4 + $0x40] sm:$0xff]  }
 0x983   : > { %v8761_v29 = vrot.slane %v8760_v19, 1  ;;  %v8786_v45 = vadd.f32 %v8785_v1, %v8784_v48  ;;  %v14365_v48 = vld [vmem:[%s19779_s4] sm:$0xff]  }
 0x985   : > { %v8762_v46 = vadd.f32 %v8761_v29, %v8760_v19  ;;  %v8787_v26 = vrot.slane %v8786_v45, 1 }
 0x987   : > { %v8763_v63 = vmul.f32 0.015625, %v8762_v46  ;;  %v8788_v3 = vadd.f32 %v8787_v26, %v8786_v45 }
 0x989   : > { %v8789_v57 = vmul.f32 0.015625, %v8788_v3  ;;  %13726 = vmatmul.mubr.f32.vlgmr.msra.gmra.mxu0 %v8763_v63 }
 0x98a   : > { %13779 = vmatprep.mubr.msk.bf16.mxu0 %vm14470_vm8, %v20497_v15  ;;  %13764 = vmatpush3.bf16.msra.mxu0 %v14350_v62 }
 0x98b   : > { %13761 = vmatmul.mubr.f32.vlgmr.msra.gmra.mxu1 %v8789_v57  ;;  %13765 = vmatprep.subr.bf16.mxu0 %v20497_v15  ;;  %v8935_v57 = vrot.slane %v20533_v40, 2 }
 0x98c   : > { %13815 = vmatprep.mubr.msk.bf16.mxu1 %vm14470_vm8, %v20497_v15  ;;  %13800 = vmatpush3.bf16.msra.mxu1 %v14351_v4 }
 0x98d   : > { %13801 = vmatprep.subr.bf16.mxu1 %v20497_v15 }
 0x98e   : > { %13766 = vmatpush3.bf16.msra.mxu0 %v14352_v39 }
 0x98f   : > { %13767 = vmatprep.subr.bf16.mxu0 %v20497_v15 }
 0x990   : > { %13802 = vmatpush3.bf16.msra.mxu1 %v14353_v21  ;;  %v8969_v21 = vrot.slane %v20536_v44, %v8716_v49 }
 0x991   : > { %13803 = vmatprep.subr.bf16.mxu1 %v20497_v15 }
 0x992   : > { %13768 = vmatpush3.bf16.msra.mxu0 %v14354_v14 }
 0x993   : > { %13769 = vmatprep.subr.bf16.mxu0 %v20497_v15 }
 0x994   : > { %13804 = vmatpush3.bf16.msra.mxu1 %v14355_v50 }
 0x995   : > { %13805 = vmatprep.subr.bf16.mxu1 %v20497_v15 }
 0x996   : > { %13770 = vmatpush3.bf16.msra.mxu0 %v14356_v0 }
 0x997   : > { %13771 = vmatprep.subr.bf16.mxu0 %v20497_v15 }
 0x998   : > { %13806 = vmatpush3.bf16.msra.mxu1 %v14357_v58 }
 0x999   : > { %13807 = vmatprep.subr.bf16.mxu1 %v20497_v15 }
 0x99a   : > { %13772 = vmatpush3.bf16.msra.mxu0 %v14358_v47 }
 0x99b   : > { %13773 = vmatprep.subr.bf16.mxu0 %v20497_v15 }
 0x99c   : > { %13808 = vmatpush3.bf16.msra.mxu1 %v14359_v43 }
 0x99d   : > { %13809 = vmatprep.subr.bf16.mxu1 %v20497_v15 }
 0x99e   : > { %13774 = vmatpush3.bf16.msra.mxu0 %v14360_v16 }
 0x99f   : > { %13775 = vmatprep.subr.bf16.mxu0 %v20497_v15 }
 0x9a0   : > { %13810 = vmatpush3.bf16.msra.mxu1 %v14361_v22 }
 0x9a1   : > { %13811 = vmatprep.subr.bf16.mxu1 %v20497_v15 }
 0x9a2   : > { %13776 = vmatpush3.bf16.msra.mxu0 %v14362_v17 }
 0x9a3   : > { %13777 = vmatprep.subr.bf16.mxu0 %v20497_v15 }
 0x9a4   : > { %13812 = vmatpush3.bf16.msra.mxu1 %v14363_v12 }
 0x9a5   : > { %13813 = vmatprep.subr.bf16.mxu1 %v20497_v15 }
 0x9a6   : > { %13778 = vmatpush3.bf16.msra.mxu0 %v14364_v36 }
 0x9a7   : > { %13835 = vmatprep.subr.bf16.mxu0 %v20497_v15 }
 0x9a8   : > { %13814 = vmatpush3.bf16.msra.mxu1 %v14365_v48 }
 0x9a9   : > { %13871 = vmatprep.subr.bf16.mxu1 %v20497_v15 }
 0xa49   : > { %v8856_v19 = vpop.f32.mrf.mxu0 }
 0xa4a   : > { %v8930_v1 = vmul.f32 %v8856_v19, %v8856_v19  ;;  %v8941_v62 = vrot.slane %v8856_v19, %v20534_v6 }
 0xa4b   : > { %v13727_v29 = vpop.f32.mrf.mxu0  ;;  %v8926_v45 = vpop.f32.mrf.mxu1 }
 0xa4c   : > { %v8931_v46 = vsub.f32 %v8926_v45, %v8930_v1  ;;  %v8942_v14 = vsub.f32 %v8728_v59, %v8941_v62  ;;  %v8943_v50 = vsub.f32 %v8729_v38, %v8941_v62  ;;  %v8944_v0 = vsub.f32 %v8730_v11, %v8941_v62 }
 0xa4d   : > { %v13762_v26 = vpop.f32.mrf.mxu1  ;;  %v8945_v47 = vsub.f32 %v8731_v28, %v8941_v62  ;;  %v8946_v43 = vsub.f32 %v8732_v61, %v8941_v62  ;;  %v8947_v49 = vsub.f32 %v8733_v41, %v8941_v62  ;;  %v8948_v60 = vsub.f32 %v8734_v32, %v8941_v62 }
 0xa4e   : > { %v8932_v63 = vmax.f32 %v8931_v46, 0.0  ;;  %v8949_v55 = vsub.f32 %v8735_v56, %v8941_v62  ;;  %v8950_v9 = vsub.f32 %v8736_v25, %v8941_v62  ;;  %v8951_v38 = vsub.f32 %v8737_v24, %v8941_v62 }
 0xa50   : > { %v8933_v3 = vadd.f32 1e-05, %v8932_v63 }
 0xa52   : > { %14426 = vrsqrt.f32 %v8933_v3 }
 0xa5f   : > { %v14427_v4 = vpop.eup %14426 }
 0xa60   : > { %v8937_v39 = vmul.f32 %v14427_v4, %v8935_v57 }
 0xa62   : > { %v8955_v58 = vrot.slane %v8937_v39, %v20534_v6 }
 0xa64   : > { %v8956_v7 = vmul.f32 %v8955_v58, %v8942_v14  ;;  %v8957_v59 = vmul.f32 %v8955_v58, %v8943_v50  ;;  %v8958_v11 = vmul.f32 %v8955_v58, %v8944_v0  ;;  %v8959_v31 = vmul.f32 %v8955_v58, %v8945_v47  ;;  %v9031_v14 = vld [vmem:[#allocation4 + $0x1] sm:$0xff] }
 0xa65   : > { %v8960_v28 = vmul.f32 %v8955_v58, %v8946_v43  ;;  %v8961_v61 = vmul.f32 %v8955_v58, %v8947_v49  ;;  %v8962_v5 = vmul.f32 %v8955_v58, %v8948_v60  ;;  %v8963_v41 = vmul.f32 %v8955_v58, %v8949_v55  ;;  %v9000_v50 = vld [vmem:[#allocation4] sm:$0xff]  ;;  %v14366_v49 = vld [vmem:[%s19779_s4 + $0xb8] sm:$0xff]  }
 0xa66   : > { %v8970_v16 = vadd.f32 %v8969_v21, %v8956_v7  ;;  %v8971_v54 = vadd.f32 %v8969_v21, %v8957_v59  ;;  %v8972_v32 = vadd.f32 %v8969_v21, %v8958_v11  ;;  %v8973_v22 = vadd.f32 %v8969_v21, %v8959_v31  ;;  %v14367_v60 = vld [vmem:[%s19779_s4 + $0xf8] sm:$0xff]  }
 0xa67   : > { %v8974_v2 = vadd.f32 %v8969_v21, %v8960_v28  ;;  %v8975_v56 = vadd.f32 %v8969_v21, %v8961_v61  ;;  %v8976_v17 = vadd.f32 %v8969_v21, %v8962_v5  ;;  %v8964_v13 = vmul.f32 %v8955_v58, %v8950_v9  ;;  %v14368_v9 = vld [vmem:[%s19779_s4 + $0xb0] sm:$0xff]   ;;  %v14370_v61 = vld [vmem:[%s19779_s4 + $0xa8] sm:$0xff]  }
 0xa68   : > { %v19135_v25 = vmul.f32 %v8970_v16, %v18255_v18  ;;  %v19138_v30 = vmul.f32 %v8971_v54, %v18261_v33  ;;  %v19141_v24 = vmul.f32 %v8972_v32, %v18272_v34  ;;  %v19144_v12 = vmul.f32 %v8973_v22, %v18279_v53  ;;  %v14371_v5 = vld [vmem:[%s19779_s4 + $0xe8] sm:$0xff]   ;;  %v14372_v16 = vld [vmem:[%s19779_s4 + $0xa0] sm:$0xff]  }
 0xa69   : > { %v19147_v36 = vmul.f32 %v8974_v2, %v18295_v52  ;;  %v19150_v48 = vmul.f32 %v8975_v56, %v18303_v27  ;;  %v19153_v19 = vmul.f32 %v8976_v17, %v18315_v23  ;;  %v8977_v1 = vadd.f32 %v8969_v21, %v8963_v41  ;;  %v14373_v54 = vld [vmem:[%s19779_s4 + $0xe0] sm:$0xff]  }
 0xa6a   : > { %8990 = vst [vmem:[#allocation4 + $0xb] sm:$0xff] %v19135_v25  ;;  %8991 = vst [vmem:[#allocation4 + $0x13] sm:$0xff] %v19138_v30  ;;  %v8978_v29 = vadd.f32 %v8969_v21, %v8964_v13  ;;  %v8965_v45 = vmul.f32 %v8955_v58, %v8951_v38  ;;  %v9641_v46 = vpack.c.bf16 %v19138_v30, %v19135_v25  ;;  %v14369_v38 = vld [vmem:[%s19779_s4 + $0xf0] sm:$0xff]   ;;  %v14374_v13 = vld [vmem:[%s19779_s4 + $0x98] sm:$0xff]  }
 0xa6b   : > { %8992 = vst [vmem:[#allocation4 + $0x1b] sm:$0xff] %v19141_v24  ;;  %8993 = vst [vmem:[#allocation4 + $0x23] sm:$0xff] %v19144_v12  ;;  %v9642_v26 = vpack.c.bf16 %v19144_v12, %v19141_v24  ;;  %v19167_v63 = vmul.f32 %v8977_v1, %v18324_v10  ;;  %v9643_v3 = vpack.c.bf16 %v19150_v48, %v19147_v36  ;;  %v14375_v1 = vld [vmem:[%s19779_s4 + $0xd8] sm:$0xff]  }
 0xa6c   : > { %8994 = vst [vmem:[#allocation4 + $0x2b] sm:$0xff] %v19147_v36  ;;  %8995 = vst [vmem:[#allocation4 + $0x33] sm:$0xff] %v19150_v48  ;;  %v19172_v57 = vmul.f32 %v8978_v29, %v18333_v51  ;;  %v8979_v62 = vadd.f32 %v8969_v21, %v8965_v45  ;;  %v14376_v45 = vld [vmem:[%s19779_s4 + $0x90] sm:$0xff]  }
 0xa6d   : > { %8996 = vst [vmem:[#allocation4 + $0x3b] sm:$0xff] %v19153_v19  ;;  %8997 = vst [vmem:[#allocation4 + $0x43] sm:$0xff] %v19167_v63  ;;  %v9644_v4 = vpack.c.bf16 %v19167_v63, %v19153_v19 }
 0xa6e   : > { %8998 = vst [vmem:[#allocation4 + $0x4b] sm:$0xff] %v19172_v57  ;;  %v19179_v39 = vmul.f32 %v8979_v62, %v18341_v20  ;;  %v14377_v62 = vld [vmem:[%s19779_s4 + $0xd0] sm:$0xff]  }
 0xa70   : > { %8999 = vst [vmem:[#allocation4 + $0x53] sm:$0xff] %v19179_v39  ;;  %v9645_v0 = vpack.c.bf16 %v19179_v39, %v19172_v57  ;;  %v14415_v57 = vld [vmem:[%s19779_s4 + $0x230] sm:$0xff]  }
 0xa71   : > { %v9032_v58 = vld [vmem:[#allocation4 + $0x9] sm:$0xff]  ;;  %v9033_v55 = vld [vmem:[#allocation4 + $0x11] sm:$0xff] }
 0xa72   : > { %v9001_v47 = vld [vmem:[#allocation4 + $0x8] sm:$0xff]  ;;  %v9041_v21 = vpack.c.bf16 %v9032_v58, %v9031_v14  ;;  %v9034_v7 = vld [vmem:[#allocation4 + $0x19] sm:$0xff]  ;;  %v9002_v59 = vld [vmem:[#allocation4 + $0x10] sm:$0xff] }
 0xa73   : > { %v9010_v43 = vpack.c.bf16 %v9001_v47, %v9000_v50  ;;  %v9003_v11 = vld [vmem:[#allocation4 + $0x18] sm:$0xff]  ;;  %v9042_v31 = vpack.c.bf16 %v9034_v7, %v9033_v55  ;;  %v9035_v41 = vld [vmem:[#allocation4 + $0x21] sm:$0xff]  ;;  %v9036_v32 = vld [vmem:[#allocation4 + $0x29] sm:$0xff] }
 0xa74   : > { %13780 = vmatmul.mubr.bf16.vlgmr.msra.gmra.mxu0 %v9041_v21  ;;  %v9011_v28 = vpack.c.bf16 %v9003_v11, %v9002_v59  ;;  %v9004_v22 = vld [vmem:[#allocation4 + $0x20] sm:$0xff]  ;;  %v9005_v2 = vld [vmem:[#allocation4 + $0x28] sm:$0xff]  ;;  %v9043_v56 = vpack.c.bf16 %v9036_v32, %v9035_v41  ;;  %v9037_v29 = vld [vmem:[#allocation4 + $0x31] sm:$0xff] }
 0xa75   : > { %13816 = vmatmul.mubr.bf16.vlgmr.msra.gmra.mxu1 %v9010_v43  ;;  %13783 = vmatprep.mubr.msk.bf16.mxu0 %vm14470_vm8, %v20497_v15  ;;  %v9012_v17 = vpack.c.bf16 %v9005_v2, %v9004_v22  ;;  %v9038_v14 = vld [vmem:[#allocation4 + $0x39] sm:$0xff]  ;;  %v9006_v50 = vld [vmem:[#allocation4 + $0x30] sm:$0xff]  ;;  %v9009_v59 = vld [vmem:[#allocation4 + $0x48] sm:$0xff] }
 0xa76   : > { %13819 = vmatprep.mubr.msk.bf16.mxu1 %vm14470_vm8, %v20497_v15  ;;  %13836 = vmatpush3.bf16.msra.mxu0 %v14366_v49  ;;  %v9007_v58 = vld [vmem:[#allocation4 + $0x38] sm:$0xff]  ;;  %v9044_v47 = vpack.c.bf16 %v9038_v14, %v9037_v29  ;;  %v14380_v55 = vld [vmem:[%s19779_s4 + $0x80] sm:$0xff]   ;;  %v9008_v7 = vld [vmem:[#allocation4 + $0x40] sm:$0xff] }
 0xa77   : > { %13872 = vmatpush3.bf16.msra.mxu1 %v14367_v60  ;;  %13837 = vmatprep.subr.bf16.mxu0 %v20497_v15  ;;  %v9013_v21 = vpack.c.bf16 %v9007_v58, %v9006_v50  ;;  %v14378_v43 = vld [vmem:[%s19779_s4 + $0x88] sm:$0xff]   ;;  %v9039_v60 = vld [vmem:[#allocation4 + $0x41] sm:$0xff]  ;;  %v14389_v14 = vld [vmem:[%s19779_s4 + $0x160] sm:$0xff]  }
 0xa78   : > { %13873 = vmatprep.subr.bf16.mxu1 %v20497_v15  ;;  %v14379_v49 = vld [vmem:[%s19779_s4 + $0xc8] sm:$0xff]   ;;  %v14383_v32 = vld [vmem:[%s19779_s4 + $0x178] sm:$0xff]   ;;  %v14384_v22 = vld [vmem:[%s19779_s4 + $0x130] sm:$0xff]  }
 0xa79   : > { %v14385_v2 = vld [vmem:[%s19779_s4 + $0x170] sm:$0xff]   ;;  %v14386_v29 = vld [vmem:[%s19779_s4 + $0x128] sm:$0xff]   ;;  %v9310_v50 = vld [vmem:[#allocation4 + $0x2a] sm:$0xff] }
 0xa7a   : > { %13838 = vmatpush3.bf16.msra.mxu0 %v14368_v9  ;;  %v14381_v9 = vld [vmem:[%s19779_s4 + $0xc0] sm:$0xff]   ;;  %v19376_v25 = vld [vmem:[#allocation4 + $0x24] sm:$0xff] }
 0xa7b   : > { %13874 = vmatpush3.bf16.msra.mxu1 %v14369_v38  ;;  %13839 = vmatprep.subr.bf16.mxu0 %v20497_v15  ;;  %v9040_v38 = vld [vmem:[#allocation4 + $0x49] sm:$0xff]  ;;  %v9473_v58 = vld [vmem:[#allocation4 + $0x32] sm:$0xff] }
 0xa7c   : > { %13875 = vmatprep.subr.bf16.mxu1 %v20497_v15  ;;  %13784 = vmatmul.mubr.bf16.gmra.mxu0 %v9042_v31  ;;  %v9045_v11 = vpack.c.bf16 %v9040_v38, %v9039_v60  ;;  %v9014_v31 = vpack.c.bf16 %v9009_v59, %v9008_v7  ;;  %v14392_v60 = vld [vmem:[%s19779_s4 + $0x110] sm:$0xff]   ;;  %v19405_v24 = vld [vmem:[#allocation4 + $0x34] sm:$0xff] }
 0xa7d   : > { %13820 = vmatmul.mubr.bf16.gmra.mxu1 %v9011_v28  ;;  %13787 = vmatprep.mubr.msk.bf16.mxu0 %vm14470_vm8, %v20497_v15  ;;  %v9305_v28 = vld [vmem:[#allocation4 + $0x2] sm:$0xff]  ;;  %v19463_v19 = vld [vmem:[#allocation4 + $0x54] sm:$0xff] }
 0xa7e   : > { %13823 = vmatprep.mubr.msk.bf16.mxu1 %vm14470_vm8, %v20497_v15  ;;  %13840 = vmatpush3.bf16.msra.mxu0 %v14370_v61  ;;  %v9306_v61 = vld [vmem:[#allocation4 + $0xa] sm:$0xff]  ;;  %v9475_v38 = vld [vmem:[#allocation4 + $0x42] sm:$0xff] }
 0xa7f   : > { %13876 = vmatpush3.bf16.msra.mxu1 %v14371_v5  ;;  %13841 = vmatprep.subr.bf16.mxu0 %v20497_v15  ;;  %v9469_v5 = vld [vmem:[#allocation4 + $0x12] sm:$0xff]  ;;  %v9315_v41 = vpack.c.bf16 %v9306_v61, %v9305_v28  ;;  %v19434_v36 = vld [vmem:[#allocation4 + $0x44] sm:$0xff] }
 0xa80   : > { %13877 = vmatprep.subr.bf16.mxu1 %v20497_v15  ;;  %v14396_v28 = vld [vmem:[%s19779_s4 + $0x100] sm:$0xff]   ;;  %v10122_v39 = vld [vmem:[#allocation4 + $0x25] sm:$0xff] }
 0xa82   : > { %13842 = vmatpush3.bf16.msra.mxu0 %v14372_v16  ;;  %v9478_v16 = vpack.c.bf16 %v9469_v5, %v9306_v61  ;;  %v14397_v61 = vld [vmem:[%s19779_s4 + $0x140] sm:$0xff]  }
 0xa83   : > { %13878 = vmatpush3.bf16.msra.mxu1 %v14373_v54  ;;  %13843 = vmatprep.subr.bf16.mxu0 %v20497_v15  ;;  %v14382_v54 = vld [vmem:[%s19779_s4 + $0x138] sm:$0xff]  }
 0xa84   : > { %13879 = vmatprep.subr.bf16.mxu1 %v20497_v15  ;;  %13788 = vmatmul.mubr.bf16.gmra.mxu0 %v9043_v56  ;;  %v9308_v56 = vld [vmem:[#allocation4 + $0x1a] sm:$0xff] }
 0xa85   : > { %13824 = vmatmul.mubr.bf16.gmra.mxu1 %v9012_v17  ;;  %13791 = vmatprep.mubr.msk.bf16.mxu0 %vm14470_vm8, %v20497_v15  ;;  %v9471_v17 = vld [vmem:[#allocation4 + $0x22] sm:$0xff] }
 0xa86   : > { %13827 = vmatprep.mubr.msk.bf16.mxu1 %vm14470_vm8, %v20497_v15  ;;  %13844 = vmatpush3.bf16.msra.mxu0 %v14374_v13  ;;  %v9316_v13 = vpack.c.bf16 %v9308_v56, %v9469_v5  ;;  %v9314_v5 = vld [vmem:[#allocation4 + $0x4a] sm:$0xff] }
 0xa87   : > { %13880 = vmatpush3.bf16.msra.mxu1 %v14375_v1  ;;  %13845 = vmatprep.subr.bf16.mxu0 %v20497_v15  ;;  %v9479_v1 = vpack.c.bf16 %v9471_v17, %v9308_v56  ;;  %v14398_v56 = vld [vmem:[%s19779_s4 + $0x1b8] sm:$0xff]  }
 0xa88   : > { %13881 = vmatprep.subr.bf16.mxu1 %v20497_v15 }
 0xa8a   : > { %13846 = vmatpush3.bf16.msra.mxu0 %v14376_v45  ;;  %v14387_v45 = vld [vmem:[%s19779_s4 + $0x168] sm:$0xff]  }
 0xa8b   : > { %13882 = vmatpush3.bf16.msra.mxu1 %v14377_v62  ;;  %13847 = vmatprep.subr.bf16.mxu0 %v20497_v15  ;;  %v14388_v62 = vld [vmem:[%s19779_s4 + $0x120] sm:$0xff]  }
 0xa8c   : > { %13883 = vmatprep.subr.bf16.mxu1 %v20497_v15  ;;  %13792 = vmatmul.mubr.bf16.gmra.mxu0 %v9044_v47  ;;  %v9317_v47 = vpack.c.bf16 %v9310_v50, %v9471_v17  ;;  %v14399_v17 = vld [vmem:[%s19779_s4 + $0x1f8] sm:$0xff]  }
 0xa8d   : > { %13828 = vmatmul.mubr.bf16.gmra.mxu1 %v9013_v21  ;;  %13795 = vmatprep.mubr.msk.bf16.mxu0 %vm14470_vm8, %v20497_v15  ;;  %v9480_v21 = vpack.c.bf16 %v9473_v58, %v9310_v50  ;;  %v19403_v50 = vld [vmem:[#allocation4 + $0x2c] sm:$0xff] }
 0xa8e   : > { %13831 = vmatprep.mubr.msk.bf16.mxu1 %vm14470_vm8, %v20497_v15  ;;  %13848 = vmatpush3.bf16.msra.mxu0 %v14378_v43  ;;  %v14390_v43 = vld [vmem:[%s19779_s4 + $0x118] sm:$0xff]   ;;  %v9806_v12 = vpack.c.bf16 %v19405_v24, %v19403_v50 }
 0xa8f   : > { %13884 = vmatpush3.bf16.msra.mxu1 %v14379_v49  ;;  %13849 = vmatprep.subr.bf16.mxu0 %v20497_v15  ;;  %v14391_v49 = vld [vmem:[%s19779_s4 + $0x158] sm:$0xff]  }
 0xa90   : > { %13885 = vmatprep.subr.bf16.mxu1 %v20497_v15 }
 0xa92   : > { %13850 = vmatpush3.bf16.msra.mxu0 %v14380_v55  ;;  %v14393_v55 = vld [vmem:[%s19779_s4 + $0x150] sm:$0xff]  }
 0xa93   : > { %13886 = vmatpush3.bf16.msra.mxu1 %v14381_v9  ;;  %13907 = vmatprep.subr.bf16.mxu0 %v20497_v15  ;;  %v9312_v9 = vld [vmem:[#allocation4 + $0x3a] sm:$0xff] }
 0xa94   : > { %13943 = vmatprep.subr.bf16.mxu1 %v20497_v15  ;;  %13796 = vmatmul.mubr.bf16.gmra.mxu0 %v9045_v11  ;;  %v9318_v7 = vpack.c.bf16 %v9312_v9, %v9473_v58  ;;  %v9481_v59 = vpack.c.bf16 %v9475_v38, %v9312_v9  ;;  %v14394_v11 = vld [vmem:[%s19779_s4 + $0x108] sm:$0xff]   ;;  %v14407_v58 = vld [vmem:[%s19779_s4 + $0x1d8] sm:$0xff]  }
 0xa95   : > { %13832 = vmatmul.mubr.bf16.gmra.mxu1 %v9014_v31  ;;  %13851 = vmatprep.mubr.msk.bf16.mxu0 %vm14470_vm8, %v20497_v15  ;;  %v14395_v31 = vld [vmem:[%s19779_s4 + $0x148] sm:$0xff]   ;;  %v19461_v9 = vld [vmem:[#allocation4 + $0x4c] sm:$0xff] }
 0xa96   : > { %13887 = vmatprep.mubr.msk.bf16.mxu1 %vm14470_vm8, %v20497_v15  ;;  %v9808_v63 = vpack.c.bf16 %v19463_v19, %v19461_v9 }
 0xa9c   : > { %13852 = vmatmul.mubr.bf16.vlgmr.msra.gmra.mxu0 %v9315_v41  ;;  %v9477_v41 = vld [vmem:[#allocation4 + $0x52] sm:$0xff] }
 0xa9d   : > { %13888 = vmatmul.mubr.bf16.vlgmr.msra.gmra.mxu1 %v9478_v16  ;;  %13855 = vmatprep.mubr.msk.bf16.mxu0 %vm14470_vm8, %v20497_v15  ;;  %v9319_v16 = vpack.c.bf16 %v9314_v5, %v9475_v38  ;;  %v10121_v38 = vld [vmem:[#allocation4 + $0x1d] sm:$0xff] }
 0xa9e   : > { %13891 = vmatprep.mubr.msk.bf16.mxu1 %vm14470_vm8, %v20497_v15  ;;  %13908 = vmatpush3.bf16.msra.mxu0 %v14382_v54  ;;  %v9482_v54 = vpack.c.bf16 %v9477_v41, %v9314_v5  ;;  %v20546_v5 = vld [vmem:[#allocation100_spill] sm:$0xff]  ;;  %v14417_v41 = vld [vmem:[%s19779_s4 + $0x220] sm:$0xff]  }
 0xa9f   : > { %13944 = vmatpush3.bf16.msra.mxu1 %v14383_v32  ;;  %13909 = vmatprep.subr.bf16.mxu0 %v20497_v15  ;;  %v9794_v32 = vld [vmem:[#allocation4 + $0xc] sm:$0xff] }
 0xaa0   : > { %13945 = vmatprep.subr.bf16.mxu1 %v20497_v15 }
 0xaa2   : > { %13910 = vmatpush3.bf16.msra.mxu0 %v14384_v22  ;;  %v19352_v22 = vld [vmem:[#allocation4 + $0x14] sm:$0xff] }
 0xaa3   : > { %13946 = vmatpush3.bf16.msra.mxu1 %v14385_v2  ;;  %13911 = vmatprep.subr.bf16.mxu0 %v20497_v15  ;;  %v9804_v2 = vpack.c.bf16 %v19352_v22, %v9794_v32  ;;  %v10125_v32 = vld [vmem:[#allocation4 + $0x3d] sm:$0xff] }
 0xaa4   : > { %13947 = vmatprep.subr.bf16.mxu1 %v20497_v15  ;;  %13856 = vmatmul.mubr.bf16.gmra.mxu0 %v9316_v13  ;;  %v14400_v13 = vld [vmem:[%s19779_s4 + $0x1b0] sm:$0xff]  }
 0xaa5   : > { %13892 = vmatmul.mubr.bf16.gmra.mxu1 %v9479_v1  ;;  %13859 = vmatprep.mubr.msk.bf16.mxu0 %vm14470_vm8, %v20497_v15  ;;  %v14401_v1 = vld [vmem:[%s19779_s4 + $0x1f0] sm:$0xff]  }
 0xaa6   : > { %13895 = vmatprep.mubr.msk.bf16.mxu1 %vm14470_vm8, %v20497_v15  ;;  %13912 = vmatpush3.bf16.msra.mxu0 %v14386_v29  ;;  %v19374_v29 = vld [vmem:[#allocation4 + $0x1c] sm:$0xff] }
 0xaa7   : > { %13948 = vmatpush3.bf16.msra.mxu1 %v14387_v45  ;;  %13913 = vmatprep.subr.bf16.mxu0 %v20497_v15  ;;  %v9805_v30 = vpack.c.bf16 %v19376_v25, %v19374_v29  ;;  %v14403_v45 = vld [vmem:[%s19779_s4 + $0x1e8] sm:$0xff]  }
 0xaa8   : > { %13949 = vmatprep.subr.bf16.mxu1 %v20497_v15 }
 0xaaa   : > { %13914 = vmatpush3.bf16.msra.mxu0 %v14388_v62  ;;  %v14404_v62 = vld [vmem:[%s19779_s4 + $0x1a0] sm:$0xff]  }
 0xaab   : > { %13950 = vmatpush3.bf16.msra.mxu1 %v14389_v14  ;;  %13915 = vmatprep.subr.bf16.mxu0 %v20497_v15  ;;  %v14405_v14 = vld [vmem:[%s19779_s4 + $0x1e0] sm:$0xff]  }
 0xaac   : > { %13951 = vmatprep.subr.bf16.mxu1 %v20497_v15  ;;  %13860 = vmatmul.mubr.bf16.gmra.mxu0 %v9317_v47  ;;  %v14408_v47 = vld [vmem:[%s19779_s4 + $0x190] sm:$0xff]  }
 0xaad   : > { %13896 = vmatmul.mubr.bf16.gmra.mxu1 %v9480_v21  ;;  %13863 = vmatprep.mubr.msk.bf16.mxu0 %vm14470_vm8, %v20497_v15  ;;  %v14409_v21 = vld [vmem:[%s19779_s4 + $0x1d0] sm:$0xff]  }
 0xaae   : > { %13899 = vmatprep.mubr.msk.bf16.mxu1 %vm14470_vm8, %v20497_v15  ;;  %13916 = vmatpush3.bf16.msra.mxu0 %v14390_v43  ;;  %v19432_v43 = vld [vmem:[#allocation4 + $0x3c] sm:$0xff] }
 0xaaf   : > { %13952 = vmatpush3.bf16.msra.mxu1 %v14391_v49  ;;  %13917 = vmatprep.subr.bf16.mxu0 %v20497_v15  ;;  %v9807_v48 = vpack.c.bf16 %v19434_v36, %v19432_v43  ;;  %v14411_v49 = vld [vmem:[%s19779_s4 + $0x1c8] sm:$0xff]  }
 0xab0   : > { %13953 = vmatprep.subr.bf16.mxu1 %v20497_v15 }
 0xab2   : > { %13918 = vmatpush3.bf16.msra.mxu0 %v14392_v60  ;;  %v14412_v60 = vld [vmem:[%s19779_s4 + $0x180] sm:$0xff]  }
 0xab3   : > { %13954 = vmatpush3.bf16.msra.mxu1 %v14393_v55  ;;  %13919 = vmatprep.subr.bf16.mxu0 %v20497_v15  ;;  %v14413_v55 = vld [vmem:[%s19779_s4 + $0x1c0] sm:$0xff]  }
 0xab4   : > { %13955 = vmatprep.subr.bf16.mxu1 %v20497_v15  ;;  %13864 = vmatmul.mubr.bf16.gmra.mxu0 %v9318_v7  ;;  %v9967_v7 = vpack.c.bf16 %v19374_v29, %v19352_v22  ;;  %v20548_v22 = vld [vmem:[#allocation98_spill] sm:$0xff]  ;;  %v20550_v29 = vld [vmem:[#allocation96_spill] sm:$0xff] }
 0xab5   : > { %13900 = vmatmul.mubr.bf16.gmra.mxu1 %v9481_v59  ;;  %13867 = vmatprep.mubr.msk.bf16.mxu0 %vm14470_vm8, %v20497_v15 }
 0xab6   : > { %13903 = vmatprep.mubr.msk.bf16.mxu1 %vm14470_vm8, %v20497_v15  ;;  %13920 = vmatpush3.bf16.msra.mxu0 %v14394_v11  ;;  %v14414_v11 = vld [vmem:[%s19779_s4 + $0x238] sm:$0xff]  }
 0xab7   : > { %13956 = vmatpush3.bf16.msra.mxu1 %v14395_v31  ;;  %13921 = vmatprep.subr.bf16.mxu0 %v20497_v15  ;;  %v9968_v31 = vpack.c.bf16 %v19403_v50, %v19376_v25  ;;  %v10126_v25 = vld [vmem:[#allocation4 + $0x45] sm:$0xff]  ;;  %v20552_v50 = vld [vmem:[#allocation94_spill] sm:$0xff] }
 0xab8   : > { %13957 = vmatprep.subr.bf16.mxu1 %v20497_v15 }
 0xaba   : > { %13922 = vmatpush3.bf16.msra.mxu0 %v14396_v28 }
 0xabb   : > { %13958 = vmatpush3.bf16.msra.mxu1 %v14397_v61  ;;  %13979 = vmatprep.subr.bf16.mxu0 %v20497_v15  ;;  %v14416_v61 = vld [vmem:[%s19779_s4 + $0x228] sm:$0xff]  }
 0xabc   : > { %14015 = vmatprep.subr.bf16.mxu1 %v20497_v15  ;;  %13868 = vmatmul.mubr.bf16.gmra.mxu0 %v9319_v16  ;;  %v20547_v16 = vld [vmem:[#allocation99_spill] sm:$0xff] }
 0xabd   : > { %13904 = vmatmul.mubr.bf16.gmra.mxu1 %v9482_v54  ;;  %13923 = vmatprep.mubr.msk.bf16.mxu0 %vm14470_vm8, %v20497_v15  ;;  %v10124_v54 = vld [vmem:[#allocation4 + $0x35] sm:$0xff] }
 0xabe   : > { %13959 = vmatprep.mubr.msk.bf16.mxu1 %vm14470_vm8, %v20497_v15 }
 0xac4   : > { %13924 = vmatmul.mubr.bf16.vlgmr.msra.gmra.mxu0 %v9641_v46  ;;  %v14402_v46 = vld [vmem:[%s19779_s4 + $0x1a8] sm:$0xff]  }
 0xac5   : > { %13960 = vmatmul.mubr.bf16.vlgmr.msra.gmra.mxu1 %v9804_v2  ;;  %13927 = vmatprep.mubr.msk.bf16.mxu0 %vm14470_vm8, %v20497_v15  ;;  %v9969_v2 = vpack.c.bf16 %v19432_v43, %v19405_v24  ;;  %v14421_v24 = vld [vmem:[%s19779_s4 + $0x200] sm:$0xff]  }
 0xac6   : > { %13963 = vmatprep.mubr.msk.bf16.mxu1 %vm14470_vm8, %v20497_v15  ;;  %13980 = vmatpush3.bf16.msra.mxu0 %v14398_v56  ;;  %v10132_v56 = vpack.c.bf16 %v10125_v32, %v10124_v54 }
 0xac7   : > { %14016 = vmatpush3.bf16.msra.mxu1 %v14399_v17  ;;  %13981 = vmatprep.subr.bf16.mxu0 %v20497_v15  ;;  %v14418_v17 = vld [vmem:[%s19779_s4 + $0x218] sm:$0xff]  }
 0xac8   : > { %14017 = vmatprep.subr.bf16.mxu1 %v20497_v15 }
 0xaca   : > { %13982 = vmatpush3.bf16.msra.mxu0 %v14400_v13  ;;  %v20549_v13 = vld [vmem:[#allocation97_spill] sm:$0xff] }
 0xacb   : > { %14018 = vmatpush3.bf16.msra.mxu1 %v14401_v1  ;;  %13983 = vmatprep.subr.bf16.mxu0 %v20497_v15  ;;  %v14419_v1 = vld [vmem:[%s19779_s4 + $0x210] sm:$0xff]  }
 0xacc   : > { %14019 = vmatprep.subr.bf16.mxu1 %v20497_v15  ;;  %13928 = vmatmul.mubr.bf16.gmra.mxu0 %v9642_v26  ;;  %v14406_v26 = vld [vmem:[%s19779_s4 + $0x198] sm:$0xff]  }
 0xacd   : > { %13964 = vmatmul.mubr.bf16.gmra.mxu1 %v9805_v30  ;;  %13931 = vmatprep.mubr.msk.bf16.mxu0 %vm14470_vm8, %v20497_v15  ;;  %v10127_v30 = vld [vmem:[#allocation4 + $0x4d] sm:$0xff] }
 0xace   : > { %13967 = vmatprep.mubr.msk.bf16.mxu1 %vm14470_vm8, %v20497_v15  ;;  %13984 = vmatpush3.bf16.msra.mxu0 %v14402_v46  ;;  %v20551_v46 = vld [vmem:[#allocation95_spill] sm:$0xff] }
 0xacf   : > { %14020 = vmatpush3.bf16.msra.mxu1 %v14403_v45  ;;  %13985 = vmatprep.subr.bf16.mxu0 %v20497_v15  ;;  %v9970_v45 = vpack.c.bf16 %v19461_v9, %v19434_v36  ;;  %v20558_v9 = vld [vmem:[#allocation88_spill] sm:$0xff] }
 0xad0   : > { %14021 = vmatprep.subr.bf16.mxu1 %v20497_v15 }
 0xad2   : > { %13986 = vmatpush3.bf16.msra.mxu0 %v14404_v62  ;;  %v10133_v62 = vpack.c.bf16 %v10127_v30, %v10126_v25 }
 0xad3   : > { %14022 = vmatpush3.bf16.msra.mxu1 %v14405_v14  ;;  %13987 = vmatprep.subr.bf16.mxu0 %v20497_v15  ;;  %v14420_v14 = vld [vmem:[%s19779_s4 + $0x208] sm:$0xff]  }
 0xad4   : > { %14023 = vmatprep.subr.bf16.mxu1 %v20497_v15  ;;  %13932 = vmatmul.mubr.bf16.gmra.mxu0 %v9643_v3  ;;  %v14410_v3 = vld [vmem:[%s19779_s4 + $0x188] sm:$0xff]  }
 0xad5   : > { %13968 = vmatmul.mubr.bf16.gmra.mxu1 %v9806_v12  ;;  %13935 = vmatprep.mubr.msk.bf16.mxu0 %vm14470_vm8, %v20497_v15  ;;  %v20553_v12 = vld [vmem:[#allocation93_spill] sm:$0xff] }
 0xad6   : > { %13971 = vmatprep.mubr.msk.bf16.mxu1 %vm14470_vm8, %v20497_v15  ;;  %13988 = vmatpush3.bf16.msra.mxu0 %v14406_v26  ;;  %v9966_v26 = vld [vmem:[#allocation4 + $0x5c] sm:$0xff] }
 0xad7   : > { %14024 = vmatpush3.bf16.msra.mxu1 %v14407_v58  ;;  %13989 = vmatprep.subr.bf16.mxu0 %v20497_v15  ;;  %v10128_v58 = vld [vmem:[#allocation4 + $0x55] sm:$0xff]  ;;  %v9971_v43 = vpack.c.bf16 %v9966_v26, %v19463_v19 }
 0xad8   : > { %14025 = vmatprep.subr.bf16.mxu1 %v20497_v15 }
 0xada   : > { %13990 = vmatpush3.bf16.msra.mxu0 %v14408_v47  ;;  %v10129_v47 = vld [vmem:[#allocation4 + $0x5d] sm:$0xff] }
 0xadb   : > { %14026 = vmatpush3.bf16.msra.mxu1 %v14409_v21  ;;  %13991 = vmatprep.subr.bf16.mxu0 %v20497_v15  ;;  %v20554_v21 = vld [vmem:[#allocation92_spill] sm:$0xff]  ;;  %v10134_v36 = vpack.c.bf16 %v10129_v47, %v10128_v58 }
 0xadc   : > { %14027 = vmatprep.subr.bf16.mxu1 %v20497_v15  ;;  %13936 = vmatmul.mubr.bf16.gmra.mxu0 %v9644_v4  ;;  %v10120_v4 = vld [vmem:[#allocation4 + $0x15] sm:$0xff] }
 0xadd   : > { %13972 = vmatmul.mubr.bf16.gmra.mxu1 %v9807_v48  ;;  %13939 = vmatprep.mubr.msk.bf16.mxu0 %vm14470_vm8, %v20497_v15  ;;  %v10130_v59 = vpack.c.bf16 %v10121_v38, %v10120_v4  ;;  %v20555_v48 = vld [vmem:[#allocation91_spill] sm:$0xff]  ;;  %v10285_v4 = vld [vmem:[#allocation4 + $0x26] sm:$0xff]  ;;  %v10286_v38 = vld [vmem:[#allocation4 + $0x2e] sm:$0xff] }
 0xade   : > { %13975 = vmatprep.mubr.msk.bf16.mxu1 %vm14470_vm8, %v20497_v15  ;;  %13992 = vmatpush3.bf16.msra.mxu0 %v14410_v3  ;;  %v20556_v3 = vld [vmem:[#allocation90_spill] sm:$0xff] }
 0xadf   : > { %14028 = vmatpush3.bf16.msra.mxu1 %v14411_v49  ;;  %13993 = vmatprep.subr.bf16.mxu0 %v20497_v15  ;;  %v10283_v49 = vld [vmem:[#allocation4 + $0x16] sm:$0xff] }
 0xae0   : > { %14029 = vmatprep.subr.bf16.mxu1 %v20497_v15 }
 0xae2   : > { %13994 = vmatpush3.bf16.msra.mxu0 %v14412_v60  ;;  %v10284_v60 = vld [vmem:[#allocation4 + $0x1e] sm:$0xff] }
 0xae3   : > { %14030 = vmatpush3.bf16.msra.mxu1 %v14413_v55  ;;  %14051 = vmatprep.subr.bf16.mxu0 %v20497_v15  ;;  %v20557_v55 = vld [vmem:[#allocation89_spill] sm:$0xff]  ;;  %v10293_v19 = vpack.c.bf16 %v10284_v60, %v10283_v49 }
 0xae4   : > { %14087 = vmatprep.subr.mxu1 %v20497_v15  ;;  %13940 = vmatmul.mubr.bf16.gmra.mxu0 %v9645_v0  ;;  %v10123_v0 = vld [vmem:[#allocation4 + $0x2d] sm:$0xff] }
 0xae5   : > { %13976 = vmatmul.mubr.bf16.gmra.mxu1 %v9808_v63  ;;  %13995 = vmatprep.mubr.msk.bf16.mxu0 %vm14470_vm8, %v20497_v15  ;;  %v10131_v28 = vpack.c.bf16 %v10123_v0, %v10122_v39  ;;  %v20559_v63 = vld [vmem:[#allocation87_spill] sm:$0xff]  ;;  %v10289_v39 = vld [vmem:[#allocation4 + $0x46] sm:$0xff]  ;;  %v10290_v0 = vld [vmem:[#allocation4 + $0x4e] sm:$0xff] }
 0xae6   : > { %14031 = vmatprep.mubr.msk.bf16.mxu1 %vm14470_vm8, %v20497_v15 }
 0xaec   : > { %13996 = vmatmul.mubr.bf16.vlgmr.msra.gmra.mxu0 %v9967_v7  ;;  %v10294_v7 = vpack.c.bf16 %v10286_v38, %v10285_v4 }
 0xaed   : > { %14032 = vmatmul.mubr.bf16.vlgmr.msra.gmra.mxu1 %v10130_v59  ;;  %13999 = vmatprep.mubr.msk.bf16.mxu0 %vm14470_vm8, %v20497_v15  ;;  %v10287_v59 = vld [vmem:[#allocation4 + $0x36] sm:$0xff] }
 0xaee   : > { %14035 = vmatprep.mubr.msk.bf16.mxu1 %vm14470_vm8, %v20497_v15  ;;  %14052 = vmatpush3.bf16.msra.mxu0 %v14414_v11  ;;  %v10288_v11 = vld [vmem:[#allocation4 + $0x3e] sm:$0xff] }
 0xaef   : > { %14088 = vmatpush3.msra.mxu1 %v20506_v35  ;;  %14053 = vmatprep.subr.bf16.mxu0 %v20497_v15 }
 0xaf0   : > { %14089 = vmatprep.subr.mxu1 %v20497_v15 }
 0xaf1   : > { %14090 = vmatpush3.msra.mxu1 %v20507_v37 }
 0xaf2   : > { %14091 = vmatprep.subr.mxu1 %v20497_v15  ;;  %14054 = vmatpush3.bf16.msra.mxu0 %v14415_v57  ;;  %v10295_v57 = vpack.c.bf16 %v10288_v11, %v10287_v59 }
 0xaf3   : > { %14092 = vmatpush3.msra.mxu1 %v20546_v5  ;;  %14055 = vmatprep.subr.bf16.mxu0 %v20497_v15 }
 0xaf4   : > { %14093 = vmatprep.subr.mxu1 %v20497_v15  ;;  %14000 = vmatmul.mubr.bf16.gmra.mxu0 %v9968_v31  ;;  %v10296_v31 = vpack.c.bf16 %v10290_v0, %v10289_v39 }
 0xaf5   : > { %14036 = vmatmul.mubr.bf16.gmra.mxu1 %v10131_v28  ;;  %14003 = vmatprep.mubr.msk.bf16.mxu0 %vm14470_vm8, %v20497_v15  ;;  %v10291_v28 = vld [vmem:[#allocation4 + $0x56] sm:$0xff] }
 0xaf6   : > { %14039 = vmatprep.mubr.msk.bf16.mxu1 %vm14470_vm8, %v20497_v15  ;;  %14056 = vmatpush3.bf16.msra.mxu0 %v14416_v61  ;;  %v10292_v61 = vld [vmem:[#allocation4 + $0x5e] sm:$0xff] }
 0xaf7   : > { %14094 = vmatpush3.msra.mxu1 %v20547_v16  ;;  %14057 = vmatprep.subr.bf16.mxu0 %v20497_v15 }
 0xaf8   : > { %14095 = vmatprep.subr.mxu1 %v20497_v15 }
 0xaf9   : > { %14096 = vmatpush3.msra.mxu1 %v20548_v22 }
 0xafa   : > { %14097 = vmatprep.subr.mxu1 %v20497_v15  ;;  %14058 = vmatpush3.bf16.msra.mxu0 %v14417_v41  ;;  %v10297_v41 = vpack.c.bf16 %v10292_v61, %v10291_v28 }
 0xafb   : > { %14098 = vmatpush3.msra.mxu1 %v20549_v13  ;;  %14059 = vmatprep.subr.bf16.mxu0 %v20497_v15 }
 0xafc   : > { %14099 = vmatprep.subr.mxu1 %v20497_v15  ;;  %14004 = vmatmul.mubr.bf16.gmra.mxu0 %v9969_v2 }
 0xafd   : > { %14040 = vmatmul.mubr.bf16.gmra.mxu1 %v10132_v56  ;;  %14007 = vmatprep.mubr.msk.bf16.mxu0 %vm14470_vm8, %v20497_v15 }
 0xafe   : > { %14043 = vmatprep.mubr.msk.bf16.mxu1 %vm14470_vm8, %v20497_v15  ;;  %14060 = vmatpush3.bf16.msra.mxu0 %v14418_v17 }
 0xaff   : > { %14100 = vmatpush3.msra.mxu1 %v20550_v29  ;;  %14061 = vmatprep.subr.bf16.mxu0 %v20497_v15 }
 0xb00   : > { %14101 = vmatprep.subr.mxu1 %v20497_v15 }
 0xb01   : > { %14102 = vmatpush3.msra.mxu1 %v20551_v46 }
 0xb02   : > { %14103 = vmatprep.subr.mxu1 %v20497_v15  ;;  %14062 = vmatpush3.bf16.msra.mxu0 %v14419_v1 }
 0xb03   : > { %14104 = vmatpush3.msra.mxu1 %v20552_v50  ;;  %14063 = vmatprep.subr.bf16.mxu0 %v20497_v15 }
 0xb04   : > { %14105 = vmatprep.subr.mxu1 %v20497_v15  ;;  %14008 = vmatmul.mubr.bf16.gmra.mxu0 %v9970_v45 }
 0xb05   : > { %14044 = vmatmul.mubr.bf16.gmra.mxu1 %v10133_v62  ;;  %14011 = vmatprep.mubr.msk.bf16.mxu0 %vm14470_vm8, %v20497_v15 }
 0xb06   : > { %14047 = vmatprep.mubr.msk.bf16.mxu1 %vm14470_vm8, %v20497_v15  ;;  %14064 = vmatpush3.bf16.msra.mxu0 %v14420_v14 }
 0xb07   : > { %14106 = vmatpush3.msra.mxu1 %v20553_v12  ;;  %14065 = vmatprep.subr.bf16.mxu0 %v20497_v15 }
 0xb08   : > { %14107 = vmatprep.subr.mxu1 %v20497_v15 }
 0xb09   : > { %14108 = vmatpush3.msra.mxu1 %v20554_v21 }
 0xb0a   : > { %14109 = vmatprep.subr.mxu1 %v20497_v15  ;;  %14066 = vmatpush3.bf16.msra.mxu0 %v14421_v24 }
 0xb0b   : > { %14110 = vmatpush3.msra.mxu1 %v20555_v48  ;;  %14122 = vmatprep.subr.mxu0 %v20497_v15 }
 0xb0c   : > { %14111 = vmatprep.subr.mxu1 %v20497_v15  ;;  %14012 = vmatmul.mubr.bf16.gmra.mxu0 %v9971_v43 }
 0xb0d   : > { %14048 = vmatmul.mubr.bf16.gmra.mxu1 %v10134_v36  ;;  %14067 = vmatprep.mubr.msk.bf16.mxu0 %vm14470_vm8, %v20497_v15 }
 0xb0e   : > { %14112 = vmatpush3.msra.mxu1 %v20556_v3  ;;  %14119 = vmatprep.mubr.msk.f32.mxu1 %vm14470_vm8, %v20497_v15 }
 0xb0f   : > { %14113 = vmatprep.subr.mxu1 %v20497_v15 }
 0xb10   : > { %14114 = vmatpush3.msra.mxu1 %v20557_v55 }
 0xb11   : > { %14115 = vmatprep.subr.mxu1 %v20497_v15 }
 0xb12   : > { %14116 = vmatpush3.msra.mxu1 %v20558_v9 }
 0xb13   : > { %14117 = vmatprep.subr.mxu1 %v20497_v15 }
 0xb14   : > { %14118 = vmatpush3.msra.mxu1 %v20559_v63  ;;  %14068 = vmatmul.mubr.bf16.vlgmr.msra.gmra.mxu0 %v10293_v19 }
 0xb15   : > { %14071 = vmatprep.mubr.msk.bf16.mxu0 %vm14470_vm8, %v20497_v15  ;;  %14123 = vmatpush3.msra.mxu0 %v20506_v35 }
 0xb16   : > { %14124 = vmatprep.subr.mxu0 %v20497_v15 }
 0xb17   : > { %14125 = vmatpush3.msra.mxu0 %v20507_v37 }
 0xb18   : > { %14126 = vmatprep.subr.mxu0 %v20497_v15 }
 0xb19   : > { %14127 = vmatpush3.msra.mxu0 %v20546_v5 }
 0xb1a   : > { %14128 = vmatprep.subr.mxu0 %v20497_v15 }
 0xb1b   : > { %14129 = vmatpush3.msra.mxu0 %v20547_v16 }
 0xb1c   : > { %14072 = vmatmul.mubr.bf16.gmra.mxu0 %v10294_v7  ;;  %14130 = vmatprep.subr.mxu0 %v20497_v15 }
 0xb1d   : > { %14075 = vmatprep.mubr.msk.bf16.mxu0 %vm14470_vm8, %v20497_v15  ;;  %14131 = vmatpush3.msra.mxu0 %v20548_v22 }
 0xb1e   : > { %14132 = vmatprep.subr.mxu0 %v20497_v15 }
 0xb1f   : > { %14133 = vmatpush3.msra.mxu0 %v20549_v13 }
 0xb20   : > { %14134 = vmatprep.subr.mxu0 %v20497_v15 }
 0xb21   : > { %14135 = vmatpush3.msra.mxu0 %v20550_v29 }
 0xb22   : > { %14136 = vmatprep.subr.mxu0 %v20497_v15 }
 0xb23   : > { %14137 = vmatpush3.msra.mxu0 %v20551_v46 }
 0xb24   : > { %14076 = vmatmul.mubr.bf16.gmra.mxu0 %v10295_v57  ;;  %14138 = vmatprep.subr.mxu0 %v20497_v15 }
 0xb25   : > { %14079 = vmatprep.mubr.msk.bf16.mxu0 %vm14470_vm8, %v20497_v15  ;;  %14139 = vmatpush3.msra.mxu0 %v20552_v50 }
 0xb26   : > { %14140 = vmatprep.subr.mxu0 %v20497_v15 }
 0xb27   : > { %14141 = vmatpush3.msra.mxu0 %v20553_v12 }
 0xb28   : > { %14142 = vmatprep.subr.mxu0 %v20497_v15 }
 0xb29   : > { %14143 = vmatpush3.msra.mxu0 %v20554_v21 }
 0xb2a   : > { %14144 = vmatprep.subr.mxu0 %v20497_v15 }
 0xb2b   : > { %14145 = vmatpush3.msra.mxu0 %v20555_v48 }
 0xb2c   : > { %14080 = vmatmul.mubr.bf16.gmra.mxu0 %v10296_v31  ;;  %14146 = vmatprep.subr.mxu0 %v20497_v15 }
 0xb2d   : > { %14083 = vmatprep.mubr.msk.bf16.mxu0 %vm14470_vm8, %v20497_v15  ;;  %14147 = vmatpush3.msra.mxu0 %v20556_v3 }
 0xb2e   : > { %14148 = vmatprep.subr.mxu0 %v20497_v15 }
 0xb2f   : > { %14149 = vmatpush3.msra.mxu0 %v20557_v55 }
 0xb30   : > { %14150 = vmatprep.subr.mxu0 %v20497_v15 }
 0xb31   : > { %14151 = vmatpush3.msra.mxu0 %v20558_v9 }
 0xb32   : > { %14152 = vmatprep.subr.mxu0 %v20497_v15 }
 0xb33   : > { %14153 = vmatpush3.msra.mxu0 %v20559_v63 }
 0xb34   : > { %v9145_v54 = vpop.f32.mrf.mxu0  ;;  %14084 = vmatmul.mubr.bf16.gmra.mxu0 %v10297_v41 }
 0xb35   : > { %v9266_v32 = vpop.f32.mrf.mxu1  ;;  %14154 = vmatprep.mubr.msk.f32.mxu0 %vm14470_vm8, %v20497_v15 }
 0xb36   : > { %v9267_v2 = vadd.f32 %v9266_v32, %v9145_v54  ;;  %v13781_v56 = vpop.f32.mrf.mxu0 }
 0xb37   : > { %v13817_v17 = vpop.f32.mrf.mxu1 }
 0xb38   : > { %v9148_v1 = vpop.f32.mrf.mxu0 }
 0xb39   : > { %v9269_v25 = vpop.f32.mrf.mxu1 }
 0xb3a   : > { %v9270_v30 = vadd.f32 %v9269_v25, %v9148_v1  ;;  %v13782_v45 = vpop.f32.mrf.mxu0 }
 0xb3b   : > { %v13818_v62 = vpop.f32.mrf.mxu1 }
 0xb3c   : > { %v9153_v14 = vpop.f32.mrf.mxu0 }
 0xb3d   : > { %v9274_v24 = vpop.f32.mrf.mxu1 }
 0xb3e   : > { %v9275_v26 = vadd.f32 %v9274_v24, %v9153_v14  ;;  %v13785_v58 = vpop.f32.mrf.mxu0 }
 0xb3f   : > { %v13821_v47 = vpop.f32.mrf.mxu1 }
 0xb40   : > { %v9156_v43 = vpop.f32.mrf.mxu0 }
 0xb41   : > { %v9277_v36 = vpop.f32.mrf.mxu1 }
 0xb42   : > { %v9278_v49 = vadd.f32 %v9277_v36, %v9156_v43  ;;  %v13786_v60 = vpop.f32.mrf.mxu0 }
 0xb43   : > { %v13822_v19 = vpop.f32.mrf.mxu1 }
 0xb44   : > { %v9161_v4 = vpop.f32.mrf.mxu0 }
 0xb45   : > { %v9282_v38 = vpop.f32.mrf.mxu1 }
 0xb46   : > { %v9283_v15 = vadd.f32 %v9282_v38, %v9161_v4  ;;  %v13789_v7 = vpop.f32.mrf.mxu0 }
 0xb47   : > { %v13825_v59 = vpop.f32.mrf.mxu1 }
 0xb48   : > { %v9164_v11 = vpop.f32.mrf.mxu0 }
 0xb49   : > { %v9285_v57 = vpop.f32.mrf.mxu1 }
 0xb4a   : > { %v9286_v39 = vadd.f32 %v9285_v57, %v9164_v11  ;;  %v13790_v0 = vpop.f32.mrf.mxu0 }
 0xb4b   : > { %v13826_v31 = vpop.f32.mrf.mxu1 }
 0xb4c   : > { %v9169_v28 = vpop.f32.mrf.mxu0 }
 0xb4d   : > { %v9290_v61 = vpop.f32.mrf.mxu1 }
 0xb4e   : > { %v9291_v41 = vadd.f32 %v9290_v61, %v9169_v28  ;;  %v13793_v54 = vpop.f32.mrf.mxu0 }
 0xb4f   : > { %v13829_v32 = vpop.f32.mrf.mxu1 }
 0xb50   : > { %v9172_v56 = vpop.f32.mrf.mxu0 }
 0xb51   : > { %v9293_v17 = vpop.f32.mrf.mxu1 }
 0xb52   : > { %v9294_v1 = vadd.f32 %v9293_v17, %v9172_v56  ;;  %v13794_v25 = vpop.f32.mrf.mxu0 }
 0xb53   : > { %v13830_v45 = vpop.f32.mrf.mxu1 }
 0xb54   : > { %v9177_v62 = vpop.f32.mrf.mxu0 }
 0xb55   : > { %v9298_v14 = vpop.f32.mrf.mxu1 }
 0xb56   : > { %v9299_v24 = vadd.f32 %v9298_v14, %v9177_v62  ;;  %v13797_v58 = vpop.f32.mrf.mxu0 }
 0xb57   : > { %v13833_v47 = vpop.f32.mrf.mxu1 }
 0xb58   : > { %v9180_v43 = vpop.f32.mrf.mxu0 }
 0xb59   : > { %v9301_v36 = vpop.f32.mrf.mxu1 }
 0xb5a   : > { %v9302_v60 = vadd.f32 %v9301_v36, %v9180_v43  ;;  %v13798_v19 = vpop.f32.mrf.mxu0 }
 0xb5b   : > { %v13834_v4 = vpop.f32.mrf.mxu1 }
 0xb5c   : > { %v9419_v38 = vpop.f32.mrf.mxu0 }
 0xb5d   : > { %v9582_v7 = vpop.f32.mrf.mxu1  ;;  %v9458_v59 = vadd.f32 %v9419_v38, %v9267_v2 }
 0xb5e   : > { %v13853_v11 = vpop.f32.mrf.mxu0 }
 0xb5f   : > { %v13889_v57 = vpop.f32.mrf.mxu1  ;;  %v9621_v0 = vadd.f32 %v9582_v7, %v9458_v59 }
 0xb60   : > { %v9422_v31 = vpop.f32.mrf.mxu0 }
 0xb61   : > { %v9585_v28 = vpop.f32.mrf.mxu1  ;;  %v9459_v61 = vadd.f32 %v9422_v31, %v9270_v30 }
 0xb62   : > { %v13854_v54 = vpop.f32.mrf.mxu0 }
 0xb63   : > { %v13890_v32 = vpop.f32.mrf.mxu1  ;;  %v9622_v56 = vadd.f32 %v9585_v28, %v9459_v61 }
 0xb64   : > { %v9427_v17 = vpop.f32.mrf.mxu0 }
 0xb65   : > { %v9590_v25 = vpop.f32.mrf.mxu1  ;;  %v9460_v45 = vadd.f32 %v9427_v17, %v9275_v26 }
 0xb66   : > { %v13857_v62 = vpop.f32.mrf.mxu0 }
 0xb67   : > { %v13893_v14 = vpop.f32.mrf.mxu1  ;;  %v9623_v58 = vadd.f32 %v9590_v25, %v9460_v45 }
 0xb68   : > { %v9430_v47 = vpop.f32.mrf.mxu0 }
 0xb69   : > { %v9593_v43 = vpop.f32.mrf.mxu1  ;;  %v9461_v36 = vadd.f32 %v9430_v47, %v9278_v49 }
 0xb6a   : > { %v13858_v19 = vpop.f32.mrf.mxu0 }
 0xb6b   : > { %v13894_v2 = vpop.f32.mrf.mxu1  ;;  %v9624_v4 = vadd.f32 %v9593_v43, %v9461_v36 }
 0xb6c   : > { %v9435_v38 = vpop.f32.mrf.mxu0 }
 0xb6d   : > { %v9598_v7 = vpop.f32.mrf.mxu1  ;;  %v9462_v59 = vadd.f32 %v9435_v38, %v9283_v15 }
 0xb6e   : > { %v13861_v11 = vpop.f32.mrf.mxu0 }
 0xb6f   : > { %v13897_v30 = vpop.f32.mrf.mxu1  ;;  %v9625_v57 = vadd.f32 %v9598_v7, %v9462_v59 }
 0xb70   : > { %v9438_v31 = vpop.f32.mrf.mxu0 }
 0xb71   : > { %v9601_v28 = vpop.f32.mrf.mxu1  ;;  %v9463_v61 = vadd.f32 %v9438_v31, %v9286_v39 }
 0xb72   : > { %v13862_v54 = vpop.f32.mrf.mxu0 }
 0xb73   : > { %v13898_v26 = vpop.f32.mrf.mxu1  ;;  %v9626_v32 = vadd.f32 %v9601_v28, %v9463_v61 }
 0xb74   : > { %v9443_v17 = vpop.f32.mrf.mxu0 }
 0xb75   : > { %v9606_v25 = vpop.f32.mrf.mxu1  ;;  %v9464_v45 = vadd.f32 %v9443_v17, %v9291_v41 }
 0xb76   : > { %v13865_v62 = vpop.f32.mrf.mxu0 }
 0xb77   : > { %v13901_v49 = vpop.f32.mrf.mxu1  ;;  %v9627_v14 = vadd.f32 %v9606_v25, %v9464_v45 }
 0xb78   : > { %v9446_v47 = vpop.f32.mrf.mxu0 }
 0xb79   : > { %v9609_v43 = vpop.f32.mrf.mxu1  ;;  %v9465_v36 = vadd.f32 %v9446_v47, %v9294_v1 }
 0xb7a   : > { %v13866_v19 = vpop.f32.mrf.mxu0 }
 0xb7b   : > { %v13902_v15 = vpop.f32.mrf.mxu1  ;;  %v9628_v2 = vadd.f32 %v9609_v43, %v9465_v36 }
 0xb7c   : > { %v9451_v38 = vpop.f32.mrf.mxu0 }
 0xb7d   : > { %v9614_v7 = vpop.f32.mrf.mxu1  ;;  %v9466_v59 = vadd.f32 %v9451_v38, %v9299_v24 }
 0xb7e   : > { %v13869_v11 = vpop.f32.mrf.mxu0 }
 0xb7f   : > { %v13905_v39 = vpop.f32.mrf.mxu1  ;;  %v9629_v30 = vadd.f32 %v9614_v7, %v9466_v59 }
 0xb80   : > { %v9454_v31 = vpop.f32.mrf.mxu0 }
 0xb81   : > { %v9617_v28 = vpop.f32.mrf.mxu1  ;;  %v9467_v61 = vadd.f32 %v9454_v31, %v9302_v60 }
 0xb82   : > { %v13870_v54 = vpop.f32.mrf.mxu0 }
 0xb83   : > { %v13906_v41 = vpop.f32.mrf.mxu1  ;;  %v9630_v26 = vadd.f32 %v9617_v28, %v9467_v61 }
 0xb84   : > { %v9745_v17 = vpop.f32.mrf.mxu0 }
 0xb85   : > { %v9908_v25 = vpop.f32.mrf.mxu1  ;;  %v9784_v45 = vadd.f32 %v9745_v17, %v9621_v0 }
 0xb86   : > { %v13925_v62 = vpop.f32.mrf.mxu0 }
 0xb87   : > { %v13961_v1 = vpop.f32.mrf.mxu1  ;;  %v19611_v49 = vadd.f32 %v9908_v25, %v9784_v45 }
 0xb88   : > { %v9748_v47 = vpop.f32.mrf.mxu0 }
 0xb89   : > { %v9911_v43 = vpop.f32.mrf.mxu1  ;;  %v9785_v36 = vadd.f32 %v9748_v47, %v9622_v56 }
 0xb8a   : > { %v13926_v24 = vpop.f32.mrf.mxu0 }
 0xb8b   : > { %v13962_v19 = vpop.f32.mrf.mxu1  ;;  %v19613_v15 = vadd.f32 %v9911_v43, %v9785_v36 }
 0xb8c   : > { %v9753_v38 = vpop.f32.mrf.mxu0 }
 0xb8d   : > { %v9916_v7 = vpop.f32.mrf.mxu1  ;;  %v9786_v60 = vadd.f32 %v9753_v38, %v9623_v58 }
 0xb8e   : > { %v13929_v59 = vpop.f32.mrf.mxu0 }
 0xb8f   : > { %v13965_v11 = vpop.f32.mrf.mxu1  ;;  %v19615_v39 = vadd.f32 %v9916_v7, %v9786_v60 }
 0xb90   : > { %v9756_v31 = vpop.f32.mrf.mxu0 }
 0xb91   : > { %v9919_v0 = vpop.f32.mrf.mxu1  ;;  %v9787_v28 = vadd.f32 %v9756_v31, %v9624_v4 }
 0xb92   : > { %v13930_v61 = vpop.f32.mrf.mxu0 }
 0xb93   : > { %v13966_v54 = vpop.f32.mrf.mxu1  ;;  %v19617_v41 = vadd.f32 %v9919_v0, %v9787_v28 }
 0xb94   : > { %v9761_v17 = vpop.f32.mrf.mxu0 }
 0xb95   : > { %v9924_v56 = vpop.f32.mrf.mxu1  ;;  %v9788_v25 = vadd.f32 %v9761_v17, %v9625_v57 }
 0xb96   : > { %v13933_v45 = vpop.f32.mrf.mxu0 }
 0xb97   : > { %v13969_v62 = vpop.f32.mrf.mxu1  ;;  %v19619_v1 = vadd.f32 %v9924_v56, %v9788_v25 }
 0xb98   : > { %v9764_v47 = vpop.f32.mrf.mxu0 }
 0xb99   : > { %v9927_v58 = vpop.f32.mrf.mxu1  ;;  %v9789_v43 = vadd.f32 %v9764_v47, %v9626_v32 }
 0xb9a   : > { %v13934_v36 = vpop.f32.mrf.mxu0 }
 0xb9b   : > { %v13970_v24 = vpop.f32.mrf.mxu1  ;;  %v19621_v19 = vadd.f32 %v9927_v58, %v9789_v43 }
 0xb9c   : > { %v9769_v38 = vpop.f32.mrf.mxu0 }
 0xb9d   : > { %v9932_v4 = vpop.f32.mrf.mxu1  ;;  %v9790_v7 = vadd.f32 %v9769_v38, %v9627_v14 }
 0xb9e   : > { %v13937_v60 = vpop.f32.mrf.mxu0 }
 0xb9f   : > { %v13973_v59 = vpop.f32.mrf.mxu1  ;;  %v19623_v11 = vadd.f32 %v9932_v4, %v9790_v7 }
 0xba0   : > { %v9772_v31 = vpop.f32.mrf.mxu0 }
 0xba1   : > { %v9935_v57 = vpop.f32.mrf.mxu1  ;;  %v9791_v0 = vadd.f32 %v9772_v31, %v9628_v2 }
 0xba2   : > { %v13938_v28 = vpop.f32.mrf.mxu0 }
 0xba3   : > { %v13974_v61 = vpop.f32.mrf.mxu1  ;;  %v19625_v54 = vadd.f32 %v9935_v57, %v9791_v0 }
 0xba4   : > { %v9777_v17 = vpop.f32.mrf.mxu0 }
 0xba5   : > { %v9940_v32 = vpop.f32.mrf.mxu1  ;;  %v9792_v56 = vadd.f32 %v9777_v17, %v9629_v30 }
 0xba6   : > { %v13941_v25 = vpop.f32.mrf.mxu0 }
 0xba7   : > { %v13977_v45 = vpop.f32.mrf.mxu1  ;;  %v19627_v62 = vadd.f32 %v9940_v32, %v9792_v56 }
 0xba8   : > { %v9780_v47 = vpop.f32.mrf.mxu0 }
 0xba9   : > { %v9943_v14 = vpop.f32.mrf.mxu1  ;;  %v9793_v58 = vadd.f32 %v9780_v47, %v9630_v26 }
 0xbaa   : > { %v13942_v43 = vpop.f32.mrf.mxu0 }
 0xbab   : > { %v13978_v36 = vpop.f32.mrf.mxu1  ;;  %v19629_v24 = vadd.f32 %v9943_v14, %v9793_v58 }
 0xbac   : > { %v10071_v38 = vpop.f32.mrf.mxu0 }
 0xbad   : > { %v10234_v2 = vpop.f32.mrf.mxu1 }
 0xbae   : > { %v13997_v4 = vpop.f32.mrf.mxu0 }
 0xbaf   : > { %v14033_v7 = vpop.f32.mrf.mxu1 }
 0xbb0   : > { %v10074_v60 = vpop.f32.mrf.mxu0 }
 0xbb1   : > { %v10237_v59 = vpop.f32.mrf.mxu1 }
 0xbb2   : > { %v13998_v31 = vpop.f32.mrf.mxu0 }
 0xbb3   : > { %v14034_v57 = vpop.f32.mrf.mxu1 }
 0xbb4   : > { %v10079_v30 = vpop.f32.mrf.mxu0 }
 0xbb5   : > { %v10242_v0 = vpop.f32.mrf.mxu1 }
 0xbb6   : > { %v14001_v28 = vpop.f32.mrf.mxu0 }
 0xbb7   : > { %v14037_v61 = vpop.f32.mrf.mxu1 }
 0xbb8   : > { %v10082_v17 = vpop.f32.mrf.mxu0 }
 0xbb9   : > { %v10245_v32 = vpop.f32.mrf.mxu1 }
 0xbba   : > { %v14002_v56 = vpop.f32.mrf.mxu0 }
 0xbbb   : > { %v14038_v26 = vpop.f32.mrf.mxu1 }
 0xbbc   : > { %v10087_v25 = vpop.f32.mrf.mxu0 }
 0xbbd   : > { %v10250_v45 = vpop.f32.mrf.mxu1 }
 0xbbe   : > { %v14005_v47 = vpop.f32.mrf.mxu0 }
 0xbbf   : > { %v14041_v14 = vpop.f32.mrf.mxu1 }
 0xbc0   : > { %v10090_v58 = vpop.f32.mrf.mxu0 }
 0xbc1   : > { %v10253_v43 = vpop.f32.mrf.mxu1 }
 0xbc2   : > { %v14006_v36 = vpop.f32.mrf.mxu0 }
 0xbc3   : > { %v14042_v4 = vpop.f32.mrf.mxu1 }
 0xbc4   : > { %v10095_v7 = vpop.f32.mrf.mxu0 }
 0xbc5   : > { %v10258_v3 = vpop.f32.mrf.mxu1 }
 0xbc6   : > { %v14009_v31 = vpop.f32.mrf.mxu0 }
 0xbc7   : > { %v14045_v57 = vpop.f32.mrf.mxu1 }
 0xbc8   : > { %v10098_v5 = vpop.f32.mrf.mxu0  ;;  %v10111_v57 = vadd.f32 %v10074_v60, %v19613_v15 }
 0xbc9   : > { %v19631_v9 = vpop.f32.mrf.mxu1 }
 0xbca   : > { %v14010_v28 = vpop.f32.mrf.mxu0  ;;  %v10274_v29 = vadd.f32 %v10237_v59, %v10111_v57 }
 0xbcb   : > { %v14046_v61 = vpop.f32.mrf.mxu1  ;;  %v10110_v28 = vadd.f32 %v10071_v38, %v19611_v49 }
 0xbcc   : > { %v19633_v12 = vpop.f32.mrf.mxu0  ;;  %v10112_v61 = vadd.f32 %v10079_v30, %v19615_v39 }
 0xbcd   : > { %v19635_v56 = vpop.f32.mrf.mxu1  ;;  %v10273_v37 = vadd.f32 %v10234_v2, %v10110_v28 }
 0xbce   : > { %v14013_v26 = vpop.f32.mrf.mxu0  ;;  %v10275_v46 = vadd.f32 %v10242_v0, %v10112_v61 }
 0xbcf   : > { %v14049_v47 = vpop.f32.mrf.mxu1  ;;  %v10113_v26 = vadd.f32 %v10082_v17, %v19617_v41 }
 0xbd0   : > { %v19637_v14 = vpop.f32.mrf.mxu0  ;;  %v10448_v47 = vsub.s32 3, %v20530_v42 }
 0xbd1   : > { %v19639_v13 = vpop.f32.mrf.mxu1  ;;  %v10276_v48 = vadd.f32 %v10245_v32, %v10113_v26 }
 0xbd2   : > { %v14014_v36 = vpop.f32.mrf.mxu0  ;;  %v19650_v49 = vrot.slane %v20531_v8, %v10448_v47 }
 0xbd3   : > { %v14050_v4 = vpop.f32.mrf.mxu1 }
 0xbd4   : > { %v10397_v16 = vpop.f32.mrf.mxu0 }
 0xbd5   : > { %v10436_v15 = vadd.f32 %v10397_v16, %v10273_v37 }
 0xbd6   : > { %v14069_v31 = vpop.f32.mrf.mxu0 }
 0xbd7   : > { %v10114_v31 = vadd.f32 %v10087_v25, %v19619_v1 }
 0xbd8   : > { %v10400_v21 = vpop.f32.mrf.mxu0 }
 0xbd9   : > { %v10437_v36 = vadd.f32 %v10400_v21, %v10274_v29  ;;  %v10277_v2 = vadd.f32 %v10250_v45, %v10114_v31  ;;  %v10115_v29 = vadd.f32 %v10090_v58, %v19621_v19  ;;  %v19657_v21 = vadd.f32 %v19650_v49, %v10436_v15 }
 0xbda   : > { %v14070_v22 = vpop.f32.mrf.mxu0 }
 0xbdb   : > { %v19653_v41 = vadd.f32 %v19650_v49, %v10437_v36  ;;  %v10278_v30 = vadd.f32 %v10253_v43, %v10115_v29  ;;  %v10460_v0 = vmax.f32 %v19657_v21, 0.0  ;;  %v10117_v43 = vadd.f32 %v10098_v5, %v19625_v54 }
 0xbdc   : > { %v10405_v35 = vpop.f32.mrf.mxu0 }
 0xbdd   : > { %v10438_v22 = vadd.f32 %v10405_v35, %v10275_v46  ;;  %v10461_v59 = vmax.f32 %v19653_v41, 0.0  ;;  %v10280_v15 = vadd.f32 %v19631_v9, %v10117_v43 }
 0xbde   : > { %v14073_v4 = vpop.f32.mrf.mxu0 }
 0xbdf   : > { %v19660_v37 = vadd.f32 %v19650_v49, %v10438_v22  ;;  %v10471_v45 = vmul.f32 %v10461_v59, %v18261_v33  ;;  %v10118_v22 = vadd.f32 %v19633_v12, %v19627_v62 }
 0xbe0   : > { %v10408_v39 = vpop.f32.mrf.mxu0 }
 0xbe1   : > { %v10439_v38 = vadd.f32 %v10408_v39, %v10276_v48  ;;  %v10116_v48 = vadd.f32 %v10095_v7, %v19623_v11  ;;  %v10462_v19 = vmax.f32 %v19660_v37, 0.0  ;;  %v10470_v7 = vmul.f32 %v10460_v0, %v18255_v18 }
 0xbe2   : > { %v14074_v60 = vpop.f32.mrf.mxu0  ;;  %v10497_v31 = vmul.f32 %v10471_v45, %v10471_v45  ;;  %v10281_v62 = vadd.f32 %v19635_v56, %v10118_v22 }
 0xbe3   : > { %v19664_v35 = vadd.f32 %v19650_v49, %v10439_v38  ;;  %v10279_v28 = vadd.f32 %v10258_v3, %v10116_v48  ;;  %v10472_v61 = vmul.f32 %v10462_v19, %v18272_v34  ;;  %v10496_v38 = vmul.f32 %v10470_v7, %v10470_v7 }
 0xbe4   : > { %v10413_v16 = vpop.f32.mrf.mxu0 }
 0xbe5   : > { %v10440_v1 = vadd.f32 %v10413_v16, %v10277_v2  ;;  %v10463_v58 = vmax.f32 %v19664_v35, 0.0  ;;  %v10498_v60 = vmul.f32 %v10472_v61, %v10472_v61  ;;  %v10480_v16 = vadd.f32 %v10471_v45, %v10470_v7 }
 0xbe6   : > { %v14077_v46 = vpop.f32.mrf.mxu0 }
 0xbe7   : > { %v19670_v17 = vadd.f32 %v19650_v49, %v10440_v1  ;;  %v10473_v5 = vmul.f32 %v10463_v58, %v18279_v53 }
 0xbe8   : > { %v10416_v32 = vpop.f32.mrf.mxu0 }
 0xbe9   : > { %v10441_v25 = vadd.f32 %v10416_v32, %v10278_v30  ;;  %v10464_v26 = vmax.f32 %v19670_v17, 0.0  ;;  %v10506_v30 = vadd.f32 %v10497_v31, %v10496_v38  ;;  %v10499_v48 = vmul.f32 %v10473_v5, %v10473_v5 }
 0xbea   : > { %v14078_v57 = vpop.f32.mrf.mxu0  ;;  %v10119_v32 = vadd.f32 %v19637_v14, %v19629_v24 }
 0xbeb   : > { %v19678_v11 = vadd.f32 %v19650_v49, %v10441_v25  ;;  %v10474_v2 = vmul.f32 %v10464_v26, %v18295_v52  ;;  %v10481_v25 = vadd.f32 %v10480_v16, %v10472_v61  ;;  %v10507_v45 = vadd.f32 %v10506_v30, %v10498_v60 }
 0xbec   : > { %v10421_v36 = vpop.f32.mrf.mxu0  ;;  %v10282_v24 = vadd.f32 %v19639_v13, %v10119_v32 }
 0xbed   : > { %v10442_v4 = vadd.f32 %v10421_v36, %v10279_v28  ;;  %v10465_v3 = vmax.f32 %v19678_v11, 0.0  ;;  %v10500_v28 = vmul.f32 %v10474_v2, %v10474_v2  ;;  %v10482_v7 = vadd.f32 %v10481_v25, %v10473_v5 }
 0xbee   : > { %v14081_v54 = vpop.f32.mrf.mxu0 }
 0xbef   : > { %v19695_v39 = vadd.f32 %v19650_v49, %v10442_v4  ;;  %v10475_v12 = vmul.f32 %v10465_v3, %v18303_v27  ;;  %v10508_v54 = vadd.f32 %v10507_v45, %v10499_v48  ;;  %v10483_v14 = vadd.f32 %v10482_v7, %v10474_v2 }
 0xbf0   : > { %v10424_v29 = vpop.f32.mrf.mxu0 }
 0xbf1   : > { %v10466_v1 = vmax.f32 %v19695_v39, 0.0  ;;  %v10443_v46 = vadd.f32 %v10424_v29, %v10280_v15  ;;  %v10501_v56 = vmul.f32 %v10475_v12, %v10475_v12  ;;  %v10509_v5 = vadd.f32 %v10508_v54, %v10500_v28 }
 0xbf2   : > { %v14082_v9 = vpop.f32.mrf.mxu0  ;;  %v10484_v60 = vadd.f32 %v10483_v14, %v10475_v12 }
 0xbf3   : > { %v19708_v57 = vadd.f32 %v19650_v49, %v10443_v46  ;;  %v10476_v36 = vmul.f32 %v10466_v1, %v18315_v23  ;;  %v10510_v30 = vadd.f32 %v10509_v5, %v10501_v56 }
 0xbf4   : > { %v10429_v43 = vpop.f32.mrf.mxu0 }
 0xbf5   : > { %v10467_v4 = vmax.f32 %v19708_v57, 0.0  ;;  %v10444_v31 = vadd.f32 %v10429_v43, %v10281_v62  ;;  %v10502_v29 = vmul.f32 %v10476_v36, %v10476_v36  ;;  %v10485_v9 = vadd.f32 %v10484_v60, %v10476_v36 }
 0xbf6   : > { %v14085_v15 = vpop.f32.mrf.mxu0 }
 0xbf7   : > { %v10477_v61 = vmul.f32 %v10467_v4, %v18324_v10  ;;  %v19719_v22 = vadd.f32 %v19650_v49, %v10444_v31  ;;  %v10511_v32 = vadd.f32 %v10510_v30, %v10502_v29 }
 0xbf8   : > { %v10432_v38 = vpop.f32.mrf.mxu0 }
 0xbf9   : > { %v10468_v16 = vmax.f32 %v19719_v22, 0.0  ;;  %v10445_v46 = vadd.f32 %v10432_v38, %v10282_v24  ;;  %v10503_v62 = vmul.f32 %v10477_v61, %v10477_v61  ;;  %v10486_v25 = vadd.f32 %v10485_v9, %v10477_v61 }
 0xbfa   : > { %v14086_v48 = vpop.f32.mrf.mxu0 }
 0xbfb   : > { %v10478_v13 = vmul.f32 %v10468_v16, %v18333_v51  ;;  %v19726_v2 = vadd.f32 %v19650_v49, %v10445_v46  ;;  %v10512_v28 = vadd.f32 %v10511_v32, %v10503_v62 }
 0xbfd   : > { %v10504_v45 = vmul.f32 %v10478_v13, %v10478_v13  ;;  %v10469_v12 = vmax.f32 %v19726_v2, 0.0  ;;  %v10487_v43 = vadd.f32 %v10486_v25, %v10478_v13 }
 0xbff   : > { %v10479_v7 = vmul.f32 %v10469_v12, %v18341_v20  ;;  %v10513_v36 = vadd.f32 %v10512_v28, %v10504_v45 }
 0xc01   : > { %v10488_v31 = vadd.f32 %v10487_v43, %v10479_v7  ;;  %v10505_v54 = vmul.f32 %v10479_v7, %v10479_v7 }
 0xc03   : > { %v10489_v56 = vrot.slane %v10488_v31, 4  ;;  %v10514_v15 = vadd.f32 %v10513_v36, %v10505_v54 }
 0xc05   : > { %v10490_v24 = vadd.f32 %v10489_v56, %v10488_v31  ;;  %v10515_v14 = vrot.slane %v10514_v15, 4  ;;  %v10667_v31 = vrot.slane %v20533_v40, 3 }
 0xc07   : > { %v10491_v49 = vrot.slane %v10490_v24, 2  ;;  %v10516_v5 = vadd.f32 %v10515_v14, %v10514_v15 }
 0xc09   : > { %v10492_v38 = vadd.f32 %v10491_v49, %v10490_v24  ;;  %v10517_v61 = vrot.slane %v10516_v5, 2  ;;  %v10701_v24 = vrot.slane %v20536_v44, %v10448_v47 }
 0xc0b   : > { %v10493_v60 = vrot.slane %v10492_v38, 1  ;;  %v10518_v29 = vadd.f32 %v10517_v61, %v10516_v5 }
 0xc0d   : > { %v10494_v46 = vadd.f32 %v10493_v60, %v10492_v38  ;;  %v10519_v30 = vrot.slane %v10518_v29, 1 }
 0xc0f   : > { %v10495_v48 = vmul.f32 0.015625, %v10494_v46  ;;  %v10520_v9 = vadd.f32 %v10519_v30, %v10518_v29 }
 0xc11   : > { %v10521_v62 = vmul.f32 0.015625, %v10520_v9  ;;  %14120 = vmatmul.mubr.f32.vlgmr.msra.gmra.mxu1 %v10495_v48 }
 0xc13   : > { %14155 = vmatmul.mubr.f32.vlgmr.msra.gmra.mxu0 %v10521_v62 }
 0xcd1   : > { %v10588_v13 = vpop.f32.mrf.mxu1 }
 0xcd2   : > { %v10662_v32 = vmul.f32 %v10588_v13, %v10588_v13  ;;  %v10673_v54 = vrot.slane %v10588_v13, %v20534_v6 }
 0xcd3   : > { %v14121_v25 = vpop.f32.mrf.mxu1  ;;  %v10658_v45 = vpop.f32.mrf.mxu0 }
 0xcd4   : > { %v10663_v43 = vsub.f32 %v10658_v45, %v10662_v32  ;;  %v10674_v14 = vsub.f32 %v10460_v0, %v10673_v54  ;;  %v10675_v49 = vsub.f32 %v10461_v59, %v10673_v54  ;;  %v10676_v5 = vsub.f32 %v10462_v19, %v10673_v54 }
 0xcd5   : > { %v14156_v28 = vpop.f32.mrf.mxu0  ;;  %v10677_v61 = vsub.f32 %v10463_v58, %v10673_v54  ;;  %v10678_v42 = vsub.f32 %v10464_v26, %v10673_v54  ;;  %v10679_v41 = vsub.f32 %v10465_v3, %v10673_v54  ;;  %v10681_v17 = vsub.f32 %v10467_v4, %v10673_v54 }
 0xcd6   : > { %v10664_v7 = vmax.f32 %v10663_v43, 0.0  ;;  %v10682_v3 = vsub.f32 %v10468_v16, %v10673_v54 }
 0xcd8   : > { %v10665_v36 = vadd.f32 1e-05, %v10664_v7 }
 0xcda   : > { %14428 = vrsqrt.f32 %v10665_v36 }
 0xce7   : > { %v14429_v56 = vpop.eup %14428 }
 0xce8   : > { %v10669_v15 = vmul.f32 %v14429_v56, %v10667_v31 }
 0xcea   : > { %v10687_v38 = vrot.slane %v10669_v15, %v20534_v6  ;;  %v10680_v6 = vsub.f32 %v10466_v1, %v10673_v54 }
 0xcec   : > { %v10688_v60 = vmul.f32 %v10687_v38, %v10674_v14  ;;  %v10689_v29 = vmul.f32 %v10687_v38, %v10675_v49  ;;  %v10690_v46 = vmul.f32 %v10687_v38, %v10676_v5  ;;  %v10691_v47 = vmul.f32 %v10687_v38, %v10677_v61 }
 0xced   : > { %v10692_v59 = vmul.f32 %v10687_v38, %v10678_v42  ;;  %v10693_v19 = vmul.f32 %v10687_v38, %v10679_v41  ;;  %v10694_v26 = vmul.f32 %v10687_v38, %v10680_v6  ;;  %v10695_v62 = vmul.f32 %v10687_v38, %v10681_v17 }
 0xcee   : > { %v10702_v21 = vadd.f32 %v10701_v24, %v10688_v60  ;;  %v10703_v0 = vadd.f32 %v10701_v24, %v10689_v29  ;;  %v10704_v37 = vadd.f32 %v10701_v24, %v10690_v46  ;;  %v10705_v35 = vadd.f32 %v10701_v24, %v10691_v47 }
 0xcef   : > { %v10706_v48 = vadd.f32 %v10701_v24, %v10692_v59  ;;  %v10707_v39 = vadd.f32 %v10701_v24, %v10693_v19  ;;  %v10708_v32 = vadd.f32 %v10701_v24, %v10694_v26  ;;  %v10709_v45 = vadd.f32 %v10701_v24, %v10695_v62 }
 0xcf0   : > { %v10712_v58 = vmul.f32 %v10702_v21, %v18255_v18  ;;  %v10713_v30 = vmul.f32 %v10703_v0, %v18261_v33  ;;  %v10714_v9 = vmul.f32 %v10704_v37, %v18272_v34  ;;  %v10715_v1 = vmul.f32 %v10705_v35, %v18279_v53 }
 0xcf1   : > { %v10683_v18 = vsub.f32 %v10469_v12, %v10673_v54  ;;  %v10696_v33 = vmul.f32 %v10687_v38, %v10682_v3  ;;  %v10716_v57 = vmul.f32 %v10706_v48, %v18295_v52  ;;  %v10717_v34 = vmul.f32 %v10707_v39, %v18303_v27 }
 0xcf2   : > { %v10722_v11 = vadd.f32 %v10713_v30, %v10712_v58  ;;  %v10718_v16 = vmul.f32 %v10708_v32, %v18315_v23  ;;  %v10719_v7 = vmul.f32 %v10709_v45, %v18324_v10 }
 0xcf3   : > { %v10697_v25 = vmul.f32 %v10687_v38, %v10683_v18  ;;  %v10710_v22 = vadd.f32 %v10701_v24, %v10696_v33 }
 0xcf4   : > { %v10723_v13 = vadd.f32 %v10722_v11, %v10714_v9 }
 0xcf5   : > { %v10711_v53 = vadd.f32 %v10701_v24, %v10697_v25  ;;  %v10720_v12 = vmul.f32 %v10710_v22, %v18333_v51 }
 0xcf6   : > { %v10724_v4 = vadd.f32 %v10723_v13, %v10715_v1 }
 0xcf7   : > { %v10721_v52 = vmul.f32 %v10711_v53, %v18341_v20 }
 0xcf8   : > { %v10725_v28 = vadd.f32 %v10724_v4, %v10716_v57 }
 0xcfa   : > { %v10726_v43 = vadd.f32 %v10725_v28, %v10717_v34 }
 0xcfc   : > { %v10727_v2 = vadd.f32 %v10726_v43, %v10718_v16 }
 0xcfe   : > { %v10728_v36 = vadd.f32 %v10727_v2, %v10719_v7 }
 0xd00   : > { %v10729_v31 = vadd.f32 %v10728_v36, %v10720_v12 }
 0xd02   : > { %v10730_v54 = vadd.f32 %v10729_v31, %v10721_v52 }
 0xd04   : > { %v10731_v56 = vrot.slane %v10730_v54, 4 }
 0xd06   : > { %v10732_v15 = vadd.f32 %v10731_v56, %v10730_v54 }
 0xd08   : > { %v10733_v27 = vrot.slane %v10732_v15, 2 }
 0xd0a   : > { %v10734_v14 = vadd.f32 %v10733_v27, %v10732_v15 }
 0xd0c   : > { %v10735_v49 = vrot.slane %v10734_v14, 1 }
 0xd0e   : > { %v10736_v5 = vadd.f32 %v10735_v49, %v10734_v14  ;;  %164 = sbr.rel (!%p162_p0) target bundleno = 59 (0x3b), region = 113 }
 0xd10   : > { %v10737_v23 = vmul.f32 0.015625, %v10736_v5 }
 0xd12   : > { %10739 = vst [vmem:[%s10738_s9] sm:$0x1] %v10737_v23 }

</bundles_post_ra>
